<compile_context>
chip_gen: v6e
topology: v6e:2x2x1
jax: 0.10.0
libtpu: 0.0.40
codegen_flags: <defaults>
</compile_context>

<pallas_src>
from functools import partial

import jax
import jax.numpy as jnp
from jax.experimental import pallas as pl
from jax.experimental.pallas import tpu as pltpu


def token_mixing_kernel(x_ref, wqkv_ref, wp_ref, bp_ref, out_ref, *attn_refs,
                        num_heads, head_dim, mxu_dtype):
    bt, N, C = x_ref.shape
    H, hd = num_heads, head_dim
    G = bt * H
    M = bt * N

    # ---- fused QKV: one flat (bt*N, C) @ (C, 3C) MXU matmul, f32 accum ----
    x2 = x_ref[...].reshape(M, C).astype(mxu_dtype)
    qkv = jnp.dot(x2, wqkv_ref[...], preferred_element_type=jnp.float32)   # (M, 3C)

    # ---- head split: (M, 3C) -> (bt*H, N, hd).  Static lane slices + a
    # leading-axis stack; layout plumbing only, no broadcast materialization.
    def heads_of(col0, dtype):
        parts = [
            qkv[:, col0 + h * hd: col0 + (h + 1) * hd].reshape(bt, 1, N, hd)
            for h in range(H)
        ]
        return jnp.concatenate(parts, axis=1).reshape(G, N, hd).astype(dtype)

    q = heads_of(0, mxu_dtype)          # softmax scale already folded into Wq
    k = heads_of(C, mxu_dtype)
    v = heads_of(2 * C, mxu_dtype)

    # ---- attention scores + numerically-safe f32 softmax ----
    # (intrinsically MXU-inefficient at hd == 8; per review, not worth tuning)
    s = jnp.einsum('gnd,gmd->gnm', q, k, preferred_element_type=jnp.float32)  # (G, N, N)
    s = s - jnp.max(s, axis=-1, keepdims=True)
    e = jnp.exp(s)
    # TODO(synk): use an exact reciprocal here if attn feeds losses/metrics.
    p = e * pl.reciprocal(jnp.sum(e, axis=-1, keepdims=True), approx=True)

    if attn_refs:   # attention-map writeback is optional (dominant HBM cost)
        attn_refs[0][...] = p.reshape(bt, H, N, N).astype(attn_refs[0].dtype)

    # ---- attn @ v, head concat, single (C, C) output projection ----
    o = jnp.einsum('gnm,gmd->gnd', p.astype(mxu_dtype), v,
                   preferred_element_type=jnp.float32)                    # (G, N, hd)
    o4 = o.reshape(bt, H, N, hd)
    o2 = jnp.concatenate([o4[:, h].reshape(M, hd) for h in range(H)],
                         axis=-1)                                         # (M, C)
    y = jnp.dot(o2.astype(mxu_dtype), wp_ref[...],
                preferred_element_type=jnp.float32)                       # (M, C)
    y = y + bp_ref[...]                                                   # (1, C) broadcast
    out_ref[...] = y.reshape(bt, N, C).astype(out_ref.dtype)


def _tensorcores_per_device():
    """2 on megacore-style chips (v7x / v5p / v4), 1 on v5e / v6e."""
    try:
        kind = jax.devices()[0].device_kind.lower()
    except Exception:
        return 1
    if "lite" in kind:                      # "TPU v5 lite" / "TPU v6 lite"
        return 1
    for tag in ("7x", "v7", "v5p", "v4"):
        if tag in kind:
            return 2
    return 1


def _pick_block_b(B, N, n_cores=1):
    """Batch rows per grid step.

    Targets bt*N (the M dim of the flat QKV / proj matmuls) ~256 so the MXU M
    dimension is filled and the ~0.35 us/step overhead is amortised.  On
    single-TC chips (v5e/v6e) grid=1 is fine; on 2-TC chips keep >= n_cores
    grid steps so both TensorCores get work via the 'parallel' batch axis.
    """
    bt = min(B, max(1, 256 // max(N, 1)))
    while B % bt:
        bt -= 1
    if n_cores > 1 and B > 1 and B // bt < n_cores:
        bt = max(1, B // n_cores)
        while B % bt:
            bt -= 1
    return bt


def token_mixing(x, wq, wkv, wp, bp, *, num_heads, block_b=None,
                 return_attn=True, attn_dtype=None, mxu_dtype=jnp.bfloat16):
    B, N, C = x.shape
    assert C % num_heads == 0
    hd = C // num_heads
    scale = hd ** (-0.5)
    attn_dtype = x.dtype if attn_dtype is None else attn_dtype

    # Wrapper-side weight prep (traced once, negligible): fold the softmax
    # scale into Wq, fuse Wq|Wk|Wv into one (C, 3C) operand so QKV is a single
    # flat MXU matmul, and pre-cast the MXU weight operands.
    wqkv = jnp.concatenate([wq * scale, wkv], axis=1).astype(mxu_dtype)   # (C, 3C)
    wp_c = wp.astype(mxu_dtype)                                           # (C, C)
    bp2 = bp.reshape(1, C).astype(jnp.float32)

    bt = block_b if block_b is not None else _pick_block_b(
        B, N, _tensorcores_per_device())
    assert B % bt == 0
    grid = (B // bt,)

    kernel = partial(token_mixing_kernel, num_heads=num_heads, head_dim=hd,
                     mxu_dtype=mxu_dtype)

    in_specs = [
        pl.BlockSpec((bt, N, C), lambda b: (b, 0, 0)),       # x
        pl.BlockSpec((C, 3 * C), lambda b: (0, 0)),          # Wq*scale | Wk | Wv
        pl.BlockSpec((C, C), lambda b: (0, 0)),              # Wproj
        pl.BlockSpec((1, C), lambda b: (0, 0)),              # bproj
    ]
    out_specs = [pl.BlockSpec((bt, N, C), lambda b: (b, 0, 0))]
    out_shapes = [jax.ShapeDtypeStruct((B, N, C), x.dtype)]
    if return_attn:
        out_specs.append(
            pl.BlockSpec((bt, num_heads, N, N), lambda b: (b, 0, 0, 0)))
        out_shapes.append(
            jax.ShapeDtypeStruct((B, num_heads, N, N), attn_dtype))

    grid_spec = pltpu.PrefetchScalarGridSpec(
        num_scalar_prefetch=0,
        grid=grid,
        in_specs=in_specs,
        out_specs=out_specs,
    )

    outs = pl.pallas_call(
        kernel,
        out_shape=tuple(out_shapes),
        grid_spec=grid_spec,
        compiler_params=pltpu.CompilerParams(
            dimension_semantics=("parallel",)),
    )(x, wqkv, wp_c, bp2)

    if return_attn:
        return outs[0], outs[1]
    return outs[0]


def token_mixing_reference(x, wq, wkv, wp, bp, *, num_heads):
    """Pure-JAX mirror of the PyTorch forward (quant=False, dropout=0)."""
    B, N, C = x.shape
    hd = C // num_heads
    scale = hd ** (-0.5)
    q = (x @ wq).reshape(B, N, num_heads, hd).transpose(0, 2, 1, 3)
    kv = (x @ wkv).reshape(B, N, 2, num_heads, hd).transpose(2, 0, 3, 1, 4)
    k, v = kv[0], kv[1]
    attn = jax.nn.softmax((q * scale) @ jnp.swapaxes(k, -2, -1), axis=-1)
    o = (attn @ v).transpose(0, 2, 1, 3).reshape(B, N, C)
    y = o @ wp + bp
    return y, attn


if __name__ == "__main__":
    # Small shapes consistent with the module: dim=32, num_heads=4 (head_dim=8),
    # H=W=8 -> N=64, B=4.
    B, Hs, Ws, dim, num_heads = 4, 8, 8, 32, 4
    N = Hs * Ws

    key = jax.random.PRNGKey(0)
    kx, kq, kkv, kp, kb = jax.random.split(key, 5)

    x = jax.random.normal(kx, (B, N, dim), dtype=jnp.float32)

    # "trunc_normal_(std=0.02)"-style init (plain normal*0.02), stored as
    # (in, out) so the kernel computes x @ W (== PyTorch's x @ W.T).
    # qkv_bias=False -> no q/kv bias.  Proj bias is initialised to 0 in the
    # module; a small nonzero bias is used here to exercise the add path.
    wq = 0.02 * jax.random.normal(kq, (dim, dim), dtype=jnp.float32)
    wkv = 0.02 * jax.random.normal(kkv, (dim, 2 * dim), dtype=jnp.float32)
    wp = 0.02 * jax.random.normal(kp, (dim, dim), dtype=jnp.float32)
    bp = 0.02 * jax.random.normal(kb, (dim,), dtype=jnp.float32)

    out, attn = token_mixing(x, wq, wkv, wp, bp, num_heads=num_heads)
    out = jax.block_until_ready(out)
    attn = jax.block_until_ready(attn)

    # Also exercise the attn-writeback-free fast path.
    out_only = jax.block_until_ready(
        token_mixing(x, wq, wkv, wp, bp, num_heads=num_heads,
                     return_attn=False))

    # Sanity check against a pure-JAX reference (tolerance accounts for the
    # bf16 MXU operands and the EUP approx-reciprocal in the softmax).
    ref_out, ref_attn = token_mixing_reference(x, wq, wkv, wp, bp,
                                               num_heads=num_heads)
    assert out.shape == (B, N, dim)
    assert attn.shape == (B, num_heads, N, N)
    assert jnp.allclose(out, ref_out, atol=2e-3, rtol=2e-3)
    assert jnp.allclose(attn, ref_attn, atol=2e-3, rtol=2e-3)
    assert jnp.allclose(out_only, ref_out, atol=2e-3, rtol=2e-3)

    print("KERNEL_OK")
</pallas_src>

<mosaic_0001>
module attributes {stable_mosaic.version = 11 : i64} {
  func.func @token_mixing_kernel(%arg0: i32, %arg1: memref<4x64x32xf32, #tpu.memory_space<vmem>>, %arg2: memref<32x96xbf16, #tpu.memory_space<vmem>>, %arg3: memref<32x32xbf16, #tpu.memory_space<vmem>>, %arg4: memref<1x32xf32, #tpu.memory_space<vmem>>, %arg5: memref<4x64x32xf32, #tpu.memory_space<vmem>>, %arg6: memref<4x4x64x64xf32, #tpu.memory_space<vmem>>) attributes {dimension_semantics = [#tpu.dimension_semantics<parallel>], iteration_bounds = array<i64: 1>, scalar_prefetch = 0 : i64, scratch_operands = 0 : i64, tpu.core_type = #tpu.core_type<tc>, window_params = [{transform_indices = @transform_0, window_bounds = array<i64: 4, 64, 32>}, {pipeline_mode = #tpu.pipeline_mode<synchronous>, transform_indices = @transform_1, window_bounds = array<i64: 32, 96>}, {pipeline_mode = #tpu.pipeline_mode<synchronous>, transform_indices = @transform_2, window_bounds = array<i64: 32, 32>}, {pipeline_mode = #tpu.pipeline_mode<synchronous>, transform_indices = @transform_3, window_bounds = array<i64: 1, 32>}, {transform_indices = @transform_4, window_bounds = array<i64: 4, 64, 32>}, {transform_indices = @transform_5, window_bounds = array<i64: 4, 4, 64, 64>}]} {
    %c0 = arith.constant 0 : index
    %c0_0 = arith.constant 0 : index
    %c0_1 = arith.constant 0 : index
    %0 = vector.load %arg1[%c0, %c0_0, %c0_1] : memref<4x64x32xf32, #tpu.memory_space<vmem>>, vector<4x64x32xf32>
    %1 = vector.shape_cast %0 : vector<4x64x32xf32> to vector<256x32xf32>
    %2 = arith.truncf %1 : vector<256x32xf32> to vector<256x32xbf16>
    %c0_2 = arith.constant 0 : index
    %c0_3 = arith.constant 0 : index
    %3 = vector.load %arg2[%c0_2, %c0_3] : memref<32x96xbf16, #tpu.memory_space<vmem>>, vector<32x96xbf16>
    %cst = arith.constant dense<0.000000e+00> : vector<256x96xf32>
    %4 = tpu.matmul %2, %3, %cst {dimension_numbers = #tpu.dot_dimension_numbers<[1], [0], [0], [1], [0, 0, 1, 1], [], []>} : vector<256x32xbf16>, vector<32x96xbf16>, vector<256x96xf32> -> vector<256x96xf32>
    %5 = vector.extract_strided_slice %4 {offsets = [0, 0], sizes = [256, 8], strides = [1, 1]} : vector<256x96xf32> to vector<256x8xf32>
    %6 = vector.shape_cast %5 : vector<256x8xf32> to vector<4x1x64x8xf32>
    %7 = vector.extract_strided_slice %4 {offsets = [0, 8], sizes = [256, 8], strides = [1, 1]} : vector<256x96xf32> to vector<256x8xf32>
    %8 = vector.shape_cast %7 : vector<256x8xf32> to vector<4x1x64x8xf32>
    %9 = vector.extract_strided_slice %4 {offsets = [0, 16], sizes = [256, 8], strides = [1, 1]} : vector<256x96xf32> to vector<256x8xf32>
    %10 = vector.shape_cast %9 : vector<256x8xf32> to vector<4x1x64x8xf32>
    %11 = vector.extract_strided_slice %4 {offsets = [0, 24], sizes = [256, 8], strides = [1, 1]} : vector<256x96xf32> to vector<256x8xf32>
    %12 = vector.shape_cast %11 : vector<256x8xf32> to vector<4x1x64x8xf32>
    %13 = tpu.concatenate %6, %8, %10, %12 in 1 : vector<4x1x64x8xf32>, vector<4x1x64x8xf32>, vector<4x1x64x8xf32>, vector<4x1x64x8xf32> -> vector<4x4x64x8xf32>
    %14 = vector.shape_cast %13 : vector<4x4x64x8xf32> to vector<16x64x8xf32>
    %15 = arith.truncf %14 : vector<16x64x8xf32> to vector<16x64x8xbf16>
    %16 = vector.extract_strided_slice %4 {offsets = [0, 32], sizes = [256, 8], strides = [1, 1]} : vector<256x96xf32> to vector<256x8xf32>
    %17 = vector.shape_cast %16 : vector<256x8xf32> to vector<4x1x64x8xf32>
    %18 = vector.extract_strided_slice %4 {offsets = [0, 40], sizes = [256, 8], strides = [1, 1]} : vector<256x96xf32> to vector<256x8xf32>
    %19 = vector.shape_cast %18 : vector<256x8xf32> to vector<4x1x64x8xf32>
    %20 = vector.extract_strided_slice %4 {offsets = [0, 48], sizes = [256, 8], strides = [1, 1]} : vector<256x96xf32> to vector<256x8xf32>
    %21 = vector.shape_cast %20 : vector<256x8xf32> to vector<4x1x64x8xf32>
    %22 = vector.extract_strided_slice %4 {offsets = [0, 56], sizes = [256, 8], strides = [1, 1]} : vector<256x96xf32> to vector<256x8xf32>
    %23 = vector.shape_cast %22 : vector<256x8xf32> to vector<4x1x64x8xf32>
    %24 = tpu.concatenate %17, %19, %21, %23 in 1 : vector<4x1x64x8xf32>, vector<4x1x64x8xf32>, vector<4x1x64x8xf32>, vector<4x1x64x8xf32> -> vector<4x4x64x8xf32>
    %25 = vector.shape_cast %24 : vector<4x4x64x8xf32> to vector<16x64x8xf32>
    %26 = arith.truncf %25 : vector<16x64x8xf32> to vector<16x64x8xbf16>
    %27 = vector.extract_strided_slice %4 {offsets = [0, 64], sizes = [256, 8], strides = [1, 1]} : vector<256x96xf32> to vector<256x8xf32>
    %28 = vector.shape_cast %27 : vector<256x8xf32> to vector<4x1x64x8xf32>
    %29 = vector.extract_strided_slice %4 {offsets = [0, 72], sizes = [256, 8], strides = [1, 1]} : vector<256x96xf32> to vector<256x8xf32>
    %30 = vector.shape_cast %29 : vector<256x8xf32> to vector<4x1x64x8xf32>
    %31 = vector.extract_strided_slice %4 {offsets = [0, 80], sizes = [256, 8], strides = [1, 1]} : vector<256x96xf32> to vector<256x8xf32>
    %32 = vector.shape_cast %31 : vector<256x8xf32> to vector<4x1x64x8xf32>
    %33 = vector.extract_strided_slice %4 {offsets = [0, 88], sizes = [256, 8], strides = [1, 1]} : vector<256x96xf32> to vector<256x8xf32>
    %34 = vector.shape_cast %33 : vector<256x8xf32> to vector<4x1x64x8xf32>
    %35 = tpu.concatenate %28, %30, %32, %34 in 1 : vector<4x1x64x8xf32>, vector<4x1x64x8xf32>, vector<4x1x64x8xf32>, vector<4x1x64x8xf32> -> vector<4x4x64x8xf32>
    %36 = vector.shape_cast %35 : vector<4x4x64x8xf32> to vector<16x64x8xf32>
    %37 = arith.truncf %36 : vector<16x64x8xf32> to vector<16x64x8xbf16>
    "tpu.trace_start"() <{level = 10 : i32, message = "gnd,gmd->gnm"}> : () -> ()
    %cst_4 = arith.constant dense<0.000000e+00> : vector<16x64x64xf32>
    %38 = tpu.matmul %15, %26, %cst_4 {dimension_numbers = #tpu.dot_dimension_numbers<[2], [2], [1], [1], [0, 0, 0, 1, 1, 1], [0], [0]>} : vector<16x64x8xbf16>, vector<16x64x8xbf16>, vector<16x64x64xf32> -> vector<16x64x64xf32>
    "tpu.trace_stop"() : () -> ()
    %cst_5 = arith.constant dense<0xFF800000> : vector<16x64xf32>
    %39 = vector.multi_reduction <maximumf>, %38, %cst_5 [2] : vector<16x64x64xf32> to vector<16x64xf32>
    %40 = vector.shape_cast %39 : vector<16x64xf32> to vector<16x64x1xf32>
    %41 = vector.broadcast %40 : vector<16x64x1xf32> to vector<16x64x64xf32>
    %42 = arith.subf %38, %41 : vector<16x64x64xf32>
    %43 = math.exp %42 : vector<16x64x64xf32>
    %cst_6 = arith.constant dense<0.000000e+00> : vector<16x64xf32>
    %44 = vector.multi_reduction <add>, %43, %cst_6 [2] : vector<16x64x64xf32> to vector<16x64xf32>
    %45 = vector.shape_cast %44 : vector<16x64xf32> to vector<16x64x1xf32>
    %46 = tpu.reciprocal %45 {approx = true} : vector<16x64x1xf32> -> vector<16x64x1xf32>
    %47 = vector.broadcast %46 : vector<16x64x1xf32> to vector<16x64x64xf32>
    %48 = arith.mulf %43, %47 : vector<16x64x64xf32>
    %49 = vector.shape_cast %48 : vector<16x64x64xf32> to vector<4x4x64x64xf32>
    %c0_7 = arith.constant 0 : index
    %c0_8 = arith.constant 0 : index
    %c0_9 = arith.constant 0 : index
    %c0_10 = arith.constant 0 : index
    %50 = vector.load %arg6[%c0_7, %c0_8, %c0_9, %c0_10] : memref<4x4x64x64xf32, #tpu.memory_space<vmem>>, vector<4x4x64x64xf32>
    tpu.vector_store %arg6[%c0_7, %c0_8, %c0_9, %c0_10], %49 {strides = array<i32>} : memref<4x4x64x64xf32, #tpu.memory_space<vmem>>, vector<4x4x64x64xf32>,
    %51 = arith.truncf %48 : vector<16x64x64xf32> to vector<16x64x64xbf16>
    "tpu.trace_start"() <{level = 10 : i32, message = "gnm,gmd->gnd"}> : () -> ()
    %cst_11 = arith.constant dense<0.000000e+00> : vector<16x64x8xf32>
    %52 = tpu.matmul %51, %37, %cst_11 {dimension_numbers = #tpu.dot_dimension_numbers<[2], [1], [1], [2], [0, 0, 0, 1, 1, 2], [0], [0]>} : vector<16x64x64xbf16>, vector<16x64x8xbf16>, vector<16x64x8xf32> -> vector<16x64x8xf32>
    "tpu.trace_stop"() : () -> ()
    %53 = vector.shape_cast %52 : vector<16x64x8xf32> to vector<4x4x64x8xf32>
    %54 = vector.extract_strided_slice %53 {offsets = [0, 0, 0, 0], sizes = [4, 1, 64, 8], strides = [1, 1, 1, 1]} : vector<4x4x64x8xf32> to vector<4x1x64x8xf32>
    %55 = vector.shape_cast %54 : vector<4x1x64x8xf32> to vector<4x64x8xf32>
    %56 = vector.shape_cast %55 : vector<4x64x8xf32> to vector<256x8xf32>
    %57 = vector.extract_strided_slice %53 {offsets = [0, 1, 0, 0], sizes = [4, 1, 64, 8], strides = [1, 1, 1, 1]} : vector<4x4x64x8xf32> to vector<4x1x64x8xf32>
    %58 = vector.shape_cast %57 : vector<4x1x64x8xf32> to vector<4x64x8xf32>
    %59 = vector.shape_cast %58 : vector<4x64x8xf32> to vector<256x8xf32>
    %60 = vector.extract_strided_slice %53 {offsets = [0, 2, 0, 0], sizes = [4, 1, 64, 8], strides = [1, 1, 1, 1]} : vector<4x4x64x8xf32> to vector<4x1x64x8xf32>
    %61 = vector.shape_cast %60 : vector<4x1x64x8xf32> to vector<4x64x8xf32>
    %62 = vector.shape_cast %61 : vector<4x64x8xf32> to vector<256x8xf32>
    %63 = vector.extract_strided_slice %53 {offsets = [0, 3, 0, 0], sizes = [4, 1, 64, 8], strides = [1, 1, 1, 1]} : vector<4x4x64x8xf32> to vector<4x1x64x8xf32>
    %64 = vector.shape_cast %63 : vector<4x1x64x8xf32> to vector<4x64x8xf32>
    %65 = vector.shape_cast %64 : vector<4x64x8xf32> to vector<256x8xf32>
    %66 = tpu.concatenate %56, %59, %62, %65 in 1 : vector<256x8xf32>, vector<256x8xf32>, vector<256x8xf32>, vector<256x8xf32> -> vector<256x32xf32>
    %67 = arith.truncf %66 : vector<256x32xf32> to vector<256x32xbf16>
    %c0_12 = arith.constant 0 : index
    %c0_13 = arith.constant 0 : index
    %68 = vector.load %arg3[%c0_12, %c0_13] : memref<32x32xbf16, #tpu.memory_space<vmem>>, vector<32x32xbf16>
    %cst_14 = arith.constant dense<0.000000e+00> : vector<256x32xf32>
    %69 = tpu.matmul %67, %68, %cst_14 {dimension_numbers = #tpu.dot_dimension_numbers<[1], [0], [0], [1], [0, 0, 1, 1], [], []>} : vector<256x32xbf16>, vector<32x32xbf16>, vector<256x32xf32> -> vector<256x32xf32>
    %c0_15 = arith.constant 0 : index
    %c0_16 = arith.constant 0 : index
    %70 = vector.load %arg4[%c0_15, %c0_16] : memref<1x32xf32, #tpu.memory_space<vmem>>, vector<1x32xf32>
    %71 = vector.broadcast %70 : vector<1x32xf32> to vector<256x32xf32>
    %72 = arith.addf %69, %71 : vector<256x32xf32>
    %73 = vector.shape_cast %72 : vector<256x32xf32> to vector<4x64x32xf32>
    %c0_17 = arith.constant 0 : index
    %c0_18 = arith.constant 0 : index
    %c0_19 = arith.constant 0 : index
    %74 = vector.load %arg5[%c0_17, %c0_18, %c0_19] : memref<4x64x32xf32, #tpu.memory_space<vmem>>, vector<4x64x32xf32>
    tpu.vector_store %arg5[%c0_17, %c0_18, %c0_19], %73 {strides = array<i32>} : memref<4x64x32xf32, #tpu.memory_space<vmem>>, vector<4x64x32xf32>,
    return
  }
  func.func @transform_0(%arg0: i32) -> (i32, i32, i32) {
    %c0_i32 = arith.constant 0 : i32
    %c0_i32_0 = arith.constant 0 : i32
    %c0_i32_1 = arith.constant 0 : i32
    return %arg0, %c0_i32, %c0_i32_0 : i32, i32, i32
  }
  func.func @transform_1(%arg0: i32) -> (i32, i32) {
    %c0_i32 = arith.constant 0 : i32
    %c0_i32_0 = arith.constant 0 : i32
    %c0_i32_1 = arith.constant 0 : i32
    return %c0_i32, %c0_i32_0 : i32, i32
  }
  func.func @transform_2(%arg0: i32) -> (i32, i32) {
    %c0_i32 = arith.constant 0 : i32
    %c0_i32_0 = arith.constant 0 : i32
    %c0_i32_1 = arith.constant 0 : i32
    return %c0_i32, %c0_i32_0 : i32, i32
  }
  func.func @transform_3(%arg0: i32) -> (i32, i32) {
    %c0_i32 = arith.constant 0 : i32
    %c0_i32_0 = arith.constant 0 : i32
    %c0_i32_1 = arith.constant 0 : i32
    return %c0_i32, %c0_i32_0 : i32, i32
  }
  func.func @transform_4(%arg0: i32) -> (i32, i32, i32) {
    %c0_i32 = arith.constant 0 : i32
    %c0_i32_0 = arith.constant 0 : i32
    %c0_i32_1 = arith.constant 0 : i32
    return %arg0, %c0_i32, %c0_i32_0 : i32, i32, i32
  }
  func.func @transform_5(%arg0: i32) -> (i32, i32, i32, i32) {
    %c0_i32 = arith.constant 0 : i32
    %c0_i32_0 = arith.constant 0 : i32
    %c0_i32_1 = arith.constant 0 : i32
    %c0_i32_2 = arith.constant 0 : i32
    return %arg0, %c0_i32, %c0_i32_0, %c0_i32_1 : i32, i32, i32, i32
  }
}

</mosaic_0001>

<bundles_post_ra>
// kernel: tpu_custom_call.1
= control target key start
LH: loop header
LB: loop body
LE: loop exit
PB: predicated region body
PF: predicated region fallthrough
CT: control target
= control target key end

     0   :  { %vm85_vm0 = vcmask 261120   ;;  %s12226_s0 = inlined_call_operand.vmem [shape: f32[4,64,32], index: 0, kind: input, shape index: {}]   ;;  %s12227_s1 = inlined_call_operand.vmem [shape: bf16[32,96], index: 1, kind: input, shape index: {}]   ;;  %s12228_s2 = inlined_call_operand.vmem [shape: bf16[32,32], index: 2, kind: input, shape index: {}]   ;;  %s12229_s3 = inlined_call_operand.vmem [shape: f32[1,32], index: 3, kind: input, shape index: {}]   ;;  %s12230_s4 = inlined_call_operand.vmem [shape: f32[4,64,32], index: 4, kind: output, shape index: {0}]   ;;  %s12231_s5 = inlined_call_operand.hbm [shape: f32[4,4,64,64], index: 5, kind: output, shape index: {1}]  }
   0x1   :  { %v7698_v0 = vld [vmem:[%s12227_s1 + $0x8] sm:$0xff]   ;;  %v7699_v1 = vld [vmem:[%s12227_s1] sm:$0xff]   ;;  %v23_v5 = vld [vmem:[%s12226_s0 + $0x10] sm:$0xff] }
   0x2   :  { %6560 = vmatprep.subr.bf16.mxu0 %v7698_v0  ;;  %v21_v2 = vld [vmem:[%s12226_s0] sm:$0xff]  ;;  %v22_v3 = vld [vmem:[%s12226_s0 + $0x8] sm:$0xff]  ;;  %v24_v6 = vld [vmem:[%s12226_s0 + $0x18] sm:$0xff] }
   0x3   :  { %6561 = vmatpush3.bf16.msra.mxu0 %v7698_v0  ;;  %v53_v4 = vpack.c.bf16 %v22_v3, %v21_v2  ;;  %v25_v7 = vld [vmem:[%s12226_s0 + $0x20] sm:$0xff]  ;;  %v26_v8 = vld [vmem:[%s12226_s0 + $0x28] sm:$0xff]  ;;  %v54_v9 = vpack.c.bf16 %v24_v6, %v23_v5  ;;  %v27_v11 = vld [vmem:[%s12226_s0 + $0x30] sm:$0xff] }
   0x4   :  { %6562 = vmatprep.subr.bf16.mxu0 %v7699_v1  ;;  %v55_v10 = vpack.c.bf16 %v26_v8, %v25_v7  ;;  %v28_v12 = vld [vmem:[%s12226_s0 + $0x38] sm:$0xff]  ;;  %v29_v13 = vld [vmem:[%s12226_s0 + $0x40] sm:$0xff]  ;;  %v30_v14 = vld [vmem:[%s12226_s0 + $0x48] sm:$0xff] }
   0x5   :  { %6564 = vmatprep.mubr.msk.bf16.mxu0 %vm85_vm0, %v53_v4  ;;  %v56_v15 = vpack.c.bf16 %v28_v12, %v27_v11 }
   0x7   :  { %6563 = vmatpush3.bf16.msra.mxu0 %v7699_v1 }
   0xa   :  { %6565 = vmatmul.mubr.msk.bf16.vlgmr.msra.gmra.mxu0 %vm85_vm0, %v54_v9 }
   0xb   :  { %6568 = vmatprep.mubr.msk.bf16.mxu0 %vm85_vm0, %v55_v10 }
   0xc   :  { %11 = vsyncpa [#allocation3], 0  ;;  %v57_v16 = vpack.c.bf16 %v30_v14, %v29_v13  ;;  %v31_v17 = vld [vmem:[%s12226_s0 + $0x50] sm:$0xff]  ;;  %v32_v18 = vld [vmem:[%s12226_s0 + $0x58] sm:$0xff]  ;;  %vm691_vm1 = vcmask 64512   ;;  %s8236_s8 = smov 112  }
   0xd   :  { %v33_v19 = vld [vmem:[%s12226_s0 + $0x60] sm:$0xff]  ;;  %v34_v20 = vld [vmem:[%s12226_s0 + $0x68] sm:$0xff]  ;;  %v58_v21 = vpack.c.bf16 %v32_v18, %v31_v17  ;;  %v35_v23 = vld [vmem:[%s12226_s0 + $0x70] sm:$0xff]  ;;  %s8237_s9 = smov 120   ;;  %s8239_s10 = smov 96   ;;  %vm2296_vm2 = vcmask 523264  }
   0xe   :  { %v59_v22 = vpack.c.bf16 %v34_v20, %v33_v19  ;;  %v36_v24 = vld [vmem:[%s12226_s0 + $0x78] sm:$0xff]  ;;  %v37_v25 = vld [vmem:[%s12226_s0 + $0x80] sm:$0xff]  ;;  %v38_v26 = vld [vmem:[%s12226_s0 + $0x88] sm:$0xff]  ;;  %s8240_s11 = smov 64   ;;  %s8241_s12 = smov 8   ;;  %vm5737_vm3 = vcmask 130048  }
   0xf   :  { %v60_v27 = vpack.c.bf16 %v36_v24, %v35_v23  ;;  %v61_v28 = vpack.c.bf16 %v38_v26, %v37_v25  ;;  %v39_v29 = vld [vmem:[%s12226_s0 + $0x90] sm:$0xff]  ;;  %v40_v30 = vld [vmem:[%s12226_s0 + $0x98] sm:$0xff]  ;;  %v41_v31 = vld [vmem:[%s12226_s0 + $0xa0] sm:$0xff]  ;;  %s8242_s13 = smov 16   ;;  %s8243_s14 = smov 24   ;;  %vm5770_vm4 = vcmask 195584  }
  0x10   :  { %v42_v32 = vld [vmem:[%s12226_s0 + $0xa8] sm:$0xff]  ;;  %v62_v33 = vpack.c.bf16 %v40_v30, %v39_v29  ;;  %v43_v35 = vld [vmem:[%s12226_s0 + $0xb0] sm:$0xff]  ;;  %v44_v36 = vld [vmem:[%s12226_s0 + $0xb8] sm:$0xff] }
  0x11   :  { %v63_v34 = vpack.c.bf16 %v42_v32, %v41_v31  ;;  %v45_v37 = vld [vmem:[%s12226_s0 + $0xc0] sm:$0xff]  ;;  %v46_v38 = vld [vmem:[%s12226_s0 + $0xc8] sm:$0xff]  ;;  %v64_v39 = vpack.c.bf16 %v44_v36, %v43_v35  ;;  %v47_v41 = vld [vmem:[%s12226_s0 + $0xd0] sm:$0xff] }
  0x12   :  { %6569 = vmatmul.mubr.msk.bf16.gmra.mxu0 %vm85_vm0, %v56_v15  ;;  %v65_v40 = vpack.c.bf16 %v46_v38, %v45_v37  ;;  %v48_v42 = vld [vmem:[%s12226_s0 + $0xd8] sm:$0xff]  ;;  %v49_v43 = vld [vmem:[%s12226_s0 + $0xe0] sm:$0xff]  ;;  %v50_v44 = vld [vmem:[%s12226_s0 + $0xe8] sm:$0xff] }
  0x13   :  { %6572 = vmatprep.mubr.msk.bf16.mxu0 %vm85_vm0, %v57_v16  ;;  %v66_v45 = vpack.c.bf16 %v48_v42, %v47_v41  ;;  %v67_v46 = vpack.c.bf16 %v50_v44, %v49_v43  ;;  %v51_v47 = vld [vmem:[%s12226_s0 + $0xf0] sm:$0xff]  ;;  %v52_v48 = vld [vmem:[%s12226_s0 + $0xf8] sm:$0xff]  ;;  %s8238_s0 = smov 104  }
  0x14   :  { %v68_v49 = vpack.c.bf16 %v52_v48, %v51_v47 }
  0x1a   :  { %6573 = vmatmul.mubr.msk.bf16.gmra.mxu0 %vm85_vm0, %v58_v21 }
  0x1b   :  { %6576 = vmatprep.mubr.msk.bf16.mxu0 %vm85_vm0, %v59_v22 }
  0x22   :  { %6577 = vmatmul.mubr.msk.bf16.gmra.mxu0 %vm85_vm0, %v60_v27 }
  0x23   :  { %6580 = vmatprep.mubr.msk.bf16.mxu0 %vm85_vm0, %v61_v28 }
  0x2a   :  { %6581 = vmatmul.mubr.msk.bf16.gmra.mxu0 %vm85_vm0, %v62_v33 }
  0x2b   :  { %6584 = vmatprep.mubr.msk.bf16.mxu0 %vm85_vm0, %v63_v34 }
  0x32   :  { %6585 = vmatmul.mubr.msk.bf16.gmra.mxu0 %vm85_vm0, %v64_v39 }
  0x33   :  { %6588 = vmatprep.mubr.msk.bf16.mxu0 %vm85_vm0, %v65_v40 }
  0x3a   :  { %6589 = vmatmul.mubr.msk.bf16.gmra.mxu0 %vm85_vm0, %v66_v45 }
  0x3b   :  { %6592 = vmatprep.mubr.msk.bf16.mxu0 %vm85_vm0, %v67_v46 }
  0x42   :  { %6593 = vmatmul.mubr.msk.bf16.gmra.mxu0 %vm85_vm0, %v68_v49 }
  0xca   :  { %v6566_v50 = vpop.f32.mrf.mxu0 }
  0xcc   :  { %v168_v51 = vpop.f32.mrf.mxu0 }
  0xce   :  { %v6567_v52 = vpop.f32.mrf.mxu0 }
  0xcf   :  { %v7223_v53 = vpack.i.bf16 %v6567_v52, %v6566_v50  ;;  %v8399_v58 = vpack.c.bf16 %v6567_v52, %v6566_v50 }
  0xd0   :  { %v171_v54 = vpop.f32.mrf.mxu0 }
  0xd1   :  { %7224 = vrot.lane.b32.xlu0 %v7223_v53, %s8236_s8  ;;  %7219 = vrot.lane.b32.xlu1 %v7223_v53, %s8237_s9  ;;  %v615_v55 = vpack.c.bf16 %v171_v54, %v168_v51  ;;  %v7238_v56 = vpack.i.bf16 %v171_v54, %v168_v51 }
  0xd2   :  { %v6570_v57 = vpop.f32.mrf.mxu0 }
  0xd3   :  { %6604 = vmatprep.mubr.msk.bf16.mxu0 %vm691_vm1, %v615_v55 }
  0xd4   :  { %v184_v59 = vpop.f32.mrf.mxu0 }
  0xd5   :  { %7229 = vrot.lane.b32.xlu1 %v7223_v53, %s8238_s0  ;;  %7239 = vrot.lane.b32.xlu0 %v7238_v56, %s8236_s8 }
  0xd6   :  { %v6571_v60 = vpop.f32.mrf.mxu0 }
  0xd7   :  { %v7248_v61 = vpack.i.bf16 %v6571_v60, %v6570_v57  ;;  %v8415_v1 = vpack.c.bf16 %v6571_v60, %v6570_v57 }
  0xd8   :  { %v187_v62 = vpop.f32.mrf.mxu0 }
  0xd9   :  { %685 = vrot.lane.b32.xlu0 %v8399_v58, %s8239_s10  ;;  %7234 = vrot.lane.b32.xlu1 %v7238_v56, %s8237_s9  ;;  %v7263_v63 = vpack.i.bf16 %v187_v62, %v184_v59  ;;  %v8421_v3 = vpack.c.bf16 %v187_v62, %v184_v59 }
  0xda   :  { %v6574_v0 = vpop.f32.mrf.mxu0 }
  0xdc   :  { %v200_v2 = vpop.f32.mrf.mxu0 }
  0xdd   :  { %7244 = vrot.lane.b32.xlu1 %v7238_v56, %s8238_s0  ;;  %3897 = vrot.lane.b32.xlu0 %v615_v55, %s8240_s11 }
  0xde   :  { %v6575_v4 = vpop.f32.mrf.mxu0 }
  0xdf   :  { %v7288_v5 = vpack.i.bf16 %v6575_v4, %v6574_v0  ;;  %v8433_v10 = vpack.c.bf16 %v6575_v4, %v6574_v0 }
  0xe0   :  { %v203_v6 = vpop.f32.mrf.mxu0 }
  0xe1   :  { %3899 = vrot.lane.b32.xlu1 %v8399_v58, %s8240_s11  ;;  %7249 = vrot.lane.b32.xlu0 %v7248_v61, %s8237_s9  ;;  %v7293_v7 = vpack.i.bf16 %v203_v6, %v200_v2  ;;  %12422 = vst [vmem:[#allocation5_spill] sm:$0xff] %v8433_v10  ;;  %v8435_v11 = vpack.c.bf16 %v203_v6, %v200_v2 }
  0xe2   :  { %v6578_v8 = vpop.f32.mrf.mxu0 }
  0xe3   :  { %12423 = vst [vmem:[#allocation6_spill] sm:$0xff] %v8435_v11 }
  0xe4   :  { %v216_v9 = vpop.f32.mrf.mxu0 }
  0xe5   :  { %683 = vrot.lane.b32.xlu1 %v615_v55, %s8239_s10  ;;  %7254 = vrot.lane.b32.xlu0 %v7248_v61, %s8236_s8 }
  0xe6   :  { %v6579_v12 = vpop.f32.mrf.mxu0 }
  0xe7   :  { %v7318_v13 = vpack.i.bf16 %v6579_v12, %v6578_v8  ;;  %v8447_v18 = vpack.c.bf16 %v6579_v12, %v6578_v8 }
  0xe8   :  { %v219_v14 = vpop.f32.mrf.mxu0 }
  0xe9   :  { %7259 = vrot.lane.b32.xlu1 %v7248_v61, %s8238_s0  ;;  %7264 = vrot.lane.b32.xlu0 %v7263_v63, %s8237_s9  ;;  %v7323_v15 = vpack.i.bf16 %v219_v14, %v216_v9  ;;  %12424 = vst [vmem:[#allocation7_spill] sm:$0xff] %v8447_v18  ;;  %v8449_v19 = vpack.c.bf16 %v219_v14, %v216_v9 }
  0xea   :  { %v6582_v16 = vpop.f32.mrf.mxu0 }
  0xeb   :  { %12425 = vst [vmem:[#allocation8_spill] sm:$0xff] %v8449_v19 }
  0xec   :  { %v232_v17 = vpop.f32.mrf.mxu0 }
  0xed   :  { %7274 = vrot.lane.b32.xlu1 %v7263_v63, %s8238_s0  ;;  %7269 = vrot.lane.b32.xlu0 %v7263_v63, %s8236_s8 }
  0xee   :  { %v6583_v20 = vpop.f32.mrf.mxu0 }
  0xef   :  { %v7348_v21 = vpack.i.bf16 %v6583_v20, %v6582_v16  ;;  %v8461_v27 = vpack.c.bf16 %v6583_v20, %v6582_v16 }
  0xf0   :  { %v235_v22 = vpop.f32.mrf.mxu0 }
  0xf1   :  { %3903 = vrot.lane.b32.xlu1 %v8415_v1, %s8240_s11  ;;  %689 = vrot.lane.b32.xlu0 %v8415_v1, %s8239_s10  ;;  %v7353_v24 = vpack.i.bf16 %v235_v22, %v232_v17  ;;  %12426 = vst [vmem:[#allocation9_spill] sm:$0xff] %v8461_v27  ;;  %v8463_v28 = vpack.c.bf16 %v235_v22, %v232_v17 }
  0xf2   :  { %v6586_v23 = vpop.f32.mrf.mxu0 }
  0xf3   :  { %12427 = vst [vmem:[#allocation10_spill] sm:$0xff] %v8463_v28 }
  0xf4   :  { %v248_v25 = vpop.f32.mrf.mxu0 }
  0xf5   :  { %3901 = vrot.lane.b32.xlu0 %v8421_v3, %s8240_s11  ;;  %687 = vrot.lane.b32.xlu1 %v8421_v3, %s8239_s10 }
  0xf6   :  { %v6587_v26 = vpop.f32.mrf.mxu0 }
  0xf7   :  { %v7378_v30 = vpack.i.bf16 %v6587_v26, %v6586_v23  ;;  %v8475_v35 = vpack.c.bf16 %v6587_v26, %v6586_v23 }
  0xf8   :  { %v251_v29 = vpop.f32.mrf.mxu0 }
  0xf9   :  { %7289 = vrot.lane.b32.xlu1 %v7288_v5, %s8238_s0  ;;  %7279 = vrot.lane.b32.xlu0 %v7288_v5, %s8237_s9  ;;  %v7383_v32 = vpack.i.bf16 %v251_v29, %v248_v25  ;;  %12428 = vst [vmem:[#allocation11_spill] sm:$0xff] %v8475_v35  ;;  %v8477_v36 = vpack.c.bf16 %v251_v29, %v248_v25 }
  0xfa   :  { %v6590_v31 = vpop.f32.mrf.mxu0 }
  0xfb   :  { %12429 = vst [vmem:[#allocation12_spill] sm:$0xff] %v8477_v36 }
  0xfc   :  { %v264_v33 = vpop.f32.mrf.mxu0 }
  0xfd   :  { %7284 = vrot.lane.b32.xlu0 %v7288_v5, %s8236_s8  ;;  %7294 = vrot.lane.b32.xlu1 %v7293_v7, %s8237_s9 }
  0xfe   :  { %v6591_v34 = vpop.f32.mrf.mxu0 }
  0xff   :  { %v7408_v39 = vpack.i.bf16 %v6591_v34, %v6590_v31  ;;  %v8489_v47 = vpack.c.bf16 %v6591_v34, %v6590_v31 }
 0x100   :  { %v267_v37 = vpop.f32.mrf.mxu0 }
 0x101   :  { %7299 = vrot.lane.b32.xlu0 %v7293_v7, %s8236_s8  ;;  %7304 = vrot.lane.b32.xlu1 %v7293_v7, %s8238_s0  ;;  %v7413_v41 = vpack.i.bf16 %v267_v37, %v264_v33  ;;  %12430 = vst [vmem:[#allocation13_spill] sm:$0xff] %v8489_v47  ;;  %v8496_v51 = vpack.c.bf16 %v267_v37, %v264_v33 }
 0x102   :  { %v6594_v38 = vpop.f32.mrf.mxu0 }
 0x103   :  { %12431 = vst [vmem:[#allocation14_spill] sm:$0xff] %v8496_v51 }
 0x104   :  { %v280_v40 = vpop.f32.mrf.mxu0 }
 0x105   :  { %1090 = vrot.lane.b32.xlu0 %v8433_v10, %s8239_s10  ;;  %1088 = vrot.lane.b32.xlu1 %v8435_v11, %s8239_s10 }
 0x106   :  { %v6595_v42 = vpop.f32.mrf.mxu0 }
 0x107   :  { %v7438_v43 = vpack.i.bf16 %v6595_v42, %v6594_v38  ;;  %v8525_v8 = vpack.c.bf16 %v6595_v42, %v6594_v38 }
 0x108   :  { %v283_v44 = vpop.f32.mrf.mxu0 }
 0x109   :  { %7319 = vrot.lane.b32.xlu1 %v7318_v13, %s8238_s0  ;;  %7309 = vrot.lane.b32.xlu0 %v7318_v13, %s8237_s9  ;;  %v7443_v48 = vpack.i.bf16 %v283_v44, %v280_v40  ;;  %12434 = vst [vmem:[#allocation17_spill] sm:$0xff] %v8525_v8  ;;  %v8531_v9 = vpack.c.bf16 %v283_v44, %v280_v40 }
 0x10b   :  { %12435 = vst [vmem:[#allocation18_spill] sm:$0xff] %v8531_v9 }
 0x10d   :  { %7314 = vrot.lane.b32.xlu0 %v7318_v13, %s8236_s8  ;;  %7324 = vrot.lane.b32.xlu1 %v7323_v15, %s8237_s9 }
 0x111   :  { %7329 = vrot.lane.b32.xlu0 %v7323_v15, %s8236_s8  ;;  %7334 = vrot.lane.b32.xlu1 %v7323_v15, %s8238_s0 }
 0x115   :  { %1094 = vrot.lane.b32.xlu0 %v8447_v18, %s8239_s10  ;;  %1092 = vrot.lane.b32.xlu1 %v8449_v19, %s8239_s10 }
 0x119   :  { %7349 = vrot.lane.b32.xlu1 %v7348_v21, %s8238_s0  ;;  %7339 = vrot.lane.b32.xlu0 %v7348_v21, %s8237_s9 }
 0x11d   :  { %7344 = vrot.lane.b32.xlu0 %v7348_v21, %s8236_s8  ;;  %7354 = vrot.lane.b32.xlu1 %v7353_v24, %s8237_s9 }
 0x121   :  { %7359 = vrot.lane.b32.xlu0 %v7353_v24, %s8236_s8  ;;  %7364 = vrot.lane.b32.xlu1 %v7353_v24, %s8238_s0 }
 0x125   :  { %1494 = vrot.lane.b32.xlu0 %v8461_v27, %s8239_s10  ;;  %1492 = vrot.lane.b32.xlu1 %v8463_v28, %s8239_s10 }
 0x129   :  { %7379 = vrot.lane.b32.xlu1 %v7378_v30, %s8238_s0  ;;  %7369 = vrot.lane.b32.xlu0 %v7378_v30, %s8237_s9 }
 0x12d   :  { %7374 = vrot.lane.b32.xlu0 %v7378_v30, %s8236_s8  ;;  %7384 = vrot.lane.b32.xlu1 %v7383_v32, %s8237_s9 }
 0x131   :  { %7389 = vrot.lane.b32.xlu0 %v7383_v32, %s8236_s8  ;;  %7394 = vrot.lane.b32.xlu1 %v7383_v32, %s8238_s0 }
 0x135   :  { %1498 = vrot.lane.b32.xlu0 %v8475_v35, %s8239_s10  ;;  %1496 = vrot.lane.b32.xlu1 %v8477_v36, %s8239_s10 }
 0x139   :  { %7409 = vrot.lane.b32.xlu1 %v7408_v39, %s8238_s0  ;;  %7399 = vrot.lane.b32.xlu0 %v7408_v39, %s8237_s9 }
 0x13d   :  { %7404 = vrot.lane.b32.xlu0 %v7408_v39, %s8236_s8  ;;  %7414 = vrot.lane.b32.xlu1 %v7413_v41, %s8237_s9 }
 0x141   :  { %7419 = vrot.lane.b32.xlu0 %v7413_v41, %s8236_s8  ;;  %7424 = vrot.lane.b32.xlu1 %v7413_v41, %s8238_s0 }
 0x143   :  { %v7225_v45 = vpop.permute.xlu0 %7224  ;;  %v7220_v46 = vpop.permute.xlu1 %7219 }
 0x144   :  { %v7222_v52 = vunpack.i.h.bf16 %v7220_v46  ;;  %v7221_v53 = vunpack.i.l.bf16 %v7220_v46  ;;  %v7227_v12 = vunpack.i.h.bf16 %v7225_v45  ;;  %v7226_v13 = vunpack.i.l.bf16 %v7225_v45 }
 0x145   :  { %1898 = vrot.lane.b32.xlu0 %v8489_v47, %s8239_s10  ;;  %7439 = vrot.lane.b32.xlu1 %v7438_v43, %s8238_s0 }
 0x146   :  { %v8509_v0 = vpack.c.bf16 %v7222_v52, %v7221_v53  ;;  %v8541_v25 = vpack.c.bf16 %v7227_v12, %v7226_v13 }
 0x147   :  { %v7230_v49 = vpop.permute.xlu1 %7229  ;;  %v8494_v50 = vpop.permute.xlu0 %7239 }
 0x148   :  { %v7232_v60 = vunpack.i.h.bf16 %v7230_v49  ;;  %v7231_v61 = vunpack.i.l.bf16 %v7230_v49  ;;  %v7242_v39 = vunpack.i.h.bf16 %v8494_v50  ;;  %v7241_v40 = vunpack.i.l.bf16 %v8494_v50 }
 0x149   :  { %1896 = vrot.lane.b32.xlu0 %v8496_v51, %s8239_s10  ;;  %7444 = vrot.lane.b32.xlu1 %v7443_v48, %s8237_s9 }
 0x14a   :  { %v8518_v5 = vpack.c.bf16 %v7232_v60, %v7231_v61  ;;  %v8569_v46 = vpack.c.bf16 %v7242_v39, %v7241_v40 }
 0x14b   :  { %v8501_v54 = vpop.permute.xlu0 %685  ;;  %v7235_v55 = vpop.permute.xlu1 %7234 }
 0x14c   :  { %v7237_v56 = vunpack.i.h.bf16 %v7235_v55  ;;  %v7236_v57 = vunpack.i.l.bf16 %v7235_v55  ;;  %12439 = vst [vmem:[#allocation22_spill] sm:$0xff] %v8569_v46 }
 0x14d   :  { %7429 = vrot.lane.b32.xlu0 %v7438_v43, %s8237_s9  ;;  %7454 = vrot.lane.b32.xlu1 %v7443_v48, %s8238_s0 }
 0x14e   :  { %v8505_v59 = vpack.c.bf16 %v7237_v56, %v7236_v57 }
 0x14f   :  { %v7245_v62 = vpop.permute.xlu1 %7244  ;;  %v8507_v63 = vpop.permute.xlu0 %3897 }
 0x150   :  { %12432 = vst [vmem:[#allocation15_spill] sm:$0xff] %v8507_v63  ;;  %6620 = vmatprep.mubr.msk.bf16.mxu1 %vm691_vm1, %v8505_v59  ;;  %v7247_v14 = vunpack.i.h.bf16 %v7245_v62  ;;  %v7246_v15 = vunpack.i.l.bf16 %v7245_v62  ;;  %v708_v62 = vsel %vm691_vm1, %v8501_v54, 0 }
 0x151   :  { %7434 = vrot.lane.b32.xlu0 %v7438_v43, %s8236_s8  ;;  %787 = vrot.lane.b32.xlu1 %v8509_v0, %s8239_s10 }
 0x152   :  { %v8539_v24 = vpack.c.bf16 %v7247_v14, %v7246_v15 }
 0x153   :  { %v8516_v2 = vpop.permute.xlu1 %3899  ;;  %v7250_v4 = vpop.permute.xlu0 %7249 }
 0x154   :  { %12433 = vst [vmem:[#allocation16_spill] sm:$0xff] %v8516_v2  ;;  %v7252_v20 = vunpack.i.h.bf16 %v7250_v4  ;;  %v7251_v21 = vunpack.i.l.bf16 %v7250_v4  ;;  %12436 = vst [vmem:[#allocation19_spill] sm:$0xff] %v8539_v24 }
 0x155   :  { %7449 = vrot.lane.b32.xlu0 %v7443_v48, %s8236_s8  ;;  %989 = vrot.lane.b32.xlu1 %v8518_v5, %s8239_s10 }
 0x156   :  { %v8549_v32 = vpack.c.bf16 %v7252_v20, %v7251_v21 }
 0x157   :  { %v8523_v6 = vpop.permute.xlu1 %683  ;;  %v7255_v7 = vpop.permute.xlu0 %7254 }
 0x158   :  { %v7257_v41 = vunpack.i.h.bf16 %v7255_v7  ;;  %v7256_v42 = vunpack.i.l.bf16 %v7255_v7  ;;  %v705_v20 = vsel %vm691_vm1, %v8523_v6, 0 }
 0x159   :  { %1902 = vrot.lane.b32.xlu0 %v8525_v8, %s8239_s10  ;;  %3988 = vrot.lane.b32.xlu1 %v8509_v0, %s8240_s11 }
 0x15a   :  { %v8579_v53 = vpack.c.bf16 %v7257_v41, %v7256_v42 }
 0x15b   :  { %v7260_v16 = vpop.permute.xlu1 %7259  ;;  %v8533_v17 = vpop.permute.xlu0 %7264 }
 0x15c   :  { %v7262_v26 = vunpack.i.h.bf16 %v7260_v16  ;;  %v7261_v29 = vunpack.i.l.bf16 %v7260_v16  ;;  %v7267_v12 = vunpack.i.h.bf16 %v8533_v17 }
 0x15d   :  { %4166 = vrot.lane.b32.xlu1 %v8518_v5, %s8240_s11  ;;  %1900 = vrot.lane.b32.xlu0 %v8531_v9, %s8239_s10 }
 0x15e   :  { %v8559_v38 = vpack.c.bf16 %v7262_v26, %v7261_v29 }
 0x15f   :  { %v7275_v22 = vpop.permute.xlu1 %7274  ;;  %v7270_v23 = vpop.permute.xlu0 %7269 }
 0x160   :  { %v7277_v48 = vunpack.i.h.bf16 %v7275_v22  ;;  %v7276_v49 = vunpack.i.l.bf16 %v7275_v22  ;;  %v7272_v55 = vunpack.i.h.bf16 %v7270_v23  ;;  %v7271_v56 = vunpack.i.l.bf16 %v7270_v23 }
 0x161   :  { %987 = vrot.lane.b32.xlu1 %v8539_v24, %s8239_s10  ;;  %888 = vrot.lane.b32.xlu0 %v8541_v25, %s8239_s10 }
 0x162   :  { %v8587_v61 = vpack.c.bf16 %v7277_v48, %v7276_v49  ;;  %v8601_v7 = vpack.c.bf16 %v7272_v55, %v7271_v56 }
 0x163   :  { %v8547_v30 = vpop.permute.xlu1 %3903  ;;  %v690_v31 = vpop.permute.xlu0 %689 }
 0x164   :  { %12437 = vst [vmem:[#allocation20_spill] sm:$0xff] %v8547_v30  ;;  %7144 = vmatprep.subr.msk.bf16.mxu0 %vm691_vm1, %v690_v31  ;;  %v714_v33 = vsel %vm691_vm1, %v690_v31, 0 }
 0x165   :  { %6597 = vmatpush3.bf16.xpose.msra.mxu0 %v714_v33  ;;  %791 = vrot.lane.b32.xlu1 %v8549_v32, %s8239_s10 }
 0x166   :  { %4077 = vrot.lane.b32.xlu0 %v8541_v25, %s8240_s11 }
 0x167   :  { %v8557_v34 = vpop.permute.xlu0 %3901  ;;  %v688_v37 = vpop.permute.xlu1 %687 }
 0x168   :  { %12438 = vst [vmem:[#allocation21_spill] sm:$0xff] %v8557_v34  ;;  %7145 = vmatprep.subr.msk.bf16.mxu0 %vm691_vm1, %v688_v37  ;;  %v711_v45 = vsel %vm691_vm1, %v688_v37, 0 }
 0x169   :  { %993 = vrot.lane.b32.xlu1 %v8559_v38, %s8239_s10 }
 0x16a   :  { %785 = vrot.lane.b32.xlu0 %v8505_v59, %s8239_s10 }
 0x16b   :  { %v7290_v43 = vpop.permute.xlu1 %7289  ;;  %v7280_v44 = vpop.permute.xlu0 %7279 }
 0x16c   :  { %v7282_v13 = vunpack.i.h.bf16 %v7280_v44  ;;  %v7281_v14 = vunpack.i.l.bf16 %v7280_v44  ;;  %v7291_v22 = vunpack.i.l.bf16 %v7290_v43 }
 0x16d   :  { %6599 = vmatpush3.bf16.xpose.msra.mxu0 %v711_v45  ;;  %3992 = vrot.lane.b32.xlu1 %v8549_v32, %s8240_s11 }
 0x16e   :  { %886 = vrot.lane.b32.xlu0 %v8569_v46, %s8239_s10  ;;  %7146 = vmatprep.subr.msk.bf16.mxu0 %vm691_vm1, %v8501_v54  ;;  %v7266_v54 = vunpack.i.l.bf16 %v8533_v17  ;;  %v7292_v17 = vunpack.i.h.bf16 %v7290_v43  ;;  %v8619_v29 = vpack.c.bf16 %v7282_v13, %v7281_v14 }
 0x16f   :  { %v7285_v50 = vpop.permute.xlu0 %7284  ;;  %v8577_v52 = vpop.permute.xlu1 %7294 }
 0x170   :  { %v8611_v21 = vpack.c.bf16 %v7267_v12, %v7266_v54  ;;  %12440 = vst [vmem:[#allocation23_spill] sm:$0xff] %v8619_v29  ;;  %v8627_v39 = vpack.c.bf16 %v7292_v17, %v7291_v22  ;;  %v7287_v40 = vunpack.i.h.bf16 %v7285_v50  ;;  %v7286_v41 = vunpack.i.l.bf16 %v7285_v50 }
 0x171   :  { %4081 = vrot.lane.b32.xlu1 %v8579_v53, %s8240_s11  ;;  %v7297_v49 = vunpack.i.h.bf16 %v8577_v52 }
 0x172   :  { %3986 = vrot.lane.b32.xlu0 %v8505_v59, %s8240_s11  ;;  %12441 = vst [vmem:[#allocation24_spill] sm:$0xff] %v8627_v39  ;;  %v8645_v50 = vpack.c.bf16 %v7287_v40, %v7286_v41 }
 0x173   :  { %v8585_v57 = vpop.permute.xlu0 %7299  ;;  %v7305_v60 = vpop.permute.xlu1 %7304 }
 0x174   :  { %v7306_v31 = vunpack.i.l.bf16 %v7305_v60  ;;  %12443 = vst [vmem:[#allocation26_spill] sm:$0xff] %v8645_v50  ;;  %v7302_v12 = vunpack.i.h.bf16 %v8585_v57  ;;  %v7301_v54 = vunpack.i.l.bf16 %v8585_v57 }
 0x175   :  { %6601 = vmatpush3.bf16.xpose.msra.mxu0 %v708_v62  ;;  %991 = vrot.lane.b32.xlu1 %v8587_v61, %s8239_s10 }
 0x176   :  { %892 = vrot.lane.b32.xlu0 %v8579_v53, %s8239_s10  ;;  %7147 = vmatprep.subr.msk.bf16.mxu0 %vm691_vm1, %v8523_v6  ;;  %v7307_v6 = vunpack.i.h.bf16 %v7305_v60 }
 0x177   :  { %v8597_v59 = vpop.permute.xlu0 %1090  ;;  %v8599_v4 = vpop.permute.xlu1 %1088 }
 0x178   :  { %v8641_v48 = vpack.c.bf16 %v7307_v6, %v7306_v31 }
 0x179   :  { %4079 = vrot.lane.b32.xlu1 %v8601_v7, %s8240_s11 }
 0x17a   :  { %4170 = vrot.lane.b32.xlu0 %v8559_v38, %s8240_s11  ;;  %12442 = vst [vmem:[#allocation25_spill] sm:$0xff] %v8641_v48 }
 0x17b   :  { %v7320_v15 = vpop.permute.xlu1 %7319  ;;  %v7310_v16 = vpop.permute.xlu0 %7309 }
 0x17c   :  { %v7312_v42 = vunpack.i.h.bf16 %v7310_v16  ;;  %v7311_v43 = vunpack.i.l.bf16 %v7310_v16  ;;  %v7321_v55 = vunpack.i.l.bf16 %v7320_v15 }
 0x17d   :  { %6603 = vmatpush3.bf16.xpose.msra.mxu0 %v705_v20  ;;  %4168 = vrot.lane.b32.xlu1 %v8587_v61, %s8240_s11 }
 0x17e   :  { %789 = vrot.lane.b32.xlu0 %v8611_v21, %s8239_s10  ;;  %v8651_v62 = vpack.c.bf16 %v7312_v42, %v7311_v43 }
 0x17f   :  { %v7315_v23 = vpop.permute.xlu0 %7314  ;;  %v8617_v26 = vpop.permute.xlu1 %7324 }
 0x180   :  { %12444 = vst [vmem:[#allocation27_spill] sm:$0xff] %v8651_v62  ;;  %v7317_v57 = vunpack.i.h.bf16 %v7315_v23  ;;  %v7316_v17 = vunpack.i.l.bf16 %v7315_v23  ;;  %v7327_v42 = vunpack.i.h.bf16 %v8617_v26  ;;  %v7326_v23 = vunpack.i.l.bf16 %v8617_v26 }
 0x181   :  { %1191 = vrot.lane.b32.xlu1 %v8619_v29, %s8239_s10 }
 0x182   :  { %890 = vrot.lane.b32.xlu0 %v8601_v7, %s8239_s10  ;;  %v8675_v41 = vpack.c.bf16 %v7317_v57, %v7316_v17 }
 0x183   :  { %v8625_v33 = vpop.permute.xlu0 %7329  ;;  %v7335_v37 = vpop.permute.xlu1 %7334 }
 0x184   :  { %6605 = vmatmul.mubr.msk.bf16.vlgmr.msra.gmra.mxu0 %vm691_vm1, %v8399_v58  ;;  %v7296_v58 = vunpack.i.l.bf16 %v8577_v52  ;;  %v7337_v13 = vunpack.i.h.bf16 %v7335_v37  ;;  %v7336_v14 = vunpack.i.l.bf16 %v7335_v37  ;;  %12449 = vst [vmem:[#allocation32_spill] sm:$0xff] %v8675_v41  ;;  %v7331_v26 = vunpack.i.l.bf16 %v8625_v33 }
 0x185   :  { %6608 = vmatprep.mubr.msk.bf16.mxu0 %vm691_vm1, %v8421_v3  ;;  %1393 = vrot.lane.b32.xlu1 %v8627_v39, %s8239_s10  ;;  %v7322_v3 = vunpack.i.h.bf16 %v7320_v15 }
 0x186   :  { %3990 = vrot.lane.b32.xlu0 %v8611_v21, %s8240_s11  ;;  %v8657_v52 = vpack.c.bf16 %v7297_v49, %v7296_v58  ;;  %v8673_v22 = vpack.c.bf16 %v7337_v13, %v7336_v14 }
 0x187   :  { %v8637_v44 = vpop.permute.xlu0 %1094  ;;  %v8639_v45 = vpop.permute.xlu1 %1092  ;;  %v8665_v20 = vpack.c.bf16 %v7322_v3, %v7321_v55 }
 0x188   :  { %12445 = vst [vmem:[#allocation28_spill] sm:$0xff] %v8657_v52  ;;  %12448 = vst [vmem:[#allocation31_spill] sm:$0xff] %v8673_v22 }
 0x189   :  { %1391 = vrot.lane.b32.xlu1 %v8641_v48, %s8239_s10  ;;  %12446 = vst [vmem:[#allocation29_spill] sm:$0xff] %v8665_v20 }
 0x18a   :  { %1292 = vrot.lane.b32.xlu0 %v8645_v50, %s8239_s10 }
 0x18b   :  { %v7350_v56 = vpop.permute.xlu1 %7349  ;;  %v7340_v60 = vpop.permute.xlu0 %7339 }
 0x18c   :  { %6609 = vmatmul.mubr.msk.bf16.gmra.mxu0 %vm691_vm1, %v8415_v1  ;;  %v8667_v1 = vpack.c.bf16 %v7302_v12, %v7301_v54  ;;  %v7342_v6 = vunpack.i.h.bf16 %v7340_v60  ;;  %v7341_v31 = vunpack.i.l.bf16 %v7340_v60  ;;  %v7352_v43 = vunpack.i.h.bf16 %v7350_v56 }
 0x18d   :  { %6636 = vmatprep.mubr.msk.bf16.mxu0 %vm691_vm1, %v8569_v46  ;;  %1195 = vrot.lane.b32.xlu1 %v8651_v62, %s8239_s10  ;;  %v7351_v49 = vunpack.i.l.bf16 %v7350_v56  ;;  %v8689_v60 = vpack.c.bf16 %v7327_v42, %v7326_v23  ;;  %v7332_v12 = vunpack.i.h.bf16 %v8625_v33 }
 0x18e   :  { %1189 = vrot.lane.b32.xlu0 %v8657_v52, %s8239_s10  ;;  %12447 = vst [vmem:[#allocation30_spill] sm:$0xff] %v8667_v1  ;;  %v8683_v58 = vpack.c.bf16 %v7342_v6, %v7341_v31 }
 0x18f   :  { %v7345_v15 = vpop.permute.xlu0 %7344  ;;  %v7355_v16 = vpop.permute.xlu1 %7354  ;;  %12451 = vst [vmem:[#allocation34_spill] sm:$0xff] %v8689_v60  ;;  %v8697_v54 = vpack.c.bf16 %v7352_v43, %v7351_v49  ;;  %v8699_v17 = vpack.c.bf16 %v7332_v12, %v7331_v26 }
 0x190   :  { %12450 = vst [vmem:[#allocation33_spill] sm:$0xff] %v8683_v58  ;;  %v7347_v6 = vunpack.i.h.bf16 %v7345_v15  ;;  %v7346_v31 = vunpack.i.l.bf16 %v7345_v15  ;;  %v7356_v63 = vunpack.i.l.bf16 %v7355_v16 }
 0x191   :  { %1397 = vrot.lane.b32.xlu1 %v8665_v20, %s8239_s10  ;;  %12452 = vst [vmem:[#allocation35_spill] sm:$0xff] %v8697_v54  ;;  %12453 = vst [vmem:[#allocation36_spill] sm:$0xff] %v8699_v17 }
 0x192   :  { %1290 = vrot.lane.b32.xlu0 %v8667_v1, %s8239_s10  ;;  %v8707_v46 = vpack.c.bf16 %v7347_v6, %v7346_v31 }
 0x193   :  { %v7360_v40 = vpop.permute.xlu0 %7359  ;;  %v7365_v37 = vpop.permute.xlu1 %7364 }
 0x194   :  { %v7367_v56 = vunpack.i.h.bf16 %v7365_v37  ;;  %v7366_v13 = vunpack.i.l.bf16 %v7365_v37  ;;  %12455 = vst [vmem:[#allocation38_spill] sm:$0xff] %v8707_v46  ;;  %v7357_v37 = vunpack.i.h.bf16 %v7355_v16  ;;  %v7361_v34 = vunpack.i.l.bf16 %v7360_v40 }
 0x195   :  { %1395 = vrot.lane.b32.xlu1 %v8673_v22, %s8239_s10 }
 0x196   :  { %1296 = vrot.lane.b32.xlu0 %v8675_v41, %s8239_s10  ;;  %v8705_v33 = vpack.c.bf16 %v7367_v56, %v7366_v13  ;;  %v8715_v2 = vpack.c.bf16 %v7357_v37, %v7356_v63 }
 0x197   :  { %v8685_v3 = vpop.permute.xlu0 %1494  ;;  %v8687_v55 = vpop.permute.xlu1 %1492 }
 0x198   :  { %12454 = vst [vmem:[#allocation37_spill] sm:$0xff] %v8705_v33  ;;  %12457 = vst [vmem:[#allocation40_spill] sm:$0xff] %v8715_v2 }
 0x199   :  { %1595 = vrot.lane.b32.xlu1 %v8683_v58, %s8239_s10 }
 0x19a   :  { %1193 = vrot.lane.b32.xlu0 %v8689_v60, %s8239_s10 }
 0x19b   :  { %v7380_v14 = vpop.permute.xlu1 %7379  ;;  %v7370_v57 = vpop.permute.xlu0 %7369 }
 0x19c   :  { %v7372_v42 = vunpack.i.h.bf16 %v7370_v57  ;;  %v7371_v23 = vunpack.i.l.bf16 %v7370_v57  ;;  %v7382_v15 = vunpack.i.h.bf16 %v7380_v14  ;;  %v7381_v12 = vunpack.i.l.bf16 %v7380_v14 }
 0x19d   :  { %1797 = vrot.lane.b32.xlu1 %v8697_v54, %s8239_s10  ;;  %v7362_v57 = vunpack.i.h.bf16 %v7360_v40 }
 0x19e   :  { %1294 = vrot.lane.b32.xlu0 %v8699_v17, %s8239_s10  ;;  %v8713_v26 = vpack.c.bf16 %v7372_v42, %v7371_v23  ;;  %v8721_v16 = vpack.c.bf16 %v7382_v15, %v7381_v12 }
 0x19f   :  { %v7375_v43 = vpop.permute.xlu0 %7374  ;;  %v7385_v49 = vpop.permute.xlu1 %7384  ;;  %v8727_v42 = vpack.c.bf16 %v7362_v57, %v7361_v34 }
 0x1a0   :  { %12456 = vst [vmem:[#allocation39_spill] sm:$0xff] %v8713_v26  ;;  %12458 = vst [vmem:[#allocation41_spill] sm:$0xff] %v8721_v16  ;;  %v7377_v63 = vunpack.i.h.bf16 %v7375_v43  ;;  %v7376_v23 = vunpack.i.l.bf16 %v7375_v43  ;;  %v7387_v40 = vunpack.i.h.bf16 %v7385_v49  ;;  %v7386_v8 = vunpack.i.l.bf16 %v7385_v49 }
 0x1a1   :  { %1795 = vrot.lane.b32.xlu1 %v8705_v33, %s8239_s10  ;;  %12459 = vst [vmem:[#allocation42_spill] sm:$0xff] %v8727_v42 }
 0x1a2   :  { %1696 = vrot.lane.b32.xlu0 %v8707_v46, %s8239_s10 }
 0x1a3   :  { %v7390_v56 = vpop.permute.xlu0 %7389  ;;  %v7395_v13 = vpop.permute.xlu1 %7394 }
 0x1a4   :  { %v7397_v6 = vunpack.i.h.bf16 %v7395_v13  ;;  %v7396_v31 = vunpack.i.l.bf16 %v7395_v13  ;;  %v8735_v13 = vpack.c.bf16 %v7377_v63, %v7376_v23  ;;  %v7392_v54 = vunpack.i.h.bf16 %v7390_v56 }
 0x1a5   :  { %1599 = vrot.lane.b32.xlu1 %v8713_v26, %s8239_s10  ;;  %v7391_v63 = vunpack.i.l.bf16 %v7390_v56 }
 0x1a6   :  { %1593 = vrot.lane.b32.xlu0 %v8715_v2, %s8239_s10  ;;  %v8733_v37 = vpack.c.bf16 %v7397_v6, %v7396_v31  ;;  %12461 = vst [vmem:[#allocation44_spill] sm:$0xff] %v8735_v13  ;;  %v8743_v31 = vpack.c.bf16 %v7387_v40, %v7386_v8 }
 0x1a7   :  { %v8723_v30 = vpop.permute.xlu0 %1498  ;;  %v8725_v14 = vpop.permute.xlu1 %1496 }
 0x1a8   :  { %12460 = vst [vmem:[#allocation43_spill] sm:$0xff] %v8733_v37  ;;  %12463 = vst [vmem:[#allocation46_spill] sm:$0xff] %v8743_v31 }
 0x1a9   :  { %1801 = vrot.lane.b32.xlu1 %v8721_v16, %s8239_s10 }
 0x1aa   :  { %1694 = vrot.lane.b32.xlu0 %v8727_v42, %s8239_s10 }
 0x1ab   :  { %v7410_v15 = vpop.permute.xlu1 %7409  ;;  %v7400_v12 = vpop.permute.xlu0 %7399 }
 0x1ac   :  { %v7402_v9 = vunpack.i.h.bf16 %v7400_v12  ;;  %v7401_v47 = vunpack.i.l.bf16 %v7400_v12  ;;  %v7412_v43 = vunpack.i.h.bf16 %v7410_v15  ;;  %v7411_v57 = vunpack.i.l.bf16 %v7410_v15 }
 0x1ad   :  { %1799 = vrot.lane.b32.xlu1 %v8733_v37, %s8239_s10  ;;  %v8751_v37 = vpack.c.bf16 %v7392_v54, %v7391_v63 }
 0x1ae   :  { %v8739_v34 = vpack.c.bf16 %v7402_v9, %v7401_v47  ;;  %1700 = vrot.lane.b32.xlu0 %v8735_v13, %s8239_s10  ;;  %v8749_v49 = vpack.c.bf16 %v7412_v43, %v7411_v57 }
 0x1af   :  { %v7405_v16 = vpop.permute.xlu0 %7404  ;;  %v7415_v6 = vpop.permute.xlu1 %7414  ;;  %12465 = vst [vmem:[#allocation48_spill] sm:$0xff] %v8751_v37 }
 0x1b0   :  { %12462 = vst [vmem:[#allocation45_spill] sm:$0xff] %v8739_v34  ;;  %12464 = vst [vmem:[#allocation47_spill] sm:$0xff] %v8749_v49  ;;  %v7417_v47 = vunpack.i.h.bf16 %v7415_v6  ;;  %v7416_v9 = vunpack.i.l.bf16 %v7415_v6  ;;  %v7407_v15 = vunpack.i.h.bf16 %v7405_v16  ;;  %v7406_v51 = vunpack.i.l.bf16 %v7405_v16 }
 0x1b1   :  { %1999 = vrot.lane.b32.xlu1 %v8739_v34, %s8239_s10 }
 0x1b2   :  { %1597 = vrot.lane.b32.xlu0 %v8743_v31, %s8239_s10  ;;  %v8757_v8 = vpack.c.bf16 %v7417_v47, %v7416_v9  ;;  %v8761_v6 = vpack.c.bf16 %v7407_v15, %v7406_v51 }
 0x1b3   :  { %v7420_v23 = vpop.permute.xlu0 %7419  ;;  %v7425_v12 = vpop.permute.xlu1 %7424 }
 0x1b4   :  { %12466 = vst [vmem:[#allocation49_spill] sm:$0xff] %v8757_v8  ;;  %v7427_v56 = vunpack.i.h.bf16 %v7425_v12  ;;  %v7426_v40 = vunpack.i.l.bf16 %v7425_v12  ;;  %12468 = vst [vmem:[#allocation51_spill] sm:$0xff] %v8761_v6  ;;  %v7422_v34 = vunpack.i.h.bf16 %v7420_v23  ;;  %v7421_v54 = vunpack.i.l.bf16 %v7420_v23 }
 0x1b5   :  { %2201 = vrot.lane.b32.xlu1 %v8749_v49, %s8239_s10 }
 0x1b6   :  { %1698 = vrot.lane.b32.xlu0 %v8751_v37, %s8239_s10  ;;  %v8767_v16 = vpack.c.bf16 %v7427_v56, %v7426_v40  ;;  %v8771_v9 = vpack.c.bf16 %v7422_v34, %v7421_v54 }
 0x1b7   :  { %v8759_v43 = vpop.permute.xlu0 %1898  ;;  %v7440_v57 = vpop.permute.xlu1 %7439 }
 0x1b8   :  { %12467 = vst [vmem:[#allocation50_spill] sm:$0xff] %v8759_v43  ;;  %12469 = vst [vmem:[#allocation52_spill] sm:$0xff] %v8767_v16  ;;  %v7442_v49 = vunpack.i.h.bf16 %v7440_v57 }
 0x1b9   :  { %1997 = vrot.lane.b32.xlu1 %v8757_v8, %s8239_s10  ;;  %12471 = vst [vmem:[#allocation54_spill] sm:$0xff] %v8771_v9  ;;  %v7441_v8 = vunpack.i.l.bf16 %v7440_v57 }
 0x1ba   :  { %2100 = vrot.lane.b32.xlu0 %v8761_v6, %s8239_s10 }
 0x1bb   :  { %v8769_v63 = vpop.permute.xlu0 %1896  ;;  %v7445_v47 = vpop.permute.xlu1 %7444  ;;  %v8781_v34 = vpack.c.bf16 %v7442_v49, %v7441_v8 }
 0x1bc   :  { %12470 = vst [vmem:[#allocation53_spill] sm:$0xff] %v8769_v63  ;;  %v7447_v54 = vunpack.i.h.bf16 %v7445_v47 }
 0x1bd   :  { %2199 = vrot.lane.b32.xlu1 %v8767_v16, %s8239_s10  ;;  %12473 = vst [vmem:[#allocation56_spill] sm:$0xff] %v8781_v34  ;;  %v7446_v16 = vunpack.i.l.bf16 %v7445_v47 }
 0x1be   :  { %2098 = vrot.lane.b32.xlu0 %v8771_v9, %s8239_s10 }
 0x1bf   :  { %v7430_v51 = vpop.permute.xlu0 %7429  ;;  %v7455_v23 = vpop.permute.xlu1 %7454 }
 0x1c0   :  { %v7432_v12 = vunpack.i.h.bf16 %v7430_v51  ;;  %v7431_v15 = vunpack.i.l.bf16 %v7430_v51  ;;  %v7456_v49 = vunpack.i.l.bf16 %v7455_v23 }
 0x1c2   :  { %v8777_v6 = vpack.c.bf16 %v7432_v12, %v7431_v15  ;;  %v8791_v12 = vpack.c.bf16 %v7447_v54, %v7446_v16  ;;  %v7457_v15 = vunpack.i.h.bf16 %v7455_v23 }
 0x1c3   :  { %v7435_v56 = vpop.permute.xlu0 %7434  ;;  %v788_v40 = vpop.permute.xlu1 %787 }
 0x1c4   :  { %12472 = vst [vmem:[#allocation55_spill] sm:$0xff] %v8777_v6  ;;  %v7437_v63 = vunpack.i.h.bf16 %v7435_v56  ;;  %v7436_v43 = vunpack.i.l.bf16 %v7435_v56  ;;  %2003 = vrot.lane.b32.xlu1 %v8777_v6, %s8239_s10  ;;  %12475 = vst [vmem:[#allocation58_spill] sm:$0xff] %v8791_v12 }
 0x1c6   :  { %v8783_v9 = vpack.c.bf16 %v7437_v63, %v7436_v43 }
 0x1c7   :  { %v7450_v13 = vpop.permute.xlu0 %7449  ;;  %v8785_v33 = vpop.permute.xlu1 %989 }
 0x1c8   :  { %12474 = vst [vmem:[#allocation57_spill] sm:$0xff] %v8783_v9  ;;  %v7452_v51 = vunpack.i.h.bf16 %v7450_v13  ;;  %v7451_v57 = vunpack.i.l.bf16 %v7450_v13  ;;  %2205 = vrot.lane.b32.xlu1 %v8781_v34, %s8239_s10  ;;  %2104 = vrot.lane.b32.xlu0 %v8783_v9, %s8239_s10  ;;  %v8803_v13 = vpack.c.bf16 %v7457_v15, %v7456_v49 }
 0x1ca   :  { %v8793_v8 = vpack.c.bf16 %v7452_v51, %v7451_v57  ;;  %12478 = vst [vmem:[#allocation61_spill] sm:$0xff] %v8803_v13 }
 0x1cb   :  { %v8795_v47 = vpop.permute.xlu0 %1902  ;;  %v8797_v43 = vpop.permute.xlu1 %3988 }
 0x1cc   :  { %12476 = vst [vmem:[#allocation59_spill] sm:$0xff] %v8793_v8  ;;  %12477 = vst [vmem:[#allocation60_spill] sm:$0xff] %v8797_v43  ;;  %2001 = vrot.lane.b32.xlu1 %v8791_v12, %s8239_s10  ;;  %2102 = vrot.lane.b32.xlu0 %v8793_v8, %s8239_s10 }
 0x1cf   :  { %v8805_v63 = vpop.permute.xlu1 %4166  ;;  %v8807_v16 = vpop.permute.xlu0 %1900 }
 0x1d0   :  { %12479 = vst [vmem:[#allocation62_spill] sm:$0xff] %v8805_v63  ;;  %2203 = vrot.lane.b32.xlu1 %v8803_v13, %s8239_s10 }
 0x1d3   :  { %v8811_v23 = vpop.permute.xlu1 %987  ;;  %v889_v56 = vpop.permute.xlu0 %888 }
 0x1d7   :  { %v792_v54 = vpop.permute.xlu1 %791 }
 0x1d8   :  { %v8813_v51 = vpop.permute.xlu0 %4077  ;;  %7148 = vmatprep.subr.msk.bf16.mxu1 %vm691_vm1, %v792_v54  ;;  %v815_v57 = vsel %vm691_vm1, %v792_v54, 0 }
 0x1d9   :  { %12480 = vst [vmem:[#allocation63_spill] sm:$0xff] %v8813_v51  ;;  %6613 = vmatpush3.bf16.xpose.msra.mxu1 %v815_v57 }
 0x1db   :  { %v994_v13 = vpop.permute.xlu1 %993 }
 0x1dc   :  { %v786_v15 = vpop.permute.xlu0 %785 }
 0x1df   :  { %v8825_v54 = vpop.permute.xlu1 %3992 }
 0x1e0   :  { %v887_v49 = vpop.permute.xlu0 %886 }
 0x1e4   :  { %v8817_v43 = vpop.permute.xlu0 %3986 }
 0x1e5   :  { %12481 = vst [vmem:[#allocation64_spill] sm:$0xff] %v8817_v43 }
 0x1e8   :  { %v893_v63 = vpop.permute.xlu0 %892 }
 0x1e9   :  { %7152 = vmatprep.subr.msk.bf16.mxu0 %vm691_vm1, %v893_v63  ;;  %v916_v34 = vsel %vm691_vm1, %v893_v63, 0  ;;  %v809_v63 = vsel %vm691_vm1, %v788_v40, 0 }
 0x1ea   :  { %6629 = vmatpush3.bf16.xpose.msra.mxu0 %v916_v34  ;;  %v8831_v34 = vpop.permute.xlu1 %4081 }
 0x1ec   :  { %v8821_v9 = vpop.permute.xlu0 %4170 }
 0x1ed   :  { %12482 = vst [vmem:[#allocation65_spill] sm:$0xff] %v8821_v9  ;;  %v806_v9 = vsel %vm691_vm1, %v786_v15, 0 }
 0x1f0   :  { %v790_v6 = vpop.permute.xlu0 %789 }
 0x1f1   :  { %7149 = vmatprep.subr.msk.bf16.mxu1 %vm691_vm1, %v790_v6  ;;  %v812_v51 = vsel %vm691_vm1, %v790_v6, 0  ;;  %v910_v6 = vsel %vm691_vm1, %v889_v56, 0 }
 0x1f2   :  { %6615 = vmatpush3.bf16.xpose.msra.mxu1 %v812_v51  ;;  %v992_v51 = vpop.permute.xlu1 %991 }
 0x1f3   :  { %7150 = vmatprep.subr.msk.bf16.mxu1 %vm691_vm1, %v788_v40  ;;  %v1017_v40 = vsel %vm691_vm1, %v994_v13, 0 }
 0x1f4   :  { %v891_v57 = vpop.permute.xlu0 %890 }
 0x1f5   :  { %7153 = vmatprep.subr.msk.bf16.mxu0 %vm691_vm1, %v891_v57  ;;  %v913_v43 = vsel %vm691_vm1, %v891_v57, 0  ;;  %v907_v57 = vsel %vm691_vm1, %v887_v49, 0 }
 0x1f6   :  { %6631 = vmatpush3.bf16.xpose.msra.mxu0 %v913_v43  ;;  %v8839_v43 = vpop.permute.xlu1 %4079 }
 0x1f7   :  { %7154 = vmatprep.subr.msk.bf16.mxu0 %vm691_vm1, %v889_v56 }
 0x1fa   :  { %6617 = vmatpush3.bf16.xpose.msra.mxu1 %v809_v63  ;;  %v8847_v56 = vpop.permute.xlu1 %4168  ;;  %v8849_v63 = vpop.permute.xlu0 %3990 }
 0x1fb   :  { %7151 = vmatprep.subr.msk.bf16.mxu1 %vm691_vm1, %v786_v15  ;;  %12483 = vst [vmem:[#allocation66_spill] sm:$0xff] %v8847_v56  ;;  %v1112_v15 = vsel %vm691_vm1, %v8597_v59, 0 }
 0x1fe   :  { %6633 = vmatpush3.bf16.xpose.msra.mxu0 %v910_v6 }
 0x1ff   :  { %7155 = vmatprep.subr.msk.bf16.mxu0 %vm691_vm1, %v887_v49  ;;  %v1008_v49 = vsel %vm691_vm1, %v8811_v23, 0 }
 0x202   :  { %6619 = vmatpush3.bf16.xpose.msra.mxu1 %v806_v9  ;;  %v1118_v9 = vsel %vm691_vm1, %v8637_v44, 0 }
 0x203   :  { %7156 = vmatprep.subr.msk.bf16.mxu1 %vm691_vm1, %v994_v13  ;;  %v1293_v13 = vpop.permute.xlu0 %1292 }
 0x206   :  { %6635 = vmatpush3.bf16.xpose.msra.mxu0 %v907_v57 }
 0x207   :  { %7160 = vmatprep.subr.msk.bf16.mxu0 %vm691_vm1, %v8637_v44  ;;  %v1190_v44 = vpop.permute.xlu0 %1189 }
 0x209   :  { %6621 = vmatmul.mubr.msk.bf16.vlgmr.msra.gmra.mxu1 %vm691_vm1, %v8509_v0  ;;  %v1192_v0 = vpop.permute.xlu1 %1191 }
 0x20a   :  { %6624 = vmatprep.mubr.msk.bf16.mxu1 %vm691_vm1, %v8611_v21  ;;  %6645 = vmatpush3.bf16.xpose.msra.mxu1 %v1017_v40  ;;  %v1014_v21 = vsel %vm691_vm1, %v992_v51, 0  ;;  %v1314_v40 = vsel %vm691_vm1, %v1293_v13, 0 }
 0x20b   :  { %7157 = vmatprep.subr.msk.bf16.mxu1 %vm691_vm1, %v992_v51 }
 0x20d   :  { %6637 = vmatmul.mubr.msk.bf16.vlgmr.msra.gmra.mxu0 %vm691_vm1, %v8541_v25  ;;  %v1115_v25 = vsel %vm691_vm1, %v8639_v45, 0 }
 0x20e   :  { %6640 = vmatprep.mubr.msk.bf16.mxu0 %vm691_vm1, %v8601_v7  ;;  %6661 = vmatpush3.bf16.xpose.msra.mxu0 %v1118_v9  ;;  %v8873_v7 = vpop.permute.xlu1 %1393  ;;  %v1210_v9 = vsel %vm691_vm1, %v1190_v44, 0 }
 0x20f   :  { %7161 = vmatprep.subr.msk.bf16.mxu0 %vm691_vm1, %v8639_v45  ;;  %v1291_v45 = vpop.permute.xlu0 %1290 }
 0x211   :  { %6625 = vmatmul.mubr.msk.bf16.gmra.mxu1 %vm691_vm1, %v8549_v32  ;;  %v1011_v32 = vsel %vm691_vm1, %v8785_v33, 0 }
 0x212   :  { %6647 = vmatpush3.bf16.xpose.msra.mxu1 %v1014_v21  ;;  %6652 = vmatprep.mubr.msk.bf16.mxu1 %vm691_vm1, %v8539_v24 }
 0x213   :  { %7158 = vmatprep.subr.msk.bf16.mxu1 %vm691_vm1, %v8785_v33  ;;  %v1297_v51 = vpop.permute.xlu0 %1296  ;;  %v1109_v33 = vsel %vm691_vm1, %v8599_v4, 0 }
 0x215   :  { %6641 = vmatmul.mubr.msk.bf16.gmra.mxu0 %vm691_vm1, %v8579_v53  ;;  %v8883_v53 = vpop.permute.xlu1 %1391 }
 0x216   :  { %6663 = vmatpush3.bf16.xpose.msra.mxu0 %v1115_v25  ;;  %6668 = vmatprep.mubr.msk.bf16.mxu0 %vm691_vm1, %v8435_v11 }
 0x217   :  { %7162 = vmatprep.subr.msk.bf16.mxu0 %vm691_vm1, %v8597_v59  ;;  %v1194_v57 = vpop.permute.xlu0 %1193 }
 0x219   :  { %v1196_v6 = vpop.permute.xlu1 %1195 }
 0x21a   :  { %6649 = vmatpush3.bf16.xpose.msra.mxu1 %v1011_v32  ;;  %v1219_v59 = vsel %vm691_vm1, %v1196_v6, 0  ;;  %v1311_v32 = vsel %vm691_vm1, %v1291_v45, 0 }
 0x21b   :  { %7159 = vmatprep.subr.msk.bf16.mxu1 %vm691_vm1, %v8811_v23  ;;  %v1295_v23 = vpop.permute.xlu0 %1294 }
 0x21d   :  { %v1398_v21 = vpop.permute.xlu1 %1397 }
 0x21e   :  { %6665 = vmatpush3.bf16.xpose.msra.mxu0 %v1112_v15 }
 0x21f   :  { %7163 = vmatprep.subr.msk.bf16.mxu0 %vm691_vm1, %v8599_v4  ;;  %v1320_v4 = vsel %vm691_vm1, %v1297_v51, 0 }
 0x222   :  { %6651 = vmatpush3.bf16.xpose.msra.mxu1 %v1008_v49  ;;  %v1421_v49 = vsel %vm691_vm1, %v1398_v21, 0 }
 0x223   :  { %7164 = vmatprep.subr.msk.bf16.mxu1 %vm691_vm1, %v1196_v6 }
 0x226   :  { %6667 = vmatpush3.bf16.xpose.msra.mxu0 %v1109_v33 }
 0x227   :  { %7168 = vmatprep.subr.msk.bf16.mxu0 %vm691_vm1, %v1297_v51 }
 0x229   :  { %6653 = vmatmul.mubr.msk.bf16.vlgmr.msra.gmra.mxu1 %vm691_vm1, %v8518_v5  ;;  %v1216_v5 = vsel %vm691_vm1, %v1194_v57, 0 }
 0x22a   :  { %6656 = vmatprep.mubr.msk.bf16.mxu1 %vm691_vm1, %v8587_v61  ;;  %6677 = vmatpush3.bf16.xpose.msra.mxu1 %v1219_v59  ;;  %v1317_v61 = vsel %vm691_vm1, %v1295_v23, 0 }
 0x22b   :  { %7165 = vmatprep.subr.msk.bf16.mxu1 %vm691_vm1, %v1194_v57  ;;  %v1522_v57 = vsel %vm691_vm1, %v8723_v30, 0 }
 0x22d   :  { %6669 = vmatmul.mubr.msk.bf16.vlgmr.msra.gmra.mxu0 %vm691_vm1, %v8433_v10 }
 0x22e   :  { %6672 = vmatprep.mubr.msk.bf16.mxu0 %vm691_vm1, %v8449_v19  ;;  %6693 = vmatpush3.bf16.xpose.msra.mxu0 %v1320_v4 }
 0x22f   :  { %7169 = vmatprep.subr.msk.bf16.mxu0 %vm691_vm1, %v1295_v23 }
 0x231   :  { %6657 = vmatmul.mubr.msk.bf16.gmra.mxu1 %vm691_vm1, %v8559_v38  ;;  %v1213_v38 = vsel %vm691_vm1, %v1192_v0, 0 }
 0x232   :  { %6679 = vmatpush3.bf16.xpose.msra.mxu1 %v1216_v5  ;;  %6684 = vmatprep.mubr.msk.bf16.mxu1 %vm691_vm1, %v8657_v52 }
 0x233   :  { %7166 = vmatprep.subr.msk.bf16.mxu1 %vm691_vm1, %v1192_v0 }
 0x235   :  { %6673 = vmatmul.mubr.msk.bf16.gmra.mxu0 %vm691_vm1, %v8447_v18 }
 0x236   :  { %6695 = vmatpush3.bf16.xpose.msra.mxu0 %v1317_v61  ;;  %6700 = vmatprep.mubr.msk.bf16.mxu0 %vm691_vm1, %v8667_v1  ;;  %v8966_v61 = vpop.permute.xlu0 %1696 }
 0x237   :  { %7170 = vmatprep.subr.msk.bf16.mxu0 %vm691_vm1, %v1293_v13 }
 0x23a   :  { %6681 = vmatpush3.bf16.xpose.msra.mxu1 %v1213_v38 }
 0x23b   :  { %7167 = vmatprep.subr.msk.bf16.mxu1 %vm691_vm1, %v1190_v44  ;;  %v1396_v44 = vpop.permute.xlu1 %1395 }
 0x23c   :  { %v1418_v38 = vsel %vm691_vm1, %v1396_v44, 0 }
 0x23e   :  { %6697 = vmatpush3.bf16.xpose.msra.mxu0 %v1314_v40 }
 0x23f   :  { %7171 = vmatprep.subr.msk.bf16.mxu0 %vm691_vm1, %v1291_v45  ;;  %v8960_v23 = vpop.permute.xlu1 %1595 }
 0x242   :  { %6683 = vmatpush3.bf16.xpose.msra.mxu1 %v1210_v9 }
 0x243   :  { %7172 = vmatprep.subr.msk.bf16.mxu1 %vm691_vm1, %v1398_v21 }
 0x244   :  { %v8925_v25 = vpop.f32.mrf.mxu0 }
 0x245   :  { %v2303_v0 = vsel %vm2296_vm2, %v8925_v25, -inf }
 0x246   :  { %6699 = vmatpush3.bf16.xpose.msra.mxu0 %v1311_v32  ;;  %v8930_v15 = vpop.f32.mrf.mxu0  ;;  %2304 = vmax.xlane.f32.xlu0 %v2303_v0  ;;  %v1519_v32 = vsel %vm691_vm1, %v8725_v14, 0  ;;  %v8987_v0 = vpop.permute.xlu1 %1797 }
 0x247   :  { %7176 = vmatprep.subr.msk.bf16.mxu0 %vm691_vm1, %v8723_v30  ;;  %v2297_v6 = vsel %vm2296_vm2, %v8930_v15, -inf }
 0x248   :  { %v8934_v13 = vpop.f32.mrf.mxu0 }
 0x249   :  { %6685 = vmatmul.mubr.msk.bf16.vlgmr.msra.gmra.mxu1 %vm691_vm1, %v8619_v29  ;;  %v2306_v4 = vsel %vm2296_vm2, %v8934_v13, -inf }
 0x24a   :  { %6688 = vmatprep.mubr.msk.bf16.mxu1 %vm691_vm1, %v8689_v60  ;;  %6709 = vmatpush3.bf16.xpose.msra.mxu1 %v1421_v49  ;;  %v8941_v45 = vpop.f32.mrf.mxu0 }
 0x24b   :  { %2298 = vmax.xlane.f32.xlu0 %v2297_v6  ;;  %7173 = vmatprep.subr.msk.bf16.mxu1 %vm691_vm1, %v1396_v44  ;;  %v2300_v51 = vsel %vm2296_vm2, %v8941_v45, -inf  ;;  %v1594_v44 = vpop.permute.xlu0 %1593  ;;  %v1415_v6 = vsel %vm691_vm1, %v8873_v7, 0 }
 0x24c   :  { %2301 = vmax.xlane.f32.xlu1 %v2300_v51  ;;  %v8948_v33 = vpop.f32.mrf.mxu0 }
 0x24d   :  { %6701 = vmatmul.mubr.msk.bf16.vlgmr.msra.gmra.mxu0 %vm691_vm1, %v8645_v50  ;;  %v2315_v5 = vsel %vm2296_vm2, %v8948_v33, -inf }
 0x24e   :  { %6704 = vmatprep.mubr.msk.bf16.mxu0 %vm691_vm1, %v8699_v17  ;;  %6725 = vmatpush3.bf16.xpose.msra.mxu0 %v1522_v57  ;;  %v8956_v59 = vpop.f32.mrf.mxu0  ;;  %v1516_v57 = vsel %vm691_vm1, %v8685_v3, 0 }
 0x24f   :  { %2307 = vmax.xlane.f32.xlu0 %v2306_v4  ;;  %7177 = vmatprep.subr.msk.bf16.mxu0 %vm691_vm1, %v8725_v14  ;;  %v2309_v21 = vsel %vm2296_vm2, %v8956_v59, -inf  ;;  %v8999_v14 = vpop.permute.xlu1 %1795  ;;  %v1695_v51 = vpop.permute.xlu0 %1694  ;;  %v1412_v4 = vsel %vm691_vm1, %v8883_v53, 0 }
 0x250   :  { %2316 = vmax.xlane.f32.xlu1 %v2315_v5  ;;  %v8968_v30 = vpop.f32.mrf.mxu0 }
 0x251   :  { %6689 = vmatmul.mubr.msk.bf16.gmra.mxu1 %vm691_vm1, %v8651_v62  ;;  %v2318_v40 = vsel %vm2296_vm2, %v8968_v30, -inf }
 0x252   :  { %6711 = vmatpush3.bf16.xpose.msra.mxu1 %v1418_v38  ;;  %6716 = vmatprep.mubr.msk.bf16.mxu1 %vm691_vm1, %v8641_v48  ;;  %v8977_v9 = vpop.f32.mrf.mxu0 }
 0x253   :  { %2319 = vmax.xlane.f32.xlu0 %v2318_v40  ;;  %7174 = vmatprep.subr.msk.bf16.mxu1 %vm691_vm1, %v8873_v7  ;;  %v2312_v49 = vsel %vm2296_vm2, %v8977_v9, -inf  ;;  %v1600_v5 = vpop.permute.xlu1 %1599  ;;  %v1701_v38 = vpop.permute.xlu0 %1700  ;;  %v1513_v7 = vsel %vm691_vm1, %v8687_v55, 0 }
 0x254   :  { %2310 = vmax.xlane.f32.xlu1 %v2309_v21 }
 0x255   :  { %6705 = vmatmul.mubr.msk.bf16.gmra.mxu0 %vm691_vm1, %v8675_v41 }
 0x256   :  { %6727 = vmatpush3.bf16.xpose.msra.mxu0 %v1519_v32  ;;  %6732 = vmatprep.mubr.msk.bf16.mxu0 %vm691_vm1, %v8463_v28  ;;  %v12508_v28 = vld [vmem:[#allocation63_spill] sm:$0xff] }
 0x257   :  { %2313 = vmax.xlane.f32.xlu0 %v2312_v49  ;;  %7178 = vmatprep.subr.msk.bf16.mxu0 %vm691_vm1, %v8685_v3  ;;  %v1598_v40 = vpop.permute.xlu0 %1597  ;;  %v1623_v3 = vsel %vm691_vm1, %v1600_v5, 0  ;;  %v1617_v49 = vsel %vm691_vm1, %v8960_v23, 0 }
 0x258   :  { %v1620_v21 = vsel %vm691_vm1, %v1598_v40, 0 }
 0x25a   :  { %6713 = vmatpush3.bf16.xpose.msra.mxu1 %v1415_v6  ;;  %v1802_v6 = vpop.permute.xlu1 %1801 }
 0x25b   :  { %7175 = vmatprep.subr.msk.bf16.mxu1 %vm691_vm1, %v8883_v53  ;;  %v1699_v53 = vpop.permute.xlu0 %1698 }
 0x25c   :  { %v1721_v32 = vsel %vm691_vm1, %v1699_v53, 0 }
 0x25e   :  { %6729 = vmatpush3.bf16.xpose.msra.mxu0 %v1516_v57  ;;  %v1718_v57 = vsel %vm691_vm1, %v8966_v61, 0 }
 0x25f   :  { %7179 = vmatprep.subr.msk.bf16.mxu0 %vm691_vm1, %v8687_v55  ;;  %v1724_v55 = vsel %vm691_vm1, %v1701_v38, 0 }
 0x262   :  { %6715 = vmatpush3.bf16.xpose.msra.mxu1 %v1412_v4  ;;  %v1614_v4 = vsel %vm691_vm1, %v1594_v44, 0 }
 0x263   :  { %7180 = vmatprep.subr.msk.bf16.mxu1 %vm691_vm1, %v1600_v5  ;;  %v1800_v5 = vpop.permute.xlu1 %1799 }
 0x266   :  { %6731 = vmatpush3.bf16.xpose.msra.mxu0 %v1513_v7  ;;  %v1822_v7 = vsel %vm691_vm1, %v1800_v5, 0 }
 0x267   :  { %7184 = vmatprep.subr.msk.bf16.mxu0 %vm691_vm1, %v1701_v38  ;;  %v1715_v38 = vsel %vm691_vm1, %v1695_v51, 0 }
 0x269   :  { %6717 = vmatmul.mubr.msk.bf16.vlgmr.msra.gmra.mxu1 %vm691_vm1, %v8627_v39 }
 0x26a   :  { %6720 = vmatprep.mubr.msk.bf16.mxu1 %vm691_vm1, %v8673_v22  ;;  %6741 = vmatpush3.bf16.xpose.msra.mxu1 %v1623_v3  ;;  %v12485_v3 = vld [vmem:[#allocation44_spill] sm:$0xff] }
 0x26b   :  { %7181 = vmatprep.subr.msk.bf16.mxu1 %vm691_vm1, %v1598_v40  ;;  %v12484_v40 = vld [vmem:[#allocation37_spill] sm:$0xff] }
 0x26d   :  { %6733 = vmatmul.mubr.msk.bf16.vlgmr.msra.gmra.mxu0 %vm691_vm1, %v8461_v27  ;;  %v12509_v27 = vld [vmem:[#allocation56_spill] sm:$0xff] }
 0x26e   :  { %6736 = vmatprep.mubr.msk.bf16.mxu0 %vm691_vm1, %v8477_v36  ;;  %6757 = vmatpush3.bf16.xpose.msra.mxu0 %v1724_v55  ;;  %v1923_v55 = vsel %vm691_vm1, %v8807_v16, 0 }
 0x26f   :  { %7185 = vmatprep.subr.msk.bf16.mxu0 %vm691_vm1, %v1699_v53  ;;  %v12486_v53 = vld [vmem:[#allocation14_spill] sm:$0xff] }
 0x271   :  { %6721 = vmatmul.mubr.msk.bf16.gmra.mxu1 %vm691_vm1, %v8665_v20 }
 0x272   :  { %6743 = vmatpush3.bf16.xpose.msra.mxu1 %v1620_v21  ;;  %6748 = vmatprep.mubr.msk.bf16.mxu1 %vm691_vm1, %v8715_v2  ;;  %v12487_v21 = vld [vmem:[#allocation50_spill] sm:$0xff] }
 0x273   :  { %7182 = vmatprep.subr.msk.bf16.mxu1 %vm691_vm1, %v8960_v23  ;;  %v9048_v23 = vpop.permute.xlu1 %1999 }
 0x275   :  { %6737 = vmatmul.mubr.msk.bf16.gmra.mxu0 %vm691_vm1, %v8475_v35 }
 0x276   :  { %6759 = vmatpush3.bf16.xpose.msra.mxu0 %v1721_v32  ;;  %6764 = vmatprep.mubr.msk.bf16.mxu0 %vm691_vm1, %v8727_v42  ;;  %v1819_v32 = vsel %vm691_vm1, %v8987_v0, 0 }
 0x277   :  { %7186 = vmatprep.subr.msk.bf16.mxu0 %vm691_vm1, %v8966_v61  ;;  %v1825_v61 = vsel %vm691_vm1, %v1802_v6, 0 }
 0x27a   :  { %6745 = vmatpush3.bf16.xpose.msra.mxu1 %v1617_v49 }
 0x27b   :  { %7183 = vmatprep.subr.msk.bf16.mxu1 %vm691_vm1, %v1594_v44  ;;  %v1926_v44 = vsel %vm691_vm1, %v8795_v47, 0 }
 0x27e   :  { %6761 = vmatpush3.bf16.xpose.msra.mxu0 %v1718_v57 }
 0x27f   :  { %7187 = vmatprep.subr.msk.bf16.mxu0 %vm691_vm1, %v1695_v51  ;;  %v9060_v51 = vpop.permute.xlu1 %2201 }
 0x280   :  { %v2223_v42 = vsel %vm691_vm1, %v9060_v51, 0 }
 0x282   :  { %6747 = vmatpush3.bf16.xpose.msra.mxu1 %v1614_v4  ;;  %v12488_v4 = vld [vmem:[#allocation53_spill] sm:$0xff] }
 0x283   :  { %7188 = vmatprep.subr.msk.bf16.mxu1 %vm691_vm1, %v1802_v6  ;;  %v2101_v6 = vpop.permute.xlu0 %2100 }
 0x286   :  { %6763 = vmatpush3.bf16.xpose.msra.mxu0 %v1715_v38 }
 0x287   :  { %7192 = vmatprep.subr.msk.bf16.mxu0 %vm691_vm1, %v8795_v47  ;;  %v1998_v47 = vpop.permute.xlu1 %1997  ;;  %v2099_v38 = vpop.permute.xlu0 %2098 }
 0x289   :  { %6749 = vmatmul.mubr.msk.bf16.vlgmr.msra.gmra.mxu1 %vm691_vm1, %v8683_v58 }
 0x28a   :  { %6752 = vmatprep.mubr.msk.bf16.mxu1 %vm691_vm1, %v8743_v31  ;;  %6773 = vmatpush3.bf16.xpose.msra.mxu1 %v1825_v61  ;;  %v1917_v61 = vsel %vm691_vm1, %v12488_v4, 0 }
 0x28b   :  { %7189 = vmatprep.subr.msk.bf16.mxu1 %vm691_vm1, %v1800_v5  ;;  %v9083_v49 = vpop.permute.xlu1 %2199  ;;  %v1816_v5 = vsel %vm691_vm1, %v8999_v14, 0 }
 0x28d   :  { %6765 = vmatmul.mubr.msk.bf16.vlgmr.msra.gmra.mxu0 %vm691_vm1, %v8707_v46 }
 0x28e   :  { %6768 = vmatprep.mubr.msk.bf16.mxu0 %vm691_vm1, %v8751_v37  ;;  %6789 = vmatpush3.bf16.xpose.msra.mxu0 %v1926_v44  ;;  %v2105_v44 = vpop.permute.xlu0 %2104 }
 0x28f   :  { %7193 = vmatprep.subr.msk.bf16.mxu0 %vm691_vm1, %v8807_v16  ;;  %v1920_v16 = vsel %vm691_vm1, %v12487_v21, 0  ;;  %v2004_v57 = vpop.permute.xlu1 %2003 }
 0x291   :  { %6753 = vmatmul.mubr.msk.bf16.gmra.mxu1 %vm691_vm1, %v8713_v26 }
 0x292   :  { %6775 = vmatpush3.bf16.xpose.msra.mxu1 %v1822_v7  ;;  %6780 = vmatprep.mubr.msk.bf16.mxu1 %vm691_vm1, %v12484_v40  ;;  %v12489_v7 = vld [vmem:[#allocation35_spill] sm:$0xff] }
 0x293   :  { %7190 = vmatprep.subr.msk.bf16.mxu1 %vm691_vm1, %v8987_v0  ;;  %v2206_v0 = vpop.permute.xlu1 %2205 }
 0x295   :  { %6769 = vmatmul.mubr.msk.bf16.gmra.mxu0 %vm691_vm1, %v12485_v3 }
 0x296   :  { %6791 = vmatpush3.bf16.xpose.msra.mxu0 %v1923_v55  ;;  %6796 = vmatprep.mubr.msk.bf16.mxu0 %vm691_vm1, %v12486_v53  ;;  %v2027_v55 = vsel %vm691_vm1, %v2004_v57, 0 }
 0x297   :  { %7194 = vmatprep.subr.msk.bf16.mxu0 %vm691_vm1, %v12487_v21  ;;  %v2002_v21 = vpop.permute.xlu1 %2001 }
 0x29a   :  { %6777 = vmatpush3.bf16.xpose.msra.mxu1 %v1819_v32  ;;  %v12490_v32 = vld [vmem:[#allocation43_spill] sm:$0xff] }
 0x29b   :  { %7191 = vmatprep.subr.msk.bf16.mxu1 %vm691_vm1, %v8999_v14  ;;  %v12491_v14 = vld [vmem:[#allocation13_spill] sm:$0xff] }
 0x29e   :  { %6793 = vmatpush3.bf16.xpose.msra.mxu0 %v1920_v16  ;;  %v2128_v16 = vsel %vm691_vm1, %v2105_v44, 0 }
 0x29f   :  { %7195 = vmatprep.subr.msk.bf16.mxu0 %vm691_vm1, %v12488_v4  ;;  %v2103_v4 = vpop.permute.xlu0 %2102 }
 0x2a0   :  { %v2125_v53 = vsel %vm691_vm1, %v2103_v4, 0 }
 0x2a2   :  { %6779 = vmatpush3.bf16.xpose.msra.mxu1 %v1816_v5  ;;  %v12492_v5 = vld [vmem:[#allocation18_spill] sm:$0xff] }
 0x2a3   :  { %7196 = vmatprep.subr.msk.bf16.mxu1 %vm691_vm1, %v2004_v57  ;;  %v12493_v57 = vld [vmem:[#allocation41_spill] sm:$0xff] }
 0x2a6   :  { %6795 = vmatpush3.bf16.xpose.msra.mxu0 %v1917_v61  ;;  %v2024_v61 = vsel %vm691_vm1, %v2002_v21, 0 }
 0x2a7   :  { %7200 = vmatprep.subr.msk.bf16.mxu0 %vm691_vm1, %v2105_v44  ;;  %v12495_v44 = vld [vmem:[#allocation17_spill] sm:$0xff] }
 0x2a9   :  { %6781 = vmatmul.mubr.msk.bf16.vlgmr.msra.gmra.mxu1 %vm691_vm1, %v12489_v7  ;;  %v12506_v7 = vld [vmem:[#allocation47_spill] sm:$0xff] }
 0x2aa   :  { %6784 = vmatprep.mubr.msk.bf16.mxu1 %vm691_vm1, %v12490_v32  ;;  %6805 = vmatpush3.bf16.xpose.msra.mxu1 %v2027_v55  ;;  %v12494_v55 = vld [vmem:[#allocation49_spill] sm:$0xff] }
 0x2ab   :  { %7197 = vmatprep.subr.msk.bf16.mxu1 %vm691_vm1, %v2002_v21  ;;  %v2021_v21 = vsel %vm691_vm1, %v9048_v23, 0 }
 0x2ad   :  { %6797 = vmatmul.mubr.msk.bf16.vlgmr.msra.gmra.mxu0 %vm691_vm1, %v12491_v14 }
 0x2ae   :  { %6800 = vmatprep.mubr.msk.bf16.mxu0 %vm691_vm1, %v12492_v5  ;;  %6821 = vmatpush3.bf16.xpose.msra.mxu0 %v2128_v16  ;;  %v12496_v16 = vld [vmem:[#allocation54_spill] sm:$0xff] }
 0x2af   :  { %7201 = vmatprep.subr.msk.bf16.mxu0 %vm691_vm1, %v2103_v4  ;;  %v12497_v4 = vld [vmem:[#allocation20_spill] sm:$0xff] }
 0x2b1   :  { %6785 = vmatmul.mubr.msk.bf16.gmra.mxu1 %vm691_vm1, %v12493_v57  ;;  %v12507_v57 = vld [vmem:[#allocation61_spill] sm:$0xff] }
 0x2b2   :  { %6807 = vmatpush3.bf16.xpose.msra.mxu1 %v2024_v61  ;;  %6812 = vmatprep.mubr.msk.bf16.mxu1 %vm691_vm1, %v12494_v55  ;;  %v2122_v61 = vsel %vm691_vm1, %v2101_v6, 0  ;;  %v2018_v55 = vsel %vm691_vm1, %v1998_v47, 0 }
 0x2b3   :  { %7198 = vmatprep.subr.msk.bf16.mxu1 %vm691_vm1, %v9048_v23  ;;  %v12498_v23 = vld [vmem:[#allocation45_spill] sm:$0xff] }
 0x2b5   :  { %6801 = vmatmul.mubr.msk.bf16.gmra.mxu0 %vm691_vm1, %v12495_v44 }
 0x2b6   :  { %6823 = vmatpush3.bf16.xpose.msra.mxu0 %v2125_v53  ;;  %6828 = vmatprep.mubr.msk.bf16.mxu0 %vm691_vm1, %v12496_v16  ;;  %v2119_v53 = vsel %vm691_vm1, %v2099_v38, 0 }
 0x2b7   :  { %7202 = vmatprep.subr.msk.bf16.mxu0 %vm691_vm1, %v2101_v6  ;;  %v2229_v6 = vsel %vm691_vm1, %v2206_v0, 0 }
 0x2ba   :  { %6809 = vmatpush3.bf16.xpose.msra.mxu1 %v2021_v21  ;;  %v2204_v21 = vpop.permute.xlu1 %2203 }
 0x2bb   :  { %7199 = vmatprep.subr.msk.bf16.mxu1 %vm691_vm1, %v1998_v47 }
 0x2be   :  { %6825 = vmatpush3.bf16.xpose.msra.mxu0 %v2122_v61 }
 0x2bf   :  { %7203 = vmatprep.subr.msk.bf16.mxu0 %vm691_vm1, %v2099_v38 }
 0x2c2   :  { %6811 = vmatpush3.bf16.xpose.msra.mxu1 %v2018_v55 }
 0x2c3   :  { %7204 = vmatprep.subr.msk.bf16.mxu1 %vm691_vm1, %v2206_v0 }
 0x2c6   :  { %6827 = vmatpush3.bf16.xpose.msra.mxu0 %v2119_v53  ;;  %v12499_v53 = vld [vmem:[#allocation51_spill] sm:$0xff] }
 0x2c7   :  { %6852 = vmatprep.subr.bf16.mxu0 %v12497_v4 }
 0x2c9   :  { %v9131_v16 = vpop.f32.mrf.mxu1  ;;  %6813 = vmatmul.mubr.msk.bf16.vlgmr.msra.gmra.mxu1 %vm691_vm1, %v12498_v23  ;;  %v12500_v23 = vld [vmem:[#allocation21_spill] sm:$0xff] }
 0x2ca   :  { %6816 = vmatprep.mubr.msk.bf16.mxu1 %vm691_vm1, %v8791_v12  ;;  %6837 = vmatpush3.bf16.xpose.msra.mxu1 %v2229_v6  ;;  %v2327_v47 = vsel %vm2296_vm2, %v9131_v16, -inf  ;;  %v12501_v12 = vld [vmem:[#allocation55_spill] sm:$0xff] }
 0x2cb   :  { %2328 = vmax.xlane.f32.xlu1 %v2327_v47  ;;  %v9140_v38 = vpop.f32.mrf.mxu1  ;;  %7205 = vmatprep.subr.msk.bf16.mxu1 %vm691_vm1, %v2204_v21 }
 0x2cd   :  { %v9143_v55 = vpop.f32.mrf.mxu1  ;;  %v9145_v61 = vpop.f32.mrf.mxu0  ;;  %6829 = vmatmul.mubr.msk.bf16.vlgmr.msra.gmra.mxu0 %vm691_vm1, %v12499_v53 }
 0x2ce   :  { %6832 = vmatprep.mubr.msk.bf16.mxu0 %vm691_vm1, %v8793_v8  ;;  %6853 = vmatpush3.bf16.msra.mxu0 %v12497_v4  ;;  %v2330_v0 = vsel %vm2296_vm2, %v9143_v55, -inf  ;;  %v2351_v6 = vsel %vm2296_vm2, %v9145_v61, -inf  ;;  %v2226_v4 = vsel %vm691_vm1, %v2204_v21, 0  ;;  %v12502_v8 = vld [vmem:[#allocation52_spill] sm:$0xff] }
 0x2cf   :  { %2331 = vmax.xlane.f32.xlu0 %v2330_v0  ;;  %2352 = vmax.xlane.f32.xlu1 %v2351_v6  ;;  %v9156_v47 = vpop.f32.mrf.mxu0  ;;  %v9158_v14 = vpop.f32.mrf.mxu1  ;;  %v2321_v0 = vsel %vm2296_vm2, %v9140_v38, -inf  ;;  %v12503_v21 = vld [vmem:[#allocation16_spill] sm:$0xff] }
 0x2d0   :  { %6854 = vmatprep.subr.bf16.mxu0 %v12500_v23 }
 0x2d1   :  { %v9161_v53 = vpop.f32.mrf.mxu0  ;;  %6817 = vmatmul.mubr.msk.bf16.gmra.mxu1 %vm691_vm1, %v12501_v12  ;;  %v9173_v5 = vpop.f32.mrf.mxu1  ;;  %v12505_v12 = vld [vmem:[#allocation15_spill] sm:$0xff] }
 0x2d2   :  { %6839 = vmatpush3.bf16.xpose.msra.mxu1 %v2226_v4  ;;  %6844 = vmatprep.mubr.msk.bf16.mxu1 %vm691_vm1, %v12502_v8  ;;  %v2354_v6 = vsel %vm2296_vm2, %v9161_v53, -inf  ;;  %v12504_v4 = vld [vmem:[#allocation57_spill] sm:$0xff]  ;;  %v2345_v8 = vsel %vm2296_vm2, %v9156_v47, -inf }
 0x2d3   :  { %6855 = vmatpush3.bf16.msra.mxu0 %v12500_v23  ;;  %2322 = vmax.xlane.f32.xlu1 %v2321_v0  ;;  %v9175_v44 = vpop.f32.mrf.mxu0  ;;  %v2324_v23 = vsel %vm2296_vm2, %v9158_v14, -inf  ;;  %v9187_v0 = vpop.f32.mrf.mxu1 }
 0x2d4   :  { %2355 = vmax.xlane.f32.xlu0 %v2354_v6  ;;  %7206 = vmatprep.subr.msk.bf16.mxu1 %vm691_vm1, %v9060_v51 }
 0x2d5   :  { %6856 = vmatprep.subr.bf16.mxu0 %v12503_v21  ;;  %6833 = vmatmul.mubr.msk.bf16.gmra.mxu0 %vm691_vm1, %v12504_v4  ;;  %v9189_v6 = vpop.f32.mrf.mxu0  ;;  %v2339_v4 = vsel %vm2296_vm2, %v9173_v5, -inf }
 0x2d7   :  { %6857 = vmatpush3.bf16.msra.mxu0 %v12503_v21  ;;  %2346 = vmax.xlane.f32.xlu1 %v2345_v8  ;;  %v2348_v8 = vsel %vm2296_vm2, %v9175_v44, -inf  ;;  %v9199_v21 = vpop.f32.mrf.mxu1  ;;  %v9201_v40 = vpop.f32.mrf.mxu0 }
 0x2d8   :  { %2325 = vmax.xlane.f32.xlu0 %v2324_v23  ;;  %6858 = vmatprep.subr.bf16.mxu0 %v12505_v12  ;;  %v2333_v23 = vsel %vm2296_vm2, %v9187_v0, -inf }
 0x2d9   :  { %v9210_v51 = vpop.f32.mrf.mxu0  ;;  %v9219_v46 = vpop.f32.mrf.mxu1 }
 0x2da   :  { %6841 = vmatpush3.bf16.xpose.msra.mxu1 %v2223_v42  ;;  %v2363_v42 = vsel %vm2296_vm2, %v9189_v6, -inf }
 0x2db   :  { %6859 = vmatpush3.bf16.msra.mxu0 %v12505_v12  ;;  %2340 = vmax.xlane.f32.xlu1 %v2339_v4  ;;  %v2342_v12 = vsel %vm2296_vm2, %v9199_v21, -inf  ;;  %v2220_v4 = vsel %vm691_vm1, %v9083_v49, 0 }
 0x2dc   :  { %2349 = vmax.xlane.f32.xlu0 %v2348_v8  ;;  %7207 = vmatprep.subr.msk.bf16.mxu1 %vm691_vm1, %v9083_v49  ;;  %v2366_v8 = vsel %vm2296_vm2, %v9210_v51, -inf  ;;  %v2336_v49 = vsel %vm2296_vm2, %v9219_v46, -inf }
 0x2dd   :  { %6868 = vmatprep.subr.bf16.mxu0 %v8825_v54 }
 0x2df   :  { %2364 = vmax.xlane.f32.xlu1 %v2363_v42  ;;  %v2305_v42 = vpop.xlane.xlu0 %2304 }
 0x2e0   :  { %2343 = vmax.xlane.f32.xlu0 %v2342_v12  ;;  %v2357_v12 = vsel %vm2296_vm2, %v9201_v40, -inf }
 0x2e2   :  { %6843 = vmatpush3.bf16.xpose.msra.mxu1 %v2220_v4  ;;  %v9225_v4 = vpop.f32.mrf.mxu0 }
 0x2e3   :  { %2334 = vmax.xlane.f32.xlu1 %v2333_v23  ;;  %6884 = vmatprep.subr.bf16.mxu1 %v8831_v34  ;;  %v2360_v32 = vsel %vm2296_vm2, %v9225_v4, -inf }
 0x2e4   :  { %2367 = vmax.xlane.f32.xlu0 %v2366_v8 }
 0x2e7   :  { %2358 = vmax.xlane.f32.xlu1 %v2357_v12 }
 0x2e8   :  { %2337 = vmax.xlane.f32.xlu0 %v2336_v49  ;;  %v2299_v49 = vpop.xlane.xlu0 %2298 }
 0x2e9   :  { %v9227_v23 = vpop.f32.mrf.mxu1  ;;  %6845 = vmatmul.mubr.msk.bf16.vlgmr.msra.gmra.mxu1 %vm691_vm1, %v12506_v7 }
 0x2ea   :  { %6848 = vmatprep.mubr.msk.bf16.mxu1 %vm691_vm1, %v12507_v57  ;;  %6885 = vmatpush3.bf16.msra.mxu1 %v8831_v34  ;;  %v2375_v8 = vsel %vm2296_vm2, %v9227_v23, -inf }
 0x2eb   :  { %v9236_v12 = vpop.f32.mrf.mxu1  ;;  %2376 = vmax.xlane.f32.xlu1 %v2375_v8  ;;  %6886 = vmatprep.subr.bf16.mxu1 %v8839_v43  ;;  %v2302_v8 = vpop.xlane.xlu1 %2301 }
 0x2ec   :  { %2361 = vmax.xlane.f32.xlu0 %v2360_v32  ;;  %v2369_v58 = vsel %vm2296_vm2, %v9236_v12, -inf  ;;  %v2308_v26 = vpop.xlane.xlu0 %2307 }
 0x2ed   :  { %v9241_v37 = vpop.f32.mrf.mxu1  ;;  %v9243_v7 = vpop.f32.mrf.mxu0 }
 0x2ee   :  { %6887 = vmatpush3.bf16.msra.mxu1 %v8839_v43  ;;  %v2378_v34 = vsel %vm2296_vm2, %v9241_v37, -inf  ;;  %v2399_v57 = vsel %vm2296_vm2, %v9243_v7, -inf  ;;  %v2683_v43 = vsub.f32 %v8925_v25, %v2305_v42  ;;  %v2684_v25 = vsub.f32 %v8934_v13, %v2308_v26 }
 0x2ef   :  { %2400 = vmax.xlane.f32.xlu1 %v2399_v57  ;;  %v9250_v3 = vpop.f32.mrf.mxu0  ;;  %6888 = vmatprep.subr.bf16.mxu1 %v12508_v28  ;;  %v9253_v2 = vpop.f32.mrf.mxu1 }
 0x2f0   :  { %2379 = vmax.xlane.f32.xlu0 %v2378_v34  ;;  %v2317_v36 = vpop.xlane.xlu1 %2316  ;;  %v2813_v35 = vmul.f32 1.442695, %v2683_v43  ;;  %v2372_v42 = vsel %vm2296_vm2, %v9253_v2, -inf  ;;  %v2320_v48 = vpop.xlane.xlu0 %2319  ;;  %v2815_v26 = vmul.f32 1.442695, %v2684_v25 }
 0x2f1   :  { %v9255_v32 = vpop.f32.mrf.mxu0  ;;  %6849 = vmatmul.mubr.msk.bf16.gmra.mxu1 %vm691_vm1, %v12509_v27  ;;  %v9265_v31 = vpop.f32.mrf.mxu1  ;;  %v2681_v27 = vsub.f32 %v8930_v15, %v2299_v49  ;;  %v2687_v43 = vsub.f32 %v8948_v33, %v2317_v36  ;;  %v2682_v49 = vsub.f32 %v8941_v45, %v2302_v8  ;;  %v2688_v45 = vsub.f32 %v8968_v30, %v2320_v48 }
 0x2f2   :  { %6889 = vmatpush3.bf16.msra.mxu1 %v12508_v28  ;;  %v2402_v57 = vsel %vm2296_vm2, %v9255_v32, -inf  ;;  %v2393_v28 = vsel %vm2296_vm2, %v9250_v3, -inf  ;;  %7702 = vpow2.f32 %v2813_v35  ;;  %v2387_v15 = vsel %vm2296_vm2, %v9265_v31, -inf }
 0x2f3   :  { %2370 = vmax.xlane.f32.xlu1 %v2369_v58  ;;  %v9267_v34 = vpop.f32.mrf.mxu0  ;;  %v9275_v1 = vpop.f32.mrf.mxu1  ;;  %v2811_v33 = vmul.f32 1.442695, %v2682_v49 }
 0x2f4   :  { %2403 = vmax.xlane.f32.xlu0 %v2402_v57  ;;  %v2809_v57 = vmul.f32 1.442695, %v2681_v27  ;;  %v2311_v13 = vpop.xlane.xlu1 %2310  ;;  %v2821_v27 = vmul.f32 1.442695, %v2687_v43  ;;  %v2314_v25 = vpop.xlane.xlu0 %2313  ;;  %v2823_v43 = vmul.f32 1.442695, %v2688_v45 }
 0x2f5   :  { %v9277_v58 = vpop.f32.mrf.mxu0  ;;  %v9285_v50 = vpop.f32.mrf.mxu1  ;;  %v2685_v35 = vsub.f32 %v8956_v59, %v2311_v13  ;;  %v2381_v59 = vsel %vm2296_vm2, %v9275_v1, -inf }
 0x2f6   :  { %7704 = vpow2.f32 %v2809_v57  ;;  %v2411_v36 = vsel %vm2296_vm2, %v9277_v58, -inf  ;;  %v2390_v8 = vsel %vm2296_vm2, %v9285_v50, -inf }
 0x2f7   :  { %2394 = vmax.xlane.f32.xlu1 %v2393_v28  ;;  %v2396_v28 = vsel %vm2296_vm2, %v9267_v34, -inf  ;;  %v9287_v39 = vpop.f32.mrf.mxu0  ;;  %7706 = vpow2.f32 %v2815_v26  ;;  %v2817_v57 = vmul.f32 1.442695, %v2685_v35  ;;  %v9302_v30 = vpop.f32.mrf.mxu1 }
 0x2f8   :  { %2373 = vmax.xlane.f32.xlu0 %v2372_v42  ;;  %7708 = vpow2.f32 %v2821_v27  ;;  %v2405_v49 = vsel %vm2296_vm2, %v9287_v39, -inf }
 0x2f9   :  { %v9295_v42 = vpop.f32.mrf.mxu0  ;;  %7710 = vpow2.f32 %v2811_v33 }
 0x2fa   :  { %12510 = vst [vmem:[#allocation50_spill] sm:$0xff] %v9295_v42  ;;  %v2414_v48 = vsel %vm2296_vm2, %v9295_v42, -inf  ;;  %7712 = vpow2.f32 %v2817_v57 }
 0x2fb   :  { %2388 = vmax.xlane.f32.xlu1 %v2387_v15  ;;  %v2686_v15 = vsub.f32 %v8977_v9, %v2314_v25  ;;  %7714 = vpow2.f32 %v2823_v43  ;;  %v9310_v9 = vpop.f32.mrf.mxu0 }
 0x2fc   :  { %2397 = vmax.xlane.f32.xlu0 %v2396_v28  ;;  %v2384_v28 = vsel %vm2296_vm2, %v9302_v30, -inf  ;;  %12511 = vst [vmem:[#allocation53_spill] sm:$0xff] %v9310_v9 }
 0x2fd   :  { %v2819_v13 = vmul.f32 1.442695, %v2686_v15 }
 0x2ff   :  { %2412 = vmax.xlane.f32.xlu1 %v2411_v36  ;;  %v9306_v26 = vpop.eup %7702  ;;  %7716 = vpow2.f32 %v2819_v13  ;;  %v2408_v36 = vsel %vm2296_vm2, %v9310_v9, -inf }
 0x300   :  { %2391 = vmax.xlane.f32.xlu0 %v2390_v8  ;;  %v3071_v27 = vsel %vm2296_vm2, %v9306_v26, 0.0 }
 0x303   :  { %2382 = vmax.xlane.f32.xlu1 %v2381_v59  ;;  %v9314_v35 = vpop.eup %7704 }
 0x304   :  { %2415 = vmax.xlane.f32.xlu0 %v2414_v48  ;;  %v9318_v33 = vpop.eup %7706  ;;  %v3065_v45 = vsel %vm2296_vm2, %v9314_v35, 0.0 }
 0x305   :  { %v9322_v8 = vpop.eup %7708  ;;  %v3074_v25 = vsel %vm2296_vm2, %v9318_v33, 0.0 }
 0x306   :  { %v9326_v57 = vpop.eup %7710  ;;  %v3083_v59 = vsel %vm2296_vm2, %v9322_v8, 0.0 }
 0x307   :  { %2406 = vmax.xlane.f32.xlu1 %v2405_v49  ;;  %v9330_v43 = vpop.eup %7712  ;;  %v3068_v15 = vsel %vm2296_vm2, %v9326_v57, 0.0 }
 0x308   :  { %2385 = vmax.xlane.f32.xlu0 %v2384_v28  ;;  %v9334_v48 = vpop.eup %7714  ;;  %v3077_v13 = vsel %vm2296_vm2, %v9330_v43, 0.0 }
 0x309   :  { %v9336_v49 = vpop.f32.mrf.mxu1  ;;  %v3086_v28 = vsel %vm2296_vm2, %v9334_v48, 0.0 }
 0x30b   :  { %3072 = vadd.xlane.f32.xlu1 %v3071_v27 }
 0x30c   :  { %2409 = vmax.xlane.f32.xlu0 %v2408_v36  ;;  %v9342_v27 = vpop.eup %7716  ;;  %v9344_v36 = vpop.f32.mrf.mxu1 }
 0x30d   :  { %12512 = vst [vmem:[#allocation20_spill] sm:$0xff] %v9344_v36 }
 0x30f   :  { %3066 = vadd.xlane.f32.xlu1 %v3065_v45  ;;  %v9346_v45 = vpop.f32.mrf.mxu0 }
 0x310   :  { %3075 = vadd.xlane.f32.xlu0 %v3074_v25  ;;  %12513 = vst [vmem:[#allocation21_spill] sm:$0xff] %v9346_v45  ;;  %v2423_v25 = vsel %vm2296_vm2, %v9336_v49, -inf  ;;  %v2447_v20 = vsel %vm2296_vm2, %v9346_v45, -inf }
 0x313   :  { %3084 = vadd.xlane.f32.xlu1 %v3083_v59  ;;  %v3080_v59 = vsel %vm2296_vm2, %v9342_v27, 0.0 }
 0x314   :  { %3069 = vadd.xlane.f32.xlu0 %v3068_v15  ;;  %v9352_v15 = vpop.f32.mrf.mxu1 }
 0x315   :  { %v2426_v22 = vsel %vm2296_vm2, %v9352_v15, -inf }
 0x317   :  { %3078 = vadd.xlane.f32.xlu1 %v3077_v13  ;;  %v9354_v13 = vpop.f32.mrf.mxu0 }
 0x318   :  { %3087 = vadd.xlane.f32.xlu0 %v3086_v28  ;;  %12514 = vst [vmem:[#allocation16_spill] sm:$0xff] %v9354_v13  ;;  %v9360_v28 = vpop.f32.mrf.mxu1 }
 0x319   :  { %v9362_v17 = vpop.f32.mrf.mxu0  ;;  %v2420_v52 = vsel %vm2296_vm2, %v9360_v28, -inf }
 0x31a   :  { %12515 = vst [vmem:[#allocation15_spill] sm:$0xff] %v9362_v17  ;;  %v2450_v41 = vsel %vm2296_vm2, %v9362_v17, -inf }
 0x31b   :  { %2424 = vmax.xlane.f32.xlu1 %v2423_v25  ;;  %v2417_v25 = vsel %vm2296_vm2, %v9344_v36, -inf  ;;  %v9370_v11 = vpop.f32.mrf.mxu0 }
 0x31c   :  { %3081 = vadd.xlane.f32.xlu0 %v3080_v59  ;;  %v9368_v59 = vpop.f32.mrf.mxu1  ;;  %12517 = vst [vmem:[#allocation67_spill] sm:$0xff] %v9370_v11  ;;  %v2444_v29 = vsel %vm2296_vm2, %v9370_v11, -inf }
 0x31d   :  { %12516 = vst [vmem:[#allocation63_spill] sm:$0xff] %v9368_v59  ;;  %v9378_v10 = vpop.f32.mrf.mxu0 }
 0x31e   :  { %12519 = vst [vmem:[#allocation69_spill] sm:$0xff] %v9378_v10 }
 0x31f   :  { %2448 = vmax.xlane.f32.xlu1 %v2447_v20  ;;  %v2441_v20 = vsel %vm2296_vm2, %v9354_v13, -inf  ;;  %v9386_v62 = vpop.f32.mrf.mxu0 }
 0x320   :  { %2427 = vmax.xlane.f32.xlu0 %v2426_v22  ;;  %v9376_v22 = vpop.f32.mrf.mxu1  ;;  %12521 = vst [vmem:[#allocation71_spill] sm:$0xff] %v9386_v62 }
 0x321   :  { %12518 = vst [vmem:[#allocation68_spill] sm:$0xff] %v9376_v22 }
 0x323   :  { %2418 = vmax.xlane.f32.xlu1 %v2417_v25  ;;  %v2435_v25 = vsel %vm2296_vm2, %v9368_v59, -inf }
 0x324   :  { %2451 = vmax.xlane.f32.xlu0 %v2450_v41  ;;  %v9384_v41 = vpop.f32.mrf.mxu1 }
 0x325   :  { %12520 = vst [vmem:[#allocation70_spill] sm:$0xff] %v9384_v41  ;;  %v2438_v60 = vsel %vm2296_vm2, %v9384_v41, -inf }
 0x326   :  { %v9394_v19 = vpop.f32.mrf.mxu1 }
 0x327   :  { %2442 = vmax.xlane.f32.xlu1 %v2441_v20  ;;  %v2459_v20 = vsel %vm2296_vm2, %v9378_v10, -inf  ;;  %12523 = vst [vmem:[#allocation73_spill] sm:$0xff] %v9394_v19 }
 0x328   :  { %2421 = vmax.xlane.f32.xlu0 %v2420_v52  ;;  %v9392_v52 = vpop.f32.mrf.mxu0 }
 0x329   :  { %12522 = vst [vmem:[#allocation72_spill] sm:$0xff] %v9392_v52  ;;  %v2462_v13 = vsel %vm2296_vm2, %v9392_v52, -inf }
 0x32a   :  { %v9402_v10 = vpop.f32.mrf.mxu0 }
 0x32b   :  { %2436 = vmax.xlane.f32.xlu1 %v2435_v25  ;;  %v2429_v25 = vsel %vm2296_vm2, %v9376_v22, -inf  ;;  %12525 = vst [vmem:[#allocation75_spill] sm:$0xff] %v9402_v10 }
 0x32c   :  { %2445 = vmax.xlane.f32.xlu0 %v2444_v29  ;;  %v9400_v29 = vpop.f32.mrf.mxu1 }
 0x32d   :  { %12524 = vst [vmem:[#allocation74_spill] sm:$0xff] %v9400_v29  ;;  %v9410_v56 = vpop.f32.mrf.mxu0 }
 0x32e   :  { %v9408_v18 = vpop.f32.mrf.mxu1  ;;  %12527 = vst [vmem:[#allocation77_spill] sm:$0xff] %v9410_v56 }
 0x32f   :  { %2460 = vmax.xlane.f32.xlu1 %v2459_v20  ;;  %v2453_v20 = vsel %vm2296_vm2, %v9386_v62, -inf  ;;  %12526 = vst [vmem:[#allocation76_spill] sm:$0xff] %v9408_v18  ;;  %v9418_v17 = vpop.f32.mrf.mxu0 }
 0x330   :  { %2439 = vmax.xlane.f32.xlu0 %v2438_v60  ;;  %v2432_v60 = vsel %vm2296_vm2, %v9394_v19, -inf  ;;  %v9416_v52 = vpop.f32.mrf.mxu1  ;;  %12529 = vst [vmem:[#allocation79_spill] sm:$0xff] %v9418_v17 }
 0x331   :  { %12528 = vst [vmem:[#allocation78_spill] sm:$0xff] %v9416_v52  ;;  %v2474_v62 = vsel %vm2296_vm2, %v9416_v52, -inf  ;;  %v9426_v45 = vpop.f32.mrf.mxu0 }
 0x332   :  { %12531 = vst [vmem:[#allocation81_spill] sm:$0xff] %v9426_v45 }
 0x333   :  { %2430 = vmax.xlane.f32.xlu1 %v2429_v25  ;;  %v2471_v25 = vsel %vm2296_vm2, %v9400_v29, -inf  ;;  %v9434_v29 = vpop.f32.mrf.mxu0 }
 0x334   :  { %2463 = vmax.xlane.f32.xlu0 %v2462_v13  ;;  %v2456_v13 = vsel %vm2296_vm2, %v9402_v10, -inf  ;;  %v2498_v10 = vsel %vm2296_vm2, %v9426_v45, -inf  ;;  %12533 = vst [vmem:[#allocation83_spill] sm:$0xff] %v9434_v29  ;;  %v2492_v45 = vsel %vm2296_vm2, %v9434_v29, -inf }
 0x335   :  { %v9442_v52 = vpop.f32.mrf.mxu0 }
 0x336   :  { %12535 = vst [vmem:[#allocation85_spill] sm:$0xff] %v9442_v52 }
 0x337   :  { %2454 = vmax.xlane.f32.xlu1 %v2453_v20  ;;  %v2495_v20 = vsel %vm2296_vm2, %v9410_v56, -inf }
 0x338   :  { %2433 = vmax.xlane.f32.xlu0 %v2432_v60  ;;  %v9424_v60 = vpop.f32.mrf.mxu1 }
 0x339   :  { %12530 = vst [vmem:[#allocation80_spill] sm:$0xff] %v9424_v60  ;;  %v2468_v56 = vsel %vm2296_vm2, %v9424_v60, -inf }
 0x33b   :  { %2472 = vmax.xlane.f32.xlu1 %v2471_v25  ;;  %v2465_v25 = vsel %vm2296_vm2, %v9408_v18, -inf  ;;  %v9450_v18 = vpop.f32.mrf.mxu0 }
 0x33c   :  { %2457 = vmax.xlane.f32.xlu0 %v2456_v13  ;;  %v9432_v13 = vpop.f32.mrf.mxu1  ;;  %12537 = vst [vmem:[#allocation87_spill] sm:$0xff] %v9450_v18 }
 0x33d   :  { %12532 = vst [vmem:[#allocation82_spill] sm:$0xff] %v9432_v13 }
 0x33f   :  { %2496 = vmax.xlane.f32.xlu1 %v2495_v20  ;;  %v2489_v20 = vsel %vm2296_vm2, %v9418_v17, -inf }
 0x340   :  { %2475 = vmax.xlane.f32.xlu0 %v2474_v62  ;;  %v9440_v62 = vpop.f32.mrf.mxu1 }
 0x341   :  { %12534 = vst [vmem:[#allocation84_spill] sm:$0xff] %v9440_v62 }
 0x343   :  { %2466 = vmax.xlane.f32.xlu1 %v2465_v25  ;;  %v2483_v25 = vsel %vm2296_vm2, %v9432_v13, -inf }
 0x344   :  { %2499 = vmax.xlane.f32.xlu0 %v2498_v10  ;;  %v9448_v10 = vpop.f32.mrf.mxu1 }
 0x345   :  { %12536 = vst [vmem:[#allocation86_spill] sm:$0xff] %v9448_v10  ;;  %v2486_v17 = vsel %vm2296_vm2, %v9448_v10, -inf  ;;  %v2501_v10 = vsel %vm2296_vm2, %v9450_v18, -inf }
 0x346   :  { %v9458_v13 = vpop.f32.mrf.mxu1 }
 0x347   :  { %2490 = vmax.xlane.f32.xlu1 %v2489_v20  ;;  %v2507_v20 = vsel %vm2296_vm2, %v9442_v52, -inf  ;;  %12539 = vst [vmem:[#allocation89_spill] sm:$0xff] %v9458_v13 }
 0x348   :  { %2469 = vmax.xlane.f32.xlu0 %v2468_v56  ;;  %v9456_v56 = vpop.f32.mrf.mxu0 }
 0x349   :  { %12538 = vst [vmem:[#allocation88_spill] sm:$0xff] %v9456_v56  ;;  %v9462_v29 = vpop.f32.mrf.mxu1 }
 0x34a   :  { %12540 = vst [vmem:[#allocation90_spill] sm:$0xff] %v9462_v29 }
 0x34b   :  { %2484 = vmax.xlane.f32.xlu1 %v2483_v25  ;;  %v2477_v25 = vsel %vm2296_vm2, %v9440_v62, -inf  ;;  %v9470_v60 = vpop.f32.mrf.mxu1  ;;  %v2480_v62 = vsel %vm2296_vm2, %v9458_v13, -inf }
 0x34c   :  { %2493 = vmax.xlane.f32.xlu0 %v2492_v45  ;;  %v2510_v45 = vsel %vm2296_vm2, %v9456_v56, -inf  ;;  %12542 = vst [vmem:[#allocation92_spill] sm:$0xff] %v9470_v60  ;;  %v2513_v19 = vsel %vm2296_vm2, %v9470_v60, -inf }
 0x34d   :  { %v9478_v56 = vpop.f32.mrf.mxu1 }
 0x34e   :  { %12544 = vst [vmem:[#allocation94_spill] sm:$0xff] %v9478_v56 }
 0x34f   :  { %2508 = vmax.xlane.f32.xlu1 %v2507_v20  ;;  %v9466_v20 = vpop.f32.mrf.mxu0  ;;  %v9488_v13 = vpop.f32.mrf.mxu1 }
 0x350   :  { %2487 = vmax.xlane.f32.xlu0 %v2486_v17  ;;  %12541 = vst [vmem:[#allocation91_spill] sm:$0xff] %v9466_v20  ;;  %v2504_v18 = vsel %vm2296_vm2, %v9466_v20, -inf  ;;  %12546 = vst [vmem:[#allocation96_spill] sm:$0xff] %v9488_v13 }
 0x351   :  { %v9472_v17 = vpop.f32.mrf.mxu0  ;;  %v9499_v22 = vpop.f32.mrf.mxu1 }
 0x352   :  { %12543 = vst [vmem:[#allocation93_spill] sm:$0xff] %v9472_v17  ;;  %12548 = vst [vmem:[#allocation98_spill] sm:$0xff] %v9499_v22 }
 0x353   :  { %2478 = vmax.xlane.f32.xlu1 %v2477_v25  ;;  %v9482_v24 = vpop.f32.mrf.mxu0 }
 0x354   :  { %2511 = vmax.xlane.f32.xlu0 %v2510_v45  ;;  %v2329_v52 = vpop.xlane.xlu1 %2328  ;;  %v2519_v45 = vsel %vm2296_vm2, %v9462_v29, -inf  ;;  %12545 = vst [vmem:[#allocation95_spill] sm:$0xff] %v9482_v24  ;;  %v2522_v29 = vsel %vm2296_vm2, %v9478_v56, -inf }
 0x355   :  { %v9492_v59 = vpop.f32.mrf.mxu0 }
 0x356   :  { %12547 = vst [vmem:[#allocation97_spill] sm:$0xff] %v9492_v59 }
 0x357   :  { %2502 = vmax.xlane.f32.xlu1 %v2501_v10 }
 0x358   :  { %2481 = vmax.xlane.f32.xlu0 %v2480_v62  ;;  %v2353_v25 = vpop.xlane.xlu1 %2352  ;;  %v2332_v11 = vpop.xlane.xlu0 %2331  ;;  %v2543_v62 = vsel %vm2296_vm2, %v9472_v17, -inf }
 0x359   :  { %v9503_v17 = vpop.f32.mrf.mxu0 }
 0x35a   :  { %12549 = vst [vmem:[#allocation99_spill] sm:$0xff] %v9503_v17 }
 0x35b   :  { %2520 = vmax.xlane.f32.xlu1 %v2519_v45  ;;  %v9517_v60 = vpop.f32.mrf.mxu0 }
 0x35c   :  { %2505 = vmax.xlane.f32.xlu0 %v2504_v18  ;;  %v2323_v41 = vpop.xlane.xlu1 %2322  ;;  %v2691_v18 = vsub.f32 %v9131_v16, %v2329_v52  ;;  %v2537_v16 = vsel %vm2296_vm2, %v9482_v24, -inf  ;;  %v9512_v52 = vpop.f32.mrf.mxu1  ;;  %12551 = vst [vmem:[#allocation101_spill] sm:$0xff] %v9517_v60 }
 0x35d   :  { %v9484_v10 = vpop.xlane.xlu0 %2355  ;;  %12550 = vst [vmem:[#allocation100_spill] sm:$0xff] %v9512_v52 }
 0x35e   :  { %v2829_v36 = vmul.f32 1.442695, %v2691_v18  ;;  %v9525_v18 = vpop.f32.mrf.mxu1 }
 0x35f   :  { %2544 = vmax.xlane.f32.xlu1 %v2543_v62  ;;  %v2546_v62 = vsel %vm2296_vm2, %v9492_v59, -inf  ;;  %v2516_v59 = vsel %vm2296_vm2, %v9488_v13, -inf  ;;  %12552 = vst [vmem:[#allocation102_spill] sm:$0xff] %v9525_v18 }
 0x360   :  { %2523 = vmax.xlane.f32.xlu0 %v2522_v29  ;;  %v2347_v45 = vpop.xlane.xlu1 %2346  ;;  %7718 = vpow2.f32 %v2829_v36  ;;  %v2692_v36 = vsub.f32 %v9143_v55, %v2332_v11  ;;  %v9551_v55 = vpop.f32.mrf.mxu1 }
 0x361   :  { %v9494_v20 = vpop.xlane.xlu0 %2325  ;;  %v2697_v42 = vsub.f32 %v9156_v47, %v2347_v45  ;;  %v2531_v45 = vsel %vm2296_vm2, %v9499_v22, -inf  ;;  %12555 = vst [vmem:[#allocation105_spill] sm:$0xff] %v9551_v55 }
 0x363   :  { %2514 = vmax.xlane.f32.xlu1 %v2513_v19  ;;  %v2699_v19 = vsub.f32 %v9145_v61, %v2353_v25  ;;  %v2841_v47 = vmul.f32 1.442695, %v2697_v42  ;;  %v2689_v61 = vsub.f32 %v9140_v38, %v2323_v41  ;;  %v2540_v25 = vsel %vm2296_vm2, %v9503_v17, -inf }
 0x364   :  { %2547 = vmax.xlane.f32.xlu0 %v2546_v62  ;;  %v9505_v56 = vpop.xlane.xlu1 %2340  ;;  %v2555_v42 = vsel %vm2296_vm2, %v9517_v60, -inf  ;;  %v2534_v38 = vsel %vm2296_vm2, %v9525_v18, -inf  ;;  %v2831_v17 = vmul.f32 1.442695, %v2692_v36 }
 0x365   :  { %v9507_v29 = vpop.xlane.xlu0 %2349  ;;  %v2845_v24 = vmul.f32 1.442695, %v2699_v19  ;;  %7720 = vpow2.f32 %v2841_v47  ;;  %v2825_v19 = vmul.f32 1.442695, %v2689_v61  ;;  %v2525_v47 = vsel %vm2296_vm2, %v9512_v52, -inf }
 0x367   :  { %2538 = vmax.xlane.f32.xlu1 %v2537_v16  ;;  %v9530_v16 = vpop.f32.mrf.mxu0  ;;  %7722 = vpow2.f32 %v2845_v24  ;;  %v2700_v24 = vsub.f32 %v9161_v53, %v9484_v10  ;;  %v2528_v53 = vsel %vm2296_vm2, %v9551_v55, -inf }
 0x368   :  { %2517 = vmax.xlane.f32.xlu0 %v2516_v59  ;;  %v9519_v62 = vpop.xlane.xlu1 %2364  ;;  %12553 = vst [vmem:[#allocation103_spill] sm:$0xff] %v9530_v16  ;;  %7724 = vpow2.f32 %v2825_v19 }
 0x369   :  { %v9521_v9 = vpop.xlane.xlu0 %2343  ;;  %v9541_v41 = vpop.f32.mrf.mxu0  ;;  %7726 = vpow2.f32 %v2831_v17  ;;  %v2847_v36 = vmul.f32 1.442695, %v2700_v24  ;;  %v2690_v17 = vsub.f32 %v9158_v14, %v9494_v20 }
 0x36a   :  { %12554 = vst [vmem:[#allocation104_spill] sm:$0xff] %v9541_v41  ;;  %v2558_v11 = vsel %vm2296_vm2, %v9541_v41, -inf  ;;  %v9589_v14 = vpop.f32.mrf.mxu1 }
 0x36b   :  { %2532 = vmax.xlane.f32.xlu1 %v2531_v45  ;;  %v9563_v10 = vpop.f32.mrf.mxu0  ;;  %7728 = vpow2.f32 %v2847_v36  ;;  %v2827_v22 = vmul.f32 1.442695, %v2690_v17  ;;  %v2698_v36 = vsub.f32 %v9175_v44, %v9507_v29  ;;  %12558 = vst [vmem:[#allocation108_spill] sm:$0xff] %v9589_v14  ;;  %v2567_v17 = vsel %vm2296_vm2, %v9589_v14, -inf }
 0x36c   :  { %2541 = vmax.xlane.f32.xlu0 %v2540_v25  ;;  %v9532_v59 = vpop.xlane.xlu1 %2334  ;;  %12556 = vst [vmem:[#allocation106_spill] sm:$0xff] %v9563_v10  ;;  %v2552_v24 = vsel %vm2296_vm2, %v9563_v10, -inf }
 0x36d   :  { %v9534_v13 = vpop.xlane.xlu0 %2367  ;;  %v9559_v60 = vpop.eup %7718  ;;  %v2843_v44 = vmul.f32 1.442695, %v2698_v36 }
 0x36e   :  { %v3095_v41 = vsel %vm2296_vm2, %v9559_v60, 0.0  ;;  %v9602_v29 = vpop.f32.mrf.mxu0 }
 0x36f   :  { %2556 = vmax.xlane.f32.xlu1 %v2555_v42  ;;  %12560 = vst [vmem:[#allocation110_spill] sm:$0xff] %v9602_v29 }
 0x370   :  { %2535 = vmax.xlane.f32.xlu0 %v2534_v38  ;;  %v2359_v45 = vpop.xlane.xlu1 %2358  ;;  %v2549_v38 = vsel %vm2296_vm2, %v9530_v16, -inf  ;;  %v9618_v36 = vpop.f32.mrf.mxu0 }
 0x371   :  { %v9543_v25 = vpop.xlane.xlu0 %2337  ;;  %12563 = vst [vmem:[#allocation113_spill] sm:$0xff] %v9618_v36 }
 0x372   :  { %v9573_v16 = vpop.eup %7720 }
 0x373   :  { %2526 = vmax.xlane.f32.xlu1 %v2525_v47 }
 0x374   :  { %2559 = vmax.xlane.f32.xlu0 %v2558_v11  ;;  %v9553_v61 = vpop.xlane.xlu1 %2376  ;;  %v2695_v11 = vsub.f32 %v9173_v5, %v9505_v56  ;;  %v3113_v56 = vsel %vm2296_vm2, %v9573_v16, 0.0 }
 0x375   :  { %v9555_v42 = vpop.xlane.xlu0 %2361 }
 0x376   :  { %v2837_v5 = vmul.f32 1.442695, %v2695_v11  ;;  %v2701_v11 = vsub.f32 %v9201_v40, %v2359_v45  ;;  %v2591_v40 = vsel %vm2296_vm2, %v9602_v29, -inf  ;;  %v9616_v45 = vpop.f32.mrf.mxu1 }
 0x377   :  { %2550 = vmax.xlane.f32.xlu1 %v2549_v38  ;;  %v9579_v38 = vpop.eup %7722  ;;  %12562 = vst [vmem:[#allocation112_spill] sm:$0xff] %v9616_v45 }
 0x378   :  { %2529 = vmax.xlane.f32.xlu0 %v2528_v53  ;;  %v9565_v19 = vpop.xlane.xlu1 %2400  ;;  %12557 = vst [vmem:[#allocation107_spill] sm:$0xff] %v9579_v38  ;;  %v3119_v20 = vsel %vm2296_vm2, %v9579_v38, 0.0  ;;  %7730 = vpow2.f32 %v2837_v5  ;;  %v2849_v5 = vmul.f32 1.442695, %v2701_v11 }
 0x379   :  { %v9567_v47 = vpop.xlane.xlu0 %2379  ;;  %7732 = vpow2.f32 %v2827_v22  ;;  %v2703_v22 = vsub.f32 %v9189_v6, %v9519_v62  ;;  %v9630_v62 = vpop.f32.mrf.mxu0 }
 0x37a   :  { %7734 = vpow2.f32 %v2843_v44  ;;  %v2561_v44 = vsel %vm2296_vm2, %v9616_v45, -inf  ;;  %12565 = vst [vmem:[#allocation115_spill] sm:$0xff] %v9630_v62 }
 0x37b   :  { %3096 = vadd.xlane.f32.xlu1 %v3095_v41  ;;  %v9593_v41 = vpop.eup %7724  ;;  %7736 = vpow2.f32 %v2849_v5  ;;  %v2853_v6 = vmul.f32 1.442695, %v2703_v22  ;;  %v2702_v5 = vsub.f32 %v9225_v4, %v9555_v42  ;;  %v2594_v22 = vsel %vm2296_vm2, %v9630_v62, -inf  ;;  %v9656_v42 = vpop.f32.mrf.mxu1 }
 0x37c   :  { %2553 = vmax.xlane.f32.xlu0 %v2552_v24  ;;  %v9581_v53 = vpop.xlane.xlu1 %2370  ;;  %12559 = vst [vmem:[#allocation109_spill] sm:$0xff] %v9593_v41  ;;  %v9606_v55 = vpop.eup %7726  ;;  %12568 = vst [vmem:[#allocation118_spill] sm:$0xff] %v9656_v42 }
 0x37d   :  { %v9583_v18 = vpop.xlane.xlu0 %2403  ;;  %12561 = vst [vmem:[#allocation111_spill] sm:$0xff] %v9606_v55  ;;  %7738 = vpow2.f32 %v2853_v6  ;;  %v9658_v62 = vpop.f32.mrf.mxu0 }
 0x37e   :  { %12569 = vst [vmem:[#allocation119_spill] sm:$0xff] %v9658_v62 }
 0x37f   :  { %3114 = vadd.xlane.f32.xlu1 %v3113_v56  ;;  %v3089_v56 = vsel %vm2296_vm2, %v9593_v41, 0.0  ;;  %v2851_v41 = vmul.f32 1.442695, %v2702_v5  ;;  %v2588_v5 = vsel %vm2296_vm2, %v9658_v62, -inf }
 0x380   :  { %3120 = vadd.xlane.f32.xlu0 %v3119_v20  ;;  %v9595_v24 = vpop.xlane.xlu1 %2394 }
 0x381   :  { %v9597_v10 = vpop.xlane.xlu0 %2373 }
 0x383   :  { %2568 = vmax.xlane.f32.xlu1 %v2567_v17  ;;  %v3098_v17 = vsel %vm2296_vm2, %v9606_v55, 0.0 }
 0x384   :  { %3090 = vadd.xlane.f32.xlu0 %v3089_v56  ;;  %v9608_v20 = vpop.xlane.xlu1 %2388  ;;  %v9622_v56 = vpop.eup %7728 }
 0x385   :  { %v9610_v52 = vpop.xlane.xlu0 %2397  ;;  %12564 = vst [vmem:[#allocation114_spill] sm:$0xff] %v9622_v56  ;;  %v9644_v45 = vpop.eup %7730 }
 0x386   :  { %12566 = vst [vmem:[#allocation116_spill] sm:$0xff] %v9644_v45  ;;  %v3107_v4 = vsel %vm2296_vm2, %v9644_v45, 0.0  ;;  %v2696_v45 = vsub.f32 %v9199_v21, %v9521_v9  ;;  %v2704_v21 = vsub.f32 %v9210_v51, %v9534_v13 }
 0x387   :  { %2592 = vmax.xlane.f32.xlu1 %v2591_v40  ;;  %v3122_v40 = vsel %vm2296_vm2, %v9622_v56, 0.0 }
 0x388   :  { %3099 = vadd.xlane.f32.xlu0 %v3098_v17  ;;  %v9624_v14 = vpop.xlane.xlu1 %2412  ;;  %v2693_v17 = vsub.f32 %v9187_v0, %v9532_v59  ;;  %v2839_v38 = vmul.f32 1.442695, %v2696_v45  ;;  %v2705_v45 = vsub.f32 %v9236_v12, %v9581_v53  ;;  %v2855_v13 = vmul.f32 1.442695, %v2704_v21 }
 0x389   :  { %v9626_v11 = vpop.xlane.xlu0 %2391  ;;  %v2694_v21 = vsub.f32 %v9219_v46, %v9543_v25 }
 0x38a   :  { %v2833_v0 = vmul.f32 1.442695, %v2693_v17 }
 0x38b   :  { %2562 = vmax.xlane.f32.xlu1 %v2561_v44  ;;  %v2585_v44 = vsel %vm2296_vm2, %v9618_v36, -inf  ;;  %v2835_v25 = vmul.f32 1.442695, %v2694_v21 }
 0x38c   :  { %3123 = vadd.xlane.f32.xlu0 %v3122_v40  ;;  %v9634_v29 = vpop.xlane.xlu1 %2382  ;;  %v9648_v40 = vpop.eup %7732  ;;  %7740 = vpow2.f32 %v2833_v0  ;;  %v2715_v0 = vsub.f32 %v9243_v7, %v9565_v19  ;;  %v2570_v7 = vsel %vm2296_vm2, %v9656_v42, -inf }
 0x38d   :  { %v9638_v55 = vpop.xlane.xlu0 %2415  ;;  %12567 = vst [vmem:[#allocation117_spill] sm:$0xff] %v9648_v40  ;;  %v3092_v6 = vsel %vm2296_vm2, %v9648_v40, 0.0  ;;  %7742 = vpow2.f32 %v2851_v41 }
 0x38f   :  { %2595 = vmax.xlane.f32.xlu1 %v2594_v22  ;;  %v9662_v22 = vpop.eup %7734 }
 0x390   :  { %2586 = vmax.xlane.f32.xlu0 %v2585_v44  ;;  %v9650_v56 = vpop.xlane.xlu1 %2406  ;;  %v9668_v36 = vpop.eup %7736 }
 0x391   :  { %v9652_v59 = vpop.xlane.xlu0 %2385  ;;  %v3125_v62 = vsel %vm2296_vm2, %v9668_v36, 0.0  ;;  %v9688_v19 = vpop.eup %7738 }
 0x393   :  { %3108 = vadd.xlane.f32.xlu1 %v3107_v4  ;;  %v9672_v4 = vpop.f32.mrf.mxu1 }
 0x394   :  { %3093 = vadd.xlane.f32.xlu0 %v3092_v6  ;;  %v3073_v44 = vpop.xlane.xlu1 %3072  ;;  %12570 = vst [vmem:[#allocation120_spill] sm:$0xff] %v9672_v4  ;;  %v3116_v6 = vsel %vm2296_vm2, %v9662_v22, 0.0 }
 0x395   :  { %v9664_v17 = vpop.xlane.xlu0 %2409  ;;  %7744 = vrcp.f32 %v3073_v44  ;;  %v9682_v9 = vpop.f32.mrf.mxu1 }
 0x396   :  { %12571 = vst [vmem:[#allocation121_spill] sm:$0xff] %v9682_v9  ;;  %v9684_v44 = vpop.f32.mrf.mxu0 }
 0x397   :  { %2589 = vmax.xlane.f32.xlu1 %v2588_v5  ;;  %12572 = vst [vmem:[#allocation122_spill] sm:$0xff] %v9684_v44  ;;  %v2877_v5 = vmul.f32 1.442695, %v2715_v0  ;;  %v2603_v51 = vsel %vm2296_vm2, %v9684_v44, -inf }
 0x398   :  { %3117 = vadd.xlane.f32.xlu0 %v3116_v6  ;;  %v3067_v41 = vpop.xlane.xlu1 %3066 }
 0x399   :  { %7746 = vrcp.f32 %v3067_v41  ;;  %v3076_v40 = vpop.xlane.xlu0 %3075  ;;  %v9698_v53 = vpop.eup %7740 }
 0x39a   :  { %7748 = vrcp.f32 %v3076_v40  ;;  %v3131_v40 = vsel %vm2296_vm2, %v9688_v19, 0.0 }
 0x39b   :  { %3126 = vadd.xlane.f32.xlu1 %v3125_v62  ;;  %v9694_v62 = vpop.f32.mrf.mxu1 }
 0x39c   :  { %2571 = vmax.xlane.f32.xlu0 %v2570_v7  ;;  %v3085_v6 = vpop.xlane.xlu1 %3084  ;;  %12573 = vst [vmem:[#allocation123_spill] sm:$0xff] %v9694_v62  ;;  %v2857_v7 = vmul.f32 1.442695, %v2705_v45 }
 0x39d   :  { %7750 = vrcp.f32 %v3085_v6  ;;  %v3070_v41 = vpop.xlane.xlu0 %3069  ;;  %v2573_v6 = vsel %vm2296_vm2, %v9694_v62, -inf }
 0x39e   :  { %7752 = vrcp.f32 %v3070_v41  ;;  %v9706_v41 = vpop.f32.mrf.mxu0 }
 0x39f   :  { %7754 = vpow2.f32 %v2839_v38  ;;  %2604 = vmax.xlane.f32.xlu1 %v2603_v51  ;;  %v9702_v38 = vpop.eup %7742  ;;  %12574 = vst [vmem:[#allocation124_spill] sm:$0xff] %v9706_v41 }
 0x3a0   :  { %7756 = vpow2.f32 %v2877_v5  ;;  %3132 = vadd.xlane.f32.xlu0 %v3131_v40  ;;  %v3079_v0 = vpop.xlane.xlu1 %3078  ;;  %v2564_v5 = vsel %vm2296_vm2, %v9672_v4, -inf  ;;  %v3128_v46 = vsel %vm2296_vm2, %v9702_v38, 0.0 }
 0x3a1   :  { %7758 = vrcp.f32 %v3079_v0  ;;  %v3088_v12 = vpop.xlane.xlu0 %3087 }
 0x3a2   :  { %7760 = vrcp.f32 %v3088_v12  ;;  %v7745_v45 = vpop.eup %7744 }
 0x3a3   :  { %7762 = vpow2.f32 %v2855_v13  ;;  %2574 = vmax.xlane.f32.xlu1 %v2573_v6  ;;  %v3579_v40 = vmul.f32 %v7745_v45, %v9306_v26  ;;  %v2716_v13 = vsub.f32 %v9255_v32, %v9583_v18  ;;  %v9717_v6 = vpop.f32.mrf.mxu0 }
 0x3a4   :  { %2565 = vmax.xlane.f32.xlu0 %v2564_v5  ;;  %v9710_v51 = vpop.xlane.xlu1 %2424  ;;  %7764 = vpow2.f32 %v2857_v7  ;;  %12575 = vst [vmem:[#allocation125_spill] sm:$0xff] %v9717_v6  ;;  %v3101_v5 = vsel %vm2296_vm2, %v9698_v53, 0.0  ;;  %v2606_v44 = vsel %vm2296_vm2, %v9717_v6, -inf }
 0x3a5   :  { %v3082_v0 = vpop.xlane.xlu0 %3081  ;;  %3707 = vst.msk [vmem:[#allocation2 + $0x10] sm:$0xff] %vm2296_vm2, %v3579_v40 }
 0x3a6   :  { %v7747_v12 = vpop.eup %7746  ;;  %7766 = vrcp.f32 %v3082_v0  ;;  %v2879_v0 = vmul.f32 1.442695, %v2716_v13 }
 0x3a7   :  { %3129 = vadd.xlane.f32.xlu1 %v3128_v46  ;;  %v3577_v26 = vmul.f32 %v7747_v12, %v9314_v35  ;;  %v7749_v7 = vpop.eup %7748  ;;  %7768 = vpow2.f32 %v2835_v25  ;;  %v9731_v46 = vpop.f32.mrf.mxu0  ;;  %v2579_v35 = vsel %vm2296_vm2, %v9682_v9, -inf }
 0x3a8   :  { %3102 = vadd.xlane.f32.xlu0 %v3101_v5  ;;  %v9723_v45 = vpop.xlane.xlu1 %2448  ;;  %v3580_v32 = vmul.f32 %v7749_v7, %v9318_v33  ;;  %12576 = vst [vmem:[#allocation126_spill] sm:$0xff] %v9731_v46  ;;  %7770 = vpow2.f32 %v2879_v0 }
 0x3a9   :  { %v9726_v18 = vpop.xlane.xlu0 %2427  ;;  %3705 = vst.msk [vmem:[#allocation2] sm:$0xff] %vm2296_vm2, %v3577_v26 }
 0x3aa   :  { %v7751_v21 = vpop.eup %7750  ;;  %3708 = vst.msk [vmem:[#allocation2 + $0x18] sm:$0xff] %vm2296_vm2, %v3580_v32 }
 0x3ab   :  { %v7753_v62 = vpop.eup %7752  ;;  %2607 = vmax.xlane.f32.xlu1 %v2606_v44  ;;  %v3583_v33 = vmul.f32 %v7751_v21, %v9322_v8  ;;  %v2600_v44 = vsel %vm2296_vm2, %v9731_v46, -inf }
 0x3ac   :  { %v9737_v12 = vpop.eup %7754  ;;  %2580 = vmax.xlane.f32.xlu0 %v2579_v35  ;;  %v9739_v5 = vpop.xlane.xlu1 %2418  ;;  %v3578_v13 = vmul.f32 %v7753_v62, %v9326_v57  ;;  %v2707_v35 = vsub.f32 %v9227_v23, %v9553_v61  ;;  %v3834_v62 = vpack.c.bf16 %v3580_v32, %v3579_v40 }
 0x3ad   :  { %v9742_v7 = vpop.eup %7756  ;;  %v9744_v25 = vpop.xlane.xlu0 %2451  ;;  %3711 = vst.msk [vmem:[#allocation2 + $0x30] sm:$0xff] %vm2296_vm2, %v3583_v33  ;;  %v3110_v57 = vsel %vm2296_vm2, %v9737_v12, 0.0 }
 0x3ae   :  { %v7759_v6 = vpop.eup %7758  ;;  %3706 = vst.msk [vmem:[#allocation2 + $0x8] sm:$0xff] %vm2296_vm2, %v3578_v13  ;;  %v3833_v8 = vpack.c.bf16 %v3578_v13, %v3577_v26  ;;  %v2861_v40 = vmul.f32 1.442695, %v2707_v35  ;;  %v9787_v35 = vpop.f32.mrf.mxu0 }
 0x3af   :  { %v7761_v21 = vpop.eup %7760  ;;  %2601 = vmax.xlane.f32.xlu1 %v2600_v44  ;;  %v3581_v9 = vmul.f32 %v7759_v6, %v9330_v43  ;;  %v3167_v43 = vsel %vm2296_vm2, %v9742_v7, 0.0  ;;  %v9779_v44 = vpop.f32.mrf.mxu1  ;;  %12578 = vst [vmem:[#allocation128_spill] sm:$0xff] %v9787_v35 }
 0x3b0   :  { %v9755_v42 = vpop.eup %7762  ;;  %3111 = vadd.xlane.f32.xlu0 %v3110_v57  ;;  %6860 = vmatprep.mubr.msk.bf16.mxu0 %vm2296_vm2, %v3833_v8  ;;  %v9758_v0 = vpop.xlane.xlu1 %2442  ;;  %v3584_v26 = vmul.f32 %v7761_v21, %v9334_v48  ;;  %v2713_v48 = vsub.f32 %v9250_v3, %v9595_v24  ;;  %12577 = vst [vmem:[#allocation127_spill] sm:$0xff] %v9779_v44  ;;  %7772 = vpow2.f32 %v2861_v40  ;;  %v12579_v57 = vld [vmem:[#allocation60_spill] sm:$0xff] }
 0x3b1   :  { %6861 = vmatmul.mubr.msk.bf16.vlgmr.msra.gmra.mxu0 %vm2296_vm2, %v3834_v62  ;;  %v9762_v13 = vpop.xlane.xlu0 %2421  ;;  %3709 = vst.msk [vmem:[#allocation2 + $0x20] sm:$0xff] %vm2296_vm2, %v3581_v9  ;;  %v9765_v23 = vpop.eup %7764  ;;  %v3134_v6 = vsel %vm2296_vm2, %v9755_v42, 0.0  ;;  %v2709_v40 = vsub.f32 %v9275_v1, %v9634_v29 }
 0x3b2   :  { %6869 = vmatpush3.bf16.msra.mxu0 %v8825_v54  ;;  %3712 = vst.msk [vmem:[#allocation2 + $0x38] sm:$0xff] %vm2296_vm2, %v3584_v26  ;;  %v3137_v3 = vsel %vm2296_vm2, %v9765_v23, 0.0  ;;  %v2873_v21 = vmul.f32 1.442695, %v2713_v48  ;;  %v3836_v62 = vpack.c.bf16 %v3584_v26, %v3583_v33  ;;  %v2639_v33 = vsel %vm2296_vm2, %v9787_v35, -inf }
 0x3b3   :  { %v7767_v61 = vpop.eup %7766  ;;  %6870 = vmatprep.subr.bf16.mxu0 %v8849_v63  ;;  %3168 = vadd.xlane.f32.xlu1 %v3167_v43  ;;  %v2708_v48 = vsub.f32 %v9241_v37, %v9567_v47 }
 0x3b4   :  { %3135 = vadd.xlane.f32.xlu0 %v3134_v6  ;;  %v9776_v32 = vpop.xlane.xlu1 %2436  ;;  %v3582_v54 = vmul.f32 %v7767_v61, %v9342_v27  ;;  %v2597_v27 = vsel %vm2296_vm2, %v9706_v41, -inf  ;;  %v9792_v43 = vpop.eup %7768  ;;  %7774 = vpow2.f32 %v2873_v21 }
 0x3b5   :  { %v9781_v8 = vpop.xlane.xlu0 %2445  ;;  %v9797_v61 = vpop.f32.mrf.mxu1  ;;  %v2863_v47 = vmul.f32 1.442695, %v2708_v48 }
 0x3b6   :  { %6871 = vmatpush3.bf16.msra.mxu0 %v8849_v63  ;;  %3710 = vst.msk [vmem:[#allocation2 + $0x28] sm:$0xff] %vm2296_vm2, %v3582_v54  ;;  %v3835_v24 = vpack.c.bf16 %v3582_v54, %v3581_v9  ;;  %12580 = vst [vmem:[#allocation60_spill] sm:$0xff] %v9797_v61  ;;  %v9807_v26 = vpop.eup %7770  ;;  %v12582_v54 = vld [vmem:[#allocation64_spill] sm:$0xff] }
 0x3b7   :  { %6872 = vmatprep.subr.bf16.mxu0 %v12579_v57  ;;  %3138 = vadd.xlane.f32.xlu1 %v3137_v3  ;;  %v9811_v6 = vpop.f32.mrf.mxu1  ;;  %v3104_v3 = vsel %vm2296_vm2, %v9792_v43, 0.0  ;;  %v3170_v37 = vsel %vm2296_vm2, %v9807_v26, 0.0 }
 0x3b8   :  { %2598 = vmax.xlane.f32.xlu0 %v2597_v27  ;;  %6864 = vmatprep.mubr.msk.bf16.mxu0 %vm2296_vm2, %v3835_v24  ;;  %v9795_v63 = vpop.xlane.xlu1 %2460  ;;  %12581 = vst [vmem:[#allocation129_spill] sm:$0xff] %v9811_v6  ;;  %v2865_v24 = vmul.f32 1.442695, %v2709_v40  ;;  %v9827_v27 = vpop.f32.mrf.mxu0 }
 0x3b9   :  { %6865 = vmatmul.mubr.msk.bf16.gmra.mxu0 %vm2296_vm2, %v3836_v62  ;;  %v9800_v9 = vpop.xlane.xlu0 %2439  ;;  %v9825_v21 = vpop.f32.mrf.mxu1  ;;  %12584 = vst [vmem:[#allocation130_spill] sm:$0xff] %v9827_v27  ;;  %v12585_v62 = vld [vmem:[#allocation65_spill] sm:$0xff] }
 0x3ba   :  { %6873 = vmatpush3.bf16.msra.mxu0 %v12579_v57  ;;  %v2717_v57 = vsub.f32 %v9287_v39, %v9650_v56  ;;  %12583 = vst [vmem:[#allocation64_spill] sm:$0xff] %v9825_v21  ;;  %7776 = vpow2.f32 %v2865_v24  ;;  %v2609_v48 = vsel %vm2296_vm2, %v9825_v21, -inf }
 0x3bb   :  { %6874 = vmatprep.subr.bf16.mxu0 %v12582_v54  ;;  %2640 = vmax.xlane.f32.xlu1 %v2639_v33  ;;  %v2582_v33 = vsel %vm2296_vm2, %v9779_v44, -inf  ;;  %7778 = vpow2.f32 %v2863_v47 }
 0x3bc   :  { %3105 = vadd.xlane.f32.xlu0 %v3104_v3  ;;  %v9816_v1 = vpop.xlane.xlu1 %2430  ;;  %v2881_v56 = vmul.f32 1.442695, %v2717_v57  ;;  %v9840_v3 = vpop.f32.mrf.mxu1 }
 0x3bd   :  { %v9818_v29 = vpop.xlane.xlu0 %2463  ;;  %12586 = vst [vmem:[#allocation65_spill] sm:$0xff] %v9840_v3  ;;  %v9846_v35 = vpop.eup %7772 }
 0x3be   :  { %6875 = vmatpush3.bf16.msra.mxu0 %v12582_v54  ;;  %v2706_v54 = vsub.f32 %v9253_v2, %v9597_v10  ;;  %7780 = vpow2.f32 %v2881_v56  ;;  %v2714_v10 = vsub.f32 %v9267_v34, %v9610_v52  ;;  %v9856_v46 = vpop.f32.mrf.mxu1 }
 0x3bf   :  { %6900 = vmatprep.subr.bf16.mxu0 %v12585_v62  ;;  %3171 = vadd.xlane.f32.xlu1 %v3170_v37  ;;  %v9842_v37 = vpop.f32.mrf.mxu0  ;;  %12588 = vst [vmem:[#allocation132_spill] sm:$0xff] %v9856_v46  ;;  %v2612_v56 = vsel %vm2296_vm2, %v9856_v46, -inf }
 0x3c0   :  { %2583 = vmax.xlane.f32.xlu0 %v2582_v33  ;;  %v9832_v40 = vpop.xlane.xlu1 %2454  ;;  %12587 = vst [vmem:[#allocation131_spill] sm:$0xff] %v9842_v37  ;;  %v2576_v33 = vsel %vm2296_vm2, %v9797_v61, -inf  ;;  %v2642_v47 = vsel %vm2296_vm2, %v9842_v37, -inf  ;;  %v2859_v2 = vmul.f32 1.442695, %v2706_v54 }
 0x3c1   :  { %v9834_v39 = vpop.xlane.xlu0 %2433  ;;  %v9860_v21 = vpop.eup %7774  ;;  %v2875_v54 = vmul.f32 1.442695, %v2714_v10  ;;  %v2615_v10 = vsel %vm2296_vm2, %v9811_v6, -inf }
 0x3c2   :  { %7782 = vpow2.f32 %v2859_v2  ;;  %v9868_v37 = vpop.f32.mrf.mxu0  ;;  %v3161_v34 = vsel %vm2296_vm2, %v9860_v21, 0.0  ;;  %v2711_v2 = vsub.f32 %v9265_v31, %v9608_v20  ;;  %v2719_v20 = vsub.f32 %v9277_v58, %v9624_v14 }
 0x3c3   :  { %2610 = vmax.xlane.f32.xlu1 %v2609_v48  ;;  %v3143_v48 = vsel %vm2296_vm2, %v9846_v35, 0.0  ;;  %12590 = vst [vmem:[#allocation134_spill] sm:$0xff] %v9868_v37  ;;  %7784 = vpow2.f32 %v2875_v54  ;;  %v9898_v54 = vpop.f32.mrf.mxu1 }
 0x3c4   :  { %2577 = vmax.xlane.f32.xlu0 %v2576_v33  ;;  %v9848_v24 = vpop.xlane.xlu1 %2472  ;;  %v2869_v31 = vmul.f32 1.442695, %v2711_v2  ;;  %12593 = vst [vmem:[#allocation137_spill] sm:$0xff] %v9898_v54  ;;  %v2885_v58 = vmul.f32 1.442695, %v2719_v20 }
 0x3c5   :  { %v9850_v57 = vpop.xlane.xlu0 %2457  ;;  %v9910_v14 = vpop.f32.mrf.mxu1 }
 0x3c6   :  { %7786 = vpow2.f32 %v2869_v31  ;;  %12596 = vst [vmem:[#allocation140_spill] sm:$0xff] %v9910_v14  ;;  %v2712_v31 = vsub.f32 %v9285_v50, %v9626_v11  ;;  %v2621_v50 = vsel %vm2296_vm2, %v9910_v14, -inf }
 0x3c7   :  { %2643 = vmax.xlane.f32.xlu1 %v2642_v47  ;;  %v9878_v44 = vpop.eup %7776  ;;  %v9926_v20 = vpop.f32.mrf.mxu1 }
 0x3c8   :  { %3144 = vadd.xlane.f32.xlu0 %v3143_v48  ;;  %v9862_v33 = vpop.xlane.xlu1 %2496  ;;  %v2636_v48 = vsel %vm2296_vm2, %v9868_v37, -inf  ;;  %v2723_v37 = vsub.f32 %v9336_v49, %v9710_v51  ;;  %v3149_v61 = vsel %vm2296_vm2, %v9878_v44, 0.0  ;;  %v2724_v51 = vsub.f32 %v9352_v15, %v9726_v18  ;;  %12600 = vst [vmem:[#allocation144_spill] sm:$0xff] %v9926_v20 }
 0x3c9   :  { %12589 = vst [vmem:[#allocation133_spill] sm:$0xff] %v9862_v33  ;;  %v9864_v41 = vpop.xlane.xlu0 %2475  ;;  %v2871_v11 = vmul.f32 1.442695, %v2712_v31 }
 0x3ca   :  { %v2893_v49 = vmul.f32 1.442695, %v2723_v37  ;;  %v2895_v15 = vmul.f32 1.442695, %v2724_v51 }
 0x3cb   :  { %2613 = vmax.xlane.f32.xlu1 %v2612_v56  ;;  %v9884_v56 = vpop.eup %7778 }
 0x3cc   :  { %3162 = vadd.xlane.f32.xlu0 %v3161_v34  ;;  %v9872_v52 = vpop.xlane.xlu1 %2466  ;;  %v9894_v4 = vpop.eup %7780  ;;  %7788 = vpow2.f32 %v2893_v49 }
 0x3cd   :  { %v9874_v47 = vpop.xlane.xlu0 %2499  ;;  %v3173_v2 = vsel %vm2296_vm2, %v9894_v4, 0.0  ;;  %7790 = vpow2.f32 %v2885_v58  ;;  %v2722_v58 = vsub.f32 %v9360_v28, %v9762_v13  ;;  %v2710_v13 = vsub.f32 %v9302_v30, %v9652_v59  ;;  %v12610_v59 = vld [vmem:[#allocation53_spill] sm:$0xff] }
 0x3ce   :  { %12591 = vst [vmem:[#allocation135_spill] sm:$0xff] %v9874_v47  ;;  %7792 = vpow2.f32 %v2895_v15 }
 0x3cf   :  { %2637 = vmax.xlane.f32.xlu1 %v2636_v48  ;;  %v3146_v48 = vsel %vm2296_vm2, %v9884_v56, 0.0  ;;  %v2891_v15 = vmul.f32 1.442695, %v2722_v58  ;;  %7794 = vpow2.f32 %v2871_v11  ;;  %v2867_v30 = vmul.f32 1.442695, %v2710_v13 }
 0x3d0   :  { %2616 = vmax.xlane.f32.xlu0 %v2615_v10  ;;  %v9886_v34 = vpop.xlane.xlu1 %2490 }
 0x3d1   :  { %12592 = vst [vmem:[#allocation136_spill] sm:$0xff] %v9886_v34  ;;  %v9888_v46 = vpop.xlane.xlu0 %2469  ;;  %v9916_v34 = vpop.eup %7782  ;;  %7796 = vpow2.f32 %v2891_v15 }
 0x3d2   :  { %7798 = vpow2.f32 %v2867_v30 }
 0x3d3   :  { %3150 = vadd.xlane.f32.xlu1 %v3149_v61  ;;  %v9912_v61 = vpop.f32.mrf.mxu0 }
 0x3d4   :  { %3147 = vadd.xlane.f32.xlu0 %v3146_v48  ;;  %v9902_v10 = vpop.xlane.xlu1 %2484  ;;  %12597 = vst [vmem:[#allocation141_spill] sm:$0xff] %v9912_v61  ;;  %v2633_v48 = vsel %vm2296_vm2, %v9827_v27, -inf  ;;  %v2651_v18 = vsel %vm2296_vm2, %v9912_v61, -inf  ;;  %v9932_v27 = vpop.eup %7784 }
 0x3d5   :  { %12594 = vst [vmem:[#allocation138_spill] sm:$0xff] %v9902_v10  ;;  %v9904_v6 = vpop.xlane.xlu0 %2493  ;;  %v9942_v61 = vpop.f32.mrf.mxu1 }
 0x3d6   :  { %12595 = vst [vmem:[#allocation139_spill] sm:$0xff] %v9904_v6  ;;  %12603 = vst [vmem:[#allocation147_spill] sm:$0xff] %v9942_v61  ;;  %v2624_v28 = vsel %vm2296_vm2, %v9942_v61, -inf  ;;  %v9960_v14 = vpop.eup %7786 }
 0x3d7   :  { %3174 = vadd.xlane.f32.xlu1 %v3173_v2  ;;  %v9928_v2 = vpop.f32.mrf.mxu0  ;;  %v9972_v61 = vpop.f32.mrf.mxu1 }
 0x3d8   :  { %2634 = vmax.xlane.f32.xlu0 %v2633_v48  ;;  %v9918_v37 = vpop.xlane.xlu1 %2508  ;;  %12601 = vst [vmem:[#allocation145_spill] sm:$0xff] %v9928_v2  ;;  %v3140_v48 = vsel %vm2296_vm2, %v9916_v34, 0.0  ;;  %12611 = vst [vmem:[#allocation53_spill] sm:$0xff] %v9972_v61 }
 0x3d9   :  { %12598 = vst [vmem:[#allocation142_spill] sm:$0xff] %v9918_v37  ;;  %v9920_v47 = vpop.xlane.xlu0 %2487  ;;  %v9968_v11 = vpop.eup %7788 }
 0x3da   :  { %12599 = vst [vmem:[#allocation143_spill] sm:$0xff] %v9920_v47 }
 0x3db   :  { %2652 = vmax.xlane.f32.xlu1 %v2651_v18  ;;  %v9944_v18 = vpop.f32.mrf.mxu0 }
 0x3dc   :  { %3141 = vadd.xlane.f32.xlu0 %v3140_v48  ;;  %v9934_v49 = vpop.xlane.xlu1 %2478  ;;  %12604 = vst [vmem:[#allocation148_spill] sm:$0xff] %v9944_v18  ;;  %v3164_v48 = vsel %vm2296_vm2, %v9932_v27, 0.0 }
 0x3dd   :  { %v9936_v51 = vpop.xlane.xlu0 %2511  ;;  %v9956_v31 = vpop.f32.mrf.mxu0 }
 0x3de   :  { %12602 = vst [vmem:[#allocation146_spill] sm:$0xff] %v9936_v51  ;;  %12607 = vst [vmem:[#allocation151_spill] sm:$0xff] %v9956_v31  ;;  %v2648_v58 = vsel %vm2296_vm2, %v9956_v31, -inf  ;;  %v3191_v31 = vsel %vm2296_vm2, %v9968_v11, 0.0 }
 0x3df   :  { %2622 = vmax.xlane.f32.xlu1 %v2621_v50  ;;  %v2618_v50 = vsel %vm2296_vm2, %v9840_v3, -inf  ;;  %v9976_v3 = vpop.eup %7790 }
 0x3e0   :  { %3165 = vadd.xlane.f32.xlu0 %v3164_v48  ;;  %v9948_v37 = vpop.xlane.xlu1 %2502  ;;  %v9984_v13 = vpop.eup %7792 }
 0x3e1   :  { %12605 = vst [vmem:[#allocation149_spill] sm:$0xff] %v9948_v37  ;;  %v9950_v51 = vpop.xlane.xlu0 %2481  ;;  %v3194_v33 = vsel %vm2296_vm2, %v9984_v13, 0.0 }
 0x3e2   :  { %12606 = vst [vmem:[#allocation150_spill] sm:$0xff] %v9950_v51 }
 0x3e3   :  { %2625 = vmax.xlane.f32.xlu1 %v2624_v28  ;;  %v2718_v28 = vsub.f32 %v12610_v59, %v9664_v17  ;;  %v9986_v59 = vpop.f32.mrf.mxu1 }
 0x3e4   :  { %2619 = vmax.xlane.f32.xlu0 %v2618_v50  ;;  %v9962_v48 = vpop.xlane.xlu1 %2520  ;;  %v3155_v50 = vsel %vm2296_vm2, %v9960_v14, 0.0  ;;  %12614 = vst [vmem:[#allocation156_spill] sm:$0xff] %v9986_v59 }
 0x3e5   :  { %12608 = vst [vmem:[#allocation152_spill] sm:$0xff] %v9962_v48  ;;  %v9964_v37 = vpop.xlane.xlu0 %2505  ;;  %v2883_v17 = vmul.f32 1.442695, %v2718_v28  ;;  %v9998_v30 = vpop.f32.mrf.mxu1 }
 0x3e6   :  { %12609 = vst [vmem:[#allocation153_spill] sm:$0xff] %v9964_v37  ;;  %v10002_v28 = vpop.eup %7794 }
 0x3e7   :  { %2649 = vmax.xlane.f32.xlu1 %v2648_v58  ;;  %v3179_v58 = vsel %vm2296_vm2, %v9976_v3, 0.0  ;;  %7800 = vpow2.f32 %v2883_v17  ;;  %v12621_v17 = vld [vmem:[#allocation20_spill] sm:$0xff] }
 0x3e8   :  { %3156 = vadd.xlane.f32.xlu0 %v3155_v50  ;;  %v9978_v37 = vpop.xlane.xlu1 %2544  ;;  %v2721_v6 = vsub.f32 %v12621_v17, %v9739_v5  ;;  %v2645_v5 = vsel %vm2296_vm2, %v9928_v2, -inf }
 0x3e9   :  { %12612 = vst [vmem:[#allocation154_spill] sm:$0xff] %v9978_v37  ;;  %v9980_v15 = vpop.xlane.xlu0 %2523  ;;  %v12617_v37 = vld [vmem:[#allocation50_spill] sm:$0xff] }
 0x3ea   :  { %12613 = vst [vmem:[#allocation155_spill] sm:$0xff] %v9980_v15  ;;  %v2720_v15 = vsub.f32 %v12617_v37, %v9638_v55  ;;  %12618 = vst [vmem:[#allocation50_spill] sm:$0xff] %v9998_v30  ;;  %v2657_v55 = vsel %vm2296_vm2, %v9986_v59, -inf  ;;  %v10010_v37 = vpop.eup %7796  ;;  %v2889_v59 = vmul.f32 1.442695, %v2721_v6 }
 0x3eb   :  { %3192 = vadd.xlane.f32.xlu1 %v3191_v31  ;;  %v2627_v31 = vsel %vm2296_vm2, %v9898_v54, -inf  ;;  %v3158_v54 = vsel %vm2296_vm2, %v10002_v28, 0.0 }
 0x3ec   :  { %3180 = vadd.xlane.f32.xlu0 %v3179_v58  ;;  %v9990_v48 = vpop.xlane.xlu1 %2514 }
 0x3ed   :  { %12615 = vst [vmem:[#allocation157_spill] sm:$0xff] %v9990_v48  ;;  %v9992_v50 = vpop.xlane.xlu0 %2547 }
 0x3ee   :  { %12616 = vst [vmem:[#allocation158_spill] sm:$0xff] %v9992_v50  ;;  %v2887_v50 = vmul.f32 1.442695, %v2720_v15  ;;  %v3188_v15 = vsel %vm2296_vm2, %v10010_v37, 0.0 }
 0x3ef   :  { %3195 = vadd.xlane.f32.xlu1 %v3194_v33  ;;  %v10014_v33 = vpop.f32.mrf.mxu1 }
 0x3f0   :  { %2628 = vmax.xlane.f32.xlu0 %v2627_v31  ;;  %v10004_v58 = vpop.xlane.xlu1 %2538  ;;  %12622 = vst [vmem:[#allocation20_spill] sm:$0xff] %v10014_v33  ;;  %7802 = vpow2.f32 %v2887_v50  ;;  %v2660_v50 = vsel %vm2296_vm2, %v10014_v33, -inf }
 0x3f1   :  { %12619 = vst [vmem:[#allocation159_spill] sm:$0xff] %v10004_v58  ;;  %v10006_v48 = vpop.xlane.xlu0 %2517  ;;  %7804 = vpow2.f32 %v2889_v59 }
 0x3f2   :  { %12620 = vst [vmem:[#allocation160_spill] sm:$0xff] %v10006_v48  ;;  %v10024_v48 = vpop.f32.mrf.mxu1 }
 0x3f3   :  { %2658 = vmax.xlane.f32.xlu1 %v2657_v55  ;;  %12625 = vst [vmem:[#allocation163_spill] sm:$0xff] %v10024_v48  ;;  %v10028_v55 = vpop.eup %7798 }
 0x3f4   :  { %3159 = vadd.xlane.f32.xlu0 %v3158_v54  ;;  %v10018_v31 = vpop.xlane.xlu1 %2532  ;;  %v3152_v6 = vsel %vm2296_vm2, %v10028_v55, 0.0 }
 0x3f5   :  { %12623 = vst [vmem:[#allocation161_spill] sm:$0xff] %v10018_v31  ;;  %v10020_v58 = vpop.xlane.xlu0 %2541 }
 0x3f6   :  { %12624 = vst [vmem:[#allocation162_spill] sm:$0xff] %v10020_v58  ;;  %v10036_v58 = vpop.f32.mrf.mxu1 }
 0x3f7   :  { %3189 = vadd.xlane.f32.xlu1 %v3188_v15  ;;  %12628 = vst [vmem:[#allocation166_spill] sm:$0xff] %v10036_v58  ;;  %v10040_v15 = vpop.eup %7800 }
 0x3f8   :  { %2646 = vmax.xlane.f32.xlu0 %v2645_v5  ;;  %v10030_v17 = vpop.xlane.xlu1 %2556  ;;  %v3176_v59 = vsel %vm2296_vm2, %v10040_v15, 0.0 }
 0x3f9   :  { %12626 = vst [vmem:[#allocation164_spill] sm:$0xff] %v10030_v17  ;;  %v10032_v54 = vpop.xlane.xlu0 %2535  ;;  %v2675_v17 = vsel %vm2296_vm2, %v10024_v48, -inf }
 0x3fa   :  { %12627 = vst [vmem:[#allocation165_spill] sm:$0xff] %v10032_v54  ;;  %v10048_v54 = vpop.f32.mrf.mxu1 }
 0x3fb   :  { %2661 = vmax.xlane.f32.xlu1 %v2660_v50  ;;  %12631 = vst [vmem:[#allocation169_spill] sm:$0xff] %v10048_v54 }
 0x3fc   :  { %3153 = vadd.xlane.f32.xlu0 %v3152_v6  ;;  %v10042_v2 = vpop.xlane.xlu1 %2526  ;;  %v12634_v6 = vld [vmem:[#allocation68_spill] sm:$0xff] }
 0x3fd   :  { %12629 = vst [vmem:[#allocation167_spill] sm:$0xff] %v10042_v2  ;;  %v10044_v5 = vpop.xlane.xlu0 %2559  ;;  %v2725_v31 = vsub.f32 %v12634_v6, %v9816_v1  ;;  %v10060_v2 = vpop.eup %7802  ;;  %v2654_v6 = vsel %vm2296_vm2, %v9944_v18, -inf }
 0x3fe   :  { %12630 = vst [vmem:[#allocation168_spill] sm:$0xff] %v10044_v5  ;;  %v2678_v5 = vsel %vm2296_vm2, %v10048_v54, -inf }
 0x3ff   :  { %2676 = vmax.xlane.f32.xlu1 %v2675_v17  ;;  %v2630_v17 = vsel %vm2296_vm2, %v9926_v20, -inf }
 0x400   :  { %3177 = vadd.xlane.f32.xlu0 %v3176_v59  ;;  %v10052_v50 = vpop.xlane.xlu1 %2550  ;;  %v2897_v59 = vmul.f32 1.442695, %v2725_v31  ;;  %v12637_v31 = vld [vmem:[#allocation63_spill] sm:$0xff] }
 0x401   :  { %12632 = vst [vmem:[#allocation170_spill] sm:$0xff] %v10052_v50  ;;  %v10054_v33 = vpop.xlane.xlu0 %2529  ;;  %v3182_v50 = vsel %vm2296_vm2, %v10060_v2, 0.0  ;;  %v2727_v20 = vsub.f32 %v12637_v31, %v9776_v32  ;;  %v12640_v32 = vld [vmem:[#allocation70_spill] sm:$0xff] }
 0x402   :  { %12633 = vst [vmem:[#allocation171_spill] sm:$0xff] %v10054_v33  ;;  %v12636_v33 = vld [vmem:[#allocation73_spill] sm:$0xff] }
 0x403   :  { %2679 = vmax.xlane.f32.xlu1 %v2678_v5  ;;  %v2726_v1 = vsub.f32 %v12636_v33, %v9834_v39  ;;  %v10072_v5 = vpop.eup %7804 }
 0x404   :  { %2631 = vmax.xlane.f32.xlu0 %v2630_v17  ;;  %v3097_v48 = vpop.xlane.xlu1 %3096  ;;  %v3185_v39 = vsel %vm2296_vm2, %v10072_v5, 0.0 }
 0x405   :  { %v10064_v47 = vpop.xlane.xlu0 %2553  ;;  %7806 = vrcp.f32 %v3097_v48 }
 0x406   :  { %12635 = vst [vmem:[#allocation68_spill] sm:$0xff] %v10064_v47  ;;  %v2899_v47 = vmul.f32 1.442695, %v2726_v1  ;;  %v2728_v1 = vsub.f32 %v12640_v32, %v9800_v9  ;;  %v2669_v9 = vsel %vm2296_vm2, %v10036_v58, -inf }
 0x407   :  { %3183 = vadd.xlane.f32.xlu1 %v3182_v50  ;;  %v2901_v50 = vmul.f32 1.442695, %v2727_v20 }
 0x408   :  { %2655 = vmax.xlane.f32.xlu0 %v2654_v6  ;;  %v3115_v54 = vpop.xlane.xlu1 %3114 }
 0x409   :  { %7808 = vrcp.f32 %v3115_v54  ;;  %v3121_v17 = vpop.xlane.xlu0 %3120  ;;  %v2663_v54 = vsel %vm2296_vm2, %v9972_v61, -inf  ;;  %v12648_v61 = vld [vmem:[#allocation111_spill] sm:$0xff] }
 0x40a   :  { %7810 = vpow2.f32 %v2897_v59 }
 0x40b   :  { %7812 = vrcp.f32 %v3121_v17  ;;  %v2666_v17 = vsel %vm2296_vm2, %v9998_v30, -inf }
 0x40c   :  { %3186 = vadd.xlane.f32.xlu0 %v3185_v39  ;;  %v10078_v48 = vpop.xlane.xlu1 %2568 }
 0x40d   :  { %12638 = vst [vmem:[#allocation73_spill] sm:$0xff] %v10078_v48  ;;  %v3091_v33 = vpop.xlane.xlu0 %3090  ;;  %v12652_v48 = vld [vmem:[#allocation114_spill] sm:$0xff] }
 0x40e   :  { %7814 = vrcp.f32 %v3091_v33 }
 0x40f   :  { %7816 = vpow2.f32 %v2899_v47 }
 0x410   :  { %2664 = vmax.xlane.f32.xlu0 %v2663_v54  ;;  %v10082_v59 = vpop.xlane.xlu1 %2592 }
 0x411   :  { %12639 = vst [vmem:[#allocation63_spill] sm:$0xff] %v10082_v59  ;;  %v3100_v6 = vpop.xlane.xlu0 %3099  ;;  %v12650_v59 = vld [vmem:[#allocation67_spill] sm:$0xff] }
 0x412   :  { %7818 = vrcp.f32 %v3100_v6  ;;  %v7807_v31 = vpop.eup %7806  ;;  %v2903_v6 = vmul.f32 1.442695, %v2728_v1 }
 0x413   :  { %7820 = vpow2.f32 %v2901_v50  ;;  %v10091_v47 = vmul.f32 %v7807_v31, %v9559_v60  ;;  %v12643_v60 = vld [vmem:[#allocation19_spill] sm:$0xff] }
 0x414   :  { %2667 = vmax.xlane.f32.xlu0 %v2666_v17  ;;  %v10088_v39 = vpop.xlane.xlu1 %2562  ;;  %v12644_v31 = vld [vmem:[#allocation107_spill] sm:$0xff] }
 0x415   :  { %12641 = vst [vmem:[#allocation70_spill] sm:$0xff] %v10088_v39  ;;  %v3124_v20 = vpop.xlane.xlu0 %3123  ;;  %3715 = vst.msk [vmem:[#allocation2 + $0x50] sm:$0xff] %vm2296_vm2, %v10091_v47  ;;  %v10133_v39 = vpop.f32.mrf.mxu1 }
 0x416   :  { %v7809_v33 = vpop.eup %7808  ;;  %7822 = vrcp.f32 %v3124_v20  ;;  %12651 = vst [vmem:[#allocation111_spill] sm:$0xff] %v10133_v39 }
 0x417   :  { %v10093_v54 = vpop.eup %7810  ;;  %v10100_v50 = vmul.f32 %v7809_v33, %v9573_v16  ;;  %7824 = vpow2.f32 %v2903_v6 }
 0x418   :  { %v7813_v32 = vpop.eup %7812  ;;  %2670 = vmax.xlane.f32.xlu0 %v2669_v9  ;;  %v10102_v17 = vpop.xlane.xlu1 %2595  ;;  %4164 = vrot.lane.b32.xlu1 %v12643_v60, %s8240_s11  ;;  %v3197_v16 = vsel %vm2296_vm2, %v10093_v54, 0.0  ;;  %v12647_v60 = vld [vmem:[#allocation109_spill] sm:$0xff] }
 0x419   :  { %12642 = vst [vmem:[#allocation172_spill] sm:$0xff] %v10102_v17  ;;  %v10107_v20 = vmul.f32 %v7813_v32, %v12644_v31  ;;  %v10109_v1 = vpop.xlane.xlu0 %2586  ;;  %3721 = vst.msk [vmem:[#allocation2 + $0x80] sm:$0xff] %vm2296_vm2, %v10100_v50 }
 0x41a   :  { %12646 = vst [vmem:[#allocation107_spill] sm:$0xff] %v10109_v1 }
 0x41b   :  { %12645 = vst [vmem:[#allocation19_spill] sm:$0xff] %v10107_v20  ;;  %v7815_v18 = vpop.eup %7814  ;;  %3723 = vst.msk [vmem:[#allocation2 + $0x90] sm:$0xff] %vm2296_vm2, %v10107_v20  ;;  %v12659_v20 = vld [vmem:[#allocation117_spill] sm:$0xff] }
 0x41c   :  { %v10117_v33 = vpop.eup %7816  ;;  %3198 = vadd.xlane.f32.xlu0 %v3197_v16  ;;  %v3109_v9 = vpop.xlane.xlu1 %3108  ;;  %v3585_v32 = vmul.f32 %v7815_v18, %v12647_v60  ;;  %v2730_v18 = vsub.f32 %v12650_v59, %v9781_v8  ;;  %v12655_v59 = vld [vmem:[#allocation21_spill] sm:$0xff] }
 0x41d   :  { %v3094_v31 = vpop.xlane.xlu0 %3093  ;;  %7826 = vrcp.f32 %v3109_v9  ;;  %v3200_v6 = vsel %vm2296_vm2, %v10117_v33, 0.0 }
 0x41e   :  { %3713 = vst.msk [vmem:[#allocation2 + $0x40] sm:$0xff] %vm2296_vm2, %v3585_v32  ;;  %7828 = vrcp.f32 %v3094_v31  ;;  %v2907_v31 = vmul.f32 1.442695, %v2730_v18  ;;  %v12657_v18 = vld [vmem:[#allocation15_spill] sm:$0xff] }
 0x41f   :  { %v7819_v58 = vpop.eup %7818 }
 0x420   :  { %v10123_v30 = vpop.eup %7820  ;;  %v3588_v1 = vmul.f32 %v7819_v58, %v12648_v61  ;;  %3201 = vadd.xlane.f32.xlu0 %v3200_v6  ;;  %v10126_v17 = vpop.xlane.xlu1 %2589  ;;  %v2731_v6 = vsub.f32 %v12655_v59, %v9723_v45 }
 0x421   :  { %12649 = vst [vmem:[#allocation109_spill] sm:$0xff] %v10126_v17  ;;  %v3118_v16 = vpop.xlane.xlu0 %3117  ;;  %v3203_v9 = vsel %vm2296_vm2, %v10123_v30, 0.0  ;;  %v2732_v17 = vsub.f32 %v12657_v18, %v9744_v25 }
 0x422   :  { %3716 = vst.msk [vmem:[#allocation2 + $0x58] sm:$0xff] %vm2296_vm2, %v3588_v1  ;;  %7830 = vrcp.f32 %v3118_v16  ;;  %v2672_v16 = vsel %vm2296_vm2, %v10133_v39, -inf }
 0x423   :  { %v7823_v60 = vpop.eup %7822 }
 0x424   :  { %v10136_v10 = vmul.f32 %v7823_v60, %v12652_v48  ;;  %3204 = vadd.xlane.f32.xlu0 %v3203_v9  ;;  %v3127_v61 = vpop.xlane.xlu1 %3126  ;;  %v10148_v48 = vpop.eup %7824 }
 0x425   :  { %v10138_v58 = vpop.xlane.xlu0 %2571  ;;  %7832 = vrcp.f32 %v3127_v61  ;;  %v2909_v61 = vmul.f32 1.442695, %v2731_v6  ;;  %v3206_v8 = vsel %vm2296_vm2, %v10148_v48, 0.0 }
 0x426   :  { %12653 = vst [vmem:[#allocation67_spill] sm:$0xff] %v10136_v10  ;;  %12654 = vst [vmem:[#allocation114_spill] sm:$0xff] %v10138_v58  ;;  %7834 = vpow2.f32 %v2907_v31  ;;  %v12660_v31 = vld [vmem:[#allocation80_spill] sm:$0xff] }
 0x427   :  { %3724 = vst.msk [vmem:[#allocation2 + $0x98] sm:$0xff] %vm2296_vm2, %v10136_v10  ;;  %v2738_v6 = vsub.f32 %v12660_v31, %v9888_v46  ;;  %v12664_v31 = vld [vmem:[#allocation62_spill] sm:$0xff] }
 0x428   :  { %2673 = vmax.xlane.f32.xlu0 %v2672_v16  ;;  %v10150_v60 = vpop.xlane.xlu1 %2604  ;;  %v12658_v16 = vld [vmem:[#allocation116_spill] sm:$0xff] }
 0x429   :  { %12656 = vst [vmem:[#allocation21_spill] sm:$0xff] %v10150_v60  ;;  %v3133_v9 = vpop.xlane.xlu0 %3132  ;;  %v2911_v60 = vmul.f32 1.442695, %v2732_v17  ;;  %v12661_v17 = vld [vmem:[#allocation74_spill] sm:$0xff] }
 0x42a   :  { %7836 = vrcp.f32 %v3133_v9  ;;  %v7827_v58 = vpop.eup %7826 }
 0x42b   :  { %v7829_v59 = vpop.eup %7828  ;;  %v10161_v51 = vmul.f32 %v7827_v58, %v12658_v16  ;;  %7838 = vpow2.f32 %v2909_v61  ;;  %v3838_v58 = vpack.c.bf16 %v3588_v1, %v10091_v47  ;;  %v12663_v1 = vld [vmem:[#allocation66_spill] sm:$0xff] }
 0x42c   :  { %3207 = vadd.xlane.f32.xlu0 %v3206_v8  ;;  %v10156_v45 = vpop.xlane.xlu1 %2574  ;;  %v3586_v10 = vmul.f32 %v7829_v59, %v12659_v20  ;;  %7840 = vpow2.f32 %v2911_v60  ;;  %v2739_v20 = vsub.f32 %v12661_v17, %v9848_v24  ;;  %v2923_v59 = vmul.f32 1.442695, %v2738_v6 }
 0x42d   :  { %v10158_v39 = vpop.xlane.xlu0 %2565  ;;  %3719 = vst.msk [vmem:[#allocation2 + $0x70] sm:$0xff] %vm2296_vm2, %v10161_v51 }
 0x42e   :  { %3714 = vst.msk [vmem:[#allocation2 + $0x48] sm:$0xff] %vm2296_vm2, %v3586_v10  ;;  %v3837_v8 = vpack.c.bf16 %v3586_v10, %v3585_v32  ;;  %v12662_v10 = vld [vmem:[#allocation78_spill] sm:$0xff]  ;;  %v2925_v32 = vmul.f32 1.442695, %v2739_v20 }
 0x42f   :  { %v7831_v25 = vpop.eup %7830  ;;  %v2740_v47 = vsub.f32 %v12662_v10, %v9864_v41  ;;  %v12665_v10 = vld [vmem:[#allocation22_spill] sm:$0xff] }
 0x430   :  { %v3130_v9 = vpop.xlane.xlu1 %3129  ;;  %v3594_v18 = vmul.f32 %v7831_v25, %v9662_v22  ;;  %6876 = vmatprep.mubr.msk.bf16.mxu0 %vm2296_vm2, %v3837_v8 }
 0x431   :  { %v3103_v16 = vpop.xlane.xlu0 %3102  ;;  %7842 = vrcp.f32 %v3130_v9  ;;  %6877 = vmatmul.mubr.msk.bf16.vlgmr.msra.gmra.mxu0 %vm2296_vm2, %v3838_v58 }
 0x432   :  { %3722 = vst.msk [vmem:[#allocation2 + $0x88] sm:$0xff] %vm2296_vm2, %v3594_v18  ;;  %v3841_v46 = vpack.c.bf16 %v3594_v18, %v10100_v50  ;;  %v7833_v61 = vpop.eup %7832  ;;  %6901 = vmatpush3.bf16.msra.mxu0 %v12585_v62  ;;  %7844 = vrcp.f32 %v3103_v16 }
 0x433   :  { %v10182_v24 = vmul.f32 %v7833_v61, %v9668_v36  ;;  %6902 = vmatprep.subr.bf16.mxu0 %v12663_v1  ;;  %v10191_v62 = vpop.eup %7834  ;;  %7846 = vpow2.f32 %v2923_v59  ;;  %v2927_v36 = vmul.f32 1.442695, %v2740_v47 }
 0x434   :  { %6892 = vmatprep.mubr.msk.bf16.mxu1 %vm2296_vm2, %v3841_v46  ;;  %v10179_v22 = vpop.xlane.xlu1 %2607  ;;  %7848 = vpow2.f32 %v2925_v32  ;;  %v3212_v8 = vsel %vm2296_vm2, %v10191_v62, 0.0 }
 0x435   :  { %v10187_v50 = vpop.xlane.xlu0 %2580  ;;  %3725 = vst.msk [vmem:[#allocation2 + $0xa0] sm:$0xff] %vm2296_vm2, %v10182_v24 }
 0x436   :  { %6903 = vmatpush3.bf16.msra.mxu0 %v12663_v1 }
 0x437   :  { %v7837_v60 = vpop.eup %7836  ;;  %6904 = vmatprep.subr.bf16.mxu0 %v12664_v31 }
 0x438   :  { %v10194_v25 = vpop.xlane.xlu1 %2601  ;;  %v10198_v6 = vmul.f32 %v7837_v60, %v9688_v19  ;;  %v10204_v9 = vpop.eup %7838 }
 0x439   :  { %v3112_v41 = vpop.xlane.xlu0 %3111  ;;  %v10207_v16 = vpop.eup %7840  ;;  %v3215_v19 = vsel %vm2296_vm2, %v10204_v9, 0.0 }
 0x43a   :  { %7850 = vrcp.f32 %v3112_v41  ;;  %3727 = vst.msk [vmem:[#allocation2 + $0xb0] sm:$0xff] %vm2296_vm2, %v10198_v6  ;;  %6905 = vmatpush3.bf16.msra.mxu0 %v12664_v31  ;;  %v3218_v1 = vsel %vm2296_vm2, %v10207_v16, 0.0  ;;  %v12667_v31 = vld [vmem:[#allocation7_spill] sm:$0xff] }
 0x43b   :  { %7852 = vpow2.f32 %v2927_v36 }
 0x43c   :  { %v3169_v18 = vpop.xlane.xlu1 %3168  ;;  %3213 = vadd.xlane.f32.xlu1 %v3212_v8 }
 0x43d   :  { %v3136_v58 = vpop.xlane.xlu0 %3135  ;;  %7854 = vrcp.f32 %v3169_v18 }
 0x43e   :  { %7856 = vrcp.f32 %v3136_v58  ;;  %v7843_v17 = vpop.eup %7842 }
 0x43f   :  { %v7845_v46 = vpop.eup %7844  ;;  %v10214_v59 = vmul.f32 %v7843_v17, %v9702_v38 }
 0x440   :  { %v3139_v20 = vpop.xlane.xlu1 %3138  ;;  %3216 = vadd.xlane.f32.xlu1 %v3215_v19  ;;  %v3589_v47 = vmul.f32 %v7845_v46, %v9698_v53  ;;  %v10225_v60 = vpop.eup %7846 }
 0x441   :  { %7858 = vrcp.f32 %v3139_v20  ;;  %v10211_v61 = vpop.xlane.xlu0 %2598  ;;  %3726 = vst.msk [vmem:[#allocation2 + $0xa8] sm:$0xff] %vm2296_vm2, %v10214_v59  ;;  %v10232_v53 = vpop.eup %7848  ;;  %v3236_v41 = vsel %vm2296_vm2, %v10225_v60, 0.0 }
 0x442   :  { %4075 = vrot.lane.b32.xlu0 %v12665_v10, %s8240_s11  ;;  %3717 = vst.msk [vmem:[#allocation2 + $0x60] sm:$0xff] %vm2296_vm2, %v3589_v47  ;;  %v3239_v46 = vsel %vm2296_vm2, %v10232_v53, 0.0 }
 0x444   :  { %v10227_v36 = vpop.xlane.xlu1 %2640  ;;  %3219 = vadd.xlane.f32.xlu1 %v3218_v1  ;;  %v12668_v1 = vld [vmem:[#allocation16_spill] sm:$0xff] }
 0x445   :  { %12666 = vst [vmem:[#allocation15_spill] sm:$0xff] %v10227_v36  ;;  %v3106_v38 = vpop.xlane.xlu0 %3105 }
 0x446   :  { %4259 = vrot.lane.b32.xlu0 %v12667_v31, %s8240_s11  ;;  %7860 = vrcp.f32 %v3106_v38  ;;  %v2729_v38 = vsub.f32 %v12668_v1, %v9758_v0 }
 0x447   :  { %v7851_v8 = vpop.eup %7850 }
 0x448   :  { %v3172_v18 = vpop.xlane.xlu1 %3171  ;;  %3237 = vadd.xlane.f32.xlu1 %v3236_v41  ;;  %v3592_v19 = vmul.f32 %v7851_v8, %v9737_v12  ;;  %v10239_v17 = vpop.eup %7852 }
 0x449   :  { %v10236_v58 = vpop.xlane.xlu0 %2583  ;;  %7862 = vrcp.f32 %v3172_v18  ;;  %v3242_v32 = vsel %vm2296_vm2, %v10239_v17, 0.0 }
 0x44a   :  { %v7855_v20 = vpop.eup %7854  ;;  %3720 = vst.msk [vmem:[#allocation2 + $0x78] sm:$0xff] %vm2296_vm2, %v3592_v19 }
 0x44b   :  { %v7857_v10 = vpop.eup %7856  ;;  %v10247_v31 = vmul.f32 %v7855_v20, %v9742_v7  ;;  %v2905_v20 = vmul.f32 1.442695, %v2729_v38 }
 0x44c   :  { %v10249_v41 = vpop.xlane.xlu1 %2610  ;;  %3240 = vadd.xlane.f32.xlu1 %v3239_v46  ;;  %v10254_v8 = vmul.f32 %v7857_v10, %v9755_v42 }
 0x44d   :  { %v10251_v12 = vpop.xlane.xlu0 %2577  ;;  %3739 = vst.msk [vmem:[#allocation2 + $0x110] sm:$0xff] %vm2296_vm2, %v10247_v31 }
 0x44e   :  { %v7859_v18 = vpop.eup %7858  ;;  %3728 = vst.msk [vmem:[#allocation2 + $0xb8] sm:$0xff] %vm2296_vm2, %v10254_v8 }
 0x44f   :  { %v10261_v0 = vmul.f32 %v7859_v18, %v9765_v23 }
 0x450   :  { %v10267_v46 = vpop.xlane.xlu1 %2643  ;;  %3243 = vadd.xlane.f32.xlu1 %v3242_v32 }
 0x451   :  { %12669 = vst [vmem:[#allocation116_spill] sm:$0xff] %v10267_v46  ;;  %v3145_v42 = vpop.xlane.xlu0 %3144  ;;  %3729 = vst.msk [vmem:[#allocation2 + $0xc0] sm:$0xff] %vm2296_vm2, %v10261_v0  ;;  %v3840_v46 = vpack.c.bf16 %v3592_v19, %v10161_v51 }
 0x452   :  { %7864 = vrcp.f32 %v3145_v42 }
 0x453   :  { %v7861_v10 = vpop.eup %7860  ;;  %7866 = vpow2.f32 %v2905_v20 }
 0x454   :  { %v10271_v1 = vpop.xlane.xlu1 %2613  ;;  %v3590_v18 = vmul.f32 %v7861_v10, %v9792_v43 }
 0x455   :  { %v3163_v23 = vpop.xlane.xlu0 %3162 }
 0x456   :  { %7868 = vrcp.f32 %v3163_v23  ;;  %v7863_v36 = vpop.eup %7862  ;;  %3718 = vst.msk [vmem:[#allocation2 + $0x68] sm:$0xff] %vm2296_vm2, %v3590_v18  ;;  %v3839_v38 = vpack.c.bf16 %v3590_v18, %v3589_v47  ;;  %v12672_v23 = vld [vmem:[#allocation8_spill] sm:$0xff] }
 0x457   :  { %v10276_v7 = vmul.f32 %v7863_v36, %v9807_v26 }
 0x458   :  { %v10278_v32 = vpop.xlane.xlu1 %2637  ;;  %6880 = vmatprep.mubr.msk.bf16.mxu0 %vm2296_vm2, %v3839_v38 }
 0x459   :  { %12670 = vst [vmem:[#allocation117_spill] sm:$0xff] %v10278_v32  ;;  %v10282_v20 = vpop.xlane.xlu0 %2616  ;;  %3740 = vst.msk [vmem:[#allocation2 + $0x118] sm:$0xff] %vm2296_vm2, %v10276_v7  ;;  %6881 = vmatmul.mubr.msk.bf16.gmra.mxu0 %vm2296_vm2, %v3840_v46 }
 0x45c   :  { %v3151_v47 = vpop.xlane.xlu1 %3150 }
 0x45d   :  { %v3148_v42 = vpop.xlane.xlu0 %3147  ;;  %7870 = vrcp.f32 %v3151_v47 }
 0x45e   :  { %7872 = vrcp.f32 %v3148_v42  ;;  %v12674_v42 = vld [vmem:[#allocation34_spill] sm:$0xff] }
 0x45f   :  { %v7865_v26 = vpop.eup %7864 }
 0x460   :  { %v3175_v36 = vpop.xlane.xlu1 %3174  ;;  %v10289_v10 = vpop.eup %7866  ;;  %v10292_v51 = vmul.f32 %v7865_v26, %v9846_v35 }
 0x461   :  { %7874 = vrcp.f32 %v3175_v36  ;;  %v10294_v19 = vpop.xlane.xlu0 %2634  ;;  %4257 = vrot.lane.b32.xlu1 %v12672_v23, %s8240_s11  ;;  %v3209_v38 = vsel %vm2296_vm2, %v10289_v10, 0.0 }
 0x462   :  { %12671 = vst [vmem:[#allocation80_spill] sm:$0xff] %v10294_v19  ;;  %3731 = vst.msk [vmem:[#allocation2 + $0xd0] sm:$0xff] %vm2296_vm2, %v10292_v51 }
 0x463   :  { %v7869_v46 = vpop.eup %7868 }
 0x464   :  { %v10300_v18 = vpop.xlane.xlu1 %2652  ;;  %v10305_v47 = vmul.f32 %v7869_v46, %v9860_v21 }
 0x465   :  { %12673 = vst [vmem:[#allocation74_spill] sm:$0xff] %v10300_v18  ;;  %3210 = vadd.xlane.f32.xlu0 %v3209_v38  ;;  %v3142_v35 = vpop.xlane.xlu0 %3141  ;;  %4346 = vrot.lane.b32.xlu1 %v12674_v42, %s8240_s11  ;;  %v12676_v42 = vld [vmem:[#allocation71_spill] sm:$0xff] }
 0x466   :  { %3737 = vst.msk [vmem:[#allocation2 + $0x100] sm:$0xff] %vm2296_vm2, %v10305_v47  ;;  %7876 = vrcp.f32 %v3142_v35 }
 0x468   :  { %v10311_v26 = vpop.xlane.xlu1 %2622 }
 0x469   :  { %v3166_v36 = vpop.xlane.xlu0 %3165 }
 0x46a   :  { %7878 = vrcp.f32 %v3166_v36  ;;  %v7871_v23 = vpop.eup %7870  ;;  %v2733_v36 = vsub.f32 %v12676_v42, %v9832_v40 }
 0x46b   :  { %v7873_v18 = vpop.eup %7872  ;;  %v10318_v21 = vmul.f32 %v7871_v23, %v9878_v44 }
 0x46c   :  { %v10313_v43 = vpop.xlane.xlu1 %2625  ;;  %v10321_v38 = vmul.f32 %v7873_v18, %v9884_v56  ;;  %v2913_v18 = vmul.f32 1.442695, %v2733_v36 }
 0x46d   :  { %12675 = vst [vmem:[#allocation78_spill] sm:$0xff] %v10313_v43  ;;  %v10315_v19 = vpop.xlane.xlu0 %2619  ;;  %3733 = vst.msk [vmem:[#allocation2 + $0xe0] sm:$0xff] %vm2296_vm2, %v10318_v21 }
 0x46e   :  { %v7875_v46 = vpop.eup %7874  ;;  %3732 = vst.msk [vmem:[#allocation2 + $0xd8] sm:$0xff] %vm2296_vm2, %v10321_v38 }
 0x46f   :  { %v10326_v35 = vmul.f32 %v7875_v46, %v9894_v4 }
 0x470   :  { %v10332_v32 = vpop.xlane.xlu1 %2649 }
 0x471   :  { %12677 = vst [vmem:[#allocation66_spill] sm:$0xff] %v10332_v32  ;;  %v3157_v44 = vpop.xlane.xlu0 %3156  ;;  %3741 = vst.msk [vmem:[#allocation2 + $0x120] sm:$0xff] %vm2296_vm2, %v10326_v35 }
 0x472   :  { %7880 = vrcp.f32 %v3157_v44 }
 0x473   :  { %v7877_v56 = vpop.eup %7876 }
 0x474   :  { %v3193_v23 = vpop.xlane.xlu1 %3192  ;;  %v3602_v4 = vmul.f32 %v7877_v56, %v9916_v34 }
 0x475   :  { %v3181_v43 = vpop.xlane.xlu0 %3180  ;;  %7882 = vrcp.f32 %v3193_v23 }
 0x476   :  { %7884 = vrcp.f32 %v3181_v43  ;;  %3730 = vst.msk [vmem:[#allocation2 + $0xc8] sm:$0xff] %vm2296_vm2, %v3602_v4  ;;  %v3845_v40 = vpack.c.bf16 %v3602_v4, %v10261_v0  ;;  %v12679_v43 = vld [vmem:[#allocation27_spill] sm:$0xff] }
 0x477   :  { %v7879_v46 = vpop.eup %7878  ;;  %7886 = vpow2.f32 %v2913_v18  ;;  %v12681_v18 = vld [vmem:[#allocation76_spill] sm:$0xff] }
 0x478   :  { %v3196_v42 = vpop.xlane.xlu1 %3195  ;;  %v10340_v32 = vmul.f32 %v7879_v46, %v9932_v27  ;;  %6908 = vmatprep.mubr.msk.bf16.mxu0 %vm2296_vm2, %v3845_v40  ;;  %v2737_v23 = vsub.f32 %v12681_v18, %v9872_v52 }
 0x479   :  { %7888 = vrcp.f32 %v3196_v42  ;;  %v10343_v36 = vpop.xlane.xlu0 %2628 }
 0x47a   :  { %12678 = vst [vmem:[#allocation62_spill] sm:$0xff] %v10343_v36  ;;  %3738 = vst.msk [vmem:[#allocation2 + $0x108] sm:$0xff] %vm2296_vm2, %v10340_v32 }
 0x47b   :  { %4348 = vrot.lane.b32.xlu0 %v12679_v43, %s8240_s11 }
 0x47c   :  { %v10351_v0 = vpop.xlane.xlu1 %2658 }
 0x47d   :  { %12680 = vst [vmem:[#allocation22_spill] sm:$0xff] %v10351_v0  ;;  %v3160_v44 = vpop.xlane.xlu0 %3159  ;;  %v2921_v0 = vmul.f32 1.442695, %v2737_v23 }
 0x47e   :  { %7890 = vrcp.f32 %v3160_v44 }
 0x47f   :  { %v7881_v27 = vpop.eup %7880 }
 0x480   :  { %v3190_v56 = vpop.xlane.xlu1 %3189  ;;  %v3607_v46 = vmul.f32 %v7881_v27, %v9960_v14 }
 0x481   :  { %v10355_v4 = vpop.xlane.xlu0 %2646  ;;  %7892 = vrcp.f32 %v3190_v56 }
 0x482   :  { %12682 = vst [vmem:[#allocation7_spill] sm:$0xff] %v10355_v4  ;;  %v7883_v40 = vpop.eup %7882  ;;  %3735 = vst.msk [vmem:[#allocation2 + $0xf0] sm:$0xff] %vm2296_vm2, %v3607_v46 }
 0x483   :  { %v7885_v42 = vpop.eup %7884  ;;  %v10360_v43 = vmul.f32 %v7883_v40, %v9968_v11 }
 0x484   :  { %v10362_v34 = vpop.xlane.xlu1 %2661  ;;  %v10364_v44 = vpop.eup %7886  ;;  %v10367_v52 = vmul.f32 %v7885_v42, %v9976_v3 }
 0x485   :  { %v3154_v36 = vpop.xlane.xlu0 %3153  ;;  %3747 = vst.msk [vmem:[#allocation2 + $0x150] sm:$0xff] %vm2296_vm2, %v10360_v43  ;;  %v3221_v27 = vsel %vm2296_vm2, %v10364_v44, 0.0 }
 0x486   :  { %v7889_v18 = vpop.eup %7888  ;;  %7894 = vrcp.f32 %v3154_v36  ;;  %3743 = vst.msk [vmem:[#allocation2 + $0x130] sm:$0xff] %vm2296_vm2, %v10367_v52 }
 0x487   :  { %v10372_v14 = vmul.f32 %v7889_v18, %v9984_v13  ;;  %7896 = vpow2.f32 %v2921_v0 }
 0x488   :  { %v10376_v11 = vpop.xlane.xlu1 %2676 }
 0x489   :  { %12683 = vst [vmem:[#allocation16_spill] sm:$0xff] %v10376_v11  ;;  %3748 = vst.msk [vmem:[#allocation2 + $0x158] sm:$0xff] %vm2296_vm2, %v10372_v14  ;;  %v3178_v56 = vpop.xlane.xlu0 %3177  ;;  %3222 = vadd.xlane.f32.xlu1 %v3221_v27 }
 0x48a   :  { %7898 = vrcp.f32 %v3178_v56 }
 0x48b   :  { %v7891_v13 = vpop.eup %7890 }
 0x48c   :  { %v10384_v36 = vpop.xlane.xlu1 %2679  ;;  %v3608_v40 = vmul.f32 %v7891_v13, %v10002_v28  ;;  %v3846_v13 = vpack.c.bf16 %v10321_v38, %v10292_v51 }
 0x48d   :  { %12684 = vst [vmem:[#allocation8_spill] sm:$0xff] %v10384_v36  ;;  %v10386_v23 = vpop.xlane.xlu0 %2631 }
 0x48e   :  { %v7893_v42 = vpop.eup %7892  ;;  %3736 = vst.msk [vmem:[#allocation2 + $0xf8] sm:$0xff] %vm2296_vm2, %v3608_v40  ;;  %v3848_v38 = vpack.c.bf16 %v3608_v40, %v3607_v46 }
 0x48f   :  { %v3618_v18 = vmul.f32 %v7893_v42, %v10010_v37 }
 0x490   :  { %v3184_v0 = vpop.xlane.xlu1 %3183 }
 0x491   :  { %v10391_v11 = vpop.xlane.xlu0 %2655  ;;  %3746 = vst.msk [vmem:[#allocation2 + $0x148] sm:$0xff] %vm2296_vm2, %v3618_v18  ;;  %7900 = vrcp.f32 %v3184_v0 }
 0x492   :  { %12685 = vst [vmem:[#allocation34_spill] sm:$0xff] %v10391_v11 }
 0x493   :  { %v7895_v27 = vpop.eup %7894 }
 0x494   :  { %v4165_v56 = vpop.permute.xlu1 %4164  ;;  %v3606_v36 = vmul.f32 %v7895_v27, %v10028_v55  ;;  %v10395_v4 = vpop.eup %7896  ;;  %v12686_v27 = vld [vmem:[#allocation23_spill] sm:$0xff] }
 0x495   :  { %v3187_v3 = vpop.xlane.xlu0 %3186  ;;  %6906 = vmatprep.subr.bf16.mxu0 %v4165_v56  ;;  %v3233_v0 = vsel %vm2296_vm2, %v10395_v4, 0.0 }
 0x496   :  { %6907 = vmatpush3.bf16.msra.mxu0 %v4165_v56  ;;  %7902 = vrcp.f32 %v3187_v3  ;;  %3734 = vst.msk [vmem:[#allocation2 + $0xe8] sm:$0xff] %vm2296_vm2, %v3606_v36  ;;  %v3847_v55 = vpack.c.bf16 %v3606_v36, %v10318_v21 }
 0x497   :  { %v7899_v28 = vpop.eup %7898 }
 0x498   :  { %v10401_v37 = vmul.f32 %v7899_v28, %v10040_v15 }
 0x499   :  { %v10403_v42 = vpop.xlane.xlu0 %2664  ;;  %6909 = vmatmul.mubr.msk.bf16.vlgmr.msra.gmra.mxu0 %vm2296_vm2, %v3846_v13  ;;  %v12689_v13 = vld [vmem:[#allocation72_spill] sm:$0xff] }
 0x49a   :  { %3234 = vadd.xlane.f32.xlu0 %v3233_v0  ;;  %4344 = vrot.lane.b32.xlu1 %v12686_v27, %s8240_s11  ;;  %3742 = vst.msk [vmem:[#allocation2 + $0x128] sm:$0xff] %vm2296_vm2, %v10401_v37  ;;  %v2736_v0 = vsub.f32 %v12689_v13, %v9818_v29 }
 0x49b   :  { %6912 = vmatprep.mubr.msk.bf16.mxu0 %vm2296_vm2, %v3847_v55 }
 0x49c   :  { %v2919_v27 = vmul.f32 1.442695, %v2736_v0 }
 0x49d   :  { %v10416_v51 = vpop.xlane.xlu0 %2667 }
 0x49e   :  { %12687 = vst [vmem:[#allocation71_spill] sm:$0xff] %v10416_v51  ;;  %v7901_v3 = vpop.eup %7900 }
 0x49f   :  { %v10422_v21 = vmul.f32 %v7901_v3, %v10060_v2  ;;  %v12690_v3 = vld [vmem:[#allocation5_spill] sm:$0xff] }
 0x4a1   :  { %v10418_v56 = vpop.xlane.xlu0 %2670  ;;  %6913 = vmatmul.mubr.msk.bf16.gmra.mxu0 %vm2296_vm2, %v3848_v38  ;;  %3744 = vst.msk [vmem:[#allocation2 + $0x138] sm:$0xff] %vm2296_vm2, %v10422_v21 }
 0x4a2   :  { %12688 = vst [vmem:[#allocation27_spill] sm:$0xff] %v10418_v56 }
 0x4a3   :  { %v7903_v28 = vpop.eup %7902 }
 0x4a4   :  { %v3617_v46 = vmul.f32 %v7903_v28, %v10072_v5 }
 0x4a5   :  { %v3199_v55 = vpop.xlane.xlu0 %3198 }
 0x4a6   :  { %7904 = vrcp.f32 %v3199_v55  ;;  %3745 = vst.msk [vmem:[#allocation2 + $0x140] sm:$0xff] %vm2296_vm2, %v3617_v46  ;;  %v3853_v40 = vpack.c.bf16 %v3618_v18, %v3617_v46  ;;  %v12692_v18 = vld [vmem:[#allocation75_spill] sm:$0xff] }
 0x4a7   :  { %v2734_v28 = vsub.f32 %v12692_v18, %v9850_v57 }
 0x4a8   :  { %6940 = vmatprep.mubr.msk.bf16.mxu0 %vm2296_vm2, %v3853_v40 }
 0x4a9   :  { %v3202_v2 = vpop.xlane.xlu0 %3201 }
 0x4aa   :  { %7906 = vrcp.f32 %v3202_v2 }
 0x4ab   :  { %7908 = vpow2.f32 %v2919_v27  ;;  %v12693_v27 = vld [vmem:[#allocation69_spill] sm:$0xff] }
 0x4ac   :  { %v2735_v2 = vsub.f32 %v12693_v27, %v9795_v63  ;;  %v12695_v63 = vld [vmem:[#allocation67_spill] sm:$0xff] }
 0x4ad   :  { %v3205_v38 = vpop.xlane.xlu0 %3204 }
 0x4ae   :  { %7910 = vrcp.f32 %v3205_v38  ;;  %v2915_v38 = vmul.f32 1.442695, %v2734_v28  ;;  %v2917_v18 = vmul.f32 1.442695, %v2735_v2  ;;  %v12696_v28 = vld [vmem:[#allocation19_spill] sm:$0xff]  ;;  %v12700_v2 = vld [vmem:[#allocation89_spill] sm:$0xff] }
 0x4b0   :  { %4255 = vrot.lane.b32.xlu0 %v12690_v3, %s8240_s11 }
 0x4b1   :  { %v10435_v36 = vpop.xlane.xlu0 %2673 }
 0x4b2   :  { %12691 = vst [vmem:[#allocation76_spill] sm:$0xff] %v10435_v36 }
 0x4b3   :  { %v7905_v29 = vpop.eup %7904 }
 0x4b4   :  { %v10438_v5 = vmul.f32 %v7905_v29, %v10093_v54 }
 0x4b5   :  { %v3208_v13 = vpop.xlane.xlu0 %3207 }
 0x4b6   :  { %7912 = vrcp.f32 %v3208_v13  ;;  %3749 = vst.msk [vmem:[#allocation2 + $0x160] sm:$0xff] %vm2296_vm2, %v10438_v5 }
 0x4b7   :  { %v7907_v0 = vpop.eup %7906  ;;  %7914 = vpow2.f32 %v2915_v38 }
 0x4b8   :  { %v10445_v55 = vmul.f32 %v7907_v0, %v10117_v33  ;;  %v10447_v40 = vpop.eup %7908  ;;  %v12694_v33 = vld [vmem:[#allocation84_spill] sm:$0xff]  ;;  %v12697_v0 = vpack.c.bf16 %v12695_v63, %v12696_v28  ;;  %7916 = vpow2.f32 %v2917_v18  ;;  %v12702_v63 = vld [vmem:[#allocation82_spill] sm:$0xff] }
 0x4b9   :  { %v4076_v46 = vpop.permute.xlu0 %4075  ;;  %v2741_v29 = vsub.f32 %v12694_v33, %v9934_v49  ;;  %v3230_v27 = vsel %vm2296_vm2, %v10447_v40, 0.0  ;;  %v12701_v33 = vld [vmem:[#allocation138_spill] sm:$0xff] }
 0x4ba   :  { %6890 = vmatprep.subr.bf16.mxu1 %v4076_v46  ;;  %3750 = vst.msk [vmem:[#allocation2 + $0x168] sm:$0xff] %vm2296_vm2, %v10445_v55  ;;  %v2743_v28 = vsub.f32 %v12702_v63, %v12701_v33  ;;  %v12706_v18 = vld [vmem:[#allocation86_spill] sm:$0xff] }
 0x4bb   :  { %v7911_v54 = vpop.eup %7910  ;;  %6891 = vmatpush3.bf16.msra.mxu1 %v4076_v46  ;;  %v2929_v49 = vmul.f32 1.442695, %v2741_v29  ;;  %v12699_v46 = vld [vmem:[#allocation150_spill] sm:$0xff] }
 0x4bc   :  { %v10456_v3 = vmul.f32 %v7911_v54, %v10123_v30  ;;  %v12698_v30 = vpack.c.bf16 %v10214_v59, %v10182_v24  ;;  %v2742_v38 = vsub.f32 %v12700_v2, %v12699_v46  ;;  %v12703_v24 = vpack.c.bf16 %v10254_v8, %v10198_v6  ;;  %v12707_v46 = vld [vmem:[#allocation28_spill] sm:$0xff] }
 0x4bd   :  { %v4260_v13 = vpop.permute.xlu0 %4259  ;;  %7918 = vpow2.f32 %v2929_v49  ;;  %v12704_v59 = vpack.c.bf16 %v10340_v32, %v10305_v47 }
 0x4be   :  { %6893 = vmatmul.mubr.msk.bf16.vlgmr.msra.gmra.mxu1 %vm2296_vm2, %v12697_v0  ;;  %6916 = vmatprep.subr.bf16.mxu1 %v4260_v13  ;;  %3751 = vst.msk [vmem:[#allocation2 + $0x170] sm:$0xff] %vm2296_vm2, %v10456_v3  ;;  %v2931_v0 = vmul.f32 1.442695, %v2742_v38 }
 0x4bf   :  { %3231 = vadd.xlane.f32.xlu1 %v3230_v27  ;;  %6896 = vmatprep.mubr.msk.bf16.mxu1 %vm2296_vm2, %v12698_v30 }
 0x4c0   :  { %6917 = vmatpush3.bf16.msra.mxu1 %v4260_v13  ;;  %v2933_v13 = vmul.f32 1.442695, %v2743_v28  ;;  %v10508_v28 = vpop.f32.mrf.mxu0 }
 0x4c1   :  { %12708 = vst [vmem:[#allocation23_spill] sm:$0xff] %v10508_v28  ;;  %v12716_v28 = vld [vmem:[#allocation135_spill] sm:$0xff] }
 0x4c3   :  { %v7913_v54 = vpop.eup %7912 }
 0x4c4   :  { %v10477_v27 = vmul.f32 %v7913_v54, %v10148_v48  ;;  %v12705_v48 = vld [vmem:[#allocation143_spill] sm:$0xff]  ;;  %v10493_v6 = vpop.eup %7914 }
 0x4c5   :  { %v3214_v15 = vpop.xlane.xlu1 %3213  ;;  %v3224_v47 = vsel %vm2296_vm2, %v10493_v6, 0.0  ;;  %v10497_v49 = vpop.eup %7916 }
 0x4c6   :  { %7920 = vrcp.f32 %v3214_v15  ;;  %6897 = vmatmul.mubr.msk.bf16.gmra.mxu1 %vm2296_vm2, %v12703_v24  ;;  %3752 = vst.msk [vmem:[#allocation2 + $0x178] sm:$0xff] %vm2296_vm2, %v10477_v27  ;;  %v2744_v15 = vsub.f32 %v12706_v18, %v12705_v48  ;;  %v3227_v54 = vsel %vm2296_vm2, %v10497_v49, 0.0  ;;  %v10519_v18 = vpop.f32.mrf.mxu0 }
 0x4c7   :  { %6924 = vmatprep.mubr.msk.bf16.mxu1 %vm2296_vm2, %v12704_v59  ;;  %7922 = vpow2.f32 %v2931_v0  ;;  %12709 = vst [vmem:[#allocation72_spill] sm:$0xff] %v10519_v18 }
 0x4c8   :  { %v2935_v8 = vmul.f32 1.442695, %v2744_v15 }
 0x4c9   :  { %v3217_v30 = vpop.xlane.xlu1 %3216 }
 0x4ca   :  { %7924 = vrcp.f32 %v3217_v30  ;;  %v10501_v38 = vpop.eup %7918 }
 0x4cb   :  { %7926 = vpow2.f32 %v2933_v13  ;;  %v3245_v59 = vsel %vm2296_vm2, %v10501_v38, 0.0 }
 0x4cd   :  { %v3220_v32 = vpop.xlane.xlu1 %3219 }
 0x4ce   :  { %7928 = vrcp.f32 %v3220_v32  ;;  %v12710_v32 = vld [vmem:[#allocation139_spill] sm:$0xff] }
 0x4cf   :  { %3225 = vadd.xlane.f32.xlu0 %v3224_v47  ;;  %7930 = vpow2.f32 %v2935_v8  ;;  %v12711_v47 = vld [vmem:[#allocation83_spill] sm:$0xff] }
 0x4d0   :  { %4342 = vrot.lane.b32.xlu1 %v12707_v46, %s8240_s11  ;;  %v2746_v46 = vsub.f32 %v12711_v47, %v12710_v32 }
 0x4d1   :  { %v3238_v2 = vpop.xlane.xlu1 %3237 }
 0x4d2   :  { %7932 = vrcp.f32 %v3238_v2  ;;  %v10532_v2 = vpop.f32.mrf.mxu0 }
 0x4d3   :  { %v7921_v33 = vpop.eup %7920  ;;  %3228 = vadd.xlane.f32.xlu0 %v3227_v54  ;;  %12712 = vst [vmem:[#allocation5_spill] sm:$0xff] %v10532_v2  ;;  %v12717_v2 = vld [vmem:[#allocation81_spill] sm:$0xff] }
 0x4d4   :  { %v10506_v63 = vmul.f32 %v7921_v33, %v10191_v62  ;;  %v10510_v24 = vpop.eup %7922  ;;  %v10547_v47 = vpop.f32.mrf.mxu0  ;;  %v2748_v18 = vsub.f32 %v12717_v2, %v12716_v28  ;;  %v12723_v2 = vld [vmem:[#allocation90_spill] sm:$0xff] }
 0x4d5   :  { %v3241_v0 = vpop.xlane.xlu1 %3240  ;;  %v3248_v30 = vsel %vm2296_vm2, %v10510_v24, 0.0  ;;  %12715 = vst [vmem:[#allocation75_spill] sm:$0xff] %v10547_v47 }
 0x4d6   :  { %7934 = vrcp.f32 %v3241_v0  ;;  %3754 = vst.msk [vmem:[#allocation2 + $0x188] sm:$0xff] %vm2296_vm2, %v10506_v63 }
 0x4d7   :  { %v7925_v13 = vpop.eup %7924  ;;  %3246 = vadd.xlane.f32.xlu0 %v3245_v59 }
 0x4d8   :  { %v10517_v48 = vmul.f32 %v7925_v13, %v10204_v9  ;;  %v10521_v15 = vpop.eup %7926 }
 0x4d9   :  { %v3244_v62 = vpop.xlane.xlu1 %3243  ;;  %v3251_v0 = vsel %vm2296_vm2, %v10521_v15, 0.0 }
 0x4da   :  { %3755 = vst.msk [vmem:[#allocation2 + $0x190] sm:$0xff] %vm2296_vm2, %v10517_v48  ;;  %7936 = vrcp.f32 %v3244_v62  ;;  %v12713_v62 = vld [vmem:[#allocation133_spill] sm:$0xff] }
 0x4db   :  { %v7929_v8 = vpop.eup %7928  ;;  %3249 = vadd.xlane.f32.xlu0 %v3248_v30  ;;  %v12714_v30 = vld [vmem:[#allocation77_spill] sm:$0xff] }
 0x4dc   :  { %v10530_v9 = vmul.f32 %v7929_v8, %v10207_v16  ;;  %v10534_v33 = vpop.eup %7930  ;;  %v2747_v16 = vsub.f32 %v12714_v30, %v12713_v62  ;;  %v2939_v8 = vmul.f32 1.442695, %v2746_v46  ;;  %v2943_v30 = vmul.f32 1.442695, %v2748_v18 }
 0x4dd   :  { %v4258_v54 = vpop.permute.xlu1 %4257  ;;  %v3254_v29 = vsel %vm2296_vm2, %v10534_v33, 0.0 }
 0x4de   :  { %3756 = vst.msk [vmem:[#allocation2 + $0x198] sm:$0xff] %vm2296_vm2, %v10530_v9  ;;  %6918 = vmatprep.subr.bf16.mxu1 %v4258_v54  ;;  %v2941_v59 = vmul.f32 1.442695, %v2747_v16  ;;  %7938 = vpow2.f32 %v2939_v8 }
 0x4df   :  { %v7933_v13 = vpop.eup %7932  ;;  %3252 = vadd.xlane.f32.xlu0 %v3251_v0  ;;  %6919 = vmatpush3.bf16.msra.mxu1 %v4258_v54  ;;  %v12719_v54 = vld [vmem:[#allocation160_spill] sm:$0xff] }
 0x4e0   :  { %v10545_v32 = vmul.f32 %v7933_v13, %v10225_v60  ;;  %v10558_v60 = vpop.f32.mrf.mxu0  ;;  %v12720_v0 = vld [vmem:[#allocation96_spill] sm:$0xff]  ;;  %7940 = vpow2.f32 %v2941_v59 }
 0x4e1   :  { %12718 = vst [vmem:[#allocation69_spill] sm:$0xff] %v10558_v60  ;;  %v2754_v13 = vsub.f32 %v12720_v0, %v12719_v54  ;;  %7942 = vpow2.f32 %v2943_v30  ;;  %v12726_v0 = vld [vmem:[#allocation94_spill] sm:$0xff] }
 0x4e2   :  { %3762 = vst.msk [vmem:[#allocation2 + $0x1c8] sm:$0xff] %vm2296_vm2, %v10545_v32  ;;  %v10567_v28 = vpop.f32.mrf.mxu0 }
 0x4e3   :  { %v7935_v57 = vpop.eup %7934  ;;  %3255 = vadd.xlane.f32.xlu0 %v3254_v29  ;;  %12721 = vst [vmem:[#allocation84_spill] sm:$0xff] %v10567_v28  ;;  %v2955_v29 = vmul.f32 1.442695, %v2754_v13 }
 0x4e4   :  { %v10556_v46 = vmul.f32 %v7935_v57, %v10232_v53  ;;  %v12722_v57 = vld [vmem:[#allocation152_spill] sm:$0xff]  ;;  %v10575_v54 = vpop.f32.mrf.mxu0 }
 0x4e5   :  { %v2755_v8 = vsub.f32 %v12723_v2, %v12722_v57  ;;  %12724 = vst [vmem:[#allocation67_spill] sm:$0xff] %v10575_v54  ;;  %7944 = vpow2.f32 %v2955_v29  ;;  %v4347_v2 = vpop.permute.xlu1 %4346  ;;  %v12732_v54 = vld [vmem:[#allocation32_spill] sm:$0xff] }
 0x4e6   :  { %3763 = vst.msk [vmem:[#allocation2 + $0x1d0] sm:$0xff] %vm2296_vm2, %v10556_v46  ;;  %v10581_v60 = vpop.f32.mrf.mxu0 }
 0x4e7   :  { %v7937_v62 = vpop.eup %7936  ;;  %v2957_v59 = vmul.f32 1.442695, %v2755_v8  ;;  %12727 = vst [vmem:[#allocation19_spill] sm:$0xff] %v10581_v60 }
 0x4e8   :  { %v10565_v16 = vmul.f32 %v7937_v62, %v10239_v17  ;;  %v12725_v17 = vld [vmem:[#allocation155_spill] sm:$0xff] }
 0x4e9   :  { %v2756_v62 = vsub.f32 %v12726_v0, %v12725_v17  ;;  %v12733_v0 = vld [vmem:[#allocation136_spill] sm:$0xff] }
 0x4ea   :  { %3764 = vst.msk [vmem:[#allocation2 + $0x1d8] sm:$0xff] %vm2296_vm2, %v10565_v16 }
 0x4eb   :  { %v10579_v13 = vpop.eup %7938  ;;  %v2959_v53 = vmul.f32 1.442695, %v2756_v62  ;;  %v12731_v62 = vld [vmem:[#allocation6_spill] sm:$0xff] }
 0x4ec   :  { %v3260_v57 = vsel %vm2296_vm2, %v10579_v13, 0.0 }
 0x4ed   :  { %v10587_v29 = vpop.eup %7940 }
 0x4ee   :  { %v3211_v18 = vpop.xlane.xlu0 %3210  ;;  %v10595_v17 = vpop.eup %7942 }
 0x4ef   :  { %7946 = vrcp.f32 %v3211_v18 }
 0x4f0   :  { %7948 = vpow2.f32 %v2957_v59  ;;  %v3263_v59 = vsel %vm2296_vm2, %v10587_v29, 0.0 }
 0x4f1   :  { %v10583_v30 = vpop.f32.mrf.mxu0  ;;  %7950 = vpow2.f32 %v2959_v53  ;;  %v3266_v53 = vsel %vm2296_vm2, %v10595_v17, 0.0 }
 0x4f2   :  { %v4349_v28 = vpop.permute.xlu0 %4348  ;;  %12728 = vst [vmem:[#allocation150_spill] sm:$0xff] %v10583_v30 }
 0x4f3   :  { %6932 = vmatprep.subr.bf16.mxu0 %v4349_v28  ;;  %v10589_v8 = vpop.f32.mrf.mxu0 }
 0x4f4   :  { %3261 = vadd.xlane.f32.xlu1 %v3260_v57  ;;  %6933 = vmatpush3.bf16.msra.mxu0 %v4349_v28  ;;  %12729 = vst [vmem:[#allocation89_spill] sm:$0xff] %v10589_v8  ;;  %v10601_v28 = vpop.eup %7944 }
 0x4f5   :  { %6934 = vmatprep.subr.bf16.mxu0 %v4347_v2  ;;  %v10591_v18 = vpop.f32.mrf.mxu0 }
 0x4f6   :  { %12730 = vst [vmem:[#allocation138_spill] sm:$0xff] %v10591_v18 }
 0x4f7   :  { %v10628_v8 = vpop.f32.mrf.mxu0 }
 0x4f8   :  { %3264 = vadd.xlane.f32.xlu1 %v3263_v59  ;;  %6935 = vmatpush3.bf16.msra.mxu0 %v4347_v2  ;;  %v3284_v59 = vsel %vm2296_vm2, %v10601_v28, 0.0  ;;  %12735 = vst [vmem:[#allocation82_spill] sm:$0xff] %v10628_v8 }
 0x4f9   :  { %4253 = vrot.lane.b32.xlu0 %v12731_v62, %s8240_s11 }
 0x4fc   :  { %v7947_v57 = vpop.eup %7946  ;;  %3267 = vadd.xlane.f32.xlu1 %v3266_v53  ;;  %v12734_v53 = vld [vmem:[#allocation79_spill] sm:$0xff] }
 0x4fd   :  { %4437 = vrot.lane.b32.xlu0 %v12732_v54, %s8240_s11  ;;  %v10608_v60 = vmul.f32 %v7947_v57, %v10289_v10  ;;  %v10616_v62 = vpop.eup %7948  ;;  %v2745_v47 = vsub.f32 %v12734_v53, %v12733_v0  ;;  %v12736_v0 = vld [vmem:[#allocation36_spill] sm:$0xff] }
 0x4fe   :  { %v3287_v54 = vsel %vm2296_vm2, %v10616_v62, 0.0  ;;  %v10622_v10 = vpop.eup %7950 }
 0x4ff   :  { %3753 = vst.msk [vmem:[#allocation2 + $0x180] sm:$0xff] %vm2296_vm2, %v10608_v60  ;;  %v2937_v57 = vmul.f32 1.442695, %v2745_v47  ;;  %v3290_v30 = vsel %vm2296_vm2, %v10622_v10, 0.0 }
 0x500   :  { %3285 = vadd.xlane.f32.xlu1 %v3284_v59 }
 0x501   :  { %7952 = vpow2.f32 %v2937_v57  ;;  %v12743_v57 = vld [vmem:[#allocation29_spill] sm:$0xff] }
 0x504   :  { %3288 = vadd.xlane.f32.xlu1 %v3287_v54 }
 0x508   :  { %3291 = vadd.xlane.f32.xlu1 %v3290_v30  ;;  %v12739_v30 = vld [vmem:[#allocation31_spill] sm:$0xff] }
 0x50e   :  { %v10626_v59 = vpop.eup %7952 }
 0x50f   :  { %v3257_v47 = vsel %vm2296_vm2, %v10626_v59, 0.0 }
 0x512   :  { %v3223_v18 = vpop.xlane.xlu1 %3222 }
 0x513   :  { %7954 = vrcp.f32 %v3223_v18 }
 0x516   :  { %v4345_v2 = vpop.permute.xlu1 %4344 }
 0x517   :  { %6936 = vmatprep.subr.bf16.mxu0 %v4345_v2 }
 0x518   :  { %6937 = vmatpush3.bf16.msra.mxu0 %v4345_v2 }
 0x519   :  { %4435 = vrot.lane.b32.xlu1 %v12736_v0, %s8240_s11  ;;  %v10632_v53 = vpop.f32.mrf.mxu0 }
 0x51a   :  { %12737 = vst [vmem:[#allocation143_spill] sm:$0xff] %v10632_v53  ;;  %v12745_v53 = vld [vmem:[#allocation92_spill] sm:$0xff] }
 0x51b   :  { %v10636_v54 = vpop.f32.mrf.mxu0 }
 0x51c   :  { %12738 = vst [vmem:[#allocation86_spill] sm:$0xff] %v10636_v54  ;;  %3258 = vadd.xlane.f32.xlu0 %v3257_v47  ;;  %v12741_v54 = vld [vmem:[#allocation149_spill] sm:$0xff]  ;;  %v12742_v47 = vld [vmem:[#allocation87_spill] sm:$0xff] }
 0x51d   :  { %4524 = vrot.lane.b32.xlu1 %v12739_v30, %s8240_s11  ;;  %v10640_v18 = vpop.f32.mrf.mxu0  ;;  %v2749_v56 = vsub.f32 %v12742_v47, %v12741_v54 }
 0x51e   :  { %12740 = vst [vmem:[#allocation28_spill] sm:$0xff] %v10640_v18 }
 0x51f   :  { %v2945_v30 = vmul.f32 1.442695, %v2749_v56 }
 0x520   :  { %v7955_v2 = vpop.eup %7954 }
 0x521   :  { %v10645_v8 = vmul.f32 %v7955_v2, %v10364_v44  ;;  %v12744_v2 = vld [vmem:[#allocation157_spill] sm:$0xff] }
 0x522   :  { %v2753_v18 = vsub.f32 %v12745_v53, %v12744_v2  ;;  %v12747_v53 = vld [vmem:[#allocation24_spill] sm:$0xff] }
 0x523   :  { %v3235_v0 = vpop.xlane.xlu0 %3234  ;;  %3757 = vst.msk [vmem:[#allocation2 + $0x1a0] sm:$0xff] %vm2296_vm2, %v10645_v8 }
 0x524   :  { %7956 = vrcp.f32 %v3235_v0  ;;  %v2953_v0 = vmul.f32 1.442695, %v2753_v18  ;;  %v12748_v18 = vpack.c.bf16 %v10445_v55, %v10438_v5  ;;  %v12753_v55 = vld [vmem:[#allocation146_spill] sm:$0xff] }
 0x525   :  { %7958 = vpow2.f32 %v2945_v30  ;;  %v10675_v30 = vpop.f32.mrf.mxu0 }
 0x526   :  { %7960 = vpow2.f32 %v2953_v0  ;;  %12749 = vst [vmem:[#allocation139_spill] sm:$0xff] %v10675_v30 }
 0x527   :  { %v4256_v36 = vpop.permute.xlu0 %4255 }
 0x528   :  { %6920 = vmatprep.subr.bf16.mxu1 %v4256_v36 }
 0x529   :  { %6921 = vmatpush3.bf16.msra.mxu1 %v4256_v36 }
 0x531   :  { %v7957_v11 = vpop.eup %7956 }
 0x532   :  { %4526 = vrot.lane.b32.xlu0 %v12743_v57, %s8240_s11  ;;  %v3633_v44 = vmul.f32 %v7957_v11, %v10395_v4  ;;  %v10657_v51 = vpop.eup %7958  ;;  %v12746_v11 = vpack.c.bf16 %v10372_v14, %v10360_v43  ;;  %v12750_v43 = vpack.c.bf16 %v10477_v27, %v10456_v3 }
 0x533   :  { %v3269_v36 = vsel %vm2296_vm2, %v10657_v51, 0.0  ;;  %v10661_v47 = vpop.eup %7960 }
 0x534   :  { %3761 = vst.msk [vmem:[#allocation2 + $0x1c0] sm:$0xff] %vm2296_vm2, %v3633_v44  ;;  %v3281_v4 = vsel %vm2296_vm2, %v10661_v47, 0.0 }
 0x541   :  { %3270 = vadd.xlane.f32.xlu1 %v3269_v36  ;;  %v3861_v36 = vpack.c.bf16 %v10545_v32, %v3633_v44 }
 0x548   :  { %v3232_v56 = vpop.xlane.xlu1 %3231 }
 0x549   :  { %7962 = vrcp.f32 %v3232_v56 }
 0x54c   :  { %v4343_v54 = vpop.permute.xlu1 %4342 }
 0x54d   :  { %6938 = vmatprep.subr.bf16.mxu0 %v4343_v54 }
 0x54e   :  { %6939 = vmatpush3.bf16.msra.mxu0 %v4343_v54 }
 0x551   :  { %3282 = vadd.xlane.f32.xlu0 %v3281_v4  ;;  %6941 = vmatmul.mubr.msk.bf16.vlgmr.msra.gmra.mxu0 %vm2296_vm2, %v12746_v11 }
 0x552   :  { %4522 = vrot.lane.b32.xlu1 %v12747_v53, %s8240_s11  ;;  %6944 = vmatprep.mubr.msk.bf16.mxu0 %vm2296_vm2, %v12748_v18 }
 0x556   :  { %v7963_v57 = vpop.eup %7962 }
 0x557   :  { %v10678_v2 = vmul.f32 %v7963_v57, %v10447_v40  ;;  %v12754_v40 = vld [vmem:[#allocation88_spill] sm:$0xff] }
 0x558   :  { %v3226_v0 = vpop.xlane.xlu0 %3225  ;;  %v2752_v56 = vsub.f32 %v12754_v40, %v12753_v55 }
 0x559   :  { %7964 = vrcp.f32 %v3226_v0  ;;  %6945 = vmatmul.mubr.msk.bf16.gmra.mxu0 %vm2296_vm2, %v12750_v43  ;;  %v10685_v14 = vpop.f32.mrf.mxu0  ;;  %3760 = vst.msk [vmem:[#allocation2 + $0x1b8] sm:$0xff] %vm2296_vm2, %v10678_v2  ;;  %v12760_v43 = vld [vmem:[#allocation26_spill] sm:$0xff] }
 0x55a   :  { %12751 = vst [vmem:[#allocation83_spill] sm:$0xff] %v10685_v14  ;;  %6972 = vmatprep.mubr.msk.bf16.mxu0 %vm2296_vm2, %v3861_v36  ;;  %v2951_v44 = vmul.f32 1.442695, %v2752_v56  ;;  %v12764_v36 = vld [vmem:[#allocation85_spill] sm:$0xff] }
 0x55b   :  { %v10690_v5 = vpop.f32.mrf.mxu0 }
 0x55c   :  { %12752 = vst [vmem:[#allocation133_spill] sm:$0xff] %v10690_v5  ;;  %v3229_v54 = vpop.xlane.xlu0 %3228 }
 0x55d   :  { %7966 = vrcp.f32 %v3229_v54  ;;  %v10694_v32 = vpop.f32.mrf.mxu0 }
 0x55e   :  { %12755 = vst [vmem:[#allocation77_spill] sm:$0xff] %v10694_v32  ;;  %v12787_v32 = vld [vmem:[#allocation93_spill] sm:$0xff] }
 0x55f   :  { %v10698_v27 = vpop.f32.mrf.mxu0 }
 0x560   :  { %12756 = vst [vmem:[#allocation135_spill] sm:$0xff] %v10698_v27  ;;  %v3247_v4 = vpop.xlane.xlu0 %3246 }
 0x561   :  { %7968 = vrcp.f32 %v3247_v4  ;;  %v10700_v11 = vpop.f32.mrf.mxu0  ;;  %v12761_v4 = vld [vmem:[#allocation153_spill] sm:$0xff] }
 0x562   :  { %12757 = vst [vmem:[#allocation81_spill] sm:$0xff] %v10700_v11  ;;  %7970 = vpow2.f32 %v2951_v44 }
 0x563   :  { %v10702_v53 = vpop.f32.mrf.mxu0 }
 0x564   :  { %12758 = vst [vmem:[#allocation160_spill] sm:$0xff] %v10702_v53  ;;  %v3250_v18 = vpop.xlane.xlu0 %3249 }
 0x565   :  { %7972 = vrcp.f32 %v3250_v18  ;;  %v10704_v57 = vpop.f32.mrf.mxu0  ;;  %v12762_v18 = vld [vmem:[#allocation91_spill] sm:$0xff] }
 0x566   :  { %12759 = vst [vmem:[#allocation96_spill] sm:$0xff] %v10704_v57  ;;  %v7965_v0 = vpop.eup %7964  ;;  %v2750_v3 = vsub.f32 %v12762_v18, %v12761_v4 }
 0x567   :  { %4433 = vrot.lane.b32.xlu0 %v12760_v43, %s8240_s11  ;;  %v10711_v55 = vmul.f32 %v7965_v0, %v10493_v6 }
 0x568   :  { %v3253_v40 = vpop.xlane.xlu0 %3252  ;;  %v2947_v57 = vmul.f32 1.442695, %v2750_v3 }
 0x569   :  { %7974 = vrcp.f32 %v3253_v40  ;;  %3758 = vst.msk [vmem:[#allocation2 + $0x1a8] sm:$0xff] %vm2296_vm2, %v10711_v55  ;;  %v12763_v40 = vld [vmem:[#allocation142_spill] sm:$0xff] }
 0x56a   :  { %v7967_v56 = vpop.eup %7966  ;;  %v2751_v11 = vsub.f32 %v12764_v36, %v12763_v40  ;;  %v12767_v36 = vpack.c.bf16 %v10276_v7, %v10247_v31  ;;  %v12769_v40 = vld [vmem:[#allocation171_spill] sm:$0xff] }
 0x56b   :  { %v10716_v54 = vmul.f32 %v7967_v56, %v10497_v49 }
 0x56c   :  { %v3256_v44 = vpop.xlane.xlu0 %3255  ;;  %v2949_v18 = vmul.f32 1.442695, %v2751_v11 }
 0x56d   :  { %7976 = vrcp.f32 %v3256_v44  ;;  %3759 = vst.msk [vmem:[#allocation2 + $0x1b0] sm:$0xff] %vm2296_vm2, %v10716_v54 }
 0x56e   :  { %v7969_v0 = vpop.eup %7968  ;;  %7978 = vpow2.f32 %v2947_v57  ;;  %v12768_v57 = vpack.c.bf16 %v10401_v37, %v10326_v35  ;;  %v12772_v35 = vld [vmem:[#allocation98_spill] sm:$0xff] }
 0x56f   :  { %v10725_v43 = vmul.f32 %v7969_v0, %v10501_v38  ;;  %v10729_v56 = vpop.eup %7970  ;;  %v12765_v38 = vld [vmem:[#allocation167_spill] sm:$0xff]  ;;  %v12766_v0 = vld [vmem:[#allocation100_spill] sm:$0xff]  ;;  %7980 = vpow2.f32 %v2949_v18  ;;  %v12775_v18 = vpack.c.bf16 %v10506_v63, %v10608_v60 }
 0x570   :  { %v4254_v49 = vpop.permute.xlu0 %4253  ;;  %v2757_v14 = vsub.f32 %v12766_v0, %v12765_v38  ;;  %v3278_v3 = vsel %vm2296_vm2, %v10729_v56, 0.0 }
 0x571   :  { %6922 = vmatprep.subr.bf16.mxu1 %v4254_v49  ;;  %3765 = vst.msk [vmem:[#allocation2 + $0x1e0] sm:$0xff] %vm2296_vm2, %v10725_v43 }
 0x572   :  { %v7973_v44 = vpop.eup %7972  ;;  %6923 = vmatpush3.bf16.msra.mxu1 %v4254_v49  ;;  %v2961_v7 = vmul.f32 1.442695, %v2757_v14  ;;  %v12770_v49 = vld [vmem:[#allocation105_spill] sm:$0xff]  ;;  %v12785_v14 = vld [vmem:[#allocation99_spill] sm:$0xff] }
 0x573   :  { %v10734_v4 = vmul.f32 %v7973_v44, %v10510_v24  ;;  %v2758_v44 = vsub.f32 %v12770_v49, %v12769_v40 }
 0x574   :  { %v4438_v6 = vpop.permute.xlu0 %4437  ;;  %7982 = vpow2.f32 %v2961_v7 }
 0x575   :  { %6925 = vmatmul.mubr.msk.bf16.vlgmr.msra.gmra.mxu1 %vm2296_vm2, %v12767_v36  ;;  %6948 = vmatprep.subr.bf16.mxu1 %v4438_v6  ;;  %3766 = vst.msk [vmem:[#allocation2 + $0x1e8] sm:$0xff] %vm2296_vm2, %v10734_v4  ;;  %v12771_v36 = vld [vmem:[#allocation161_spill] sm:$0xff] }
 0x576   :  { %v7975_v11 = vpop.eup %7974  ;;  %3279 = vadd.xlane.f32.xlu1 %v3278_v3  ;;  %6928 = vmatprep.mubr.msk.bf16.mxu1 %vm2296_vm2, %v12768_v57  ;;  %v2759_v37 = vsub.f32 %v12772_v35, %v12771_v36 }
 0x577   :  { %6949 = vmatpush3.bf16.msra.mxu1 %v4438_v6  ;;  %v10753_v31 = vmul.f32 %v7975_v11, %v10521_v15  ;;  %v2963_v6 = vmul.f32 1.442695, %v2758_v44  ;;  %v12773_v15 = vpack.c.bf16 %v10422_v21, %v10367_v52  ;;  %v12776_v52 = vld [vmem:[#allocation165_spill] sm:$0xff]  ;;  %v12777_v21 = vld [vmem:[#allocation102_spill] sm:$0xff] }
 0x578   :  { %v2965_v57 = vmul.f32 1.442695, %v2759_v37  ;;  %v2760_v7 = vsub.f32 %v12777_v21, %v12776_v52 }
 0x579   :  { %3767 = vst.msk [vmem:[#allocation2 + $0x1f0] sm:$0xff] %vm2296_vm2, %v10753_v31 }
 0x57a   :  { %v7977_v38 = vpop.eup %7976  ;;  %v2967_v63 = vmul.f32 1.442695, %v2760_v7 }
 0x57b   :  { %v10760_v0 = vmul.f32 %v7977_v38, %v10534_v33  ;;  %v10782_v49 = vpop.eup %7978 }
 0x57c   :  { %v3272_v35 = vsel %vm2296_vm2, %v10782_v49, 0.0  ;;  %v10792_v37 = vpop.eup %7980 }
 0x57d   :  { %v3262_v3 = vpop.xlane.xlu1 %3261  ;;  %6929 = vmatmul.mubr.msk.bf16.gmra.mxu1 %vm2296_vm2, %v12773_v15  ;;  %3768 = vst.msk [vmem:[#allocation2 + $0x1f8] sm:$0xff] %vm2296_vm2, %v10760_v0 }
 0x57e   :  { %7984 = vrcp.f32 %v3262_v3  ;;  %v10772_v33 = vpop.f32.mrf.mxu1  ;;  %6956 = vmatprep.mubr.msk.bf16.mxu1 %vm2296_vm2, %v12775_v18  ;;  %v12781_v3 = vld [vmem:[#allocation25_spill] sm:$0xff] }
 0x57f   :  { %12774 = vst [vmem:[#allocation152_spill] sm:$0xff] %v10772_v33  ;;  %7986 = vpow2.f32 %v2963_v6 }
 0x580   :  { %v10778_v11 = vpop.f32.mrf.mxu1 }
 0x581   :  { %v3265_v40 = vpop.xlane.xlu1 %3264  ;;  %v10802_v52 = vpop.eup %7982 }
 0x582   :  { %7988 = vrcp.f32 %v3265_v40  ;;  %v10784_v44 = vpop.f32.mrf.mxu1  ;;  %v12784_v40 = vld [vmem:[#allocation162_spill] sm:$0xff] }
 0x583   :  { %12778 = vst [vmem:[#allocation90_spill] sm:$0xff] %v10784_v44  ;;  %7990 = vpow2.f32 %v2965_v57  ;;  %v3275_v57 = vsel %vm2296_vm2, %v10792_v37, 0.0  ;;  %v2762_v24 = vsub.f32 %v12785_v14, %v12784_v40 }
 0x584   :  { %v10788_v36 = vpop.f32.mrf.mxu1 }
 0x585   :  { %12779 = vst [vmem:[#allocation155_spill] sm:$0xff] %v10788_v36  ;;  %v3268_v60 = vpop.xlane.xlu1 %3267  ;;  %v2971_v44 = vmul.f32 1.442695, %v2762_v24 }
 0x586   :  { %7992 = vrcp.f32 %v3268_v60  ;;  %3273 = vadd.xlane.f32.xlu0 %v3272_v35  ;;  %v10794_v6 = vpop.f32.mrf.mxu1 }
 0x587   :  { %12780 = vst [vmem:[#allocation94_spill] sm:$0xff] %v10794_v6  ;;  %4520 = vrot.lane.b32.xlu1 %v12781_v3, %s8240_s11  ;;  %7994 = vpow2.f32 %v2967_v63  ;;  %v3293_v63 = vsel %vm2296_vm2, %v10802_v52, 0.0 }
 0x588   :  { %v10798_v15 = vpop.f32.mrf.mxu1 }
 0x589   :  { %12782 = vst [vmem:[#allocation6_spill] sm:$0xff] %v10798_v15  ;;  %v3286_v18 = vpop.xlane.xlu1 %3285 }
 0x58a   :  { %7996 = vrcp.f32 %v3286_v18  ;;  %3276 = vadd.xlane.f32.xlu0 %v3275_v57  ;;  %v10804_v21 = vpop.f32.mrf.mxu1 }
 0x58b   :  { %12783 = vst [vmem:[#allocation32_spill] sm:$0xff] %v10804_v21  ;;  %v7985_v7 = vpop.eup %7984  ;;  %v12786_v21 = vld [vmem:[#allocation154_spill] sm:$0xff] }
 0x58c   :  { %v10809_v60 = vmul.f32 %v7985_v7, %v10579_v13  ;;  %v10813_v3 = vpop.eup %7986  ;;  %v2763_v33 = vsub.f32 %v12787_v32, %v12786_v21  ;;  %v12789_v32 = vld [vmem:[#allocation97_spill] sm:$0xff] }
 0x58d   :  { %v3289_v35 = vpop.xlane.xlu1 %3288  ;;  %v3296_v13 = vsel %vm2296_vm2, %v10813_v3, 0.0 }
 0x58e   :  { %7998 = vrcp.f32 %v3289_v35  ;;  %3294 = vadd.xlane.f32.xlu0 %v3293_v63  ;;  %3770 = vst.msk [vmem:[#allocation2 + $0x208] sm:$0xff] %vm2296_vm2, %v10809_v60 }
 0x58f   :  { %v7989_v18 = vpop.eup %7988 }
 0x590   :  { %v10818_v57 = vmul.f32 %v7989_v18, %v10587_v29  ;;  %v10822_v7 = vpop.eup %7990 }
 0x591   :  { %v3292_v38 = vpop.xlane.xlu1 %3291  ;;  %v3299_v18 = vsel %vm2296_vm2, %v10822_v7, 0.0 }
 0x592   :  { %3771 = vst.msk [vmem:[#allocation2 + $0x210] sm:$0xff] %vm2296_vm2, %v10818_v57  ;;  %8000 = vrcp.f32 %v3292_v38  ;;  %3297 = vadd.xlane.f32.xlu0 %v3296_v13  ;;  %v2973_v13 = vmul.f32 1.442695, %v2763_v33 }
 0x593   :  { %v7993_v35 = vpop.eup %7992  ;;  %8002 = vpow2.f32 %v2971_v44 }
 0x594   :  { %v10829_v63 = vmul.f32 %v7993_v35, %v10595_v17  ;;  %v10833_v6 = vpop.eup %7994  ;;  %v12788_v35 = vld [vmem:[#allocation158_spill] sm:$0xff]  ;;  %8004 = vpow2.f32 %v2973_v13 }
 0x595   :  { %v4436_v29 = vpop.permute.xlu1 %4435  ;;  %v3302_v40 = vsel %vm2296_vm2, %v10833_v6, 0.0  ;;  %v2764_v24 = vsub.f32 %v12789_v32, %v12788_v35  ;;  %v12792_v32 = vld [vmem:[#allocation108_spill] sm:$0xff] }
 0x596   :  { %3772 = vst.msk [vmem:[#allocation2 + $0x218] sm:$0xff] %vm2296_vm2, %v10829_v63  ;;  %3300 = vadd.xlane.f32.xlu0 %v3299_v18  ;;  %6950 = vmatprep.subr.bf16.mxu1 %v4436_v29 }
 0x597   :  { %v7997_v17 = vpop.eup %7996  ;;  %6951 = vmatpush3.bf16.msra.mxu1 %v4436_v29  ;;  %v12790_v29 = vld [vmem:[#allocation120_spill] sm:$0xff] }
 0x598   :  { %v10842_v38 = vmul.f32 %v7997_v17, %v10601_v28  ;;  %v2770_v28 = vsub.f32 %v12790_v29, %v10158_v39  ;;  %v2975_v17 = vmul.f32 1.442695, %v2764_v24  ;;  %v12793_v24 = vld [vmem:[#allocation114_spill] sm:$0xff] }
 0x59a   :  { %3303 = vadd.xlane.f32.xlu0 %v3302_v40  ;;  %3778 = vst.msk [vmem:[#allocation2 + $0x248] sm:$0xff] %vm2296_vm2, %v10842_v38  ;;  %v2987_v44 = vmul.f32 1.442695, %v2770_v28  ;;  %8006 = vpow2.f32 %v2975_v17  ;;  %v12791_v40 = vld [vmem:[#allocation73_spill] sm:$0xff] }
 0x59b   :  { %v7999_v21 = vpop.eup %7998  ;;  %v2771_v14 = vsub.f32 %v12792_v32, %v12791_v40  ;;  %v4525_v32 = vpop.permute.xlu1 %4524 }
 0x59c   :  { %v10851_v18 = vmul.f32 %v7999_v21, %v10616_v62  ;;  %8008 = vpow2.f32 %v2987_v44  ;;  %v12794_v21 = vld [vmem:[#allocation118_spill] sm:$0xff] }
 0x59d   :  { %v2989_v13 = vmul.f32 1.442695, %v2771_v14  ;;  %v2772_v29 = vsub.f32 %v12794_v21, %v12793_v24 }
 0x59e   :  { %3779 = vst.msk [vmem:[#allocation2 + $0x250] sm:$0xff] %vm2296_vm2, %v10851_v18 }
 0x59f   :  { %v8001_v33 = vpop.eup %8000  ;;  %v2991_v17 = vmul.f32 1.442695, %v2772_v29  ;;  %v12796_v29 = vld [vmem:[#allocation11_spill] sm:$0xff] }
 0x5a0   :  { %v10858_v35 = vmul.f32 %v8001_v33, %v10622_v10  ;;  %v10868_v10 = vpop.eup %8002 }
 0x5a1   :  { %v3308_v33 = vsel %vm2296_vm2, %v10868_v10, 0.0  ;;  %v10872_v40 = vpop.eup %8004 }
 0x5a2   :  { %3780 = vst.msk [vmem:[#allocation2 + $0x258] sm:$0xff] %vm2296_vm2, %v10858_v35  ;;  %v3311_v14 = vsel %vm2296_vm2, %v10872_v40, 0.0 }
 0x5a5   :  { %v3259_v62 = vpop.xlane.xlu0 %3258 }
 0x5a6   :  { %8010 = vrcp.f32 %v3259_v62  ;;  %v12795_v62 = vld [vmem:[#allocation30_spill] sm:$0xff] }
 0x5a7   :  { %8012 = vpow2.f32 %v2989_v13  ;;  %v10876_v44 = vpop.eup %8006 }
 0x5a8   :  { %8014 = vpow2.f32 %v2991_v17  ;;  %v3314_v24 = vsel %vm2296_vm2, %v10876_v44, 0.0 }
 0x5a9   :  { %v4527_v28 = vpop.permute.xlu0 %4526  ;;  %v10880_v13 = vpop.eup %8008 }
 0x5aa   :  { %6964 = vmatprep.subr.bf16.mxu0 %v4527_v28  ;;  %v3332_v17 = vsel %vm2296_vm2, %v10880_v13, 0.0 }
 0x5ab   :  { %3309 = vadd.xlane.f32.xlu1 %v3308_v33  ;;  %6965 = vmatpush3.bf16.msra.mxu0 %v4527_v28 }
 0x5ac   :  { %6966 = vmatprep.subr.bf16.mxu0 %v4525_v32 }
 0x5af   :  { %3312 = vadd.xlane.f32.xlu1 %v3311_v14  ;;  %6967 = vmatpush3.bf16.msra.mxu0 %v4525_v32  ;;  %v12797_v14 = vld [vmem:[#allocation159_spill] sm:$0xff] }
 0x5b0   :  { %4431 = vrot.lane.b32.xlu0 %v12795_v62, %s8240_s11  ;;  %v12798_v62 = vld [vmem:[#allocation95_spill] sm:$0xff] }
 0x5b3   :  { %v8011_v21 = vpop.eup %8010  ;;  %3315 = vadd.xlane.f32.xlu1 %v3314_v24  ;;  %v2761_v24 = vsub.f32 %v12798_v62, %v12797_v14  ;;  %v12800_v62 = vld [vmem:[#allocation46_spill] sm:$0xff] }
 0x5b4   :  { %4615 = vrot.lane.b32.xlu0 %v12796_v29, %s8240_s11  ;;  %v10887_v28 = vmul.f32 %v8011_v21, %v10626_v59  ;;  %v10895_v32 = vpop.eup %8012 }
 0x5b5   :  { %v3335_v29 = vsel %vm2296_vm2, %v10895_v32, 0.0  ;;  %v10901_v59 = vpop.eup %8014  ;;  %v2969_v21 = vmul.f32 1.442695, %v2761_v24 }
 0x5b6   :  { %3769 = vst.msk [vmem:[#allocation2 + $0x200] sm:$0xff] %vm2296_vm2, %v10887_v28  ;;  %v3338_v39 = vsel %vm2296_vm2, %v10901_v59, 0.0 }
 0x5b7   :  { %3333 = vadd.xlane.f32.xlu1 %v3332_v17  ;;  %8016 = vpow2.f32 %v2969_v21  ;;  %v12799_v17 = vld [vmem:[#allocation12_spill] sm:$0xff]  ;;  %v12801_v21 = vld [vmem:[#allocation170_spill] sm:$0xff] }
 0x5bb   :  { %3336 = vadd.xlane.f32.xlu1 %v3335_v29 }
 0x5bf   :  { %3339 = vadd.xlane.f32.xlu1 %v3338_v39 }
 0x5c4   :  { %v10905_v15 = vpop.eup %8016 }
 0x5c5   :  { %v3305_v14 = vsel %vm2296_vm2, %v10905_v15, 0.0 }
 0x5ca   :  { %v3271_v53 = vpop.xlane.xlu1 %3270 }
 0x5cb   :  { %8018 = vrcp.f32 %v3271_v53 }
 0x5ce   :  { %v4523_v33 = vpop.permute.xlu1 %4522 }
 0x5cf   :  { %6968 = vmatprep.subr.bf16.mxu0 %v4523_v33 }
 0x5d0   :  { %4613 = vrot.lane.b32.xlu1 %v12799_v17, %s8240_s11  ;;  %6969 = vmatpush3.bf16.msra.mxu0 %v4523_v33  ;;  %v12802_v17 = vld [vmem:[#allocation103_spill] sm:$0xff] }
 0x5d1   :  { %v2765_v33 = vsub.f32 %v12802_v17, %v12801_v21 }
 0x5d3   :  { %3306 = vadd.xlane.f32.xlu0 %v3305_v14  ;;  %v2977_v30 = vmul.f32 1.442695, %v2765_v33  ;;  %v12808_v33 = vpack.c.bf16 %v10734_v4, %v10725_v43  ;;  %v12810_v43 = vld [vmem:[#allocation168_spill] sm:$0xff] }
 0x5d4   :  { %4702 = vrot.lane.b32.xlu1 %v12800_v62, %s8240_s11  ;;  %v12803_v62 = vld [vmem:[#allocation39_spill] sm:$0xff] }
 0x5d8   :  { %v8019_v24 = vpop.eup %8018 }
 0x5d9   :  { %v10914_v39 = vmul.f32 %v8019_v24, %v10657_v51  ;;  %v12804_v24 = vld [vmem:[#allocation70_spill] sm:$0xff] }
 0x5da   :  { %v3283_v53 = vpop.xlane.xlu0 %3282 }
 0x5db   :  { %8020 = vrcp.f32 %v3283_v53  ;;  %3773 = vst.msk [vmem:[#allocation2 + $0x220] sm:$0xff] %vm2296_vm2, %v10914_v39  ;;  %v12805_v53 = vld [vmem:[#allocation112_spill] sm:$0xff] }
 0x5dc   :  { %8022 = vpow2.f32 %v2977_v30  ;;  %v2769_v27 = vsub.f32 %v12805_v53, %v12804_v24  ;;  %v10947_v24 = vpop.f32.mrf.mxu0 }
 0x5de   :  { %v4434_v29 = vpop.permute.xlu0 %4433  ;;  %v2985_v5 = vmul.f32 1.442695, %v2769_v27  ;;  %v12806_v27 = vpack.c.bf16 %v10565_v16, %v10556_v46  ;;  %v12809_v46 = vpack.c.bf16 %v10760_v0, %v10753_v31 }
 0x5df   :  { %6952 = vmatprep.subr.bf16.mxu1 %v4434_v29 }
 0x5e0   :  { %6953 = vmatpush3.bf16.msra.mxu1 %v4434_v29  ;;  %8024 = vpow2.f32 %v2985_v5  ;;  %v12807_v5 = vld [vmem:[#allocation33_spill] sm:$0xff] }
 0x5e8   :  { %v8021_v14 = vpop.eup %8020 }
 0x5e9   :  { %4704 = vrot.lane.b32.xlu0 %v12803_v62, %s8240_s11  ;;  %v3649_v51 = vmul.f32 %v8021_v14, %v10661_v47  ;;  %v10926_v36 = vpop.eup %8022 }
 0x5ea   :  { %v3317_v29 = vsel %vm2296_vm2, %v10926_v36, 0.0 }
 0x5eb   :  { %3777 = vst.msk [vmem:[#allocation2 + $0x240] sm:$0xff] %vm2296_vm2, %v3649_v51 }
 0x5ed   :  { %v10930_v17 = vpop.eup %8024 }
 0x5ee   :  { %v3329_v47 = vsel %vm2296_vm2, %v10930_v17, 0.0 }
 0x5f8   :  { %3318 = vadd.xlane.f32.xlu1 %v3317_v29  ;;  %v3869_v29 = vpack.c.bf16 %v10842_v38, %v3649_v51 }
 0x5ff   :  { %v3280_v30 = vpop.xlane.xlu1 %3279 }
 0x600   :  { %8026 = vrcp.f32 %v3280_v30 }
 0x603   :  { %v4521_v21 = vpop.permute.xlu1 %4520 }
 0x604   :  { %6970 = vmatprep.subr.bf16.mxu0 %v4521_v21 }
 0x605   :  { %6971 = vmatpush3.bf16.msra.mxu0 %v4521_v21 }
 0x608   :  { %3330 = vadd.xlane.f32.xlu0 %v3329_v47  ;;  %6973 = vmatmul.mubr.msk.bf16.vlgmr.msra.gmra.mxu0 %vm2296_vm2, %v12806_v27 }
 0x609   :  { %4700 = vrot.lane.b32.xlu1 %v12807_v5, %s8240_s11  ;;  %6976 = vmatprep.mubr.msk.bf16.mxu0 %vm2296_vm2, %v12808_v33 }
 0x60d   :  { %v8027_v14 = vpop.eup %8026 }
 0x60e   :  { %v10945_v62 = vmul.f32 %v8027_v14, %v10729_v56  ;;  %v12811_v56 = vld [vmem:[#allocation104_spill] sm:$0xff] }
 0x60f   :  { %v3274_v53 = vpop.xlane.xlu0 %3273  ;;  %v2768_v4 = vsub.f32 %v12811_v56, %v12810_v43 }
 0x610   :  { %8028 = vrcp.f32 %v3274_v53  ;;  %6977 = vmatmul.mubr.msk.bf16.gmra.mxu0 %vm2296_vm2, %v12809_v46  ;;  %3776 = vst.msk [vmem:[#allocation2 + $0x238] sm:$0xff] %vm2296_vm2, %v10945_v62  ;;  %v12814_v46 = vld [vmem:[#allocation9_spill] sm:$0xff] }
 0x611   :  { %v10956_v16 = vpop.f32.mrf.mxu0  ;;  %7004 = vmatprep.mubr.msk.bf16.mxu0 %vm2296_vm2, %v3869_v29  ;;  %v2983_v0 = vmul.f32 1.442695, %v2768_v4  ;;  %v12818_v29 = vld [vmem:[#allocation101_spill] sm:$0xff] }
 0x613   :  { %v10961_v30 = vpop.f32.mrf.mxu0  ;;  %v3277_v21 = vpop.xlane.xlu0 %3276 }
 0x614   :  { %8030 = vrcp.f32 %v3277_v21 }
 0x615   :  { %v10963_v38 = vpop.f32.mrf.mxu0 }
 0x617   :  { %v10967_v51 = vpop.f32.mrf.mxu0  ;;  %v3295_v47 = vpop.xlane.xlu0 %3294 }
 0x618   :  { %8032 = vrcp.f32 %v3295_v47  ;;  %v12815_v47 = vld [vmem:[#allocation68_spill] sm:$0xff] }
 0x619   :  { %v10969_v27 = vpop.f32.mrf.mxu0  ;;  %8034 = vpow2.f32 %v2983_v0 }
 0x61a   :  { %12812 = vst [vmem:[#allocation136_spill] sm:$0xff] %v10969_v27 }
 0x61b   :  { %v10971_v5 = vpop.f32.mrf.mxu0  ;;  %v3298_v33 = vpop.xlane.xlu0 %3297 }
 0x61c   :  { %8036 = vrcp.f32 %v3298_v33  ;;  %v12816_v33 = vld [vmem:[#allocation106_spill] sm:$0xff] }
 0x61d   :  { %v8029_v14 = vpop.eup %8028  ;;  %v10973_v53 = vpop.f32.mrf.mxu0  ;;  %v2766_v31 = vsub.f32 %v12816_v33, %v12815_v47 }
 0x61e   :  { %12813 = vst [vmem:[#allocation79_spill] sm:$0xff] %v10973_v53  ;;  %4611 = vrot.lane.b32.xlu0 %v12814_v46, %s8240_s11  ;;  %v10980_v43 = vmul.f32 %v8029_v14, %v10782_v49 }
 0x61f   :  { %v3301_v56 = vpop.xlane.xlu0 %3300  ;;  %v2979_v53 = vmul.f32 1.442695, %v2766_v31  ;;  %v12820_v31 = vpack.c.bf16 %v10530_v9, %v10517_v48  ;;  %v12821_v9 = vld [vmem:[#allocation60_spill] sm:$0xff] }
 0x620   :  { %8038 = vrcp.f32 %v3301_v56  ;;  %3774 = vst.msk [vmem:[#allocation2 + $0x228] sm:$0xff] %vm2296_vm2, %v10980_v43  ;;  %v12817_v56 = vld [vmem:[#allocation164_spill] sm:$0xff] }
 0x621   :  { %v8031_v4 = vpop.eup %8030  ;;  %v2767_v27 = vsub.f32 %v12818_v29, %v12817_v56  ;;  %v12819_v29 = vld [vmem:[#allocation123_spill] sm:$0xff] }
 0x622   :  { %v10985_v21 = vmul.f32 %v8031_v4, %v10792_v37 }
 0x623   :  { %v3304_v0 = vpop.xlane.xlu0 %3303  ;;  %v2981_v33 = vmul.f32 1.442695, %v2767_v27 }
 0x624   :  { %8040 = vrcp.f32 %v3304_v0  ;;  %3775 = vst.msk [vmem:[#allocation2 + $0x230] sm:$0xff] %vm2296_vm2, %v10985_v21 }
 0x625   :  { %v8033_v14 = vpop.eup %8032  ;;  %8042 = vpow2.f32 %v2979_v53 }
 0x626   :  { %v10994_v46 = vmul.f32 %v8033_v14, %v10802_v52  ;;  %v10998_v4 = vpop.eup %8034  ;;  %v3859_v52 = vpack.c.bf16 %v10711_v55, %v10645_v8  ;;  %v2773_v14 = vsub.f32 %v12819_v29, %v10156_v45  ;;  %8044 = vpow2.f32 %v2981_v33  ;;  %v12825_v33 = vld [vmem:[#allocation127_spill] sm:$0xff] }
 0x627   :  { %v4432_v37 = vpop.permute.xlu0 %4431  ;;  %v3326_v56 = vsel %vm2296_vm2, %v10998_v4, 0.0  ;;  %v2774_v55 = vsub.f32 %v12821_v9, %v10251_v12  ;;  %v2776_v29 = vsub.f32 %v12825_v33, %v10236_v58  ;;  %v12828_v33 = vld [vmem:[#allocation119_spill] sm:$0xff] }
 0x628   :  { %6954 = vmatprep.subr.bf16.mxu1 %v4432_v37  ;;  %3781 = vst.msk [vmem:[#allocation2 + $0x260] sm:$0xff] %vm2296_vm2, %v10994_v46  ;;  %v2993_v48 = vmul.f32 1.442695, %v2773_v14 }
 0x629   :  { %v8037_v0 = vpop.eup %8036  ;;  %6955 = vmatpush3.bf16.msra.mxu1 %v4432_v37  ;;  %v12822_v37 = vld [vmem:[#allocation121_spill] sm:$0xff]  ;;  %v2999_v14 = vmul.f32 1.442695, %v2776_v29 }
 0x62a   :  { %v11003_v47 = vmul.f32 %v8037_v0, %v10813_v3  ;;  %8046 = vpow2.f32 %v2993_v48  ;;  %v2775_v0 = vsub.f32 %v12822_v37, %v10187_v50 }
 0x62b   :  { %v4616_v49 = vpop.permute.xlu0 %4615 }
 0x62c   :  { %6957 = vmatmul.mubr.msk.bf16.vlgmr.msra.gmra.mxu1 %vm2296_vm2, %v12820_v31  ;;  %6980 = vmatprep.subr.bf16.mxu1 %v4616_v49  ;;  %3782 = vst.msk [vmem:[#allocation2 + $0x268] sm:$0xff] %vm2296_vm2, %v11003_v47  ;;  %v3871_v3 = vpack.c.bf16 %v11003_v47, %v10994_v46  ;;  %v2997_v50 = vmul.f32 1.442695, %v2775_v0 }
 0x62d   :  { %v8039_v8 = vpop.eup %8038  ;;  %3327 = vadd.xlane.f32.xlu1 %v3326_v56  ;;  %6960 = vmatprep.mubr.msk.bf16.mxu1 %vm2296_vm2, %v3859_v52 }
 0x62e   :  { %6981 = vmatpush3.bf16.msra.mxu1 %v4616_v49  ;;  %v11021_v45 = vmul.f32 %v8039_v8, %v10822_v7  ;;  %v2995_v49 = vmul.f32 1.442695, %v2774_v55  ;;  %v12823_v7 = vpack.c.bf16 %v10678_v2, %v10716_v54 }
 0x630   :  { %3783 = vst.msk [vmem:[#allocation2 + $0x270] sm:$0xff] %vm2296_vm2, %v11021_v45 }
 0x631   :  { %v8041_v27 = vpop.eup %8040 }
 0x632   :  { %v11028_v53 = vmul.f32 %v8041_v27, %v10833_v6  ;;  %v12824_v6 = vpack.c.bf16 %v10809_v60, %v10887_v28  ;;  %v11046_v54 = vpop.eup %8042  ;;  %v12826_v60 = vld [vmem:[#allocation40_spill] sm:$0xff] }
 0x633   :  { %v3320_v56 = vsel %vm2296_vm2, %v11046_v54, 0.0  ;;  %v11050_v8 = vpop.eup %8044 }
 0x634   :  { %v3310_v52 = vpop.xlane.xlu1 %3309  ;;  %6961 = vmatmul.mubr.msk.bf16.gmra.mxu1 %vm2296_vm2, %v12823_v7  ;;  %3784 = vst.msk [vmem:[#allocation2 + $0x278] sm:$0xff] %vm2296_vm2, %v11028_v53  ;;  %v3872_v12 = vpack.c.bf16 %v11028_v53, %v11021_v45  ;;  %v3323_v28 = vsel %vm2296_vm2, %v11050_v8, 0.0  ;;  %v12848_v45 = vld [vmem:[#allocation38_spill] sm:$0xff] }
 0x635   :  { %8048 = vrcp.f32 %v3310_v52  ;;  %6988 = vmatprep.mubr.msk.bf16.mxu1 %vm2296_vm2, %v12824_v6 }
 0x636   :  { %8050 = vpow2.f32 %v2995_v49 }
 0x637   :  { %v11056_v48 = vpop.eup %8046 }
 0x638   :  { %v3313_v2 = vpop.xlane.xlu1 %3312  ;;  %v3341_v37 = vsel %vm2296_vm2, %v11056_v48, 0.0 }
 0x639   :  { %8052 = vrcp.f32 %v3313_v2 }
 0x63a   :  { %8054 = vpow2.f32 %v2997_v50  ;;  %v12827_v50 = vld [vmem:[#allocation109_spill] sm:$0xff] }
 0x63b   :  { %v2778_v29 = vsub.f32 %v12828_v33, %v12827_v50  ;;  %v12832_v50 = vld [vmem:[#allocation115_spill] sm:$0xff] }
 0x63c   :  { %v3316_v31 = vpop.xlane.xlu1 %3315 }
 0x63d   :  { %8056 = vrcp.f32 %v3316_v31  ;;  %3321 = vadd.xlane.f32.xlu0 %v3320_v56 }
 0x63e   :  { %4698 = vrot.lane.b32.xlu1 %v12826_v60, %s8240_s11  ;;  %8058 = vpow2.f32 %v2999_v14  ;;  %v12829_v60 = vld [vmem:[#allocation63_spill] sm:$0xff] }
 0x640   :  { %v3334_v58 = vpop.xlane.xlu1 %3333 }
 0x641   :  { %8060 = vrcp.f32 %v3334_v58  ;;  %3324 = vadd.xlane.f32.xlu0 %v3323_v28  ;;  %v12830_v58 = vld [vmem:[#allocation110_spill] sm:$0xff] }
 0x642   :  { %v8049_v9 = vpop.eup %8048  ;;  %v2779_v28 = vsub.f32 %v12830_v58, %v12829_v60 }
 0x643   :  { %v11059_v55 = vmul.f32 %v8049_v9, %v10868_v10  ;;  %v11063_v0 = vpop.eup %8050  ;;  %v3003_v9 = vmul.f32 1.442695, %v2778_v29 }
 0x644   :  { %v3337_v27 = vpop.xlane.xlu1 %3336  ;;  %v3344_v10 = vsel %vm2296_vm2, %v11063_v0, 0.0 }
 0x645   :  { %8062 = vrcp.f32 %v3337_v27  ;;  %3342 = vadd.xlane.f32.xlu0 %v3341_v37  ;;  %3786 = vst.msk [vmem:[#allocation2 + $0x288] sm:$0xff] %vm2296_vm2, %v11059_v55 }
 0x646   :  { %v8053_v49 = vpop.eup %8052 }
 0x647   :  { %v11068_v52 = vmul.f32 %v8053_v49, %v10872_v40  ;;  %v11072_v6 = vpop.eup %8054 }
 0x648   :  { %v3340_v7 = vpop.xlane.xlu1 %3339  ;;  %v3347_v31 = vsel %vm2296_vm2, %v11072_v6, 0.0 }
 0x649   :  { %3787 = vst.msk [vmem:[#allocation2 + $0x290] sm:$0xff] %vm2296_vm2, %v11068_v52  ;;  %8064 = vrcp.f32 %v3340_v7  ;;  %3345 = vadd.xlane.f32.xlu0 %v3344_v10  ;;  %v3005_v7 = vmul.f32 1.442695, %v2779_v28  ;;  %v12831_v10 = vld [vmem:[#allocation172_spill] sm:$0xff] }
 0x64a   :  { %v8057_v2 = vpop.eup %8056  ;;  %v2780_v33 = vsub.f32 %v12832_v50, %v12831_v10  ;;  %8066 = vpow2.f32 %v3003_v9  ;;  %v12834_v9 = vld [vmem:[#allocation129_spill] sm:$0xff] }
 0x64b   :  { %v11079_v14 = vmul.f32 %v8057_v2, %v10876_v44  ;;  %v11083_v56 = vpop.eup %8058  ;;  %8068 = vpow2.f32 %v3005_v7  ;;  %v12835_v7 = vld [vmem:[#allocation65_spill] sm:$0xff] }
 0x64c   :  { %v4614_v40 = vpop.permute.xlu1 %4613  ;;  %v3350_v49 = vsel %vm2296_vm2, %v11083_v56, 0.0  ;;  %v2788_v10 = vsub.f32 %v12835_v7, %v10315_v19 }
 0x64d   :  { %3788 = vst.msk [vmem:[#allocation2 + $0x298] sm:$0xff] %vm2296_vm2, %v11079_v14  ;;  %3348 = vadd.xlane.f32.xlu0 %v3347_v31  ;;  %6982 = vmatprep.subr.bf16.mxu1 %v4614_v40  ;;  %v3007_v31 = vmul.f32 1.442695, %v2780_v33 }
 0x64e   :  { %v8061_v44 = vpop.eup %8060  ;;  %6983 = vmatpush3.bf16.msra.mxu1 %v4614_v40  ;;  %v12833_v40 = vld [vmem:[#allocation132_spill] sm:$0xff]  ;;  %v3023_v33 = vmul.f32 1.442695, %v2788_v10 }
 0x64f   :  { %v11092_v37 = vmul.f32 %v8061_v44, %v10880_v13  ;;  %v2786_v13 = vsub.f32 %v12833_v40, %v10271_v1  ;;  %8070 = vpow2.f32 %v3007_v31  ;;  %v2787_v44 = vsub.f32 %v12834_v9, %v10282_v20  ;;  %v12836_v31 = vld [vmem:[#allocation10_spill] sm:$0xff] }
 0x650   :  { %v4703_v40 = vpop.permute.xlu1 %4702 }
 0x651   :  { %3351 = vadd.xlane.f32.xlu0 %v3350_v49  ;;  %3794 = vst.msk [vmem:[#allocation2 + $0x2c8] sm:$0xff] %vm2296_vm2, %v11092_v37  ;;  %v3019_v28 = vmul.f32 1.442695, %v2786_v13  ;;  %v3021_v49 = vmul.f32 1.442695, %v2787_v44  ;;  %v12837_v44 = vld [vmem:[#allocation44_spill] sm:$0xff] }
 0x652   :  { %v8063_v29 = vpop.eup %8062 }
 0x653   :  { %v11101_v2 = vmul.f32 %v8063_v29, %v10895_v32  ;;  %8072 = vpow2.f32 %v3019_v28 }
 0x655   :  { %3795 = vst.msk [vmem:[#allocation2 + $0x2d0] sm:$0xff] %vm2296_vm2, %v11101_v2 }
 0x656   :  { %v8065_v60 = vpop.eup %8064 }
 0x657   :  { %v11108_v58 = vmul.f32 %v8065_v60, %v10901_v59  ;;  %v11118_v59 = vpop.eup %8066 }
 0x658   :  { %v3356_v20 = vsel %vm2296_vm2, %v11118_v59, 0.0  ;;  %v11122_v29 = vpop.eup %8068 }
 0x659   :  { %3796 = vst.msk [vmem:[#allocation2 + $0x2d8] sm:$0xff] %vm2296_vm2, %v11108_v58  ;;  %v3359_v19 = vsel %vm2296_vm2, %v11122_v29, 0.0 }
 0x65c   :  { %v3307_v32 = vpop.xlane.xlu0 %3306  ;;  %v11126_v13 = vpop.eup %8070 }
 0x65d   :  { %8074 = vrcp.f32 %v3307_v32  ;;  %v3362_v28 = vsel %vm2296_vm2, %v11126_v13, 0.0 }
 0x65e   :  { %8076 = vpow2.f32 %v3021_v49 }
 0x65f   :  { %8078 = vpow2.f32 %v3023_v33  ;;  %v12839_v33 = vld [vmem:[#allocation113_spill] sm:$0xff] }
 0x660   :  { %v4705_v50 = vpop.permute.xlu0 %4704  ;;  %v11130_v60 = vpop.eup %8072 }
 0x661   :  { %6996 = vmatprep.subr.bf16.mxu0 %v4705_v50  ;;  %v3380_v49 = vsel %vm2296_vm2, %v11130_v60, 0.0 }
 0x662   :  { %3357 = vadd.xlane.f32.xlu1 %v3356_v20  ;;  %6997 = vmatpush3.bf16.msra.mxu0 %v4705_v50  ;;  %v12838_v50 = vld [vmem:[#allocation107_spill] sm:$0xff] }
 0x663   :  { %6998 = vmatprep.subr.bf16.mxu0 %v4703_v40  ;;  %v2777_v20 = vsub.f32 %v12839_v33, %v12838_v50  ;;  %v12841_v33 = vld [vmem:[#allocation43_spill] sm:$0xff] }
 0x666   :  { %3360 = vadd.xlane.f32.xlu1 %v3359_v19  ;;  %6999 = vmatpush3.bf16.msra.mxu0 %v4703_v40  ;;  %v3001_v19 = vmul.f32 1.442695, %v2777_v20 }
 0x667   :  { %4609 = vrot.lane.b32.xlu0 %v12836_v31, %s8240_s11 }
 0x668   :  { %8080 = vpow2.f32 %v3001_v19 }
 0x66a   :  { %v8075_v9 = vpop.eup %8074  ;;  %3363 = vadd.xlane.f32.xlu1 %v3362_v28 }
 0x66b   :  { %4793 = vrot.lane.b32.xlu0 %v12837_v44, %s8240_s11  ;;  %v11137_v32 = vmul.f32 %v8075_v9, %v10905_v15  ;;  %v11145_v10 = vpop.eup %8076 }
 0x66c   :  { %v3383_v40 = vsel %vm2296_vm2, %v11145_v10, 0.0  ;;  %v11151_v15 = vpop.eup %8078 }
 0x66d   :  { %3785 = vst.msk [vmem:[#allocation2 + $0x280] sm:$0xff] %vm2296_vm2, %v11137_v32  ;;  %v3873_v7 = vpack.c.bf16 %v11059_v55, %v11137_v32  ;;  %v3386_v31 = vsel %vm2296_vm2, %v11151_v15, 0.0  ;;  %v12860_v55 = vld [vmem:[#allocation37_spill] sm:$0xff] }
 0x66e   :  { %3381 = vadd.xlane.f32.xlu1 %v3380_v49  ;;  %v12840_v49 = vld [vmem:[#allocation48_spill] sm:$0xff] }
 0x672   :  { %3384 = vadd.xlane.f32.xlu1 %v3383_v40 }
 0x675   :  { %v11155_v44 = vpop.eup %8080 }
 0x676   :  { %3387 = vadd.xlane.f32.xlu1 %v3386_v31  ;;  %v3353_v50 = vsel %vm2296_vm2, %v11155_v44, 0.0 }
 0x681   :  { %v3319_v28 = vpop.xlane.xlu1 %3318 }
 0x682   :  { %8082 = vrcp.f32 %v3319_v28  ;;  %v12842_v28 = vld [vmem:[#allocation124_spill] sm:$0xff] }
 0x685   :  { %v4701_v9 = vpop.permute.xlu1 %4700 }
 0x686   :  { %7000 = vmatprep.subr.bf16.mxu0 %v4701_v9 }
 0x687   :  { %4791 = vrot.lane.b32.xlu1 %v12840_v49, %s8240_s11  ;;  %7001 = vmatpush3.bf16.msra.mxu0 %v4701_v9  ;;  %v2781_v9 = vsub.f32 %v12842_v28, %v10211_v61 }
 0x689   :  { %v3009_v49 = vmul.f32 1.442695, %v2781_v9 }
 0x68a   :  { %3354 = vadd.xlane.f32.xlu0 %v3353_v50 }
 0x68b   :  { %4880 = vrot.lane.b32.xlu1 %v12841_v33, %s8240_s11  ;;  %v12843_v33 = vld [vmem:[#allocation41_spill] sm:$0xff] }
 0x68f   :  { %v8083_v20 = vpop.eup %8082 }
 0x690   :  { %v11164_v40 = vmul.f32 %v8083_v20, %v10926_v36  ;;  %v12844_v20 = vld [vmem:[#allocation64_spill] sm:$0xff] }
 0x691   :  { %v3331_v19 = vpop.xlane.xlu0 %3330 }
 0x692   :  { %8084 = vrcp.f32 %v3331_v19  ;;  %3789 = vst.msk [vmem:[#allocation2 + $0x2a0] sm:$0xff] %vm2296_vm2, %v11164_v40  ;;  %v2785_v19 = vsub.f32 %v12844_v20, %v10249_v41  ;;  %v12845_v41 = vpack.c.bf16 %v10858_v35, %v10851_v18  ;;  %v12847_v18 = vld [vmem:[#allocation125_spill] sm:$0xff] }
 0x693   :  { %8086 = vpow2.f32 %v3009_v49  ;;  %v2784_v35 = vsub.f32 %v12847_v18, %v10179_v22 }
 0x694   :  { %v3017_v27 = vmul.f32 1.442695, %v2785_v19 }
 0x695   :  { %v4612_v31 = vpop.permute.xlu0 %4611 }
 0x696   :  { %6984 = vmatprep.subr.bf16.mxu1 %v4612_v31  ;;  %8088 = vpow2.f32 %v3017_v27  ;;  %v12846_v27 = vld [vmem:[#allocation35_spill] sm:$0xff] }
 0x697   :  { %6985 = vmatpush3.bf16.msra.mxu1 %v4612_v31 }
 0x69f   :  { %v8085_v50 = vpop.eup %8084 }
 0x6a0   :  { %4882 = vrot.lane.b32.xlu0 %v12843_v33, %s8240_s11  ;;  %v3665_v36 = vmul.f32 %v8085_v50, %v10930_v17  ;;  %v11176_v1 = vpop.eup %8086 }
 0x6a1   :  { %v3365_v61 = vsel %vm2296_vm2, %v11176_v1, 0.0 }
 0x6a2   :  { %3793 = vst.msk [vmem:[#allocation2 + $0x2c0] sm:$0xff] %vm2296_vm2, %v3665_v36  ;;  %v3877_v20 = vpack.c.bf16 %v11092_v37, %v3665_v36 }
 0x6a3   :  { %v11180_v9 = vpop.eup %8088 }
 0x6a4   :  { %v3377_v17 = vsel %vm2296_vm2, %v11180_v9, 0.0 }
 0x6af   :  { %3366 = vadd.xlane.f32.xlu1 %v3365_v61  ;;  %v12849_v61 = vld [vmem:[#allocation126_spill] sm:$0xff] }
 0x6b6   :  { %v3328_v31 = vpop.xlane.xlu1 %3327 }
 0x6b7   :  { %8090 = vrcp.f32 %v3328_v31  ;;  %v2782_v31 = vsub.f32 %v12849_v61, %v10194_v25  ;;  %v12856_v61 = vld [vmem:[#allocation62_spill] sm:$0xff] }
 0x6ba   :  { %v4699_v28 = vpop.permute.xlu1 %4698 }
 0x6bb   :  { %7002 = vmatprep.subr.bf16.mxu0 %v4699_v28 }
 0x6bc   :  { %7003 = vmatpush3.bf16.msra.mxu0 %v4699_v28 }
 0x6bf   :  { %3378 = vadd.xlane.f32.xlu0 %v3377_v17  ;;  %7005 = vmatmul.mubr.msk.bf16.vlgmr.msra.gmra.mxu0 %vm2296_vm2, %v12845_v41  ;;  %v12850_v41 = vld [vmem:[#allocation21_spill] sm:$0xff] }
 0x6c0   :  { %4878 = vrot.lane.b32.xlu1 %v12846_v27, %s8240_s11  ;;  %7008 = vmatprep.mubr.msk.bf16.mxu0 %vm2296_vm2, %v3871_v3  ;;  %v12851_v27 = vld [vmem:[#allocation122_spill] sm:$0xff] }
 0x6c4   :  { %v8091_v49 = vpop.eup %8090 }
 0x6c5   :  { %v11195_v50 = vmul.f32 %v8091_v49, %v10998_v4  ;;  %v3015_v4 = vmul.f32 1.442695, %v2784_v35  ;;  %v2783_v49 = vsub.f32 %v12851_v27, %v12850_v41 }
 0x6c6   :  { %v3322_v33 = vpop.xlane.xlu0 %3321 }
 0x6c7   :  { %8092 = vrcp.f32 %v3322_v33  ;;  %7009 = vmatmul.mubr.msk.bf16.gmra.mxu0 %vm2296_vm2, %v3872_v12  ;;  %3792 = vst.msk [vmem:[#allocation2 + $0x2b8] sm:$0xff] %vm2296_vm2, %v11195_v50  ;;  %v3013_v35 = vmul.f32 1.442695, %v2783_v49  ;;  %v12859_v49 = vld [vmem:[#allocation144_spill] sm:$0xff] }
 0x6c8   :  { %7036 = vmatprep.mubr.msk.bf16.mxu0 %vm2296_vm2, %v3877_v20  ;;  %v3011_v20 = vmul.f32 1.442695, %v2782_v31  ;;  %v12857_v31 = vld [vmem:[#allocation137_spill] sm:$0xff] }
 0x6ca   :  { %v3325_v46 = vpop.xlane.xlu0 %3324 }
 0x6cb   :  { %8094 = vrcp.f32 %v3325_v46 }
 0x6ce   :  { %v3343_v47 = vpop.xlane.xlu0 %3342 }
 0x6cf   :  { %8096 = vrcp.f32 %v3343_v47 }
 0x6d0   :  { %8098 = vpow2.f32 %v3015_v4  ;;  %v12852_v4 = vld [vmem:[#allocation140_spill] sm:$0xff] }
 0x6d1   :  { %v2789_v47 = vsub.f32 %v12852_v4, %v10311_v26 }
 0x6d2   :  { %v3346_v3 = vpop.xlane.xlu0 %3345 }
 0x6d3   :  { %8100 = vrcp.f32 %v3346_v3  ;;  %v12853_v3 = vpack.c.bf16 %v10829_v63, %v10818_v57  ;;  %v3025_v57 = vmul.f32 1.442695, %v2789_v47  ;;  %v12854_v63 = vld [vmem:[#allocation78_spill] sm:$0xff] }
 0x6d4   :  { %v8093_v37 = vpop.eup %8092 }
 0x6d5   :  { %4789 = vrot.lane.b32.xlu0 %v12848_v45, %s8240_s11  ;;  %v11210_v53 = vmul.f32 %v8093_v37, %v11046_v54 }
 0x6d6   :  { %v3349_v12 = vpop.xlane.xlu0 %3348 }
 0x6d7   :  { %8102 = vrcp.f32 %v3349_v12  ;;  %3790 = vst.msk [vmem:[#allocation2 + $0x2a8] sm:$0xff] %vm2296_vm2, %v11210_v53 }
 0x6d8   :  { %v8095_v22 = vpop.eup %8094 }
 0x6d9   :  { %v11215_v36 = vmul.f32 %v8095_v22, %v11050_v8 }
 0x6da   :  { %v3352_v19 = vpop.xlane.xlu0 %3351 }
 0x6db   :  { %8104 = vrcp.f32 %v3352_v19  ;;  %3791 = vst.msk [vmem:[#allocation2 + $0x2b0] sm:$0xff] %vm2296_vm2, %v11215_v36  ;;  %v3876_v54 = vpack.c.bf16 %v11195_v50, %v11215_v36 }
 0x6dc   :  { %v8097_v28 = vpop.eup %8096  ;;  %8106 = vpow2.f32 %v3011_v20 }
 0x6dd   :  { %v11224_v17 = vmul.f32 %v8097_v28, %v11056_v48  ;;  %v11228_v33 = vpop.eup %8098  ;;  %v3867_v48 = vpack.c.bf16 %v10980_v43, %v10914_v39  ;;  %8108 = vpow2.f32 %v3013_v35  ;;  %v12855_v43 = vld [vmem:[#allocation147_spill] sm:$0xff]  ;;  %v2791_v28 = vsub.f32 %v12857_v31, %v12856_v61 }
 0x6de   :  { %v4610_v8 = vpop.permute.xlu0 %4609  ;;  %v3374_v37 = vsel %vm2296_vm2, %v11228_v33, 0.0  ;;  %v2790_v45 = vsub.f32 %v12855_v43, %v12854_v63  ;;  %8110 = vpow2.f32 %v3025_v57 }
 0x6df   :  { %6986 = vmatprep.subr.bf16.mxu1 %v4610_v8  ;;  %3797 = vst.msk [vmem:[#allocation2 + $0x2e0] sm:$0xff] %vm2296_vm2, %v11224_v17 }
 0x6e0   :  { %v8101_v25 = vpop.eup %8100  ;;  %6987 = vmatpush3.bf16.msra.mxu1 %v4610_v8  ;;  %v3027_v19 = vmul.f32 1.442695, %v2790_v45  ;;  %v2792_v8 = vsub.f32 %v12859_v49, %v10386_v23  ;;  %v12861_v45 = vld [vmem:[#allocation117_spill] sm:$0xff] }
 0x6e1   :  { %v11233_v18 = vmul.f32 %v8101_v25, %v11063_v0 }
 0x6e2   :  { %v4794_v46 = vpop.permute.xlu0 %4793  ;;  %v3031_v20 = vmul.f32 1.442695, %v2792_v8 }
 0x6e3   :  { %6989 = vmatmul.mubr.msk.bf16.vlgmr.msra.gmra.mxu1 %vm2296_vm2, %v12853_v3  ;;  %7012 = vmatprep.subr.bf16.mxu1 %v4794_v46  ;;  %3798 = vst.msk [vmem:[#allocation2 + $0x2e8] sm:$0xff] %vm2296_vm2, %v11233_v18  ;;  %v3879_v0 = vpack.c.bf16 %v11233_v18, %v11224_v17 }
 0x6e4   :  { %v8103_v39 = vpop.eup %8102  ;;  %3375 = vadd.xlane.f32.xlu1 %v3374_v37  ;;  %6992 = vmatprep.mubr.msk.bf16.mxu1 %vm2296_vm2, %v3867_v48 }
 0x6e5   :  { %7013 = vmatpush3.bf16.msra.mxu1 %v4794_v46  ;;  %v11251_v26 = vmul.f32 %v8103_v39, %v11072_v6  ;;  %v12858_v6 = vpack.c.bf16 %v10945_v62, %v10985_v21 }
 0x6e7   :  { %3799 = vst.msk [vmem:[#allocation2 + $0x2f0] sm:$0xff] %vm2296_vm2, %v11251_v26 }
 0x6e8   :  { %v8105_v12 = vpop.eup %8104 }
 0x6e9   :  { %v11258_v22 = vmul.f32 %v8105_v12, %v11083_v56  ;;  %v3029_v56 = vmul.f32 1.442695, %v2791_v28  ;;  %v11276_v21 = vpop.eup %8106  ;;  %v12862_v12 = vld [vmem:[#allocation134_spill] sm:$0xff] }
 0x6ea   :  { %v3368_v35 = vsel %vm2296_vm2, %v11276_v21, 0.0  ;;  %v11280_v46 = vpop.eup %8108 }
 0x6eb   :  { %v3358_v41 = vpop.xlane.xlu1 %3357  ;;  %6993 = vmatmul.mubr.msk.bf16.gmra.mxu1 %vm2296_vm2, %v12858_v6  ;;  %3800 = vst.msk [vmem:[#allocation2 + $0x2f8] sm:$0xff] %vm2296_vm2, %v11258_v22  ;;  %v3880_v27 = vpack.c.bf16 %v11258_v22, %v11251_v26  ;;  %v3371_v23 = vsel %vm2296_vm2, %v11280_v46, 0.0  ;;  %v12863_v6 = vld [vmem:[#allocation15_spill] sm:$0xff]  ;;  %v12886_v26 = vld [vmem:[#allocation13_spill] sm:$0xff] }
 0x6ec   :  { %8112 = vrcp.f32 %v3358_v41  ;;  %7020 = vmatprep.mubr.msk.bf16.mxu1 %vm2296_vm2, %v3873_v7  ;;  %v11286_v7 = vpop.eup %8110 }
 0x6ed   :  { %8114 = vpow2.f32 %v3027_v19  ;;  %v3389_v3 = vsel %vm2296_vm2, %v11286_v7, 0.0  ;;  %v2794_v19 = vsub.f32 %v12862_v12, %v12861_v45  ;;  %v12868_v12 = vld [vmem:[#allocation53_spill] sm:$0xff] }
 0x6ef   :  { %v3361_v62 = vpop.xlane.xlu1 %3360  ;;  %v3035_v8 = vmul.f32 1.442695, %v2794_v19  ;;  %v2803_v19 = vsub.f32 %v12868_v12, %v10403_v42  ;;  %v12873_v12 = vld [vmem:[#allocation80_spill] sm:$0xff] }
 0x6f0   :  { %8116 = vrcp.f32 %v3361_v62 }
 0x6f1   :  { %8118 = vpow2.f32 %v3029_v56  ;;  %v12864_v56 = vld [vmem:[#allocation128_spill] sm:$0xff] }
 0x6f2   :  { %v2795_v49 = vsub.f32 %v12864_v56, %v12863_v6 }
 0x6f3   :  { %v3364_v25 = vpop.xlane.xlu1 %3363 }
 0x6f4   :  { %8120 = vrcp.f32 %v3364_v25  ;;  %3369 = vadd.xlane.f32.xlu0 %v3368_v35  ;;  %v3037_v35 = vmul.f32 1.442695, %v2795_v49 }
 0x6f5   :  { %4876 = vrot.lane.b32.xlu1 %v12860_v55, %s8240_s11  ;;  %8122 = vpow2.f32 %v3031_v20  ;;  %v12865_v55 = vld [vmem:[#allocation116_spill] sm:$0xff] }
 0x6f7   :  { %v3382_v32 = vpop.xlane.xlu1 %3381 }
 0x6f8   :  { %8124 = vrcp.f32 %v3382_v32  ;;  %3372 = vadd.xlane.f32.xlu0 %v3371_v23  ;;  %v12866_v32 = vld [vmem:[#allocation131_spill] sm:$0xff] }
 0x6f9   :  { %v8113_v48 = vpop.eup %8112  ;;  %v2796_v23 = vsub.f32 %v12866_v32, %v12865_v55  ;;  %v12871_v55 = vld [vmem:[#allocation42_spill] sm:$0xff] }
 0x6fa   :  { %v11289_v4 = vmul.f32 %v8113_v48, %v11118_v59  ;;  %v11293_v37 = vpop.eup %8114 }
 0x6fb   :  { %v3385_v47 = vpop.xlane.xlu1 %3384  ;;  %v3392_v59 = vsel %vm2296_vm2, %v11293_v37, 0.0 }
 0x6fc   :  { %8126 = vrcp.f32 %v3385_v47  ;;  %3390 = vadd.xlane.f32.xlu0 %v3389_v3  ;;  %3802 = vst.msk [vmem:[#allocation2 + $0x308] sm:$0xff] %vm2296_vm2, %v11289_v4  ;;  %v12867_v3 = vld [vmem:[#allocation20_spill] sm:$0xff] }
 0x6fd   :  { %v8117_v39 = vpop.eup %8116 }
 0x6fe   :  { %v11298_v57 = vmul.f32 %v8117_v39, %v11122_v29  ;;  %v11302_v43 = vpop.eup %8118  ;;  %v3039_v39 = vmul.f32 1.442695, %v2796_v23 }
 0x6ff   :  { %v3388_v63 = vpop.xlane.xlu1 %3387  ;;  %v3395_v28 = vsel %vm2296_vm2, %v11302_v43, 0.0 }
 0x700   :  { %3803 = vst.msk [vmem:[#allocation2 + $0x310] sm:$0xff] %vm2296_vm2, %v11298_v57  ;;  %8128 = vrcp.f32 %v3388_v63  ;;  %3393 = vadd.xlane.f32.xlu0 %v3392_v59 }
 0x701   :  { %v8121_v61 = vpop.eup %8120  ;;  %8130 = vpow2.f32 %v3035_v8 }
 0x702   :  { %v11309_v31 = vmul.f32 %v8121_v61, %v11126_v13  ;;  %v11313_v41 = vpop.eup %8122  ;;  %8132 = vpow2.f32 %v3037_v35  ;;  %v3053_v61 = vmul.f32 1.442695, %v2803_v19  ;;  %v12874_v19 = vld [vmem:[#allocation130_spill] sm:$0xff] }
 0x703   :  { %v4792_v29 = vpop.permute.xlu1 %4791  ;;  %v3398_v25 = vsel %vm2296_vm2, %v11313_v41, 0.0  ;;  %8134 = vpow2.f32 %v3039_v39 }
 0x704   :  { %3804 = vst.msk [vmem:[#allocation2 + $0x318] sm:$0xff] %vm2296_vm2, %v11309_v31  ;;  %3396 = vadd.xlane.f32.xlu0 %v3395_v28  ;;  %7014 = vmatprep.subr.bf16.mxu1 %v4792_v29  ;;  %v12870_v28 = vld [vmem:[#allocation50_spill] sm:$0xff] }
 0x705   :  { %v8125_v13 = vpop.eup %8124  ;;  %7015 = vmatpush3.bf16.msra.mxu1 %v4792_v29  ;;  %v12869_v29 = vld [vmem:[#allocation71_spill] sm:$0xff] }
 0x706   :  { %v11322_v20 = vmul.f32 %v8125_v13, %v11130_v60  ;;  %v2802_v60 = vsub.f32 %v12867_v3, %v10362_v34  ;;  %v2804_v6 = vsub.f32 %v12870_v28, %v12869_v29  ;;  %v12872_v3 = vld [vmem:[#allocation17_spill] sm:$0xff] }
 0x707   :  { %v4881_v13 = vpop.permute.xlu1 %4880 }
 0x708   :  { %3399 = vadd.xlane.f32.xlu0 %v3398_v25  ;;  %3810 = vst.msk [vmem:[#allocation2 + $0x348] sm:$0xff] %vm2296_vm2, %v11322_v20  ;;  %v3051_v45 = vmul.f32 1.442695, %v2802_v60  ;;  %v3055_v49 = vmul.f32 1.442695, %v2804_v6 }
 0x709   :  { %v8127_v48 = vpop.eup %8126 }
 0x70a   :  { %v11331_v47 = vmul.f32 %v8127_v48, %v11145_v10  ;;  %8136 = vpow2.f32 %v3051_v45 }
 0x70c   :  { %3811 = vst.msk [vmem:[#allocation2 + $0x350] sm:$0xff] %vm2296_vm2, %v11331_v47 }
 0x70d   :  { %v8129_v63 = vpop.eup %8128 }
 0x70e   :  { %v11338_v59 = vmul.f32 %v8129_v63, %v11151_v15  ;;  %v11348_v15 = vpop.eup %8130 }
 0x70f   :  { %v3404_v42 = vsel %vm2296_vm2, %v11348_v15, 0.0  ;;  %v11352_v8 = vpop.eup %8132 }
 0x710   :  { %3812 = vst.msk [vmem:[#allocation2 + $0x358] sm:$0xff] %vm2296_vm2, %v11338_v59  ;;  %v3886_v34 = vpack.c.bf16 %v11338_v59, %v11331_v47  ;;  %v3407_v25 = vsel %vm2296_vm2, %v11352_v8, 0.0  ;;  %v11356_v35 = vpop.eup %8134 }
 0x711   :  { %v3410_v23 = vsel %vm2296_vm2, %v11356_v35, 0.0 }
 0x713   :  { %v3355_v10 = vpop.xlane.xlu0 %3354 }
 0x714   :  { %8138 = vrcp.f32 %v3355_v10  ;;  %v2793_v10 = vsub.f32 %v12874_v19, %v12873_v12  ;;  %v12878_v12 = vld [vmem:[#allocation145_spill] sm:$0xff] }
 0x715   :  { %8140 = vpow2.f32 %v3053_v61 }
 0x716   :  { %8142 = vpow2.f32 %v3055_v49  ;;  %v3033_v29 = vmul.f32 1.442695, %v2793_v10 }
 0x717   :  { %v4883_v56 = vpop.permute.xlu0 %4882  ;;  %v11360_v32 = vpop.eup %8136 }
 0x718   :  { %7028 = vmatprep.subr.bf16.mxu0 %v4883_v56  ;;  %v3428_v39 = vsel %vm2296_vm2, %v11360_v32, 0.0  ;;  %8144 = vpow2.f32 %v3033_v29  ;;  %v12879_v29 = vld [vmem:[#allocation55_spill] sm:$0xff] }
 0x719   :  { %3405 = vadd.xlane.f32.xlu1 %v3404_v42  ;;  %7029 = vmatpush3.bf16.msra.mxu0 %v4883_v56  ;;  %v12875_v42 = vld [vmem:[#allocation18_spill] sm:$0xff] }
 0x71a   :  { %7030 = vmatprep.subr.bf16.mxu0 %v4881_v13 }
 0x71d   :  { %3408 = vadd.xlane.f32.xlu1 %v3407_v25  ;;  %7031 = vmatpush3.bf16.msra.mxu0 %v4881_v13  ;;  %v12876_v25 = vld [vmem:[#allocation58_spill] sm:$0xff] }
 0x71e   :  { %4787 = vrot.lane.b32.xlu0 %v12871_v55, %s8240_s11 }
 0x721   :  { %v8139_v48 = vpop.eup %8138  ;;  %3411 = vadd.xlane.f32.xlu1 %v3410_v23 }
 0x722   :  { %4971 = vrot.lane.b32.xlu0 %v12872_v3, %s8240_s11  ;;  %v11367_v60 = vmul.f32 %v8139_v48, %v11155_v44  ;;  %v11375_v45 = vpop.eup %8140 }
 0x723   :  { %v3431_v61 = vsel %vm2296_vm2, %v11375_v45, 0.0  ;;  %v11381_v44 = vpop.eup %8142 }
 0x724   :  { %3801 = vst.msk [vmem:[#allocation2 + $0x300] sm:$0xff] %vm2296_vm2, %v11367_v60  ;;  %v3881_v63 = vpack.c.bf16 %v11289_v4, %v11367_v60  ;;  %v3434_v28 = vsel %vm2296_vm2, %v11381_v44, 0.0 }
 0x725   :  { %3429 = vadd.xlane.f32.xlu1 %v3428_v39  ;;  %v11385_v49 = vpop.eup %8144  ;;  %v12877_v39 = vld [vmem:[#allocation7_spill] sm:$0xff] }
 0x726   :  { %v3401_v13 = vsel %vm2296_vm2, %v11385_v49, 0.0  ;;  %v2797_v19 = vsub.f32 %v12878_v12, %v12877_v39  ;;  %v12882_v39 = vpack.c.bf16 %v11108_v58, %v11101_v2  ;;  %v12883_v12 = vld [vmem:[#allocation45_spill] sm:$0xff]  ;;  %v12884_v2 = vld [vmem:[#allocation34_spill] sm:$0xff]  ;;  %v12885_v58 = vld [vmem:[#allocation148_spill] sm:$0xff] }
 0x727   :  { %v2800_v17 = vsub.f32 %v12885_v58, %v12884_v2 }
 0x728   :  { %v3041_v10 = vmul.f32 1.442695, %v2797_v19 }
 0x729   :  { %3432 = vadd.xlane.f32.xlu1 %v3431_v61 }
 0x72d   :  { %3435 = vadd.xlane.f32.xlu1 %v3434_v28  ;;  %v12880_v28 = vld [vmem:[#allocation22_spill] sm:$0xff] }
 0x738   :  { %v3367_v6 = vpop.xlane.xlu1 %3366 }
 0x739   :  { %8146 = vrcp.f32 %v3367_v6  ;;  %v12881_v6 = vld [vmem:[#allocation156_spill] sm:$0xff] }
 0x73c   :  { %v4879_v56 = vpop.permute.xlu1 %4878 }
 0x73d   :  { %7032 = vmatprep.subr.bf16.mxu0 %v4879_v56 }
 0x73e   :  { %4969 = vrot.lane.b32.xlu1 %v12875_v42, %s8240_s11  ;;  %7033 = vmatpush3.bf16.msra.mxu0 %v4879_v56  ;;  %v2801_v56 = vsub.f32 %v12881_v6, %v12880_v28 }
 0x740   :  { %v3049_v42 = vmul.f32 1.442695, %v2801_v56 }
 0x741   :  { %3402 = vadd.xlane.f32.xlu0 %v3401_v13 }
 0x742   :  { %5058 = vrot.lane.b32.xlu1 %v12876_v25, %s8240_s11 }
 0x746   :  { %v8147_v55 = vpop.eup %8146 }
 0x747   :  { %v11394_v23 = vmul.f32 %v8147_v55, %v11176_v1 }
 0x748   :  { %v3379_v48 = vpop.xlane.xlu0 %3378 }
 0x749   :  { %8148 = vrcp.f32 %v3379_v48  ;;  %3805 = vst.msk [vmem:[#allocation2 + $0x320] sm:$0xff] %vm2296_vm2, %v11394_v23 }
 0x74a   :  { %8150 = vpow2.f32 %v3041_v10 }
 0x74b   :  { %8152 = vpow2.f32 %v3049_v42  ;;  %v12887_v42 = vld [vmem:[#allocation66_spill] sm:$0xff] }
 0x74c   :  { %v4790_v3 = vpop.permute.xlu0 %4789 }
 0x74d   :  { %7016 = vmatprep.subr.bf16.mxu1 %v4790_v3 }
 0x74e   :  { %7017 = vmatpush3.bf16.msra.mxu1 %v4790_v3 }
 0x756   :  { %v8149_v61 = vpop.eup %8148 }
 0x757   :  { %5060 = vrot.lane.b32.xlu0 %v12879_v29, %s8240_s11  ;;  %v3681_v1 = vmul.f32 %v8149_v61, %v11180_v9  ;;  %v11406_v13 = vpop.eup %8150 }
 0x758   :  { %v3413_v25 = vsel %vm2296_vm2, %v11406_v13, 0.0  ;;  %v11410_v3 = vpop.eup %8152 }
 0x759   :  { %3809 = vst.msk [vmem:[#allocation2 + $0x340] sm:$0xff] %vm2296_vm2, %v3681_v1  ;;  %v3425_v9 = vsel %vm2296_vm2, %v11410_v3, 0.0  ;;  %v3885_v29 = vpack.c.bf16 %v11322_v20, %v3681_v1 }
 0x766   :  { %3414 = vadd.xlane.f32.xlu1 %v3413_v25  ;;  %v12888_v25 = vld [vmem:[#allocation151_spill] sm:$0xff] }
 0x76d   :  { %v3376_v55 = vpop.xlane.xlu1 %3375 }
 0x76e   :  { %8154 = vrcp.f32 %v3376_v55  ;;  %v2798_v55 = vsub.f32 %v12888_v25, %v12887_v42  ;;  %v11487_v42 = vpop.f32.mrf.mxu1 }
 0x771   :  { %v4877_v48 = vpop.permute.xlu1 %4876 }
 0x772   :  { %7034 = vmatprep.subr.bf16.mxu0 %v4877_v48 }
 0x773   :  { %7035 = vmatpush3.bf16.msra.mxu0 %v4877_v48 }
 0x776   :  { %3426 = vadd.xlane.f32.xlu0 %v3425_v9  ;;  %7037 = vmatmul.mubr.msk.bf16.vlgmr.msra.gmra.mxu0 %vm2296_vm2, %v12882_v39  ;;  %v12889_v39 = vld [vmem:[#allocation74_spill] sm:$0xff] }
 0x777   :  { %5056 = vrot.lane.b32.xlu1 %v12883_v12, %s8240_s11  ;;  %7040 = vmatprep.mubr.msk.bf16.mxu0 %vm2296_vm2, %v3879_v0  ;;  %v12890_v12 = vld [vmem:[#allocation141_spill] sm:$0xff] }
 0x77b   :  { %v8155_v19 = vpop.eup %8154 }
 0x77c   :  { %v11425_v10 = vmul.f32 %v8155_v19, %v11228_v33  ;;  %v3047_v33 = vmul.f32 1.442695, %v2800_v17  ;;  %v2799_v19 = vsub.f32 %v12890_v12, %v12889_v39  ;;  %v12897_v39 = vld [vmem:[#allocation163_spill] sm:$0xff] }
 0x77d   :  { %v3370_v61 = vpop.xlane.xlu0 %3369 }
 0x77e   :  { %8156 = vrcp.f32 %v3370_v61  ;;  %7041 = vmatmul.mubr.msk.bf16.gmra.mxu0 %vm2296_vm2, %v3880_v27  ;;  %3808 = vst.msk [vmem:[#allocation2 + $0x338] sm:$0xff] %vm2296_vm2, %v11425_v10  ;;  %v3045_v17 = vmul.f32 1.442695, %v2799_v19 }
 0x77f   :  { %7068 = vmatprep.mubr.msk.bf16.mxu0 %vm2296_vm2, %v3885_v29  ;;  %v3043_v29 = vmul.f32 1.442695, %v2798_v55  ;;  %v11492_v55 = vpop.f32.mrf.mxu1 }
 0x781   :  { %v3373_v18 = vpop.xlane.xlu0 %3372 }
 0x782   :  { %8158 = vrcp.f32 %v3373_v18 }
 0x785   :  { %v3391_v0 = vpop.xlane.xlu0 %3390 }
 0x786   :  { %8160 = vrcp.f32 %v3391_v0  ;;  %v12892_v0 = vld [vmem:[#allocation166_spill] sm:$0xff] }
 0x787   :  { %8162 = vpow2.f32 %v3047_v33  ;;  %v12891_v33 = vld [vmem:[#allocation27_spill] sm:$0xff] }
 0x789   :  { %v3394_v20 = vpop.xlane.xlu0 %3393 }
 0x78a   :  { %8164 = vrcp.f32 %v3394_v20  ;;  %v2805_v20 = vsub.f32 %v12892_v0, %v12891_v33 }
 0x78b   :  { %v8157_v1 = vpop.eup %8156 }
 0x78c   :  { %4967 = vrot.lane.b32.xlu0 %v12886_v26, %s8240_s11  ;;  %v11440_v22 = vmul.f32 %v8157_v1, %v11276_v21  ;;  %v12893_v1 = vpack.c.bf16 %v11079_v14, %v11068_v52  ;;  %v3057_v52 = vmul.f32 1.442695, %v2805_v20  ;;  %v12894_v14 = vld [vmem:[#allocation76_spill] sm:$0xff] }
 0x78d   :  { %v3397_v27 = vpop.xlane.xlu0 %3396 }
 0x78e   :  { %8166 = vrcp.f32 %v3397_v27  ;;  %3806 = vst.msk [vmem:[#allocation2 + $0x328] sm:$0xff] %vm2296_vm2, %v11440_v22  ;;  %v12895_v27 = vld [vmem:[#allocation111_spill] sm:$0xff] }
 0x78f   :  { %v8159_v28 = vpop.eup %8158 }
 0x790   :  { %v11445_v6 = vmul.f32 %v8159_v28, %v11280_v46  ;;  %v2806_v28 = vsub.f32 %v12895_v27, %v12894_v14 }
 0x791   :  { %v3400_v56 = vpop.xlane.xlu0 %3399 }
 0x792   :  { %8168 = vrcp.f32 %v3400_v56  ;;  %3807 = vst.msk [vmem:[#allocation2 + $0x330] sm:$0xff] %vm2296_vm2, %v11445_v6  ;;  %v3059_v12 = vmul.f32 1.442695, %v2806_v28 }
 0x793   :  { %v8161_v48 = vpop.eup %8160  ;;  %8170 = vpow2.f32 %v3043_v29 }
 0x794   :  { %v11454_v9 = vmul.f32 %v8161_v48, %v11286_v7  ;;  %v11458_v61 = vpop.eup %8162  ;;  %v3875_v7 = vpack.c.bf16 %v11210_v53, %v11164_v40  ;;  %8172 = vpow2.f32 %v3045_v17  ;;  %v12896_v48 = vld [vmem:[#allocation16_spill] sm:$0xff]  ;;  %v12899_v17 = vld [vmem:[#allocation169_spill] sm:$0xff] }
 0x795   :  { %v4788_v46 = vpop.permute.xlu0 %4787  ;;  %v3422_v26 = vsel %vm2296_vm2, %v11458_v61, 0.0  ;;  %8174 = vpow2.f32 %v3057_v52  ;;  %v12901_v52 = vld [vmem:[#allocation51_spill] sm:$0xff] }
 0x796   :  { %7018 = vmatprep.subr.bf16.mxu1 %v4788_v46  ;;  %3813 = vst.msk [vmem:[#allocation2 + $0x360] sm:$0xff] %vm2296_vm2, %v11454_v9 }
 0x797   :  { %v8165_v2 = vpop.eup %8164  ;;  %7019 = vmatpush3.bf16.msra.mxu1 %v4788_v46  ;;  %v11508_v46 = vpop.f32.mrf.mxu1 }
 0x798   :  { %v11463_v58 = vmul.f32 %v8165_v2, %v11293_v37  ;;  %v12898_v2 = vld [vmem:[#allocation8_spill] sm:$0xff] }
 0x799   :  { %v4972_v18 = vpop.permute.xlu0 %4971  ;;  %v2808_v50 = vsub.f32 %v12899_v17, %v12898_v2 }
 0x79a   :  { %7021 = vmatmul.mubr.msk.bf16.vlgmr.msra.gmra.mxu1 %vm2296_vm2, %v12893_v1  ;;  %7044 = vmatprep.subr.bf16.mxu1 %v4972_v18  ;;  %3814 = vst.msk [vmem:[#allocation2 + $0x368] sm:$0xff] %vm2296_vm2, %v11463_v58 }
 0x79b   :  { %v8167_v40 = vpop.eup %8166  ;;  %3423 = vadd.xlane.f32.xlu1 %v3422_v26  ;;  %7024 = vmatprep.mubr.msk.bf16.mxu1 %vm2296_vm2, %v3875_v7  ;;  %v3063_v7 = vmul.f32 1.442695, %v2808_v50 }
 0x79c   :  { %7045 = vmatpush3.bf16.msra.mxu1 %v4972_v18  ;;  %v11481_v53 = vmul.f32 %v8167_v40, %v11302_v43  ;;  %v2807_v43 = vsub.f32 %v12897_v39, %v12896_v48  ;;  %v11514_v18 = vpop.f32.mrf.mxu1 }
 0x79e   :  { %3815 = vst.msk [vmem:[#allocation2 + $0x370] sm:$0xff] %vm2296_vm2, %v11481_v53  ;;  %v3061_v29 = vmul.f32 1.442695, %v2807_v43  ;;  %v11522_v0 = vpop.f32.mrf.mxu1  ;;  %v12902_v43 = vld [vmem:[#allocation54_spill] sm:$0xff] }
 0x79f   :  { %v8169_v56 = vpop.eup %8168 }
 0x7a0   :  { %v11490_v25 = vmul.f32 %v8169_v56, %v11313_v41  ;;  %v11530_v14 = vpop.f32.mrf.mxu1 }
 0x7a2   :  { %v3406_v19 = vpop.xlane.xlu1 %3405  ;;  %7025 = vmatmul.mubr.msk.bf16.gmra.mxu1 %vm2296_vm2, %v3876_v54  ;;  %3816 = vst.msk [vmem:[#allocation2 + $0x378] sm:$0xff] %vm2296_vm2, %v11490_v25  ;;  %v11512_v54 = vpop.eup %8170 }
 0x7a3   :  { %8176 = vrcp.f32 %v3406_v19  ;;  %7052 = vmatprep.mubr.msk.bf16.mxu1 %vm2296_vm2, %v3881_v63  ;;  %v3416_v4 = vsel %vm2296_vm2, %v11512_v54, 0.0  ;;  %v11518_v60 = vpop.eup %8172  ;;  %v12900_v63 = vld [vmem:[#allocation49_spill] sm:$0xff] }
 0x7a4   :  { %8178 = vpow2.f32 %v3059_v12  ;;  %v3419_v1 = vsel %vm2296_vm2, %v11518_v60, 0.0  ;;  %v11526_v26 = vpop.eup %8174  ;;  %v11543_v12 = vpop.f32.mrf.mxu1  ;;  %v12903_v19 = vld [vmem:[#allocation89_spill] sm:$0xff] }
 0x7a5   :  { %v3437_v56 = vsel %vm2296_vm2, %v11526_v26, 0.0 }
 0x7a6   :  { %v3409_v36 = vpop.xlane.xlu1 %3408 }
 0x7a7   :  { %8180 = vrcp.f32 %v3409_v36 }
 0x7a8   :  { %8182 = vpow2.f32 %v3061_v29  ;;  %v12904_v29 = vld [vmem:[#allocation82_spill] sm:$0xff] }
 0x7a9   :  { %v7458_v2 = vpack.i.bf16 %v12904_v29, %v12903_v19  ;;  %v12906_v19 = vld [vmem:[#allocation133_spill] sm:$0xff]  ;;  %v12907_v29 = vld [vmem:[#allocation135_spill] sm:$0xff] }
 0x7aa   :  { %v3412_v33 = vpop.xlane.xlu1 %3411 }
 0x7ab   :  { %8184 = vrcp.f32 %v3412_v33  ;;  %3417 = vadd.xlane.f32.xlu0 %v3416_v4 }
 0x7ac   :  { %5054 = vrot.lane.b32.xlu1 %v12900_v63, %s8240_s11  ;;  %8186 = vpow2.f32 %v3063_v7  ;;  %v11554_v7 = vpop.f32.mrf.mxu0 }
 0x7ae   :  { %v3430_v20 = vpop.xlane.xlu1 %3429  ;;  %v11561_v4 = vpop.f32.mrf.mxu0 }
 0x7af   :  { %8188 = vrcp.f32 %v3430_v20  ;;  %3420 = vadd.xlane.f32.xlu0 %v3419_v1  ;;  %v12905_v20 = vld [vmem:[#allocation155_spill] sm:$0xff] }
 0x7b0   :  { %v8177_v40 = vpop.eup %8176  ;;  %5145 = vrot.lane.b32.xlu1 %v12901_v52, %s8240_s11  ;;  %v7468_v1 = vpack.i.bf16 %v12905_v20, %v10778_v11 }
 0x7b1   :  { %v11533_v27 = vmul.f32 %v8177_v40, %v11348_v15  ;;  %v11537_v48 = vpop.eup %8178 }
 0x7b2   :  { %v3433_v28 = vpop.xlane.xlu1 %3432  ;;  %v3440_v50 = vsel %vm2296_vm2, %v11537_v48, 0.0 }
 0x7b3   :  { %8190 = vrcp.f32 %v3433_v28  ;;  %3438 = vadd.xlane.f32.xlu0 %v3437_v56  ;;  %3818 = vst.msk [vmem:[#allocation2 + $0x388] sm:$0xff] %vm2296_vm2, %v11533_v27 }
 0x7b4   :  { %v8181_v39 = vpop.eup %8180  ;;  %5143 = vrot.lane.b32.xlu1 %v12902_v43, %s8240_s11 }
 0x7b5   :  { %v11546_v15 = vmul.f32 %v8181_v39, %v11352_v8  ;;  %v11552_v36 = vpop.eup %8182  ;;  %v11559_v8 = vpop.f32.mrf.mxu1 }
 0x7b6   :  { %v3436_v17 = vpop.xlane.xlu1 %3435  ;;  %v3443_v52 = vsel %vm2296_vm2, %v11552_v36, 0.0 }
 0x7b7   :  { %3819 = vst.msk [vmem:[#allocation2 + $0x390] sm:$0xff] %vm2296_vm2, %v11546_v15  ;;  %8192 = vrcp.f32 %v3436_v17  ;;  %3441 = vadd.xlane.f32.xlu0 %v3440_v50  ;;  %v11577_v11 = vpop.f32.mrf.mxu1 }
 0x7b8   :  { %v8185_v33 = vpop.eup %8184  ;;  %7459 = vrot.lane.b32.xlu1 %v7458_v2, %s8241_s12  ;;  %v7478_v2 = vpack.i.bf16 %v12907_v29, %v12906_v19 }
 0x7b9   :  { %v11564_v63 = vmul.f32 %v8185_v33, %v11356_v35  ;;  %v11570_v28 = vpop.eup %8186  ;;  %v4578_v35 = vpop.f32.mrf.mxu0 }
 0x7ba   :  { %v4970_v40 = vpop.permute.xlu1 %4969  ;;  %v3446_v17 = vsel %vm2296_vm2, %v11570_v28, 0.0  ;;  %v11586_v50 = vpop.f32.mrf.mxu1 }
 0x7bb   :  { %3820 = vst.msk [vmem:[#allocation2 + $0x398] sm:$0xff] %vm2296_vm2, %v11564_v63  ;;  %3444 = vadd.xlane.f32.xlu0 %v3443_v52  ;;  %7046 = vmatprep.subr.bf16.mxu1 %v4970_v40  ;;  %v11591_v20 = vpop.f32.mrf.mxu0 }
 0x7bc   :  { %v8189_v39 = vpop.eup %8188  ;;  %7469 = vrot.lane.b32.xlu1 %v7468_v1, %s8242_s13  ;;  %7047 = vmatpush3.bf16.msra.mxu1 %v4970_v40  ;;  %v12908_v1 = vld [vmem:[#allocation86_spill] sm:$0xff]  ;;  %v12909_v40 = vld [vmem:[#allocation139_spill] sm:$0xff] }
 0x7bd   :  { %v11580_v43 = vmul.f32 %v8189_v39, %v11360_v32  ;;  %v7488_v52 = vpack.i.bf16 %v12909_v40, %v12908_v1  ;;  %v4489_v39 = vpop.f32.mrf.mxu1  ;;  %v4581_v29 = vpop.f32.mrf.mxu0  ;;  %v12911_v1 = vld [vmem:[#allocation160_spill] sm:$0xff] }
 0x7be   :  { %v7508_v40 = vpack.i.bf16 %v10947_v24, %v12911_v1 }
 0x7bf   :  { %3447 = vadd.xlane.f32.xlu0 %v3446_v17  ;;  %3826 = vst.msk [vmem:[#allocation2 + $0x3c8] sm:$0xff] %vm2296_vm2, %v11580_v43  ;;  %v11606_v21 = vpop.f32.mrf.mxu1 }
 0x7c0   :  { %v8191_v33 = vpop.eup %8190  ;;  %7479 = vrot.lane.b32.xlu1 %v7478_v2, %s8243_s14  ;;  %v12910_v2 = vld [vmem:[#allocation6_spill] sm:$0xff] }
 0x7c1   :  { %v11594_v32 = vmul.f32 %v8191_v33, %v11375_v45  ;;  %v7498_v56 = vpack.i.bf16 %v11487_v42, %v12910_v2  ;;  %v11613_v33 = vpop.f32.mrf.mxu0  ;;  %v5059_v45 = vpop.permute.xlu1 %5058 }
 0x7c3   :  { %3827 = vst.msk [vmem:[#allocation2 + $0x3d0] sm:$0xff] %vm2296_vm2, %v11594_v32  ;;  %v4594_v42 = vpop.f32.mrf.mxu0 }
 0x7c4   :  { %v8193_v19 = vpop.eup %8192  ;;  %7489 = vrot.lane.b32.xlu1 %v7488_v52, %s8241_s12  ;;  %v4492_v52 = vpop.f32.mrf.mxu1 }
 0x7c5   :  { %v11602_v17 = vmul.f32 %v8193_v19, %v11381_v44  ;;  %v7518_v19 = vpack.i.bf16 %v10967_v51, %v10961_v30  ;;  %v7528_v24 = vpack.i.bf16 %v4492_v52, %v4489_v39  ;;  %v7538_v30 = vpack.i.bf16 %v4581_v29, %v4578_v35  ;;  %v12914_v29 = vld [vmem:[#allocation56_spill] sm:$0xff] }
 0x7c6   :  { %v11620_v62 = vpop.f32.mrf.mxu1  ;;  %v7548_v39 = vpack.i.bf16 %v11554_v7, %v10971_v5  ;;  %v12916_v7 = vld [vmem:[#allocation61_spill] sm:$0xff] }
 0x7c7   :  { %3828 = vst.msk [vmem:[#allocation2 + $0x3d8] sm:$0xff] %vm2296_vm2, %v11602_v17 }
 0x7c8   :  { %7499 = vrot.lane.b32.xlu1 %v7498_v56, %s8242_s13  ;;  %v11623_v56 = vpop.f32.mrf.mxu0  ;;  %v4505_v1 = vpop.f32.mrf.mxu1 }
 0x7ca   :  { %v3403_v44 = vpop.xlane.xlu0 %3402  ;;  %v6963_v51 = vpop.f32.mrf.mxu1 }
 0x7cb   :  { %8194 = vrcp.f32 %v3403_v44  ;;  %v12912_v44 = vld [vmem:[#allocation14_spill] sm:$0xff] }
 0x7cc   :  { %7509 = vrot.lane.b32.xlu1 %v7508_v40, %s8243_s14  ;;  %v4597_v40 = vpop.f32.mrf.mxu0 }
 0x7cd   :  { %v7568_v5 = vpack.i.bf16 %v4597_v40, %v4594_v42  ;;  %v12920_v42 = vld [vmem:[#allocation150_spill] sm:$0xff] }
 0x7ce   :  { %v5061_v2 = vpop.permute.xlu0 %5060  ;;  %v7006_v41 = vpop.f32.mrf.mxu0 }
 0x7cf   :  { %7060 = vmatprep.subr.bf16.mxu0 %v5061_v2 }
 0x7d0   :  { %7519 = vrot.lane.b32.xlu1 %v7518_v19, %s8241_s12  ;;  %7061 = vmatpush3.bf16.msra.mxu0 %v5061_v2  ;;  %v12913_v19 = vld [vmem:[#allocation57_spill] sm:$0xff]  ;;  %v4756_v52 = vpop.f32.mrf.mxu0 }
 0x7d1   :  { %7062 = vmatprep.subr.bf16.mxu0 %v5059_v45 }
 0x7d4   :  { %7529 = vrot.lane.b32.xlu1 %v7528_v24, %s8242_s13  ;;  %7063 = vmatpush3.bf16.msra.mxu0 %v5059_v45  ;;  %v4508_v45 = vpop.f32.mrf.mxu1 }
 0x7d5   :  { %4965 = vrot.lane.b32.xlu0 %v12912_v44, %s8240_s11  ;;  %v7558_v24 = vpack.i.bf16 %v4508_v45, %v4505_v1  ;;  %v7007_v44 = vpop.f32.mrf.mxu0  ;;  %v12918_v1 = vld [vmem:[#allocation52_spill] sm:$0xff]  ;;  %v12919_v45 = vld [vmem:[#allocation138_spill] sm:$0xff] }
 0x7d6   :  { %v12921_v40 = vpack.i.bf16 %v12919_v45, %v12920_v42 }
 0x7d8   :  { %v8195_v37 = vpop.eup %8194  ;;  %7539 = vrot.lane.b32.xlu1 %v7538_v30, %s8243_s14 }
 0x7d9   :  { %5149 = vrot.lane.b32.xlu0 %v12913_v19, %s8240_s11  ;;  %v11632_v2 = vmul.f32 %v8195_v37, %v11385_v49  ;;  %v12915_v49 = vld [vmem:[#allocation59_spill] sm:$0xff]  ;;  %v4759_v37 = vpop.f32.mrf.mxu0 }
 0x7da   :  { %v7578_v30 = vpack.i.bf16 %v4759_v37, %v4756_v52  ;;  %v12917_v19 = vld [vmem:[#allocation47_spill] sm:$0xff]  ;;  %v12923_v52 = vld [vmem:[#allocation152_spill] sm:$0xff] }
 0x7db   :  { %3817 = vst.msk [vmem:[#allocation2 + $0x380] sm:$0xff] %vm2296_vm2, %v11632_v2  ;;  %v3889_v35 = vpack.c.bf16 %v11533_v27, %v11632_v2  ;;  %v12926_v37 = vld [vmem:[#allocation83_spill] sm:$0xff]  ;;  %v7700_v27 = vld [vmem:[%s12228_s2 + $0x8] sm:$0xff]  }
 0x7dc   :  { %7549 = vrot.lane.b32.xlu1 %v7548_v39, %s8241_s12 }
 0x7dd   :  { %5238 = vrot.lane.b32.xlu0 %v12914_v29, %s8240_s11 }
 0x7e0   :  { %7559 = vrot.lane.b32.xlu1 %v7558_v24, %s8242_s13  ;;  %v12922_v24 = vld [vmem:[#allocation90_spill] sm:$0xff] }
 0x7e1   :  { %5147 = vrot.lane.b32.xlu0 %v12915_v49, %s8240_s11  ;;  %v12924_v49 = vpack.i.bf16 %v12922_v24, %v12923_v52 }
 0x7e4   :  { %7569 = vrot.lane.b32.xlu1 %v7568_v5, %s8243_s14  ;;  %v12925_v5 = vld [vmem:[#allocation77_spill] sm:$0xff] }
 0x7e5   :  { %5236 = vrot.lane.b32.xlu0 %v12916_v7, %s8240_s11  ;;  %v12927_v7 = vpack.i.bf16 %v12925_v5, %v12926_v37  ;;  %v12935_v5 = vld [vmem:[#allocation81_spill] sm:$0xff] }
 0x7e8   :  { %7579 = vrot.lane.b32.xlu1 %v7578_v30, %s8241_s12 }
 0x7e9   :  { %5234 = vrot.lane.b32.xlu0 %v12917_v19, %s8240_s11  ;;  %v12928_v19 = vld [vmem:[#allocation28_spill] sm:$0xff] }
 0x7ed   :  { %5232 = vrot.lane.b32.xlu0 %v12918_v1, %s8240_s11  ;;  %v12929_v1 = vld [vmem:[#allocation143_spill] sm:$0xff] }
 0x7ef   :  { %v3415_v39 = vpop.xlane.xlu1 %3414 }
 0x7f0   :  { %8196 = vrcp.f32 %v3415_v39  ;;  %v12930_v39 = vpack.i.bf16 %v12928_v19, %v12929_v1  ;;  %v7543_v1 = vpack.i.bf16 %v11591_v20, %v11561_v4 }
 0x7f1   :  { %7464 = vrot.lane.b32.xlu0 %v12921_v40, %s8241_s12  ;;  %v12931_v40 = vld [vmem:[#allocation32_spill] sm:$0xff] }
 0x7f3   :  { %v5057_v29 = vpop.permute.xlu1 %5056 }
 0x7f4   :  { %7064 = vmatprep.subr.bf16.mxu0 %v5057_v29 }
 0x7f5   :  { %7474 = vrot.lane.b32.xlu0 %v12924_v49, %s8242_s13  ;;  %7065 = vmatpush3.bf16.msra.mxu0 %v5057_v29  ;;  %v12932_v29 = vld [vmem:[#allocation94_spill] sm:$0xff]  ;;  %v12934_v49 = vld [vmem:[#allocation96_spill] sm:$0xff] }
 0x7f6   :  { %v12933_v24 = vpack.i.bf16 %v12931_v40, %v12932_v29  ;;  %v12936_v37 = vpack.i.bf16 %v12934_v49, %v12935_v5 }
 0x7f9   :  { %7484 = vrot.lane.b32.xlu0 %v12927_v7, %s8243_s14  ;;  %v7533_v7 = vpack.i.bf16 %v11606_v21, %v11586_v50  ;;  %v7573_v21 = vpack.i.bf16 %v11623_v56, %v11613_v33 }
 0x7fd   :  { %v8197_v30 = vpop.eup %8196  ;;  %7494 = vrot.lane.b32.xlu0 %v12930_v39, %s8241_s12  ;;  %v12938_v39 = vld [vmem:[#allocation79_spill] sm:$0xff] }
 0x7fe   :  { %v11671_v45 = vmul.f32 %v8197_v30, %v11406_v13  ;;  %v12937_v13 = vpack.i.bf16 %v10963_v38, %v10956_v16  ;;  %v7563_v38 = vpack.i.bf16 %v6963_v51, %v11620_v62  ;;  %v12941_v62 = vpack.c.bf16 %v11463_v58, %v11454_v9 }
 0x7ff   :  { %v3427_v42 = vpop.xlane.xlu0 %3426  ;;  %v12942_v51 = vpack.c.bf16 %v11490_v25, %v11481_v53 }
 0x800   :  { %8198 = vrcp.f32 %v3427_v42  ;;  %3821 = vst.msk [vmem:[#allocation2 + $0x3a0] sm:$0xff] %vm2296_vm2, %v11671_v45  ;;  %v12939_v42 = vld [vmem:[#allocation136_spill] sm:$0xff] }
 0x801   :  { %7504 = vrot.lane.b32.xlu0 %v12933_v24, %s8242_s13  ;;  %v12940_v16 = vpack.i.bf16 %v12938_v39, %v12939_v42 }
 0x803   :  { %v4968_v52 = vpop.permute.xlu0 %4967 }
 0x804   :  { %7048 = vmatprep.subr.bf16.mxu1 %v4968_v52 }
 0x805   :  { %7514 = vrot.lane.b32.xlu0 %v12936_v37, %s8243_s14  ;;  %7049 = vmatpush3.bf16.msra.mxu1 %v4968_v52 }
 0x809   :  { %7524 = vrot.lane.b32.xlu0 %v12937_v13, %s8241_s12 }
 0x80d   :  { %v8199_v30 = vpop.eup %8198  ;;  %7534 = vrot.lane.b32.xlu0 %v7533_v7, %s8242_s13 }
 0x80e   :  { %v3697_v19 = vmul.f32 %v8199_v30, %v11410_v3  ;;  %v7583_v3 = vpack.i.bf16 %v7007_v44, %v7006_v41  ;;  %v11734_v44 = vpop.f32.mrf.mxu0 }
 0x810   :  { %3825 = vst.msk [vmem:[#allocation2 + $0x3c0] sm:$0xff] %vm2296_vm2, %v3697_v19  ;;  %v3893_v56 = vpack.c.bf16 %v11580_v43, %v3697_v19  ;;  %v11743_v49 = vpop.f32.mrf.mxu0 }
 0x811   :  { %7544 = vrot.lane.b32.xlu0 %v7543_v1, %s8243_s14 }
 0x812   :  { %v11754_v30 = vpop.f32.mrf.mxu0 }
 0x815   :  { %7554 = vrot.lane.b32.xlu0 %v12940_v16, %s8241_s12  ;;  %v11765_v16 = vpop.f32.mrf.mxu0 }
 0x819   :  { %7564 = vrot.lane.b32.xlu0 %v7563_v38, %s8242_s13 }
 0x81d   :  { %7574 = vrot.lane.b32.xlu0 %v7573_v21, %s8243_s14 }
 0x821   :  { %7584 = vrot.lane.b32.xlu0 %v7583_v3, %s8241_s12 }
 0x824   :  { %v3424_v4 = vpop.xlane.xlu1 %3423 }
 0x825   :  { %8200 = vrcp.f32 %v3424_v4 }
 0x828   :  { %v5055_v50 = vpop.permute.xlu1 %5054 }
 0x829   :  { %7066 = vmatprep.subr.bf16.mxu0 %v5055_v50 }
 0x82a   :  { %7067 = vmatpush3.bf16.msra.mxu0 %v5055_v50  ;;  %v12943_v50 = vpack.c.bf16 %v11309_v31, %v11298_v57 }
 0x82c   :  { %v11723_v47 = vpop.permute.xlu1 %5145 }
 0x82d   :  { %7069 = vmatmul.mubr.msk.bf16.vlgmr.msra.gmra.mxu0 %vm2296_vm2, %v3886_v34  ;;  %v11726_v34 = vpop.f32.mrf.mxu1 }
 0x82e   :  { %7072 = vmatprep.mubr.msk.bf16.mxu0 %vm2296_vm2, %v12941_v62 }
 0x82f   :  { %v11730_v58 = vpop.f32.mrf.mxu1 }
 0x830   :  { %v11728_v9 = vpop.permute.xlu1 %5143 }
 0x831   :  { %v11739_v29 = vpop.f32.mrf.mxu1 }
 0x832   :  { %v8201_v20 = vpop.eup %8200 }
 0x833   :  { %v11714_v41 = vmul.f32 %v8201_v20, %v11458_v61  ;;  %v11745_v5 = vpop.f32.mrf.mxu1 }
 0x834   :  { %v3418_v33 = vpop.xlane.xlu0 %3417  ;;  %v11732_v43 = vpop.permute.xlu1 %7459 }
 0x835   :  { %8202 = vrcp.f32 %v3418_v33  ;;  %7073 = vmatmul.mubr.msk.bf16.gmra.mxu0 %vm2296_vm2, %v12942_v51  ;;  %3824 = vst.msk [vmem:[#allocation2 + $0x3b8] sm:$0xff] %vm2296_vm2, %v11714_v41  ;;  %v11756_v19 = vpop.f32.mrf.mxu1 }
 0x836   :  { %7100 = vmatprep.mubr.msk.bf16.mxu0 %vm2296_vm2, %v3893_v56  ;;  %v7038_v3 = vpop.f32.mrf.mxu0 }
 0x837   :  { %v11767_v38 = vpop.f32.mrf.mxu1 }
 0x838   :  { %v3421_v59 = vpop.xlane.xlu0 %3420  ;;  %v11747_v37 = vpop.permute.xlu1 %7469 }
 0x839   :  { %8204 = vrcp.f32 %v3421_v59 }
 0x83c   :  { %v3439_v61 = vpop.xlane.xlu0 %3438  ;;  %v11761_v42 = vpop.permute.xlu1 %7479 }
 0x83d   :  { %8206 = vrcp.f32 %v3439_v61 }
 0x840   :  { %v3442_v53 = vpop.xlane.xlu0 %3441  ;;  %v11783_v20 = vpop.permute.xlu1 %7489 }
 0x841   :  { %8208 = vrcp.f32 %v3442_v53 }
 0x842   :  { %v8203_v25 = vpop.eup %8202 }
 0x843   :  { %v11737_v40 = vmul.f32 %v8203_v25, %v11512_v54 }
 0x844   :  { %v3445_v24 = vpop.xlane.xlu0 %3444  ;;  %v11797_v61 = vpop.permute.xlu1 %7499 }
 0x845   :  { %3822 = vst.msk [vmem:[#allocation2 + $0x3a8] sm:$0xff] %vm2296_vm2, %v11737_v40  ;;  %8210 = vrcp.f32 %v3445_v24 }
 0x846   :  { %v8205_v52 = vpop.eup %8204 }
 0x847   :  { %v11750_v13 = vmul.f32 %v8205_v52, %v11518_v60 }
 0x848   :  { %v3448_v7 = vpop.xlane.xlu0 %3447  ;;  %v11811_v52 = vpop.permute.xlu1 %7509 }
 0x849   :  { %8212 = vrcp.f32 %v3448_v7  ;;  %3823 = vst.msk [vmem:[#allocation2 + $0x3b0] sm:$0xff] %vm2296_vm2, %v11750_v13 }
 0x84a   :  { %v8207_v54 = vpop.eup %8206 }
 0x84b   :  { %v11759_v1 = vmul.f32 %v8207_v54, %v11526_v26  ;;  %v3883_v26 = vpack.c.bf16 %v11440_v22, %v11394_v23  ;;  %v11788_v23 = vpop.f32.mrf.mxu0 }
 0x84c   :  { %v4966_v39 = vpop.permute.xlu0 %4965 }
 0x84d   :  { %7050 = vmatprep.subr.bf16.mxu1 %v4966_v39  ;;  %3829 = vst.msk [vmem:[#allocation2 + $0x3e0] sm:$0xff] %vm2296_vm2, %v11759_v1  ;;  %v7039_v51 = vpop.f32.mrf.mxu0 }
 0x84e   :  { %v8209_v60 = vpop.eup %8208  ;;  %7051 = vmatpush3.bf16.msra.mxu1 %v4966_v39 }
 0x84f   :  { %v11770_v21 = vmul.f32 %v8209_v60, %v11537_v48  ;;  %v11781_v48 = vpop.f32.mrf.mxu1  ;;  %v4937_v24 = vpop.f32.mrf.mxu0  ;;  %v7603_v60 = vpack.i.bf16 %v7039_v51, %v7038_v3  ;;  %v7701_v3 = vld [vmem:[%s12228_s2] sm:$0xff]  }
 0x850   :  { %v5150_v4 = vpop.permute.xlu0 %5149  ;;  %v7598_v51 = vpack.i.bf16 %v4937_v24, %v11788_v23 }
 0x851   :  { %7053 = vmatmul.mubr.msk.bf16.vlgmr.msra.gmra.mxu1 %vm2296_vm2, %v12943_v50  ;;  %7076 = vmatprep.subr.bf16.mxu1 %v5150_v4  ;;  %3830 = vst.msk [vmem:[#allocation2 + $0x3e8] sm:$0xff] %vm2296_vm2, %v11770_v21  ;;  %v11792_v22 = vpop.f32.mrf.mxu1  ;;  %v11818_v54 = vpop.f32.mrf.mxu0  ;;  %v7472_v50 = vunpack.i.h.bf16 %v11747_v37 }
 0x852   :  { %v8211_v62 = vpop.eup %8210  ;;  %7056 = vmatprep.mubr.msk.bf16.mxu1 %vm2296_vm2, %v3883_v26  ;;  %7077 = vmatpush3.bf16.msra.mxu1 %v5150_v4  ;;  %v7461_v4 = vunpack.i.l.bf16 %v11732_v43 }
 0x853   :  { %v11786_v33 = vmul.f32 %v8211_v62, %v11552_v36  ;;  %v12944_v36 = vpack.c.bf16 %v11425_v10, %v11445_v6  ;;  %v7471_v62 = vunpack.i.l.bf16 %v11747_v37  ;;  %v11839_v37 = vpop.permute.xlu1 %7519 }
 0x854   :  { %v5239_v57 = vpop.permute.xlu0 %5238 }
 0x855   :  { %7092 = vmatprep.subr.bf16.mxu0 %v5239_v57  ;;  %3831 = vst.msk [vmem:[#allocation2 + $0x3f0] sm:$0xff] %vm2296_vm2, %v11786_v33 }
 0x856   :  { %v8213_v31 = vpop.eup %8212  ;;  %7093 = vmatpush3.bf16.msra.mxu0 %v5239_v57 }
 0x857   :  { %v11795_v56 = vmul.f32 %v8213_v31, %v11570_v28  ;;  %v7481_v31 = vunpack.i.l.bf16 %v11761_v42 }
 0x858   :  { %v5148_v59 = vpop.permute.xlu0 %5147 }
 0x859   :  { %7057 = vmatmul.mubr.msk.bf16.gmra.mxu1 %vm2296_vm2, %v12944_v36  ;;  %7078 = vmatprep.subr.bf16.mxu1 %v5148_v59  ;;  %3832 = vst.msk [vmem:[#allocation2 + $0x3f8] sm:$0xff] %vm2296_vm2, %v11795_v56  ;;  %v12945_v36 = vpack.c.bf16 %v11564_v63, %v11546_v15 }
 0x85a   :  { %v7022_v53 = vpop.f32.mrf.mxu1  ;;  %7079 = vmatpush3.bf16.msra.mxu1 %v5148_v59  ;;  %7084 = vmatprep.mubr.msk.bf16.mxu1 %vm2296_vm2, %v3889_v35  ;;  %v11837_v59 = vpop.f32.mrf.mxu0 }
 0x85b   :  { %7080 = vmatprep.subr.bf16.mxu1 %v11723_v47 }
 0x85c   :  { %v4845_v28 = vpop.f32.mrf.mxu1  ;;  %v5237_v25 = vpop.permute.xlu0 %5236 }
 0x85d   :  { %7094 = vmatprep.subr.bf16.mxu0 %v5237_v25 }
 0x85e   :  { %v7023_v10 = vpop.f32.mrf.mxu1  ;;  %7081 = vmatpush3.bf16.msra.mxu1 %v11723_v47  ;;  %7095 = vmatpush3.bf16.msra.mxu0 %v5237_v25  ;;  %v7462_v47 = vunpack.i.h.bf16 %v11732_v43  ;;  %v7482_v43 = vunpack.i.h.bf16 %v11761_v42  ;;  %v12946_v42 = vld [vmem:[#allocation75_spill] sm:$0xff] }
 0x85f   :  { %v7593_v6 = vpack.i.bf16 %v7023_v10, %v7022_v53  ;;  %7082 = vmatprep.subr.bf16.mxu1 %v11728_v9  ;;  %v12947_v53 = vld [vmem:[#allocation72_spill] sm:$0xff] }
 0x860   :  { %v4848_v7 = vpop.f32.mrf.mxu1  ;;  %v5235_v35 = vpop.permute.xlu0 %5234  ;;  %v5706_v23 = vsel %vm691_vm1, %v12946_v42, %v7462_v47  ;;  %v12952_v42 = vld [vmem:[#allocation23_spill] sm:$0xff] }
 0x861   :  { %v7588_v2 = vpack.i.bf16 %v4848_v7, %v4845_v28  ;;  %7594 = vrot.lane.b32.xlu0 %v7593_v6, %s8242_s13  ;;  %7096 = vmatprep.subr.bf16.mxu0 %v5235_v35  ;;  %v5705_v28 = vsel %vm691_vm1, %v12947_v53, %v7461_v4  ;;  %v5739_v15 = vsel %vm5737_vm3, %v5706_v23, %v7472_v50  ;;  %v7043_v6 = vpop.f32.mrf.mxu0 }
 0x862   :  { %v7026_v39 = vpop.f32.mrf.mxu1  ;;  %7083 = vmatpush3.bf16.msra.mxu1 %v11728_v9  ;;  %7097 = vmatpush3.bf16.msra.mxu0 %v5235_v35  ;;  %v3891_v9 = vpack.c.bf16 %v11737_v40, %v11671_v45  ;;  %v7613_v45 = vpack.i.bf16 %v11754_v30, %v11734_v44  ;;  %v5738_v63 = vsel %vm5737_vm3, %v5705_v28, %v7471_v62  ;;  %v11869_v35 = vpop.permute.xlu1 %7529 }
 0x863   :  { %7589 = vrot.lane.b32.xlu1 %v7588_v2, %s8242_s13  ;;  %7108 = vmatprep.subr.bf16.mxu1 %v7700_v27  ;;  %v3895_v44 = vpack.c.bf16 %v11770_v21, %v11759_v1  ;;  %v7608_v30 = vpack.i.bf16 %v11765_v16, %v11743_v49  ;;  %v5771_v24 = vsel %vm5770_vm4, %v5738_v63, %v7481_v31  ;;  %v7492_v1 = vunpack.i.h.bf16 %v11783_v20  ;;  %v4953_v47 = vpop.f32.mrf.mxu0 }
 0x864   :  { %v11824_v26 = vpop.f32.mrf.mxu1  ;;  %v5233_v57 = vpop.permute.xlu0 %5232  ;;  %v5772_v10 = vsel %vm5770_vm4, %v5739_v15, %v7482_v43  ;;  %v12948_v7 = vpack.c.bf16 %v11602_v17, %v11594_v32  ;;  %v7491_v21 = vunpack.i.l.bf16 %v11783_v20  ;;  %v3892_v49 = vpack.c.bf16 %v11714_v41, %v11750_v13 }
 0x865   :  { %7604 = vrot.lane.b32.xlu0 %v7603_v60, %s8243_s14  ;;  %7085 = vmatmul.mubr.msk.bf16.vlgmr.msra.gmra.mxu1 %vm2296_vm2, %v12945_v36  ;;  %v5803_v16 = vpack.c.bf16 %v5772_v10, %v5771_v24  ;;  %v7502_v32 = vunpack.i.h.bf16 %v11797_v61  ;;  %v7501_v17 = vunpack.i.l.bf16 %v11797_v61  ;;  %v7633_v60 = vpack.i.bf16 %v7043_v6, %v11818_v54  ;;  %v12949_v61 = vld [vmem:[#allocation19_spill] sm:$0xff] }
 0x866   :  { %7098 = vmatprep.subr.bf16.mxu0 %v5233_v57  ;;  %v7027_v40 = vpop.f32.mrf.mxu1  ;;  %7088 = vmatprep.mubr.msk.bf16.mxu1 %vm2296_vm2, %v3891_v9  ;;  %v7512_v41 = vunpack.i.h.bf16 %v11811_v52  ;;  %v7511_v13 = vunpack.i.l.bf16 %v11811_v52  ;;  %v5710_v9 = vsel %vm691_vm1, %v12949_v61, %v7492_v1  ;;  %v7628_v52 = vpack.i.bf16 %v4953_v47, %v11837_v59  ;;  %v7540_v36 = vpop.permute.xlu1 %7539 }
 0x867   :  { %7099 = vmatpush3.bf16.msra.mxu0 %v5233_v57  ;;  %7599 = vrot.lane.b32.xlu1 %v7598_v51, %s8243_s14  ;;  %v5743_v43 = vsel %vm5737_vm3, %v5710_v9, %v7502_v32  ;;  %v7522_v10 = vunpack.i.h.bf16 %v11839_v37  ;;  %v7521_v6 = vunpack.i.l.bf16 %v11839_v37  ;;  %v7541_v32 = vunpack.i.l.bf16 %v7540_v36 }
 0x868   :  { %7109 = vmatpush3.bf16.msra.mxu1 %v7700_v27  ;;  %v7465_v25 = vpop.permute.xlu0 %7464  ;;  %v7623_v27 = vpack.i.bf16 %v7027_v40, %v7026_v39  ;;  %v4864_v2 = vpop.f32.mrf.mxu1 }
 0x869   :  { %7614 = vrot.lane.b32.xlu0 %v7613_v45, %s8241_s12  ;;  %7110 = vmatprep.subr.bf16.mxu1 %v7701_v3  ;;  %v7618_v20 = vpack.i.bf16 %v4864_v2, %v11824_v26  ;;  %v7467_v4 = vunpack.i.h.bf16 %v7465_v25  ;;  %v7466_v50 = vunpack.i.l.bf16 %v7465_v25  ;;  %v3896_v26 = vpack.c.bf16 %v11795_v56, %v11786_v33  ;;  %v12951_v45 = vld [vmem:[#allocation5_spill] sm:$0xff] }
 0x86a   :  { %7101 = vmatmul.mubr.msk.bf16.vlgmr.msra.gmra.mxu0 %vm2296_vm2, %v12948_v7  ;;  %v5776_v56 = vsel %vm5770_vm4, %v5743_v43, %v7512_v41  ;;  %v7550_v7 = vpop.permute.xlu1 %7549  ;;  %v7531_v2 = vunpack.i.l.bf16 %v11869_v35  ;;  %v5714_v37 = vsel %vm691_vm1, %v11522_v0, %v7522_v10 }
 0x86b   :  { %7104 = vmatprep.mubr.msk.bf16.mxu0 %vm2296_vm2, %v3895_v44  ;;  %7609 = vrot.lane.b32.xlu1 %v7608_v30, %s8241_s12  ;;  %v5708_v40 = vsel %vm691_vm1, %v12951_v45, %v7467_v4  ;;  %v5707_v23 = vsel %vm691_vm1, %v12952_v42, %v7466_v50 }
 0x86c   :  { %7111 = vmatpush3.bf16.msra.mxu1 %v7701_v3  ;;  %v7475_v39 = vpop.permute.xlu0 %7474  ;;  %v12950_v3 = vld [vmem:[#allocation84_spill] sm:$0xff] }
 0x86d   :  { %7624 = vrot.lane.b32.xlu0 %v7623_v27, %s8242_s13  ;;  %7089 = vmatmul.mubr.msk.bf16.gmra.mxu1 %vm2296_vm2, %v3892_v49  ;;  %v7477_v62 = vunpack.i.h.bf16 %v7475_v39  ;;  %v7476_v57 = vunpack.i.l.bf16 %v7475_v39  ;;  %v5709_v54 = vsel %vm691_vm1, %v12950_v3, %v7491_v21  ;;  %v7532_v27 = vunpack.i.h.bf16 %v11869_v35  ;;  %v12953_v35 = vld [vmem:[#allocation67_spill] sm:$0xff] }
 0x86e   :  { %7112 = vmatprep.mubr.msk.bf16.mxu1 %vm85_vm0, %v5803_v16  ;;  %v5742_v31 = vsel %vm5737_vm3, %v5709_v54, %v7501_v17  ;;  %v7542_v16 = vunpack.i.h.bf16 %v7540_v36  ;;  %v7560_v50 = vpop.permute.xlu1 %7559  ;;  %v7551_v36 = vunpack.i.l.bf16 %v7550_v7 }
 0x86f   :  { %7619 = vrot.lane.b32.xlu1 %v7618_v20, %s8242_s13  ;;  %v5775_v33 = vsel %vm5770_vm4, %v5742_v31, %v7511_v13  ;;  %v5740_v59 = vsel %vm5737_vm3, %v5707_v23, %v7476_v57  ;;  %v5741_v15 = vsel %vm5737_vm3, %v5708_v40, %v7477_v62  ;;  %v5747_v47 = vsel %vm5737_vm3, %v5714_v37, %v7532_v27  ;;  %v12954_v13 = vld [vmem:[#allocation69_spill] sm:$0xff] }
 0x870   :  { %v7485_v51 = vpop.permute.xlu0 %7484  ;;  %v5805_v24 = vpack.c.bf16 %v5776_v56, %v5775_v33  ;;  %v7562_v40 = vunpack.i.h.bf16 %v7560_v50  ;;  %v7561_v42 = vunpack.i.l.bf16 %v7560_v50 }
 0x871   :  { %7634 = vrot.lane.b32.xlu0 %v7633_v60, %s8243_s14  ;;  %v7487_v53 = vunpack.i.h.bf16 %v7485_v51  ;;  %v7486_v28 = vunpack.i.l.bf16 %v7485_v51  ;;  %v5713_v60 = vsel %vm691_vm1, %v11508_v46, %v7521_v6  ;;  %v5780_v46 = vsel %vm5770_vm4, %v5747_v47, %v7542_v16 }
 0x872   :  { %7105 = vmatmul.mubr.msk.bf16.gmra.mxu0 %vm2296_vm2, %v3896_v26  ;;  %v5746_v20 = vsel %vm5737_vm3, %v5713_v60, %v7531_v2  ;;  %v7552_v51 = vunpack.i.h.bf16 %v7550_v7  ;;  %v7570_v45 = vpop.permute.xlu1 %7569 }
 0x873   :  { %v5773_v63 = vsel %vm5770_vm4, %v5740_v59, %v7486_v28  ;;  %v5774_v25 = vsel %vm5770_vm4, %v5741_v15, %v7487_v53  ;;  %7629 = vrot.lane.b32.xlu1 %v7628_v52, %s8243_s14  ;;  %v5779_v9 = vsel %vm5770_vm4, %v5746_v20, %v7541_v32  ;;  %v7572_v33 = vunpack.i.h.bf16 %v7570_v45 }
 0x874   :  { %v5804_v44 = vpack.c.bf16 %v5774_v25, %v5773_v63  ;;  %v7495_v30 = vpop.permute.xlu0 %7494  ;;  %v5807_v52 = vpack.c.bf16 %v5780_v46, %v5779_v9  ;;  %v7571_v56 = vunpack.i.l.bf16 %v7570_v45  ;;  %v5718_v63 = vsel %vm691_vm1, %v11577_v11, %v7552_v51 }
 0x875   :  { %v7497_v21 = vunpack.i.h.bf16 %v7495_v30  ;;  %v7496_v49 = vunpack.i.l.bf16 %v7495_v30  ;;  %v5717_v25 = vsel %vm691_vm1, %v11543_v12, %v7551_v36 }
 0x876   :  { %7113 = vmatmul.mubr.msk.bf16.vlgmr.msra.gmra.mxu1 %vm85_vm0, %v5804_v44  ;;  %v5751_v44 = vsel %vm5737_vm3, %v5718_v63, %v7562_v40  ;;  %v5750_v30 = vsel %vm5737_vm3, %v5717_v25, %v7561_v42  ;;  %v7580_v46 = vpop.permute.xlu1 %7579 }
 0x877   :  { %7116 = vmatprep.mubr.msk.bf16.mxu1 %vm85_vm0, %v5805_v24  ;;  %v5712_v41 = vsel %vm691_vm1, %v12953_v35, %v7497_v21  ;;  %v5711_v62 = vsel %vm691_vm1, %v12954_v13, %v7496_v49  ;;  %v5783_v2 = vsel %vm5770_vm4, %v5750_v30, %v7571_v56  ;;  %v5784_v11 = vsel %vm5770_vm4, %v5751_v44, %v7572_v33 }
 0x878   :  { %v7505_v1 = vpop.permute.xlu0 %7504 }
 0x879   :  { %v7507_v17 = vunpack.i.h.bf16 %v7505_v1  ;;  %v7506_v39 = vunpack.i.l.bf16 %v7505_v1 }
 0x87b   :  { %v5744_v0 = vsel %vm5737_vm3, %v5711_v62, %v7506_v39  ;;  %v5745_v3 = vsel %vm5737_vm3, %v5712_v41, %v7507_v17 }
 0x87c   :  { %v7515_v4 = vpop.permute.xlu0 %7514 }
 0x87d   :  { %v7517_v57 = vunpack.i.h.bf16 %v7515_v4  ;;  %v7516_v61 = vunpack.i.l.bf16 %v7515_v4 }
 0x87f   :  { %v5777_v54 = vsel %vm5770_vm4, %v5744_v0, %v7516_v61  ;;  %v5778_v26 = vsel %vm5770_vm4, %v5745_v3, %v7517_v57  ;;  %v7581_v3 = vunpack.i.l.bf16 %v7580_v46 }
 0x880   :  { %v5806_v43 = vpack.c.bf16 %v5778_v26, %v5777_v54  ;;  %v7525_v31 = vpop.permute.xlu0 %7524 }
 0x881   :  { %v7527_v53 = vunpack.i.h.bf16 %v7525_v31  ;;  %v7526_v28 = vunpack.i.l.bf16 %v7525_v31  ;;  %v5721_v42 = vsel %vm691_vm1, %v11730_v58, %v7581_v3 }
 0x882   :  { %7117 = vmatmul.mubr.msk.bf16.gmra.mxu1 %vm85_vm0, %v5806_v43 }
 0x883   :  { %7120 = vmatprep.mubr.msk.bf16.mxu1 %vm85_vm0, %v5807_v52  ;;  %v5716_v10 = vsel %vm691_vm1, %v11514_v18, %v7527_v53  ;;  %v5715_v6 = vsel %vm691_vm1, %v11492_v55, %v7526_v28  ;;  %v5809_v18 = vpack.c.bf16 %v5784_v11, %v5783_v2 }
 0x884   :  { %v7535_v23 = vpop.permute.xlu0 %7534 }
 0x885   :  { %v7537_v59 = vunpack.i.h.bf16 %v7535_v23  ;;  %v7536_v15 = vunpack.i.l.bf16 %v7535_v23 }
 0x887   :  { %v5748_v1 = vsel %vm5737_vm3, %v5715_v6, %v7536_v15  ;;  %v5749_v12 = vsel %vm5737_vm3, %v5716_v10, %v7537_v59 }
 0x888   :  { %v7545_v24 = vpop.permute.xlu0 %7544 }
 0x889   :  { %v7547_v7 = vunpack.i.h.bf16 %v7545_v24  ;;  %v7546_v27 = vunpack.i.l.bf16 %v7545_v24 }
 0x88b   :  { %v5781_v21 = vsel %vm5770_vm4, %v5748_v1, %v7546_v27  ;;  %v5782_v49 = vsel %vm5770_vm4, %v5749_v12, %v7547_v7 }
 0x88c   :  { %v5808_v16 = vpack.c.bf16 %v5782_v49, %v5781_v21  ;;  %v7555_v32 = vpop.permute.xlu0 %7554 }
 0x88d   :  { %v7557_v17 = vunpack.i.h.bf16 %v7555_v32  ;;  %v7556_v39 = vunpack.i.l.bf16 %v7555_v32 }
 0x88e   :  { %7121 = vmatmul.mubr.msk.bf16.gmra.mxu1 %vm85_vm0, %v5808_v16 }
 0x88f   :  { %7124 = vmatprep.mubr.msk.bf16.mxu1 %vm85_vm0, %v5809_v18  ;;  %v5720_v20 = vsel %vm691_vm1, %v11559_v8, %v7557_v17  ;;  %v5719_v4 = vsel %vm691_vm1, %v11530_v14, %v7556_v39  ;;  %v7582_v8 = vunpack.i.h.bf16 %v7580_v46 }
 0x890   :  { %v7565_v55 = vpop.permute.xlu0 %7564 }
 0x891   :  { %v7567_v60 = vunpack.i.h.bf16 %v7565_v55  ;;  %v7566_v37 = vunpack.i.l.bf16 %v7565_v55  ;;  %v5722_v23 = vsel %vm691_vm1, %v11745_v5, %v7582_v8 }
 0x893   :  { %v5752_v41 = vsel %vm5737_vm3, %v5719_v4, %v7566_v37  ;;  %v5753_v13 = vsel %vm5737_vm3, %v5720_v20, %v7567_v60 }
 0x894   :  { %v7575_v47 = vpop.permute.xlu0 %7574 }
 0x895   :  { %v7577_v50 = vunpack.i.h.bf16 %v7575_v47  ;;  %v7576_v35 = vunpack.i.l.bf16 %v7575_v47 }
 0x897   :  { %v5785_v62 = vsel %vm5770_vm4, %v5752_v41, %v7576_v35  ;;  %v5786_v57 = vsel %vm5770_vm4, %v5753_v13, %v7577_v50 }
 0x898   :  { %v5810_v61 = vpack.c.bf16 %v5786_v57, %v5785_v62  ;;  %v7585_v9 = vpop.permute.xlu0 %7584 }
 0x899   :  { %v7587_v54 = vunpack.i.h.bf16 %v7585_v9  ;;  %v7586_v14 = vunpack.i.l.bf16 %v7585_v9 }
 0x89a   :  { %7125 = vmatmul.mubr.msk.bf16.gmra.mxu1 %vm85_vm0, %v5810_v61 }
 0x89b   :  { %v5724_v53 = vsel %vm691_vm1, %v11739_v29, %v7587_v54  ;;  %v5723_v28 = vsel %vm691_vm1, %v11726_v34, %v7586_v14 }
 0x8d3   :  { %v7595_v0 = vpop.permute.xlu0 %7594 }
 0x8d4   :  { %v7597_v43 = vunpack.i.h.bf16 %v7595_v0  ;;  %v7596_v31 = vunpack.i.l.bf16 %v7595_v0 }
 0x8d5   :  { %v7590_v26 = vpop.permute.xlu1 %7589 }
 0x8d6   :  { %v7592_v51 = vunpack.i.h.bf16 %v7590_v26  ;;  %v7591_v36 = vunpack.i.l.bf16 %v7590_v26  ;;  %v5756_v56 = vsel %vm5737_vm3, %v5723_v28, %v7596_v31  ;;  %v5757_v59 = vsel %vm5737_vm3, %v5724_v53, %v7597_v43 }
 0x8d7   :  { %v7605_v52 = vpop.permute.xlu0 %7604 }
 0x8d8   :  { %v7607_v45 = vunpack.i.h.bf16 %v7605_v52  ;;  %v7606_v40 = vunpack.i.l.bf16 %v7605_v52  ;;  %v5755_v44 = vsel %vm5737_vm3, %v5722_v23, %v7592_v51  ;;  %v5754_v58 = vsel %vm5737_vm3, %v5721_v42, %v7591_v36 }
 0x8d9   :  { %v7600_v33 = vpop.permute.xlu1 %7599 }
 0x8da   :  { %v7602_v15 = vunpack.i.h.bf16 %v7600_v33  ;;  %v7601_v63 = vunpack.i.l.bf16 %v7600_v33  ;;  %v5789_v5 = vsel %vm5770_vm4, %v5756_v56, %v7606_v40  ;;  %v5790_v30 = vsel %vm5770_vm4, %v5757_v59, %v7607_v45 }
 0x8db   :  { %v7615_v25 = vpop.permute.xlu0 %7614  ;;  %v5812_v6 = vpack.c.bf16 %v5790_v30, %v5789_v5 }
 0x8dc   :  { %v5787_v29 = vsel %vm5770_vm4, %v5754_v58, %v7601_v63  ;;  %v5788_v34 = vsel %vm5770_vm4, %v5755_v44, %v7602_v15  ;;  %v7617_v27 = vunpack.i.h.bf16 %v7615_v25  ;;  %v7616_v2 = vunpack.i.l.bf16 %v7615_v25 }
 0x8dd   :  { %v5811_v24 = vpack.c.bf16 %v5788_v34, %v5787_v29  ;;  %v7610_v10 = vpop.permute.xlu1 %7609 }
 0x8de   :  { %v7612_v11 = vunpack.i.h.bf16 %v7610_v10  ;;  %v7611_v1 = vunpack.i.l.bf16 %v7610_v10  ;;  %v5728_v39 = vsel %vm691_vm1, %v11781_v48, %v7617_v27  ;;  %v5727_v60 = vsel %vm691_vm1, %v11756_v19, %v7616_v2 }
 0x8df   :  { %v7625_v7 = vpop.permute.xlu0 %7624  ;;  %7128 = vmatprep.mubr.msk.bf16.mxu1 %vm85_vm0, %v5811_v24 }
 0x8e0   :  { %7129 = vmatmul.mubr.msk.bf16.gmra.mxu1 %vm85_vm0, %v5812_v6  ;;  %v7627_v21 = vunpack.i.h.bf16 %v7625_v7  ;;  %v7626_v49 = vunpack.i.l.bf16 %v7625_v7  ;;  %v5726_v37 = vsel %vm691_vm1, %v11792_v22, %v7612_v11  ;;  %v5725_v47 = vsel %vm691_vm1, %v11767_v38, %v7611_v1  ;;  %v12019_v1 = vld [vmem:[%s12229_s3] ss:$0 sm:$0xff] }
 0x8e1   :  { %v7620_v12 = vpop.permute.xlu1 %7619 }
 0x8e2   :  { %v7622_v32 = vunpack.i.h.bf16 %v7620_v12  ;;  %v7621_v18 = vunpack.i.l.bf16 %v7620_v12  ;;  %v5760_v4 = vsel %vm5737_vm3, %v5727_v60, %v7626_v49  ;;  %v5761_v50 = vsel %vm5737_vm3, %v5728_v39, %v7627_v21 }
 0x8e3   :  { %v7635_v16 = vpop.permute.xlu0 %7634 }
 0x8e4   :  { %v7637_v55 = vunpack.i.h.bf16 %v7635_v16  ;;  %v7636_v17 = vunpack.i.l.bf16 %v7635_v16  ;;  %v5759_v13 = vsel %vm5737_vm3, %v5726_v37, %v7622_v32  ;;  %v5758_v48 = vsel %vm5737_vm3, %v5725_v47, %v7621_v18 }
 0x8e5   :  { %v7630_v20 = vpop.permute.xlu1 %7629 }
 0x8e6   :  { %v7632_v35 = vunpack.i.h.bf16 %v7630_v20  ;;  %v7631_v41 = vunpack.i.l.bf16 %v7630_v20  ;;  %v5793_v62 = vsel %vm5770_vm4, %v5760_v4, %v7636_v17  ;;  %v5794_v19 = vsel %vm5770_vm4, %v5761_v50, %v7637_v55 }
 0x8e7   :  { %v5814_v61 = vpack.c.bf16 %v5794_v19, %v5793_v62 }
 0x8e8   :  { %v5791_v22 = vsel %vm5770_vm4, %v5758_v48, %v7631_v41  ;;  %v5792_v57 = vsel %vm5770_vm4, %v5759_v13, %v7632_v35 }
 0x8e9   :  { %v5813_v38 = vpack.c.bf16 %v5792_v57, %v5791_v22 }
 0x8eb   :  { %7132 = vmatprep.mubr.msk.bf16.mxu1 %vm85_vm0, %v5813_v38 }
 0x8ec   :  { %7133 = vmatmul.mubr.msk.bf16.gmra.mxu1 %vm85_vm0, %v5814_v61 }
 0x8ed   :  { %v7070_v9 = vpop.f32.mrf.mxu0 }
 0x8ef   :  { %v5112_v46 = vpop.f32.mrf.mxu0 }
 0x8f1   :  { %v7071_v0 = vpop.f32.mrf.mxu0 }
 0x8f2   :  { %v7643_v8 = vpack.i.bf16 %v7071_v0, %v7070_v9 }
 0x8f3   :  { %v5115_v3 = vpop.f32.mrf.mxu0 }
 0x8f4   :  { %v7638_v54 = vpack.i.bf16 %v5115_v3, %v5112_v46  ;;  %7644 = vrot.lane.b32.xlu0 %v7643_v8, %s8241_s12 }
 0x8f5   :  { %v7074_v51 = vpop.f32.mrf.mxu0 }
 0x8f6   :  { %7639 = vrot.lane.b32.xlu1 %v7638_v54, %s8241_s12 }
 0x8f7   :  { %v5128_v45 = vpop.f32.mrf.mxu0 }
 0x8f9   :  { %v7075_v42 = vpop.f32.mrf.mxu0 }
 0x8fa   :  { %v7673_v7 = vpack.i.bf16 %v7075_v42, %v7074_v51 }
 0x8fb   :  { %v5131_v28 = vpop.f32.mrf.mxu0 }
 0x8fc   :  { %v7668_v11 = vpack.i.bf16 %v5131_v28, %v5128_v45 }
 0x911   :  { %v11995_v14 = vpop.f32.mrf.mxu1 }
 0x913   :  { %v11997_v26 = vpop.f32.mrf.mxu1 }
 0x915   :  { %v11999_v43 = vpop.f32.mrf.mxu1 }
 0x917   :  { %v12001_v31 = vpop.f32.mrf.mxu1 }
 0x919   :  { %v12003_v52 = vpop.f32.mrf.mxu1 }
 0x91b   :  { %v12005_v36 = vpop.f32.mrf.mxu1 }
 0x91d   :  { %v12007_v40 = vpop.f32.mrf.mxu1 }
 0x91f   :  { %v12009_v23 = vpop.f32.mrf.mxu1 }
 0x925   :  { %v7086_v53 = vpop.f32.mrf.mxu1 }
 0x927   :  { %v5201_v33 = vpop.f32.mrf.mxu1 }
 0x929   :  { %v7087_v56 = vpop.f32.mrf.mxu1 }
 0x92a   :  { %v7102_v59 = vpop.f32.mrf.mxu0  ;;  %v7653_v15 = vpack.i.bf16 %v7087_v56, %v7086_v53 }
 0x92b   :  { %v5204_v63 = vpop.f32.mrf.mxu1 }
 0x92c   :  { %v5290_v25 = vpop.f32.mrf.mxu0  ;;  %v7648_v44 = vpack.i.bf16 %v5204_v63, %v5201_v33  ;;  %7654 = vrot.lane.b32.xlu0 %v7653_v15, %s8242_s13 }
 0x92d   :  { %v7090_v58 = vpop.f32.mrf.mxu1 }
 0x92e   :  { %v7103_v5 = vpop.f32.mrf.mxu0  ;;  %7649 = vrot.lane.b32.xlu1 %v7648_v44, %s8242_s13 }
 0x92f   :  { %v7663_v30 = vpack.i.bf16 %v7103_v5, %v7102_v59  ;;  %v5217_v29 = vpop.f32.mrf.mxu1 }
 0x930   :  { %v5293_v34 = vpop.f32.mrf.mxu0 }
 0x931   :  { %v7658_v24 = vpack.i.bf16 %v5293_v34, %v5290_v25  ;;  %7664 = vrot.lane.b32.xlu0 %v7663_v30, %s8243_s14  ;;  %v7091_v10 = vpop.f32.mrf.mxu1 }
 0x932   :  { %v7106_v6 = vpop.f32.mrf.mxu0  ;;  %v7683_v21 = vpack.i.bf16 %v7091_v10, %v7090_v58 }
 0x933   :  { %7659 = vrot.lane.b32.xlu1 %v7658_v24, %s8243_s14  ;;  %v5220_v27 = vpop.f32.mrf.mxu1 }
 0x934   :  { %v5306_v2 = vpop.f32.mrf.mxu0  ;;  %v7678_v32 = vpack.i.bf16 %v5220_v27, %v5217_v29 }
 0x935   :  { %7674 = vrot.lane.b32.xlu0 %v7673_v7, %s8241_s12 }
 0x936   :  { %v7107_v12 = vpop.f32.mrf.mxu0  ;;  %v7114_v49 = vpop.f32.mrf.mxu1 }
 0x937   :  { %7669 = vrot.lane.b32.xlu1 %v7668_v11, %s8241_s12  ;;  %v5933_v16 = vadd.f32 %v7114_v49, %v12019_v1  ;;  %v7693_v39 = vpack.i.bf16 %v7107_v12, %v7106_v6 }
 0x938   :  { %v5924_v18 = vpop.f32.mrf.mxu1  ;;  %v5309_v55 = vpop.f32.mrf.mxu0 }
 0x939   :  { %7684 = vrot.lane.b32.xlu0 %v7683_v21, %s8242_s13  ;;  %6053 = vst.msk [vmem:[%s12230_s4 + $0x10] sm:$0xff] %vm85_vm0, %v5933_v16  ;;  %v5925_v17 = vadd.f32 %v12019_v1, %v5924_v18  ;;  %v7688_v47 = vpack.i.bf16 %v5309_v55, %v5306_v2 }
 0x93a   :  { %v7115_v60 = vpop.f32.mrf.mxu1 }
 0x93b   :  { %7679 = vrot.lane.b32.xlu1 %v7678_v32, %s8242_s13  ;;  %6051 = vst.msk [vmem:[%s12230_s4] sm:$0xff] %vm85_vm0, %v5925_v17  ;;  %v5936_v37 = vadd.f32 %v7115_v60, %v12019_v1  ;;  %s8244_s13 = smov [#allocation2]  }
 0x93c   :  { %v5927_v20 = vpop.f32.mrf.mxu1 }
 0x93d   :  { %7694 = vrot.lane.b32.xlu0 %v7693_v39, %s8243_s14  ;;  %6054 = vst.msk [vmem:[%s12230_s4 + $0x18] sm:$0xff] %vm85_vm0, %v5936_v37  ;;  %v5928_v4 = vadd.f32 %v12019_v1, %v5927_v20 }
 0x93f   :  { %7689 = vrot.lane.b32.xlu1 %v7688_v47, %s8243_s14  ;;  %6052 = vst.msk [vmem:[%s12230_s4 + $0x8] sm:$0xff] %vm85_vm0, %v5928_v4  ;;  %s6090_s14 = sshll.u32 %s8244_s13, 4  ;;  %s6091_s14 = int_to_ptr.vmem [resolvable:$true] %s6090_s14 }
 0x940   :  { %s8214_s15 = scalar_lea.vmem %s6091_s14, 16384  ;;  %p8219_p1 = scmp.lt.s32.totalorder %s6091_s14, %s6091_s14 }
 0x941   :  { %p8215_p0 = scmp.ne.s32.totalorder %s6091_s14, %s8214_s15  ;;  %p8220_p2 = scmp.lt.s32.totalorder %s8214_s15, %s8214_s15 }
 0x942   :  { %v7118_v50 = vpop.f32.mrf.mxu1 }
 0x943   :  { %v5949_v35 = vadd.f32 %v7118_v50, %v12019_v1  ;;  %p8221_p3 = por %p8220_p2, %p8219_p1 }
 0x944   :  { %v5940_v41 = vpop.f32.mrf.mxu1 }
 0x945   :  { %6057 = vst.msk [vmem:[%s12230_s4 + $0x30] sm:$0xff] %vm85_vm0, %v5949_v35  ;;  %v5941_v13 = vadd.f32 %v12019_v1, %v5940_v41  ;;  %p8222_p4 = pnand %p8221_p3, %p8215_p0 }
 0x946   :  { %v7119_v48 = vpop.f32.mrf.mxu1 }
 0x947   :  { %6055 = vst.msk [vmem:[%s12230_s4 + $0x20] sm:$0xff] %vm85_vm0, %v5941_v13  ;;  %v5952_v62 = vadd.f32 %v7119_v48, %v12019_v1 }
 0x948   :  { %v5943_v19 = vpop.f32.mrf.mxu1 }
 0x949   :  { %6058 = vst.msk [vmem:[%s12230_s4 + $0x38] sm:$0xff] %vm85_vm0, %v5952_v62  ;;  %v5944_v22 = vadd.f32 %v12019_v1, %v5943_v19 }
 0x94b   :  { %6056 = vst.msk [vmem:[%s12230_s4 + $0x28] sm:$0xff] %vm85_vm0, %v5944_v22 }
 0x94e   :  { %v7122_v57 = vpop.f32.mrf.mxu1 }
 0x94f   :  { %v5965_v38 = vadd.f32 %v7122_v57, %v12019_v1 }
 0x950   :  { %v5956_v61 = vpop.f32.mrf.mxu1 }
 0x951   :  { %6061 = vst.msk [vmem:[%s12230_s4 + $0x50] sm:$0xff] %vm85_vm0, %v5965_v38  ;;  %v5957_v9 = vadd.f32 %v12019_v1, %v5956_v61 }
 0x952   :  { %v7123_v46 = vpop.f32.mrf.mxu1 }
 0x953   :  { %6059 = vst.msk [vmem:[%s12230_s4 + $0x40] sm:$0xff] %vm85_vm0, %v5957_v9  ;;  %v5968_v0 = vadd.f32 %v7123_v46, %v12019_v1 }
 0x954   :  { %v5959_v8 = vpop.f32.mrf.mxu1 }
 0x955   :  { %6062 = vst.msk [vmem:[%s12230_s4 + $0x58] sm:$0xff] %vm85_vm0, %v5968_v0  ;;  %v5960_v3 = vadd.f32 %v12019_v1, %v5959_v8 }
 0x957   :  { %6060 = vst.msk [vmem:[%s12230_s4 + $0x48] sm:$0xff] %vm85_vm0, %v5960_v3 }
 0x95a   :  { %v7126_v54 = vpop.f32.mrf.mxu1 }
 0x95b   :  { %v5981_v51 = vadd.f32 %v7126_v54, %v12019_v1 }
 0x95c   :  { %v5972_v45 = vpop.f32.mrf.mxu1 }
 0x95d   :  { %6065 = vst.msk [vmem:[%s12230_s4 + $0x70] sm:$0xff] %vm85_vm0, %v5981_v51  ;;  %v5973_v42 = vadd.f32 %v12019_v1, %v5972_v45 }
 0x95e   :  { %v7127_v53 = vpop.f32.mrf.mxu1 }
 0x95f   :  { %6063 = vst.msk [vmem:[%s12230_s4 + $0x60] sm:$0xff] %vm85_vm0, %v5973_v42  ;;  %v5984_v28 = vadd.f32 %v7127_v53, %v12019_v1 }
 0x960   :  { %v5975_v33 = vpop.f32.mrf.mxu1 }
 0x961   :  { %6066 = vst.msk [vmem:[%s12230_s4 + $0x78] sm:$0xff] %vm85_vm0, %v5984_v28  ;;  %v5976_v56 = vadd.f32 %v12019_v1, %v5975_v33 }
 0x963   :  { %6064 = vst.msk [vmem:[%s12230_s4 + $0x68] sm:$0xff] %vm85_vm0, %v5976_v56 }
 0x966   :  { %v7645_v59 = vpop.permute.xlu0 %7644 }
 0x967   :  { %v7647_v25 = vunpack.i.h.bf16 %v7645_v59  ;;  %v7646_v44 = vunpack.i.l.bf16 %v7645_v59 }
 0x968   :  { %v7640_v15 = vpop.permute.xlu1 %7639 }
 0x969   :  { %v7642_v58 = vunpack.i.h.bf16 %v7640_v15  ;;  %v7641_v5 = vunpack.i.l.bf16 %v7640_v15  ;;  %v5732_v11 = vsel %vm691_vm1, %v11999_v43, %v7647_v25  ;;  %v5731_v12 = vsel %vm691_vm1, %v11995_v14, %v7646_v44 }
 0x96b   :  { %v5729_v16 = vsel %vm691_vm1, %v11997_v26, %v7641_v5  ;;  %v5730_v32 = vsel %vm691_vm1, %v12001_v31, %v7642_v58 }
 0x99e   :  { %v7655_v63 = vpop.permute.xlu0 %7654 }
 0x99f   :  { %v7656_v30 = vunpack.i.l.bf16 %v7655_v63  ;;  %v7657_v24 = vunpack.i.h.bf16 %v7655_v63 }
 0x9a0   :  { %v7650_v29 = vpop.permute.xlu1 %7649  ;;  %v7130_v34 = vpop.f32.mrf.mxu1 }
 0x9a1   :  { %v7652_v10 = vunpack.i.h.bf16 %v7650_v29  ;;  %v7651_v6 = vunpack.i.l.bf16 %v7650_v29  ;;  %v5997_v7 = vadd.f32 %v7130_v34, %v12019_v1  ;;  %v5764_v18 = vsel %vm5737_vm3, %v5731_v12, %v7656_v30 }
 0x9a2   :  { %v5988_v2 = vpop.f32.mrf.mxu1  ;;  %v5765_v14 = vsel %vm5737_vm3, %v5732_v11, %v7657_v24 }
 0x9a3   :  { %v7665_v27 = vpop.permute.xlu0 %7664  ;;  %6069 = vst.msk [vmem:[%s12230_s4 + $0x90] sm:$0xff] %vm85_vm0, %v5997_v7  ;;  %v5989_v43 = vadd.f32 %v12019_v1, %v5988_v2  ;;  %v5763_v39 = vsel %vm5737_vm3, %v5730_v32, %v7652_v10  ;;  %v5762_v37 = vsel %vm5737_vm3, %v5729_v16, %v7651_v6 }
 0x9a4   :  { %v7667_v21 = vunpack.i.h.bf16 %v7665_v27  ;;  %v7666_v49 = vunpack.i.l.bf16 %v7665_v27  ;;  %v7131_v17 = vpop.f32.mrf.mxu1 }
 0x9a5   :  { %v7660_v55 = vpop.permute.xlu1 %7659  ;;  %6067 = vst.msk [vmem:[%s12230_s4 + $0x80] sm:$0xff] %vm85_vm0, %v5989_v43  ;;  %v6000_v20 = vadd.f32 %v7131_v17, %v12019_v1 }
 0x9a6   :  { %v7662_v60 = vunpack.i.h.bf16 %v7660_v55  ;;  %v7661_v26 = vunpack.i.l.bf16 %v7660_v55  ;;  %v5797_v31 = vsel %vm5770_vm4, %v5764_v18, %v7666_v49  ;;  %v5798_v47 = vsel %vm5770_vm4, %v5765_v14, %v7667_v21  ;;  %v5991_v50 = vpop.f32.mrf.mxu1 }
 0x9a7   :  { %v7675_v4 = vpop.permute.xlu0 %7674  ;;  %6070 = vst.msk [vmem:[%s12230_s4 + $0x98] sm:$0xff] %vm85_vm0, %v6000_v20  ;;  %v5992_v48 = vadd.f32 %v12019_v1, %v5991_v50  ;;  %v5816_v19 = vpack.c.bf16 %v5798_v47, %v5797_v31 }
 0x9a8   :  { %v5796_v35 = vsel %vm5770_vm4, %v5763_v39, %v7662_v60  ;;  %v5795_v41 = vsel %vm5770_vm4, %v5762_v37, %v7661_v26  ;;  %v7677_v57 = vunpack.i.h.bf16 %v7675_v4  ;;  %v7676_v38 = vunpack.i.l.bf16 %v7675_v4 }
 0x9a9   :  { %v5815_v13 = vpack.c.bf16 %v5796_v35, %v5795_v41  ;;  %v7670_v62 = vpop.permute.xlu1 %7669  ;;  %6068 = vst.msk [vmem:[%s12230_s4 + $0x88] sm:$0xff] %vm85_vm0, %v5992_v48 }
 0x9aa   :  { %v7672_v61 = vunpack.i.h.bf16 %v7670_v62  ;;  %v7671_v9 = vunpack.i.l.bf16 %v7670_v62  ;;  %v5736_v28 = vsel %vm691_vm1, %v12007_v40, %v7677_v57  ;;  %v5735_v33 = vsel %vm691_vm1, %v12003_v52, %v7676_v38 }
 0x9ab   :  { %v7685_v22 = vpop.permute.xlu0 %7684  ;;  %7136 = vmatprep.mubr.msk.bf16.mxu1 %vm85_vm0, %v5815_v13 }
 0x9ac   :  { %7137 = vmatmul.mubr.msk.bf16.gmra.mxu1 %vm85_vm0, %v5816_v19  ;;  %v7686_v46 = vunpack.i.l.bf16 %v7685_v22  ;;  %v7134_v8 = vpop.f32.mrf.mxu1  ;;  %v7687_v3 = vunpack.i.h.bf16 %v7685_v22  ;;  %v5734_v15 = vsel %vm691_vm1, %v12009_v23, %v7672_v61  ;;  %v5733_v63 = vsel %vm691_vm1, %v12005_v36, %v7671_v9 }
 0x9ad   :  { %v7680_v0 = vpop.permute.xlu1 %7679  ;;  %v6013_v45 = vadd.f32 %v7134_v8, %v12019_v1 }
 0x9ae   :  { %v7681_v54 = vunpack.i.l.bf16 %v7680_v0  ;;  %v7682_v51 = vunpack.i.h.bf16 %v7680_v0  ;;  %v6004_v53 = vpop.f32.mrf.mxu1  ;;  %v5768_v25 = vsel %vm5737_vm3, %v5735_v33, %v7686_v46  ;;  %v5769_v52 = vsel %vm5737_vm3, %v5736_v28, %v7687_v3 }
 0x9af   :  { %v7695_v42 = vpop.permute.xlu0 %7694  ;;  %6073 = vst.msk [vmem:[%s12230_s4 + $0xb0] sm:$0xff] %vm85_vm0, %v6013_v45  ;;  %v6005_v40 = vadd.f32 %v12019_v1, %v6004_v53 }
 0x9b0   :  { %v7697_v56 = vunpack.i.h.bf16 %v7695_v42  ;;  %v7696_v59 = vunpack.i.l.bf16 %v7695_v42  ;;  %v7135_v58 = vpop.f32.mrf.mxu1  ;;  %v5766_v5 = vsel %vm5737_vm3, %v5733_v63, %v7681_v54  ;;  %v5767_v29 = vsel %vm5737_vm3, %v5734_v15, %v7682_v51 }
 0x9b1   :  { %v7690_v44 = vpop.permute.xlu1 %7689  ;;  %6071 = vst.msk [vmem:[%s12230_s4 + $0xa0] sm:$0xff] %vm85_vm0, %v6005_v40  ;;  %v6016_v24 = vadd.f32 %v7135_v58, %v12019_v1 }
 0x9b2   :  { %v7692_v30 = vunpack.i.h.bf16 %v7690_v44  ;;  %v7691_v23 = vunpack.i.l.bf16 %v7690_v44  ;;  %v5801_v36 = vsel %vm5770_vm4, %v5768_v25, %v7696_v59  ;;  %v5802_v34 = vsel %vm5770_vm4, %v5769_v52, %v7697_v56  ;;  %v6007_v10 = vpop.f32.mrf.mxu1 }
 0x9b3   :  { %v6008_v27 = vadd.f32 %v12019_v1, %v6007_v10  ;;  %6074 = vst.msk [vmem:[%s12230_s4 + $0xb8] sm:$0xff] %vm85_vm0, %v6016_v24  ;;  %v5818_v11 = vpack.c.bf16 %v5802_v34, %v5801_v36 }
 0x9b4   :  { %v5800_v6 = vsel %vm5770_vm4, %v5767_v29, %v7692_v30  ;;  %v5799_v7 = vsel %vm5770_vm4, %v5766_v5, %v7691_v23 }
 0x9b5   :  { %v5817_v2 = vpack.c.bf16 %v5800_v6, %v5799_v7  ;;  %6072 = vst.msk [vmem:[%s12230_s4 + $0xa8] sm:$0xff] %vm85_vm0, %v6008_v27 }
 0x9b7   :  { %7140 = vmatprep.mubr.msk.bf16.mxu1 %vm85_vm0, %v5817_v2 }
 0x9b8   :  { %7141 = vmatmul.mubr.msk.bf16.gmra.mxu1 %vm85_vm0, %v5818_v11 }
 0x9b9   :  { %8225 = shalt.err (!%p8222_p4)
}
 0x9ba   :  { %s8245_s16 = smov 128  }
 0x9bb   :  { %6096 = dma.vmem_to_hbm [thread:$0]  %s6091_s14, 16384, %s12231_s5, [#allocation3], %s8245_s16, %s8245_s16, %s8241_s12  }
 0xa6c   :  { %v7138_v12 = vpop.f32.mrf.mxu1 }
 0xa6d   :  { %v6029_v21 = vadd.f32 %v7138_v12, %v12019_v1 }
 0xa6e   :  { %v6020_v49 = vpop.f32.mrf.mxu1 }
 0xa6f   :  { %6077 = vst.msk [vmem:[%s12230_s4 + $0xd0] sm:$0xff] %vm85_vm0, %v6029_v21  ;;  %v6021_v16 = vadd.f32 %v12019_v1, %v6020_v49 }
 0xa70   :  { %v7139_v32 = vpop.f32.mrf.mxu1 }
 0xa71   :  { %6075 = vst.msk [vmem:[%s12230_s4 + $0xc0] sm:$0xff] %vm85_vm0, %v6021_v16  ;;  %v6032_v18 = vadd.f32 %v7139_v32, %v12019_v1 }
 0xa72   :  { %v6023_v43 = vpop.f32.mrf.mxu1 }
 0xa73   :  { %6078 = vst.msk [vmem:[%s12230_s4 + $0xd8] sm:$0xff] %vm85_vm0, %v6032_v18  ;;  %v6024_v55 = vadd.f32 %v12019_v1, %v6023_v43 }
 0xa75   :  { %6076 = vst.msk [vmem:[%s12230_s4 + $0xc8] sm:$0xff] %vm85_vm0, %v6024_v55 }
 0xa78   :  { %v7142_v17 = vpop.f32.mrf.mxu1 }
 0xa79   :  { %v6045_v14 = vadd.f32 %v7142_v17, %v12019_v1 }
 0xa7a   :  { %v6036_v39 = vpop.f32.mrf.mxu1 }
 0xa7b   :  { %6081 = vst.msk [vmem:[%s12230_s4 + $0xf0] sm:$0xff] %vm85_vm0, %v6045_v14  ;;  %v6037_v60 = vadd.f32 %v12019_v1, %v6036_v39 }
 0xa7c   :  { %v7143_v26 = vpop.f32.mrf.mxu1 }
 0xa7d   :  { %6079 = vst.msk [vmem:[%s12230_s4 + $0xe0] sm:$0xff] %vm85_vm0, %v6037_v60  ;;  %v6048_v37 = vadd.f32 %v7143_v26, %v12019_v1 }
 0xa7e   :  { %v6039_v31 = vpop.f32.mrf.mxu1 }
 0xa7f   :  { %6082 = vst.msk [vmem:[%s12230_s4 + $0xf8] sm:$0xff] %vm85_vm0, %v6048_v37  ;;  %v6040_v47 = vadd.f32 %v12019_v1, %v6039_v31 }
 0xa81   :  { %6080 = vst.msk [vmem:[%s12230_s4 + $0xe8] sm:$0xff] %vm85_vm0, %v6040_v47 }
 0xa82   :  { %8234 = dma.done.wait [#allocation3], 16384  }
 0xa83   :  { %8235 = vsyncadd [#allocation3], 4294950912 }
 0xa84   :  { %6102 = vsyncpa [#allocation3], 1 }

</bundles_post_ra>
